<compile_context>
chip_gen: v6e
topology: v6e:2x2x1
jax: 0.10.0
libtpu: 0.0.40
codegen_flags: <defaults>
</compile_context>

<pallas_src>
import functools
import math

import numpy as np
import jax
import jax.numpy as jnp
from jax import lax
from jax.experimental import pallas as pl
from jax.experimental.pallas import tpu as pltpu


# ----------------------------------------------------------------------------
# Fused decoder kernel (one grid step == one batch element)
# ----------------------------------------------------------------------------
def _reconstructor_kernel(tgt_in_ref, h_ref, p_ref, out_ref, attn_scratch,
                          *, nhead, eps, layout, d_model):
  f32 = jnp.float32
  D = d_model
  dh = D // nhead
  scale = 1.0 / math.sqrt(dh)
  t_pad = tgt_in_ref.shape[0]

  def pslab(name):
    off, nr, nc = layout[name]                       # static python ints
    return p_ref[off:off + nr, :nc]

  def layer_norm(z, g, b):
    mean = jnp.mean(z, axis=-1, keepdims=True)
    zc = z - mean
    var = jnp.mean(zc * zc, axis=-1, keepdims=True)
    return zc * lax.rsqrt(var + eps) * g + b

  def softmax_lastdim(s):
    s = s - jnp.max(s, axis=-1, keepdims=True)
    p = jnp.exp(s)
    return p * pl.reciprocal(jnp.sum(p, axis=-1, keepdims=True), approx=True)

  def attn_block(q, k, v, wo, bo, mask_add):
    # Per-head QK^T / softmax / PV; head outputs land in a (Lq, D) VMEM scratch
    # at static lane offsets, then ONE full-D matmul against Wo.
    for hh in range(nhead):
      lo = hh * dh
      qh = q[:, lo:lo + dh]
      kh = k[:, lo:lo + dh]
      vh = v[:, lo:lo + dh]
      s = lax.dot_general(qh, kh, (((1,), (1,)), ((), ())),
                          preferred_element_type=f32) * scale      # (Lq, Lk)
      if mask_add is not None:
        s = s + mask_add
      p = softmax_lastdim(s)
      attn_scratch[:, lo:lo + dh] = jnp.dot(p, vh, preferred_element_type=f32)
    return jnp.dot(attn_scratch[...], wo, preferred_element_type=f32) + bo

  # ---- embeddings with fused positional-encoding add ----
  memory = (jnp.dot(h_ref[...], pslab("Wm"), preferred_element_type=f32)
            + pslab("bm") + pslab("pe_m"))                         # (S, D)
  tgt = (jnp.dot(tgt_in_ref[...], pslab("Wt"), preferred_element_type=f32)
         + pslab("bt") + pslab("pe_t"))                            # (T_pad, D)

  # additive causal mask, built once (== generate_square_subsequent_mask)
  row = lax.broadcasted_iota(jnp.int32, (t_pad, t_pad), 0)
  col = lax.broadcasted_iota(jnp.int32, (t_pad, t_pad), 1)
  mask_add = jnp.where(col <= row, 0.0, -1e30).astype(f32)         # (T_pad, T_pad)

  # ---- self-attention block (post-norm) ----
  qkv = (jnp.dot(tgt, pslab("sa_wqkv"), preferred_element_type=f32)
         + pslab("sa_bqkv"))                                       # (T_pad, 3D)
  a = attn_block(qkv[:, :D], qkv[:, D:2 * D], qkv[:, 2 * D:3 * D],
                 pslab("sa_wo"), pslab("sa_bo"), mask_add)
  tgt = layer_norm(tgt + a, pslab("ln1_g"), pslab("ln1_b"))

  # ---- cross-attention block (no mask) ----
  q = jnp.dot(tgt, pslab("ca_wq"), preferred_element_type=f32) + pslab("ca_bq")
  kv = (jnp.dot(memory, pslab("ca_wkv"), preferred_element_type=f32)
        + pslab("ca_bkv"))                                         # (S, 2D)
  a = attn_block(q, kv[:, :D], kv[:, D:2 * D],
                 pslab("ca_wo"), pslab("ca_bo"), None)
  tgt = layer_norm(tgt + a, pslab("ln2_g"), pslab("ln2_b"))

  # ---- feed-forward block (ReLU; dropout = identity in eval mode) ----
  ff = jnp.maximum(jnp.dot(tgt, pslab("w1"), preferred_element_type=f32)
                   + pslab("b1"), 0.0)
  ff = jnp.dot(ff, pslab("w2"), preferred_element_type=f32) + pslab("b2")
  tgt = layer_norm(tgt + ff, pslab("ln3_g"), pslab("ln3_b"))

  # ---- predict head: lane-dense (T_pad, 128) store ----
  out_ref[...] = (jnp.dot(tgt, pslab("wp_pad"), preferred_element_type=f32)
                  + pslab("bp_pad")).astype(out_ref.dtype)


# ----------------------------------------------------------------------------
# Host-side helpers (run eagerly, once)
# ----------------------------------------------------------------------------
def positional_encoding_1d(length, channels):
  """Exact numpy port of PositionalEncoding1D (interleaved sin/cos)."""
  ch = int(np.ceil(channels / 2) * 2)
  inv_freq = 1.0 / (10000.0 ** (np.arange(0, ch, 2, dtype=np.float32) / ch))
  pos = np.arange(length, dtype=np.float32)
  sin_inp = pos[:, None] * inv_freq[None, :]                       # (L, ch/2)
  emb = np.stack([np.sin(sin_inp), np.cos(sin_inp)], axis=-1).reshape(length, ch)
  return emb[:, :channels].astype(np.float32)                      # (L, channels)


def pack_params(params, *, d_model, dim_ff, t_pad, seq_mem, out_pad):
  """Pack every weight/bias/LN param + positional encodings into one (R, W)
  f32 slab (row offsets 8-aligned, all blocks start at lane 0).  Returns the
  slab (jnp array) and a static layout dict name -> (row_off, nrows, ncols)."""
  D = d_model
  width = max(3 * D, 2 * D, dim_ff, out_pad, 128)
  width = int(-(-width // 128) * 128)

  def as2d(a):
    a = np.asarray(a, np.float32)
    return a.reshape(1, -1) if a.ndim == 1 else a

  wp_pad = np.zeros((D, out_pad), np.float32)
  wp_pad[:, :4] = as2d(params["Wp"])
  bp_pad = np.zeros((out_pad,), np.float32)
  bp_pad[:4] = np.asarray(params["bp"], np.float32)

  entries = [
      ("pe_t", positional_encoding_1d(t_pad, D)),
      ("pe_m", positional_encoding_1d(seq_mem, D)),
      ("Wm", params["Wm"]), ("Wt", params["Wt"]),
      ("sa_wqkv", params["sa_wqkv"]), ("sa_wo", params["sa_wo"]),
      ("ca_wq", params["ca_wq"]), ("ca_wkv", params["ca_wkv"]),
      ("ca_wo", params["ca_wo"]),
      ("w1", params["w1"]), ("w2", params["w2"]),
      ("wp_pad", wp_pad),
      ("bm", params["bm"]), ("bt", params["bt"]),
      ("sa_bqkv", params["sa_bqkv"]), ("sa_bo", params["sa_bo"]),
      ("ca_bq", params["ca_bq"]), ("ca_bkv", params["ca_bkv"]),
      ("ca_bo", params["ca_bo"]),
      ("b1", params["b1"]), ("b2", params["b2"]),
      ("ln1_g", params["ln1_g"]), ("ln1_b", params["ln1_b"]),
      ("ln2_g", params["ln2_g"]), ("ln2_b", params["ln2_b"]),
      ("ln3_g", params["ln3_g"]), ("ln3_b", params["ln3_b"]),
      ("bp_pad", bp_pad),
  ]

  layout, blocks, r = {}, [], 0
  for name, a in entries:
    a = as2d(a)
    nr, nc = a.shape
    layout[name] = (r, nr, nc)
    nr_pad = int(-(-nr // 8) * 8)
    blk = np.zeros((nr_pad, width), np.float32)
    blk[:nr, :nc] = a
    blocks.append(blk)
    r += nr_pad
  slab = np.concatenate(blocks, axis=0)
  return jnp.asarray(slab), layout


def reconstructor_forward(x, h, slab, *, layout, nhead, d_model, t_pad, out_pad):
  """x: (B, T, 4) with T == 110 (mask size in the reference), h: (B, S, F)."""
  B, T, _ = x.shape
  S, F = h.shape[1], h.shape[2]

  # tgt input = cat([start=0.25, x], dim=1)[:, :-1], zero-padded to t_pad rows.
  start = jnp.full((B, 1, 4), 0.25, dtype=jnp.float32)
  tgt_in = jnp.concatenate([start, x.astype(jnp.float32)], axis=1)[:, :-1, :]
  tgt_in = jnp.pad(tgt_in, ((0, 0), (0, t_pad - T), (0, 0)))

  kernel = functools.partial(_reconstructor_kernel, nhead=nhead, eps=1e-5,
                             layout=layout, d_model=d_model)

  out = pl.pallas_call(
      kernel,
      out_shape=jax.ShapeDtypeStruct((B, t_pad, out_pad), jnp.float32),
      grid=(B,),
      in_specs=[
          pl.BlockSpec((None, t_pad, 4), lambda b: (b, 0, 0)),   # per-batch tgt
          pl.BlockSpec((None, S, F), lambda b: (b, 0, 0)),       # per-batch memory
          pl.BlockSpec(slab.shape, lambda b: (0, 0)),            # packed params (1 DMA)
      ],
      out_specs=pl.BlockSpec((None, t_pad, out_pad), lambda b: (b, 0, 0)),
      scratch_shapes=[pltpu.VMEM((t_pad, d_model), jnp.float32)],
      compiler_params=pltpu.CompilerParams(dimension_semantics=("parallel",)),
  )(tgt_in, h, slab)

  return out[:, :T, :4]


def make_params(key, *, h_feat, d_model, nhead, dim_ff):
  """Deterministic synthetic parameters; QKV / KV weights pre-concatenated."""
  ks = iter(jax.random.split(key, 32))

  def lin(din, dout):
    w = jax.random.normal(next(ks), (din, dout), jnp.float32) / math.sqrt(din)
    b = jax.random.normal(next(ks), (dout,), jnp.float32) * 0.01
    return w, b

  p = {}
  p["Wm"], p["bm"] = lin(h_feat, d_model)                  # embed_memory (LazyLinear)
  p["Wt"], p["bt"] = lin(4, d_model)                       # embed_tgt
  p["sa_wqkv"], p["sa_bqkv"] = lin(d_model, 3 * d_model)   # self-attn Q|K|V (concat)
  p["sa_wo"], p["sa_bo"] = lin(d_model, d_model)
  p["ca_wq"], p["ca_bq"] = lin(d_model, d_model)           # cross-attn Q
  p["ca_wkv"], p["ca_bkv"] = lin(d_model, 2 * d_model)     # cross-attn K|V (concat)
  p["ca_wo"], p["ca_bo"] = lin(d_model, d_model)
  p["w1"], p["b1"] = lin(d_model, dim_ff)                  # linear1
  p["w2"], p["b2"] = lin(dim_ff, d_model)                  # linear2
  for i in (1, 2, 3):                                      # norm1/2/3
    p[f"ln{i}_g"] = jnp.ones((d_model,), jnp.float32)
    p[f"ln{i}_b"] = jnp.zeros((d_model,), jnp.float32)
  p["Wp"], p["bp"] = lin(d_model, 4)                       # predict
  return p


if __name__ == "__main__":
  # T is forced to 110 by the hard-coded mask in the reference module.
  B, T, S_MEM, H_FEAT = 2, 110, 12, 8
  D_MODEL, NHEAD, DIM_FF = 32, 4, 64
  T_PAD = 112         # 110 rounded up to a sublane multiple of 8
  OUT_PAD = 128       # lane-dense predict head / output store

  key = jax.random.PRNGKey(0)
  kx, kh, kp = jax.random.split(key, 3)
  x = jax.random.normal(kx, (B, T, 4), jnp.float32)           # target tokens (4-dim)
  h = jax.random.normal(kh, (B, S_MEM, H_FEAT), jnp.float32)  # memory features

  params = make_params(kp, h_feat=H_FEAT, d_model=D_MODEL, nhead=NHEAD, dim_ff=DIM_FF)
  slab, layout = pack_params(params, d_model=D_MODEL, dim_ff=DIM_FF,
                             t_pad=T_PAD, seq_mem=S_MEM, out_pad=OUT_PAD)

  fwd = jax.jit(functools.partial(reconstructor_forward, layout=layout,
                                  nhead=NHEAD, d_model=D_MODEL,
                                  t_pad=T_PAD, out_pad=OUT_PAD))
  out = jax.block_until_ready(fwd(x, h, slab))
  assert out.shape == (B, T, 4), out.shape
  assert bool(jnp.all(jnp.isfinite(out)))
  print("KERNEL_OK")
</pallas_src>

<mosaic_0001>
module attributes {stable_mosaic.version = 11 : i64} {
  func.func @_reconstructor_kernel(%arg0: i32, %arg1: memref<1x112x4xf32, #tpu.memory_space<vmem>>, %arg2: memref<1x12x8xf32, #tpu.memory_space<vmem>>, %arg3: memref<560x128xf32, #tpu.memory_space<vmem>>, %arg4: memref<1x112x128xf32, #tpu.memory_space<vmem>>, %arg5: memref<112x32xf32, #tpu.memory_space<vmem>>) attributes {dimension_semantics = [#tpu.dimension_semantics<parallel>], iteration_bounds = array<i64: 2>, scalar_prefetch = 0 : i64, scratch_operands = 1 : i64, tpu.core_type = #tpu.core_type<tc>, window_params = [{transform_indices = @transform_0, window_bounds = array<i64: 1, 112, 4>}, {transform_indices = @transform_1, window_bounds = array<i64: 1, 12, 8>}, {pipeline_mode = #tpu.pipeline_mode<synchronous>, transform_indices = @transform_2, window_bounds = array<i64: 560, 128>}, {transform_indices = @transform_3, window_bounds = array<i64: 1, 112, 128>}]} {
    %c0 = arith.constant 0 : index
    %c0_0 = arith.constant 0 : index
    %c0_1 = arith.constant 0 : index
    %0 = vector.load %arg2[%c0, %c0_0, %c0_1] : memref<1x12x8xf32, #tpu.memory_space<vmem>>, vector<1x12x8xf32>
    %1 = vector.shape_cast %0 : vector<1x12x8xf32> to vector<12x8xf32>
    %c128 = arith.constant 128 : index
    %c0_2 = arith.constant 0 : index
    %2 = vector.load %arg3[%c128, %c0_2] : memref<560x128xf32, #tpu.memory_space<vmem>>, vector<8x32xf32>
    %cst = arith.constant dense<0.000000e+00> : vector<12x32xf32>
    %3 = tpu.matmul %1, %2, %cst {dimension_numbers = #tpu.dot_dimension_numbers<[1], [0], [0], [1], [0, 0, 1, 1], [], []>} : vector<12x8xf32>, vector<8x32xf32>, vector<12x32xf32> -> vector<12x32xf32>
    %c432 = arith.constant 432 : index
    %c0_3 = arith.constant 0 : index
    %4 = vector.load %arg3[%c432, %c0_3] : memref<560x128xf32, #tpu.memory_space<vmem>>, vector<1x32xf32>
    %5 = vector.broadcast %4 : vector<1x32xf32> to vector<12x32xf32>
    %6 = arith.addf %3, %5 : vector<12x32xf32>
    %c112 = arith.constant 112 : index
    %c0_4 = arith.constant 0 : index
    %7 = vector.load %arg3[%c112, %c0_4] : memref<560x128xf32, #tpu.memory_space<vmem>>, vector<12x32xf32>
    %8 = arith.addf %6, %7 : vector<12x32xf32>
    %c0_5 = arith.constant 0 : index
    %c0_6 = arith.constant 0 : index
    %c0_7 = arith.constant 0 : index
    %9 = vector.load %arg1[%c0_5, %c0_6, %c0_7] : memref<1x112x4xf32, #tpu.memory_space<vmem>>, vector<1x112x4xf32>
    %10 = vector.shape_cast %9 : vector<1x112x4xf32> to vector<112x4xf32>
    %c136 = arith.constant 136 : index
    %c0_8 = arith.constant 0 : index
    %11 = vector.load %arg3[%c136, %c0_8] : memref<560x128xf32, #tpu.memory_space<vmem>>, vector<4x32xf32>
    %cst_9 = arith.constant dense<0.000000e+00> : vector<112x32xf32>
    %12 = tpu.matmul %10, %11, %cst_9 {dimension_numbers = #tpu.dot_dimension_numbers<[1], [0], [0], [1], [0, 0, 1, 1], [], []>} : vector<112x4xf32>, vector<4x32xf32>, vector<112x32xf32> -> vector<112x32xf32>
    %c440 = arith.constant 440 : index
    %c0_10 = arith.constant 0 : index
    %13 = vector.load %arg3[%c440, %c0_10] : memref<560x128xf32, #tpu.memory_space<vmem>>, vector<1x32xf32>
    %14 = vector.broadcast %13 : vector<1x32xf32> to vector<112x32xf32>
    %15 = arith.addf %12, %14 : vector<112x32xf32>
    %c0_11 = arith.constant 0 : index
    %c0_12 = arith.constant 0 : index
    %16 = vector.load %arg3[%c0_11, %c0_12] : memref<560x128xf32, #tpu.memory_space<vmem>>, vector<112x32xf32>
    %17 = arith.addf %15, %16 : vector<112x32xf32>
    %18 = tpu.iota {dimensions = array<i32: 0>} : vector<112x112xi32>
    %19 = tpu.iota {dimensions = array<i32: 1>} : vector<112x112xi32>
    %20 = arith.cmpi sle, %19, %18 : vector<112x112xi32>
    %cst_13 = arith.constant 0.000000e+00 : f32
    %cst_14 = arith.constant -1.000000e+30 : f32
    %21 = vector.broadcast %cst_13 : f32 to vector<112x112xf32>
    %22 = vector.broadcast %cst_14 : f32 to vector<112x112xf32>
    %23 = arith.select %20, %21, %22 : vector<112x112xi1>, vector<112x112xf32>
    %c144 = arith.constant 144 : index
    %c0_15 = arith.constant 0 : index
    %24 = vector.load %arg3[%c144, %c0_15] : memref<560x128xf32, #tpu.memory_space<vmem>>, vector<32x96xf32>
    %cst_16 = arith.constant dense<0.000000e+00> : vector<112x96xf32>
    %25 = tpu.matmul %17, %24, %cst_16 {dimension_numbers = #tpu.dot_dimension_numbers<[1], [0], [0], [1], [0, 0, 1, 1], [], []>} : vector<112x32xf32>, vector<32x96xf32>, vector<112x96xf32> -> vector<112x96xf32>
    %c448 = arith.constant 448 : index
    %c0_17 = arith.constant 0 : index
    %26 = vector.load %arg3[%c448, %c0_17] : memref<560x128xf32, #tpu.memory_space<vmem>>, vector<1x96xf32>
    %27 = vector.broadcast %26 : vector<1x96xf32> to vector<112x96xf32>
    %28 = arith.addf %25, %27 : vector<112x96xf32>
    %29 = vector.extract_strided_slice %28 {offsets = [0, 0], sizes = [112, 32], strides = [1, 1]} : vector<112x96xf32> to vector<112x32xf32>
    %30 = vector.extract_strided_slice %28 {offsets = [0, 32], sizes = [112, 32], strides = [1, 1]} : vector<112x96xf32> to vector<112x32xf32>
    %31 = vector.extract_strided_slice %28 {offsets = [0, 64], sizes = [112, 32], strides = [1, 1]} : vector<112x96xf32> to vector<112x32xf32>
    %c176 = arith.constant 176 : index
    %c0_18 = arith.constant 0 : index
    %32 = vector.load %arg3[%c176, %c0_18] : memref<560x128xf32, #tpu.memory_space<vmem>>, vector<32x32xf32>
    %c456 = arith.constant 456 : index
    %c0_19 = arith.constant 0 : index
    %33 = vector.load %arg3[%c456, %c0_19] : memref<560x128xf32, #tpu.memory_space<vmem>>, vector<1x32xf32>
    %34 = vector.extract_strided_slice %29 {offsets = [0, 0], sizes = [112, 8], strides = [1, 1]} : vector<112x32xf32> to vector<112x8xf32>
    %35 = vector.extract_strided_slice %30 {offsets = [0, 0], sizes = [112, 8], strides = [1, 1]} : vector<112x32xf32> to vector<112x8xf32>
    %36 = vector.extract_strided_slice %31 {offsets = [0, 0], sizes = [112, 8], strides = [1, 1]} : vector<112x32xf32> to vector<112x8xf32>
    %cst_20 = arith.constant dense<0.000000e+00> : vector<112x112xf32>
    %37 = tpu.matmul %34, %35, %cst_20 {dimension_numbers = #tpu.dot_dimension_numbers<[1], [1], [0], [0], [0, 0, 1, 0], [], []>} : vector<112x8xf32>, vector<112x8xf32>, vector<112x112xf32> -> vector<112x112xf32>
    %cst_21 = arith.constant 0.353553385 : f32
    %38 = vector.broadcast %cst_21 : f32 to vector<112x112xf32>
    %39 = arith.mulf %37, %38 : vector<112x112xf32>
    %40 = arith.addf %39, %23 : vector<112x112xf32>
    %cst_22 = arith.constant dense<0xFF800000> : vector<112xf32>
    %41 = vector.multi_reduction <maximumf>, %40, %cst_22 [1] : vector<112x112xf32> to vector<112xf32>
    %42 = vector.shape_cast %41 : vector<112xf32> to vector<112x1xf32>
    %43 = vector.broadcast %42 : vector<112x1xf32> to vector<112x112xf32>
    %44 = arith.subf %40, %43 : vector<112x112xf32>
    %45 = math.exp %44 : vector<112x112xf32>
    %cst_23 = arith.constant dense<0.000000e+00> : vector<112xf32>
    %46 = vector.multi_reduction <add>, %45, %cst_23 [1] : vector<112x112xf32> to vector<112xf32>
    %47 = vector.shape_cast %46 : vector<112xf32> to vector<112x1xf32>
    %48 = tpu.reciprocal %47 {approx = true} : vector<112x1xf32> -> vector<112x1xf32>
    %49 = vector.broadcast %48 : vector<112x1xf32> to vector<112x112xf32>
    %50 = arith.mulf %45, %49 : vector<112x112xf32>
    %cst_24 = arith.constant dense<0.000000e+00> : vector<112x8xf32>
    %51 = tpu.matmul %50, %36, %cst_24 {dimension_numbers = #tpu.dot_dimension_numbers<[1], [0], [0], [1], [0, 0, 1, 1], [], []>} : vector<112x112xf32>, vector<112x8xf32>, vector<112x8xf32> -> vector<112x8xf32>
    %c0_25 = arith.constant 0 : index
    %c0_26 = arith.constant 0 : index
    %52 = vector.load %arg5[%c0_25, %c0_26] : memref<112x32xf32, #tpu.memory_space<vmem>>, vector<112x8xf32>
    tpu.vector_store %arg5[%c0_25, %c0_26], %51 {strides = array<i32>} : memref<112x32xf32, #tpu.memory_space<vmem>>, vector<112x8xf32>,
    %53 = vector.extract_strided_slice %29 {offsets = [0, 8], sizes = [112, 8], strides = [1, 1]} : vector<112x32xf32> to vector<112x8xf32>
    %54 = vector.extract_strided_slice %30 {offsets = [0, 8], sizes = [112, 8], strides = [1, 1]} : vector<112x32xf32> to vector<112x8xf32>
    %55 = vector.extract_strided_slice %31 {offsets = [0, 8], sizes = [112, 8], strides = [1, 1]} : vector<112x32xf32> to vector<112x8xf32>
    %cst_27 = arith.constant dense<0.000000e+00> : vector<112x112xf32>
    %56 = tpu.matmul %53, %54, %cst_27 {dimension_numbers = #tpu.dot_dimension_numbers<[1], [1], [0], [0], [0, 0, 1, 0], [], []>} : vector<112x8xf32>, vector<112x8xf32>, vector<112x112xf32> -> vector<112x112xf32>
    %cst_28 = arith.constant 0.353553385 : f32
    %57 = vector.broadcast %cst_28 : f32 to vector<112x112xf32>
    %58 = arith.mulf %56, %57 : vector<112x112xf32>
    %59 = arith.addf %58, %23 : vector<112x112xf32>
    %cst_29 = arith.constant dense<0xFF800000> : vector<112xf32>
    %60 = vector.multi_reduction <maximumf>, %59, %cst_29 [1] : vector<112x112xf32> to vector<112xf32>
    %61 = vector.shape_cast %60 : vector<112xf32> to vector<112x1xf32>
    %62 = vector.broadcast %61 : vector<112x1xf32> to vector<112x112xf32>
    %63 = arith.subf %59, %62 : vector<112x112xf32>
    %64 = math.exp %63 : vector<112x112xf32>
    %cst_30 = arith.constant dense<0.000000e+00> : vector<112xf32>
    %65 = vector.multi_reduction <add>, %64, %cst_30 [1] : vector<112x112xf32> to vector<112xf32>
    %66 = vector.shape_cast %65 : vector<112xf32> to vector<112x1xf32>
    %67 = tpu.reciprocal %66 {approx = true} : vector<112x1xf32> -> vector<112x1xf32>
    %68 = vector.broadcast %67 : vector<112x1xf32> to vector<112x112xf32>
    %69 = arith.mulf %64, %68 : vector<112x112xf32>
    %cst_31 = arith.constant dense<0.000000e+00> : vector<112x8xf32>
    %70 = tpu.matmul %69, %55, %cst_31 {dimension_numbers = #tpu.dot_dimension_numbers<[1], [0], [0], [1], [0, 0, 1, 1], [], []>} : vector<112x112xf32>, vector<112x8xf32>, vector<112x8xf32> -> vector<112x8xf32>
    %c0_32 = arith.constant 0 : index
    %c8 = arith.constant 8 : index
    %71 = vector.load %arg5[%c0_32, %c8] : memref<112x32xf32, #tpu.memory_space<vmem>>, vector<112x8xf32>
    tpu.vector_store %arg5[%c0_32, %c8], %70 {strides = array<i32>} : memref<112x32xf32, #tpu.memory_space<vmem>>, vector<112x8xf32>,
    %72 = vector.extract_strided_slice %29 {offsets = [0, 16], sizes = [112, 8], strides = [1, 1]} : vector<112x32xf32> to vector<112x8xf32>
    %73 = vector.extract_strided_slice %30 {offsets = [0, 16], sizes = [112, 8], strides = [1, 1]} : vector<112x32xf32> to vector<112x8xf32>
    %74 = vector.extract_strided_slice %31 {offsets = [0, 16], sizes = [112, 8], strides = [1, 1]} : vector<112x32xf32> to vector<112x8xf32>
    %cst_33 = arith.constant dense<0.000000e+00> : vector<112x112xf32>
    %75 = tpu.matmul %72, %73, %cst_33 {dimension_numbers = #tpu.dot_dimension_numbers<[1], [1], [0], [0], [0, 0, 1, 0], [], []>} : vector<112x8xf32>, vector<112x8xf32>, vector<112x112xf32> -> vector<112x112xf32>
    %cst_34 = arith.constant 0.353553385 : f32
    %76 = vector.broadcast %cst_34 : f32 to vector<112x112xf32>
    %77 = arith.mulf %75, %76 : vector<112x112xf32>
    %78 = arith.addf %77, %23 : vector<112x112xf32>
    %cst_35 = arith.constant dense<0xFF800000> : vector<112xf32>
    %79 = vector.multi_reduction <maximumf>, %78, %cst_35 [1] : vector<112x112xf32> to vector<112xf32>
    %80 = vector.shape_cast %79 : vector<112xf32> to vector<112x1xf32>
    %81 = vector.broadcast %80 : vector<112x1xf32> to vector<112x112xf32>
    %82 = arith.subf %78, %81 : vector<112x112xf32>
    %83 = math.exp %82 : vector<112x112xf32>
    %cst_36 = arith.constant dense<0.000000e+00> : vector<112xf32>
    %84 = vector.multi_reduction <add>, %83, %cst_36 [1] : vector<112x112xf32> to vector<112xf32>
    %85 = vector.shape_cast %84 : vector<112xf32> to vector<112x1xf32>
    %86 = tpu.reciprocal %85 {approx = true} : vector<112x1xf32> -> vector<112x1xf32>
    %87 = vector.broadcast %86 : vector<112x1xf32> to vector<112x112xf32>
    %88 = arith.mulf %83, %87 : vector<112x112xf32>
    %cst_37 = arith.constant dense<0.000000e+00> : vector<112x8xf32>
    %89 = tpu.matmul %88, %74, %cst_37 {dimension_numbers = #tpu.dot_dimension_numbers<[1], [0], [0], [1], [0, 0, 1, 1], [], []>} : vector<112x112xf32>, vector<112x8xf32>, vector<112x8xf32> -> vector<112x8xf32>
    %c0_38 = arith.constant 0 : index
    %c16 = arith.constant 16 : index
    %90 = vector.load %arg5[%c0_38, %c16] : memref<112x32xf32, #tpu.memory_space<vmem>>, vector<112x8xf32>
    tpu.vector_store %arg5[%c0_38, %c16], %89 {strides = array<i32>} : memref<112x32xf32, #tpu.memory_space<vmem>>, vector<112x8xf32>,
    %91 = vector.extract_strided_slice %29 {offsets = [0, 24], sizes = [112, 8], strides = [1, 1]} : vector<112x32xf32> to vector<112x8xf32>
    %92 = vector.extract_strided_slice %30 {offsets = [0, 24], sizes = [112, 8], strides = [1, 1]} : vector<112x32xf32> to vector<112x8xf32>
    %93 = vector.extract_strided_slice %31 {offsets = [0, 24], sizes = [112, 8], strides = [1, 1]} : vector<112x32xf32> to vector<112x8xf32>
    %cst_39 = arith.constant dense<0.000000e+00> : vector<112x112xf32>
    %94 = tpu.matmul %91, %92, %cst_39 {dimension_numbers = #tpu.dot_dimension_numbers<[1], [1], [0], [0], [0, 0, 1, 0], [], []>} : vector<112x8xf32>, vector<112x8xf32>, vector<112x112xf32> -> vector<112x112xf32>
    %cst_40 = arith.constant 0.353553385 : f32
    %95 = vector.broadcast %cst_40 : f32 to vector<112x112xf32>
    %96 = arith.mulf %94, %95 : vector<112x112xf32>
    %97 = arith.addf %96, %23 : vector<112x112xf32>
    %cst_41 = arith.constant dense<0xFF800000> : vector<112xf32>
    %98 = vector.multi_reduction <maximumf>, %97, %cst_41 [1] : vector<112x112xf32> to vector<112xf32>
    %99 = vector.shape_cast %98 : vector<112xf32> to vector<112x1xf32>
    %100 = vector.broadcast %99 : vector<112x1xf32> to vector<112x112xf32>
    %101 = arith.subf %97, %100 : vector<112x112xf32>
    %102 = math.exp %101 : vector<112x112xf32>
    %cst_42 = arith.constant dense<0.000000e+00> : vector<112xf32>
    %103 = vector.multi_reduction <add>, %102, %cst_42 [1] : vector<112x112xf32> to vector<112xf32>
    %104 = vector.shape_cast %103 : vector<112xf32> to vector<112x1xf32>
    %105 = tpu.reciprocal %104 {approx = true} : vector<112x1xf32> -> vector<112x1xf32>
    %106 = vector.broadcast %105 : vector<112x1xf32> to vector<112x112xf32>
    %107 = arith.mulf %102, %106 : vector<112x112xf32>
    %cst_43 = arith.constant dense<0.000000e+00> : vector<112x8xf32>
    %108 = tpu.matmul %107, %93, %cst_43 {dimension_numbers = #tpu.dot_dimension_numbers<[1], [0], [0], [1], [0, 0, 1, 1], [], []>} : vector<112x112xf32>, vector<112x8xf32>, vector<112x8xf32> -> vector<112x8xf32>
    %c0_44 = arith.constant 0 : index
    %c24 = arith.constant 24 : index
    %109 = vector.load %arg5[%c0_44, %c24] : memref<112x32xf32, #tpu.memory_space<vmem>>, vector<112x8xf32>
    tpu.vector_store %arg5[%c0_44, %c24], %108 {strides = array<i32>} : memref<112x32xf32, #tpu.memory_space<vmem>>, vector<112x8xf32>,
    %c0_45 = arith.constant 0 : index
    %c0_46 = arith.constant 0 : index
    %110 = vector.load %arg5[%c0_45, %c0_46] : memref<112x32xf32, #tpu.memory_space<vmem>>, vector<112x32xf32>
    %cst_47 = arith.constant dense<0.000000e+00> : vector<112x32xf32>
    %111 = tpu.matmul %110, %32, %cst_47 {dimension_numbers = #tpu.dot_dimension_numbers<[1], [0], [0], [1], [0, 0, 1, 1], [], []>} : vector<112x32xf32>, vector<32x32xf32>, vector<112x32xf32> -> vector<112x32xf32>
    %112 = vector.broadcast %33 : vector<1x32xf32> to vector<112x32xf32>
    %113 = arith.addf %111, %112 : vector<112x32xf32>
    %114 = arith.addf %17, %113 : vector<112x32xf32>
    %c504 = arith.constant 504 : index
    %c0_48 = arith.constant 0 : index
    %115 = vector.load %arg3[%c504, %c0_48] : memref<560x128xf32, #tpu.memory_space<vmem>>, vector<1x32xf32>
    %c512 = arith.constant 512 : index
    %c0_49 = arith.constant 0 : index
    %116 = vector.load %arg3[%c512, %c0_49] : memref<560x128xf32, #tpu.memory_space<vmem>>, vector<1x32xf32>
    %cst_50 = arith.constant dense<0.000000e+00> : vector<112xf32>
    %117 = vector.multi_reduction <add>, %114, %cst_50 [1] : vector<112x32xf32> to vector<112xf32>
    %118 = vector.shape_cast %117 : vector<112xf32> to vector<112x1xf32>
    %cst_51 = arith.constant 3.200000e+01 : f32
    %119 = vector.broadcast %cst_51 : f32 to vector<112x1xf32>
    %120 = arith.divf %118, %119 : vector<112x1xf32>
    %121 = vector.broadcast %120 : vector<112x1xf32> to vector<112x32xf32>
    %122 = arith.subf %114, %121 : vector<112x32xf32>
    %123 = arith.mulf %122, %122 : vector<112x32xf32>
    %cst_52 = arith.constant dense<0.000000e+00> : vector<112xf32>
    %124 = vector.multi_reduction <add>, %123, %cst_52 [1] : vector<112x32xf32> to vector<112xf32>
    %125 = vector.shape_cast %124 : vector<112xf32> to vector<112x1xf32>
    %cst_53 = arith.constant 3.200000e+01 : f32
    %126 = vector.broadcast %cst_53 : f32 to vector<112x1xf32>
    %127 = arith.divf %125, %126 : vector<112x1xf32>
    %cst_54 = arith.constant 9.99999974E-6 : f32
    %128 = vector.broadcast %cst_54 : f32 to vector<112x1xf32>
    %129 = arith.addf %127, %128 : vector<112x1xf32>
    %130 = math.rsqrt %129 : vector<112x1xf32>
    %131 = vector.broadcast %130 : vector<112x1xf32> to vector<112x32xf32>
    %132 = arith.mulf %122, %131 : vector<112x32xf32>
    %133 = vector.broadcast %115 : vector<1x32xf32> to vector<112x32xf32>
    %134 = arith.mulf %132, %133 : vector<112x32xf32>
    %135 = vector.broadcast %116 : vector<1x32xf32> to vector<112x32xf32>
    %136 = arith.addf %134, %135 : vector<112x32xf32>
    %c208 = arith.constant 208 : index
    %c0_55 = arith.constant 0 : index
    %137 = vector.load %arg3[%c208, %c0_55] : memref<560x128xf32, #tpu.memory_space<vmem>>, vector<32x32xf32>
    %cst_56 = arith.constant dense<0.000000e+00> : vector<112x32xf32>
    %138 = tpu.matmul %136, %137, %cst_56 {dimension_numbers = #tpu.dot_dimension_numbers<[1], [0], [0], [1], [0, 0, 1, 1], [], []>} : vector<112x32xf32>, vector<32x32xf32>, vector<112x32xf32> -> vector<112x32xf32>
    %c464 = arith.constant 464 : index
    %c0_57 = arith.constant 0 : index
    %139 = vector.load %arg3[%c464, %c0_57] : memref<560x128xf32, #tpu.memory_space<vmem>>, vector<1x32xf32>
    %140 = vector.broadcast %139 : vector<1x32xf32> to vector<112x32xf32>
    %141 = arith.addf %138, %140 : vector<112x32xf32>
    %c240 = arith.constant 240 : index
    %c0_58 = arith.constant 0 : index
    %142 = vector.load %arg3[%c240, %c0_58] : memref<560x128xf32, #tpu.memory_space<vmem>>, vector<32x64xf32>
    %cst_59 = arith.constant dense<0.000000e+00> : vector<12x64xf32>
    %143 = tpu.matmul %8, %142, %cst_59 {dimension_numbers = #tpu.dot_dimension_numbers<[1], [0], [0], [1], [0, 0, 1, 1], [], []>} : vector<12x32xf32>, vector<32x64xf32>, vector<12x64xf32> -> vector<12x64xf32>
    %c472 = arith.constant 472 : index
    %c0_60 = arith.constant 0 : index
    %144 = vector.load %arg3[%c472, %c0_60] : memref<560x128xf32, #tpu.memory_space<vmem>>, vector<1x64xf32>
    %145 = vector.broadcast %144 : vector<1x64xf32> to vector<12x64xf32>
    %146 = arith.addf %143, %145 : vector<12x64xf32>
    %147 = vector.extract_strided_slice %146 {offsets = [0, 0], sizes = [12, 32], strides = [1, 1]} : vector<12x64xf32> to vector<12x32xf32>
    %148 = vector.extract_strided_slice %146 {offsets = [0, 32], sizes = [12, 32], strides = [1, 1]} : vector<12x64xf32> to vector<12x32xf32>
    %c272 = arith.constant 272 : index
    %c0_61 = arith.constant 0 : index
    %149 = vector.load %arg3[%c272, %c0_61] : memref<560x128xf32, #tpu.memory_space<vmem>>, vector<32x32xf32>
    %c480 = arith.constant 480 : index
    %c0_62 = arith.constant 0 : index
    %150 = vector.load %arg3[%c480, %c0_62] : memref<560x128xf32, #tpu.memory_space<vmem>>, vector<1x32xf32>
    %151 = vector.extract_strided_slice %141 {offsets = [0, 0], sizes = [112, 8], strides = [1, 1]} : vector<112x32xf32> to vector<112x8xf32>
    %152 = vector.extract_strided_slice %147 {offsets = [0, 0], sizes = [12, 8], strides = [1, 1]} : vector<12x32xf32> to vector<12x8xf32>
    %153 = vector.extract_strided_slice %148 {offsets = [0, 0], sizes = [12, 8], strides = [1, 1]} : vector<12x32xf32> to vector<12x8xf32>
    %cst_63 = arith.constant dense<0.000000e+00> : vector<112x12xf32>
    %154 = tpu.matmul %151, %152, %cst_63 {dimension_numbers = #tpu.dot_dimension_numbers<[1], [1], [0], [0], [0, 0, 1, 0], [], []>} : vector<112x8xf32>, vector<12x8xf32>, vector<112x12xf32> -> vector<112x12xf32>
    %cst_64 = arith.constant 0.353553385 : f32
    %155 = vector.broadcast %cst_64 : f32 to vector<112x12xf32>
    %156 = arith.mulf %154, %155 : vector<112x12xf32>
    %cst_65 = arith.constant dense<0xFF800000> : vector<112xf32>
    %157 = vector.multi_reduction <maximumf>, %156, %cst_65 [1] : vector<112x12xf32> to vector<112xf32>
    %158 = vector.shape_cast %157 : vector<112xf32> to vector<112x1xf32>
    %159 = vector.broadcast %158 : vector<112x1xf32> to vector<112x12xf32>
    %160 = arith.subf %156, %159 : vector<112x12xf32>
    %161 = math.exp %160 : vector<112x12xf32>
    %cst_66 = arith.constant dense<0.000000e+00> : vector<112xf32>
    %162 = vector.multi_reduction <add>, %161, %cst_66 [1] : vector<112x12xf32> to vector<112xf32>
    %163 = vector.shape_cast %162 : vector<112xf32> to vector<112x1xf32>
    %164 = tpu.reciprocal %163 {approx = true} : vector<112x1xf32> -> vector<112x1xf32>
    %165 = vector.broadcast %164 : vector<112x1xf32> to vector<112x12xf32>
    %166 = arith.mulf %161, %165 : vector<112x12xf32>
    %cst_67 = arith.constant dense<0.000000e+00> : vector<112x8xf32>
    %167 = tpu.matmul %166, %153, %cst_67 {dimension_numbers = #tpu.dot_dimension_numbers<[1], [0], [0], [1], [0, 0, 1, 1], [], []>} : vector<112x12xf32>, vector<12x8xf32>, vector<112x8xf32> -> vector<112x8xf32>
    %c0_68 = arith.constant 0 : index
    %c0_69 = arith.constant 0 : index
    %168 = vector.load %arg5[%c0_68, %c0_69] : memref<112x32xf32, #tpu.memory_space<vmem>>, vector<112x8xf32>
    tpu.vector_store %arg5[%c0_68, %c0_69], %167 {strides = array<i32>} : memref<112x32xf32, #tpu.memory_space<vmem>>, vector<112x8xf32>,
    %169 = vector.extract_strided_slice %141 {offsets = [0, 8], sizes = [112, 8], strides = [1, 1]} : vector<112x32xf32> to vector<112x8xf32>
    %170 = vector.extract_strided_slice %147 {offsets = [0, 8], sizes = [12, 8], strides = [1, 1]} : vector<12x32xf32> to vector<12x8xf32>
    %171 = vector.extract_strided_slice %148 {offsets = [0, 8], sizes = [12, 8], strides = [1, 1]} : vector<12x32xf32> to vector<12x8xf32>
    %cst_70 = arith.constant dense<0.000000e+00> : vector<112x12xf32>
    %172 = tpu.matmul %169, %170, %cst_70 {dimension_numbers = #tpu.dot_dimension_numbers<[1], [1], [0], [0], [0, 0, 1, 0], [], []>} : vector<112x8xf32>, vector<12x8xf32>, vector<112x12xf32> -> vector<112x12xf32>
    %cst_71 = arith.constant 0.353553385 : f32
    %173 = vector.broadcast %cst_71 : f32 to vector<112x12xf32>
    %174 = arith.mulf %172, %173 : vector<112x12xf32>
    %cst_72 = arith.constant dense<0xFF800000> : vector<112xf32>
    %175 = vector.multi_reduction <maximumf>, %174, %cst_72 [1] : vector<112x12xf32> to vector<112xf32>
    %176 = vector.shape_cast %175 : vector<112xf32> to vector<112x1xf32>
    %177 = vector.broadcast %176 : vector<112x1xf32> to vector<112x12xf32>
    %178 = arith.subf %174, %177 : vector<112x12xf32>
    %179 = math.exp %178 : vector<112x12xf32>
    %cst_73 = arith.constant dense<0.000000e+00> : vector<112xf32>
    %180 = vector.multi_reduction <add>, %179, %cst_73 [1] : vector<112x12xf32> to vector<112xf32>
    %181 = vector.shape_cast %180 : vector<112xf32> to vector<112x1xf32>
    %182 = tpu.reciprocal %181 {approx = true} : vector<112x1xf32> -> vector<112x1xf32>
    %183 = vector.broadcast %182 : vector<112x1xf32> to vector<112x12xf32>
    %184 = arith.mulf %179, %183 : vector<112x12xf32>
    %cst_74 = arith.constant dense<0.000000e+00> : vector<112x8xf32>
    %185 = tpu.matmul %184, %171, %cst_74 {dimension_numbers = #tpu.dot_dimension_numbers<[1], [0], [0], [1], [0, 0, 1, 1], [], []>} : vector<112x12xf32>, vector<12x8xf32>, vector<112x8xf32> -> vector<112x8xf32>
    %c0_75 = arith.constant 0 : index
    %c8_76 = arith.constant 8 : index
    %186 = vector.load %arg5[%c0_75, %c8_76] : memref<112x32xf32, #tpu.memory_space<vmem>>, vector<112x8xf32>
    tpu.vector_store %arg5[%c0_75, %c8_76], %185 {strides = array<i32>} : memref<112x32xf32, #tpu.memory_space<vmem>>, vector<112x8xf32>,
    %187 = vector.extract_strided_slice %141 {offsets = [0, 16], sizes = [112, 8], strides = [1, 1]} : vector<112x32xf32> to vector<112x8xf32>
    %188 = vector.extract_strided_slice %147 {offsets = [0, 16], sizes = [12, 8], strides = [1, 1]} : vector<12x32xf32> to vector<12x8xf32>
    %189 = vector.extract_strided_slice %148 {offsets = [0, 16], sizes = [12, 8], strides = [1, 1]} : vector<12x32xf32> to vector<12x8xf32>
    %cst_77 = arith.constant dense<0.000000e+00> : vector<112x12xf32>
    %190 = tpu.matmul %187, %188, %cst_77 {dimension_numbers = #tpu.dot_dimension_numbers<[1], [1], [0], [0], [0, 0, 1, 0], [], []>} : vector<112x8xf32>, vector<12x8xf32>, vector<112x12xf32> -> vector<112x12xf32>
    %cst_78 = arith.constant 0.353553385 : f32
    %191 = vector.broadcast %cst_78 : f32 to vector<112x12xf32>
    %192 = arith.mulf %190, %191 : vector<112x12xf32>
    %cst_79 = arith.constant dense<0xFF800000> : vector<112xf32>
    %193 = vector.multi_reduction <maximumf>, %192, %cst_79 [1] : vector<112x12xf32> to vector<112xf32>
    %194 = vector.shape_cast %193 : vector<112xf32> to vector<112x1xf32>
    %195 = vector.broadcast %194 : vector<112x1xf32> to vector<112x12xf32>
    %196 = arith.subf %192, %195 : vector<112x12xf32>
    %197 = math.exp %196 : vector<112x12xf32>
    %cst_80 = arith.constant dense<0.000000e+00> : vector<112xf32>
    %198 = vector.multi_reduction <add>, %197, %cst_80 [1] : vector<112x12xf32> to vector<112xf32>
    %199 = vector.shape_cast %198 : vector<112xf32> to vector<112x1xf32>
    %200 = tpu.reciprocal %199 {approx = true} : vector<112x1xf32> -> vector<112x1xf32>
    %201 = vector.broadcast %200 : vector<112x1xf32> to vector<112x12xf32>
    %202 = arith.mulf %197, %201 : vector<112x12xf32>
    %cst_81 = arith.constant dense<0.000000e+00> : vector<112x8xf32>
    %203 = tpu.matmul %202, %189, %cst_81 {dimension_numbers = #tpu.dot_dimension_numbers<[1], [0], [0], [1], [0, 0, 1, 1], [], []>} : vector<112x12xf32>, vector<12x8xf32>, vector<112x8xf32> -> vector<112x8xf32>
    %c0_82 = arith.constant 0 : index
    %c16_83 = arith.constant 16 : index
    %204 = vector.load %arg5[%c0_82, %c16_83] : memref<112x32xf32, #tpu.memory_space<vmem>>, vector<112x8xf32>
    tpu.vector_store %arg5[%c0_82, %c16_83], %203 {strides = array<i32>} : memref<112x32xf32, #tpu.memory_space<vmem>>, vector<112x8xf32>,
    %205 = vector.extract_strided_slice %141 {offsets = [0, 24], sizes = [112, 8], strides = [1, 1]} : vector<112x32xf32> to vector<112x8xf32>
    %206 = vector.extract_strided_slice %147 {offsets = [0, 24], sizes = [12, 8], strides = [1, 1]} : vector<12x32xf32> to vector<12x8xf32>
    %207 = vector.extract_strided_slice %148 {offsets = [0, 24], sizes = [12, 8], strides = [1, 1]} : vector<12x32xf32> to vector<12x8xf32>
    %cst_84 = arith.constant dense<0.000000e+00> : vector<112x12xf32>
    %208 = tpu.matmul %205, %206, %cst_84 {dimension_numbers = #tpu.dot_dimension_numbers<[1], [1], [0], [0], [0, 0, 1, 0], [], []>} : vector<112x8xf32>, vector<12x8xf32>, vector<112x12xf32> -> vector<112x12xf32>
    %cst_85 = arith.constant 0.353553385 : f32
    %209 = vector.broadcast %cst_85 : f32 to vector<112x12xf32>
    %210 = arith.mulf %208, %209 : vector<112x12xf32>
    %cst_86 = arith.constant dense<0xFF800000> : vector<112xf32>
    %211 = vector.multi_reduction <maximumf>, %210, %cst_86 [1] : vector<112x12xf32> to vector<112xf32>
    %212 = vector.shape_cast %211 : vector<112xf32> to vector<112x1xf32>
    %213 = vector.broadcast %212 : vector<112x1xf32> to vector<112x12xf32>
    %214 = arith.subf %210, %213 : vector<112x12xf32>
    %215 = math.exp %214 : vector<112x12xf32>
    %cst_87 = arith.constant dense<0.000000e+00> : vector<112xf32>
    %216 = vector.multi_reduction <add>, %215, %cst_87 [1] : vector<112x12xf32> to vector<112xf32>
    %217 = vector.shape_cast %216 : vector<112xf32> to vector<112x1xf32>
    %218 = tpu.reciprocal %217 {approx = true} : vector<112x1xf32> -> vector<112x1xf32>
    %219 = vector.broadcast %218 : vector<112x1xf32> to vector<112x12xf32>
    %220 = arith.mulf %215, %219 : vector<112x12xf32>
    %cst_88 = arith.constant dense<0.000000e+00> : vector<112x8xf32>
    %221 = tpu.matmul %220, %207, %cst_88 {dimension_numbers = #tpu.dot_dimension_numbers<[1], [0], [0], [1], [0, 0, 1, 1], [], []>} : vector<112x12xf32>, vector<12x8xf32>, vector<112x8xf32> -> vector<112x8xf32>
    %c0_89 = arith.constant 0 : index
    %c24_90 = arith.constant 24 : index
    %222 = vector.load %arg5[%c0_89, %c24_90] : memref<112x32xf32, #tpu.memory_space<vmem>>, vector<112x8xf32>
    tpu.vector_store %arg5[%c0_89, %c24_90], %221 {strides = array<i32>} : memref<112x32xf32, #tpu.memory_space<vmem>>, vector<112x8xf32>,
    %c0_91 = arith.constant 0 : index
    %c0_92 = arith.constant 0 : index
    %223 = vector.load %arg5[%c0_91, %c0_92] : memref<112x32xf32, #tpu.memory_space<vmem>>, vector<112x32xf32>
    %cst_93 = arith.constant dense<0.000000e+00> : vector<112x32xf32>
    %224 = tpu.matmul %223, %149, %cst_93 {dimension_numbers = #tpu.dot_dimension_numbers<[1], [0], [0], [1], [0, 0, 1, 1], [], []>} : vector<112x32xf32>, vector<32x32xf32>, vector<112x32xf32> -> vector<112x32xf32>
    %225 = vector.broadcast %150 : vector<1x32xf32> to vector<112x32xf32>
    %226 = arith.addf %224, %225 : vector<112x32xf32>
    %227 = arith.addf %136, %226 : vector<112x32xf32>
    %c520 = arith.constant 520 : index
    %c0_94 = arith.constant 0 : index
    %228 = vector.load %arg3[%c520, %c0_94] : memref<560x128xf32, #tpu.memory_space<vmem>>, vector<1x32xf32>
    %c528 = arith.constant 528 : index
    %c0_95 = arith.constant 0 : index
    %229 = vector.load %arg3[%c528, %c0_95] : memref<560x128xf32, #tpu.memory_space<vmem>>, vector<1x32xf32>
    %cst_96 = arith.constant dense<0.000000e+00> : vector<112xf32>
    %230 = vector.multi_reduction <add>, %227, %cst_96 [1] : vector<112x32xf32> to vector<112xf32>
    %231 = vector.shape_cast %230 : vector<112xf32> to vector<112x1xf32>
    %cst_97 = arith.constant 3.200000e+01 : f32
    %232 = vector.broadcast %cst_97 : f32 to vector<112x1xf32>
    %233 = arith.divf %231, %232 : vector<112x1xf32>
    %234 = vector.broadcast %233 : vector<112x1xf32> to vector<112x32xf32>
    %235 = arith.subf %227, %234 : vector<112x32xf32>
    %236 = arith.mulf %235, %235 : vector<112x32xf32>
    %cst_98 = arith.constant dense<0.000000e+00> : vector<112xf32>
    %237 = vector.multi_reduction <add>, %236, %cst_98 [1] : vector<112x32xf32> to vector<112xf32>
    %238 = vector.shape_cast %237 : vector<112xf32> to vector<112x1xf32>
    %cst_99 = arith.constant 3.200000e+01 : f32
    %239 = vector.broadcast %cst_99 : f32 to vector<112x1xf32>
    %240 = arith.divf %238, %239 : vector<112x1xf32>
    %cst_100 = arith.constant 9.99999974E-6 : f32
    %241 = vector.broadcast %cst_100 : f32 to vector<112x1xf32>
    %242 = arith.addf %240, %241 : vector<112x1xf32>
    %243 = math.rsqrt %242 : vector<112x1xf32>
    %244 = vector.broadcast %243 : vector<112x1xf32> to vector<112x32xf32>
    %245 = arith.mulf %235, %244 : vector<112x32xf32>
    %246 = vector.broadcast %228 : vector<1x32xf32> to vector<112x32xf32>
    %247 = arith.mulf %245, %246 : vector<112x32xf32>
    %248 = vector.broadcast %229 : vector<1x32xf32> to vector<112x32xf32>
    %249 = arith.addf %247, %248 : vector<112x32xf32>
    %c304 = arith.constant 304 : index
    %c0_101 = arith.constant 0 : index
    %250 = vector.load %arg3[%c304, %c0_101] : memref<560x128xf32, #tpu.memory_space<vmem>>, vector<32x64xf32>
    %cst_102 = arith.constant dense<0.000000e+00> : vector<112x64xf32>
    %251 = tpu.matmul %249, %250, %cst_102 {dimension_numbers = #tpu.dot_dimension_numbers<[1], [0], [0], [1], [0, 0, 1, 1], [], []>} : vector<112x32xf32>, vector<32x64xf32>, vector<112x64xf32> -> vector<112x64xf32>
    %c488 = arith.constant 488 : index
    %c0_103 = arith.constant 0 : index
    %252 = vector.load %arg3[%c488, %c0_103] : memref<560x128xf32, #tpu.memory_space<vmem>>, vector<1x64xf32>
    %253 = vector.broadcast %252 : vector<1x64xf32> to vector<112x64xf32>
    %254 = arith.addf %251, %253 : vector<112x64xf32>
    %cst_104 = arith.constant 0.000000e+00 : f32
    %255 = vector.broadcast %cst_104 : f32 to vector<112x64xf32>
    %256 = arith.maximumf %254, %255 : vector<112x64xf32>
    %c336 = arith.constant 336 : index
    %c0_105 = arith.constant 0 : index
    %257 = vector.load %arg3[%c336, %c0_105] : memref<560x128xf32, #tpu.memory_space<vmem>>, vector<64x32xf32>
    %cst_106 = arith.constant dense<0.000000e+00> : vector<112x32xf32>
    %258 = tpu.matmul %256, %257, %cst_106 {dimension_numbers = #tpu.dot_dimension_numbers<[1], [0], [0], [1], [0, 0, 1, 1], [], []>} : vector<112x64xf32>, vector<64x32xf32>, vector<112x32xf32> -> vector<112x32xf32>
    %c496 = arith.constant 496 : index
    %c0_107 = arith.constant 0 : index
    %259 = vector.load %arg3[%c496, %c0_107] : memref<560x128xf32, #tpu.memory_space<vmem>>, vector<1x32xf32>
    %260 = vector.broadcast %259 : vector<1x32xf32> to vector<112x32xf32>
    %261 = arith.addf %258, %260 : vector<112x32xf32>
    %262 = arith.addf %249, %261 : vector<112x32xf32>
    %c536 = arith.constant 536 : index
    %c0_108 = arith.constant 0 : index
    %263 = vector.load %arg3[%c536, %c0_108] : memref<560x128xf32, #tpu.memory_space<vmem>>, vector<1x32xf32>
    %c544 = arith.constant 544 : index
    %c0_109 = arith.constant 0 : index
    %264 = vector.load %arg3[%c544, %c0_109] : memref<560x128xf32, #tpu.memory_space<vmem>>, vector<1x32xf32>
    %cst_110 = arith.constant dense<0.000000e+00> : vector<112xf32>
    %265 = vector.multi_reduction <add>, %262, %cst_110 [1] : vector<112x32xf32> to vector<112xf32>
    %266 = vector.shape_cast %265 : vector<112xf32> to vector<112x1xf32>
    %cst_111 = arith.constant 3.200000e+01 : f32
    %267 = vector.broadcast %cst_111 : f32 to vector<112x1xf32>
    %268 = arith.divf %266, %267 : vector<112x1xf32>
    %269 = vector.broadcast %268 : vector<112x1xf32> to vector<112x32xf32>
    %270 = arith.subf %262, %269 : vector<112x32xf32>
    %271 = arith.mulf %270, %270 : vector<112x32xf32>
    %cst_112 = arith.constant dense<0.000000e+00> : vector<112xf32>
    %272 = vector.multi_reduction <add>, %271, %cst_112 [1] : vector<112x32xf32> to vector<112xf32>
    %273 = vector.shape_cast %272 : vector<112xf32> to vector<112x1xf32>
    %cst_113 = arith.constant 3.200000e+01 : f32
    %274 = vector.broadcast %cst_113 : f32 to vector<112x1xf32>
    %275 = arith.divf %273, %274 : vector<112x1xf32>
    %cst_114 = arith.constant 9.99999974E-6 : f32
    %276 = vector.broadcast %cst_114 : f32 to vector<112x1xf32>
    %277 = arith.addf %275, %276 : vector<112x1xf32>
    %278 = math.rsqrt %277 : vector<112x1xf32>
    %279 = vector.broadcast %278 : vector<112x1xf32> to vector<112x32xf32>
    %280 = arith.mulf %270, %279 : vector<112x32xf32>
    %281 = vector.broadcast %263 : vector<1x32xf32> to vector<112x32xf32>
    %282 = arith.mulf %280, %281 : vector<112x32xf32>
    %283 = vector.broadcast %264 : vector<1x32xf32> to vector<112x32xf32>
    %284 = arith.addf %282, %283 : vector<112x32xf32>
    %c400 = arith.constant 400 : index
    %c0_115 = arith.constant 0 : index
    %285 = vector.load %arg3[%c400, %c0_115] : memref<560x128xf32, #tpu.memory_space<vmem>>, vector<32x128xf32>
    %cst_116 = arith.constant dense<0.000000e+00> : vector<112x128xf32>
    %286 = tpu.matmul %284, %285, %cst_116 {dimension_numbers = #tpu.dot_dimension_numbers<[1], [0], [0], [1], [0, 0, 1, 1], [], []>} : vector<112x32xf32>, vector<32x128xf32>, vector<112x128xf32> -> vector<112x128xf32>
    %c552 = arith.constant 552 : index
    %c0_117 = arith.constant 0 : index
    %287 = vector.load %arg3[%c552, %c0_117] : memref<560x128xf32, #tpu.memory_space<vmem>>, vector<1x128xf32>
    %288 = vector.broadcast %287 : vector<1x128xf32> to vector<112x128xf32>
    %289 = arith.addf %286, %288 : vector<112x128xf32>
    %c0_118 = arith.constant 0 : index
    %c0_119 = arith.constant 0 : index
    %c0_120 = arith.constant 0 : index
    %290 = vector.load %arg4[%c0_118, %c0_119, %c0_120] : memref<1x112x128xf32, #tpu.memory_space<vmem>>, vector<1x112x128xf32>
    %291 = vector.shape_cast %290 : vector<1x112x128xf32> to vector<112x128xf32>
    %292 = vector.shape_cast %289 : vector<112x128xf32> to vector<1x112x128xf32>
    tpu.vector_store %arg4[%c0_118, %c0_119, %c0_120], %292 {strides = array<i32>} : memref<1x112x128xf32, #tpu.memory_space<vmem>>, vector<1x112x128xf32>,
    return
  }
  func.func @transform_0(%arg0: i32) -> (i32, i32, i32) {
    %c0_i32 = arith.constant 0 : i32
    %c0_i32_0 = arith.constant 0 : i32
    %c0_i32_1 = arith.constant 0 : i32
    return %arg0, %c0_i32, %c0_i32_0 : i32, i32, i32
  }
  func.func @transform_1(%arg0: i32) -> (i32, i32, i32) {
    %c0_i32 = arith.constant 0 : i32
    %c0_i32_0 = arith.constant 0 : i32
    %c0_i32_1 = arith.constant 0 : i32
    return %arg0, %c0_i32, %c0_i32_0 : i32, i32, i32
  }
  func.func @transform_2(%arg0: i32) -> (i32, i32) {
    %c0_i32 = arith.constant 0 : i32
    %c0_i32_0 = arith.constant 0 : i32
    %c0_i32_1 = arith.constant 0 : i32
    return %c0_i32, %c0_i32_0 : i32, i32
  }
  func.func @transform_3(%arg0: i32) -> (i32, i32, i32) {
    %c0_i32 = arith.constant 0 : i32
    %c0_i32_0 = arith.constant 0 : i32
    %c0_i32_1 = arith.constant 0 : i32
    return %arg0, %c0_i32, %c0_i32_0 : i32, i32, i32
  }
}

</mosaic_0001>

<bundles_post_ra>
// kernel: reconstructor_forward.1
= control target key start
LH: loop header
LB: loop body
LE: loop exit
PB: predicated region body
PF: predicated region fallthrough
CT: control target
= control target key end

     0   :  { %s10387_s12 = smov 0   ;;  %s14087_s0 = inlined_call_operand.vmem [shape: f32[2,112,4], index: 0, kind: input, shape index: {}]   ;;  %s14088_s1 = inlined_call_operand.vmem [shape: f32[2,12,8], index: 1, kind: input, shape index: {}]   ;;  %s14089_s2 = inlined_call_operand.vmem [shape: f32[560,128], index: 2, kind: input, shape index: {}]   ;;  %s14090_s3 = inlined_call_operand.vmem [shape: f32[2,112,128], index: 3, kind: output, shape index: {}]  }
   0x1 LB: > { %s8003_s13 = sadd.s32 4294967295, %s10350_s12   ;;  %p8007_p0 = scmp.ge.s32.totalorder %s10350_s12, 1  ;;  %s10350_s12 = sphi %s10387_s12, %s13_s12  }
   0x2   : > { %p147_p1 = scmp.lt.s32.totalorder %s10350_s12, 3 }
   0x4   : > { %p148_p2 = pnand %p8007_p0, %p147_p1 }
   0x6   : > { %151 = sbr.rel (%p148_p2) target bundleno = 7021 (0x1b6d), region = 32 }
   0xb   : > { %v299_v0 = vld [vmem:[%s14089_s2 + $0x88] sm:$0xf]  ;;  %vm348_vm0 = vcmask 1043456   ;;  %p176_p3 = scmp.lt.s32.totalorder %s8003_s13, 1  ;;  %v193_v1 = vld [vmem:[%s14089_s2 + $0x80] sm:$0xff]  ;;  %vm199_vm1 = vcmask 64512  }
   0xc   : > { %8951 = vmatprep.subr.msk.mxu1 %vm348_vm0, %v299_v0  ;;  %8946 = vmatprep.subr.mxu0 %v193_v1  ;;  %vm305_vm2 = vcmask 31744   ;;  %v563_v18 = vld [vmem:[%s14089_s2 + $0xa8] sm:$0xff]  ;;  %v562_v19 = vld [vmem:[%s14089_s2 + $0xa0] sm:$0xff]  ;;  %v561_v20 = vld [vmem:[%s14089_s2 + $0x98] sm:$0xff]  ;;  %vm569_vm3 = vcmask 261120   ;;  %s10352_s17 = smov 96  }
   0xd   : > { %8952 = vmatpush3.msk.msra.mxu1 %vm348_vm0, %v299_v0  ;;  %s14210_s13 = smov (!%p176_p3, %s8003_s13), 1  ;;  %8947 = vmatpush3.msra.mxu0 %v193_v1  ;;  %v560_v21 = vld [vmem:[%s14089_s2 + $0x90] sm:$0xff]  ;;  %v10462_v22 = vld [vmem:[%s14089_s2 + $0x1b8] ss:$0 sm:$0xff]  ;;  %v487_v26 = vld [vmem:[%s14089_s2] sm:$0xff]  ;;  %s10354_s20 = smov 88  }
   0xe   : > { %s9788_s18 = smul.u32 112, %s14210_s13  ;;  %s8439_s19 = sshll.u32 %s14210_s13, 4  ;;  %8974 = vmatprep.subr.mxu0 %v563_v18  ;;  %v488_v27 = vld [vmem:[%s14089_s2 + $0x8] sm:$0xff]  ;;  %v489_v34 = vld [vmem:[%s14089_s2 + $0x10] sm:$0xff]  ;;  %v490_v35 = vld [vmem:[%s14089_s2 + $0x18] sm:$0xff]  ;;  %vm1013_vm9 = vcmask 916480  }
   0xf   : > { %s185_s22 = scalar_lea.vmem %s14088_s1, %s8439_s19  ;;  %v491_v42 = vld [vmem:[%s14089_s2 + $0x20] sm:$0xff]  ;;  %v492_v43 = vld [vmem:[%s14089_s2 + $0x28] sm:$0xff]  ;;  %v493_v50 = vld [vmem:[%s14089_s2 + $0x30] sm:$0xff]  ;;  %s10353_s19 = smov 64  }
  0x10   : > { %s10415_s25 = scalar_lea.vmem %s14087_s0, %s9788_s18  ;;  %v191_v2 = vld [vmem:[%s185_s22] sm:$0xff]  ;;  %v192_v3 = vld [vmem:[%s185_s22 + $0x8] sm:$0xf]  ;;  %v494_v51 = vld [vmem:[%s14089_s2 + $0x38] sm:$0xff]  ;;  %s10356_s21 = smov 120  }
  0x11   : > { %v285_v4 = vld [vmem:[%s10415_s25] sm:$0xff]  ;;  %v286_v5 = vld [vmem:[%s10415_s25 + $0x8] sm:$0xff]  ;;  %v287_v6 = vld [vmem:[%s10415_s25 + $0x10] sm:$0xff]  ;;  %8948 = vmatprep.mubr.msk.f32.mxu0 %vm199_vm1, %v191_v2  ;;  %s10357_s22 = smov 56   ;;  %s10358_s23 = smov 80  }
  0x12   : > { %8953 = vmatprep.mubr.msk.f32.mxu1 %vm305_vm2, %v285_v4  ;;  %8949 = vmatmul.mubr.msk.f32.vlgmr.msra.gmra.mxu0 %vm199_vm1, %v192_v3  ;;  %v288_v7 = vld [vmem:[%s10415_s25 + $0x18] sm:$0xff]  ;;  %v289_v8 = vld [vmem:[%s10415_s25 + $0x20] sm:$0xff]  ;;  %v290_v9 = vld [vmem:[%s10415_s25 + $0x28] sm:$0xff]  ;;  %s10359_s24 = smov 112   ;;  %s10361_s26 = smov 72  }
  0x13   : > { %8954 = vmatmul.mubr.msk.f32.vlgmr.msra.gmra.mxu1 %vm305_vm2, %v286_v5  ;;  %v291_v10 = vld [vmem:[%s10415_s25 + $0x30] sm:$0xff]  ;;  %v292_v11 = vld [vmem:[%s10415_s25 + $0x38] sm:$0xff]  ;;  %v293_v12 = vld [vmem:[%s10415_s25 + $0x40] sm:$0xff]  ;;  %8975 = vmatpush3.msra.mxu0 %v563_v18  ;;  %s10362_s27 = smov 104   ;;  %s10363_s28 = smov 40  }
  0x14   : > { %8956 = vmatprep.mubr.msk.f32.mxu1 %vm305_vm2, %v287_v6  ;;  %v294_v13 = vld [vmem:[%s10415_s25 + $0x48] sm:$0xff]  ;;  %v295_v14 = vld [vmem:[%s10415_s25 + $0x50] sm:$0xff]  ;;  %v296_v15 = vld [vmem:[%s10415_s25 + $0x58] sm:$0xff]  ;;  %8976 = vmatprep.subr.mxu0 %v562_v19  ;;  %s10364_s29 = smov 8   ;;  %s10365_s30 = smov 16  }
  0x15   : > { %v297_v16 = vld [vmem:[%s10415_s25 + $0x60] sm:$0xff]  ;;  %v298_v17 = vld [vmem:[%s10415_s25 + $0x68] sm:$0xff]  ;;  %8977 = vmatpush3.msra.mxu0 %v562_v19  ;;  %v497_v2 = vld [vmem:[%s14089_s2 + $0x50] sm:$0xff]  ;;  %s10360_s25 = smov 48   ;;  %s10366_s14 = smov 24  }
  0x16   : > { %8978 = vmatprep.subr.mxu0 %v561_v20  ;;  %v495_v58 = vld [vmem:[%s14089_s2 + $0x40] sm:$0xff]  ;;  %v496_v59 = vld [vmem:[%s14089_s2 + $0x48] sm:$0xff]  ;;  %v498_v3 = vld [vmem:[%s14089_s2 + $0x58] sm:$0xff] }
  0x17   : > { %8957 = vmatmul.mubr.msk.f32.gmra.mxu1 %vm305_vm2, %v288_v7  ;;  %8979 = vmatpush3.msra.mxu0 %v561_v20  ;;  %v8031_v18 = vld [vmem:[%s14089_s2 + $0x1c0] ss:$0 sm:$0xff] }
  0x18   : > { %8959 = vmatprep.mubr.msk.f32.mxu1 %vm305_vm2, %v289_v8  ;;  %8980 = vmatprep.subr.mxu0 %v560_v21 }
  0x19   : > { %8981 = vmatpush3.msra.mxu0 %v560_v21 }
  0x1b   : > { %8960 = vmatmul.mubr.msk.f32.gmra.mxu1 %vm305_vm2, %v290_v9 }
  0x1c   : > { %8962 = vmatprep.mubr.msk.f32.mxu1 %vm305_vm2, %v291_v10  ;;  %v499_v10 = vld [vmem:[%s14089_s2 + $0x60] sm:$0xff] }
  0x1f   : > { %8963 = vmatmul.mubr.msk.f32.gmra.mxu1 %vm305_vm2, %v292_v11  ;;  %v500_v11 = vld [vmem:[%s14089_s2 + $0x68] sm:$0xff] }
  0x20   : > { %8965 = vmatprep.mubr.msk.f32.mxu1 %vm305_vm2, %v293_v12 }
  0x23   : > { %8966 = vmatmul.mubr.msk.f32.gmra.mxu1 %vm305_vm2, %v294_v13 }
  0x24   : > { %8968 = vmatprep.mubr.msk.f32.mxu1 %vm305_vm2, %v295_v14 }
  0x27   : > { %8969 = vmatmul.mubr.msk.f32.gmra.mxu1 %vm305_vm2, %v296_v15 }
  0x28   : > { %8971 = vmatprep.mubr.msk.f32.mxu1 %vm305_vm2, %v297_v16 }
  0x2b   : > { %8972 = vmatmul.mubr.msk.f32.gmra.mxu1 %vm305_vm2, %v298_v17 }
  0xd2   : > { %v10576_v15 = vpop.f32.mrf.mxu0 }
  0xd3   : > { %v8955_v23 = vpop.f32.mrf.mxu1  ;;  %14134 = vst [vmem:[#allocation17_spill] sm:$0xff] %v10576_v15 }
  0xd4   : > { %v424_v24 = vadd.f32 %v8955_v23, %v10462_v22  ;;  %v10578_v16 = vpop.f32.mrf.mxu0 }
  0xd5   : > { %v418_v25 = vpop.f32.mrf.mxu1  ;;  %14135 = vst [vmem:[#allocation18_spill] sm:$0xff] %v10578_v16 }
  0xd6   : > { %v419_v28 = vadd.f32 %v10462_v22, %v418_v25  ;;  %v10474_v31 = vadd.f32 %v488_v27, %v424_v24 }
  0xd7   : > { %v8958_v29 = vpop.f32.mrf.mxu1 }
  0xd8   : > { %v10472_v30 = vadd.f32 %v487_v26, %v419_v28  ;;  %14121 = vst [vmem:[#allocation4_spill] sm:$0xff] %v10474_v31  ;;  %v434_v32 = vadd.f32 %v8958_v29, %v10462_v22 }
  0xd9   : > { %v428_v33 = vpop.f32.mrf.mxu1 }
  0xda   : > { %14120 = vst [vmem:[#allocation3_spill] sm:$0xff] %v10472_v30  ;;  %v429_v36 = vadd.f32 %v10462_v22, %v428_v33  ;;  %8982 = vmatprep.mubr.msk.f32.mxu0 %vm569_vm3, %v10472_v30  ;;  %v10490_v39 = vadd.f32 %v490_v35, %v434_v32 }
  0xdb   : > { %v8961_v37 = vpop.f32.mrf.mxu1  ;;  %8983 = vmatmul.mubr.msk.f32.vlgmr.msra.gmra.mxu0 %vm569_vm3, %v10474_v31 }
  0xdc   : > { %v10488_v38 = vadd.f32 %v489_v34, %v429_v36  ;;  %14123 = vst [vmem:[#allocation6_spill] sm:$0xff] %v10490_v39  ;;  %v444_v40 = vadd.f32 %v8961_v37, %v10462_v22 }
  0xdd   : > { %v438_v41 = vpop.f32.mrf.mxu1 }
  0xde   : > { %14122 = vst [vmem:[#allocation5_spill] sm:$0xff] %v10488_v38  ;;  %v439_v44 = vadd.f32 %v10462_v22, %v438_v41  ;;  %8985 = vmatprep.mubr.msk.f32.mxu0 %vm569_vm3, %v10488_v38  ;;  %v10506_v47 = vadd.f32 %v492_v43, %v444_v40 }
  0xdf   : > { %v8964_v45 = vpop.f32.mrf.mxu1  ;;  %8986 = vmatmul.mubr.msk.f32.gmra.mxu0 %vm569_vm3, %v10490_v39 }
  0xe0   : > { %v10504_v46 = vadd.f32 %v491_v42, %v439_v44  ;;  %14125 = vst [vmem:[#allocation8_spill] sm:$0xff] %v10506_v47  ;;  %v454_v48 = vadd.f32 %v8964_v45, %v10462_v22 }
  0xe1   : > { %v448_v49 = vpop.f32.mrf.mxu1 }
  0xe2   : > { %14124 = vst [vmem:[#allocation7_spill] sm:$0xff] %v10504_v46  ;;  %v449_v52 = vadd.f32 %v10462_v22, %v448_v49  ;;  %8988 = vmatprep.mubr.msk.f32.mxu0 %vm569_vm3, %v10504_v46  ;;  %v10522_v55 = vadd.f32 %v494_v51, %v454_v48 }
  0xe3   : > { %v8967_v53 = vpop.f32.mrf.mxu1  ;;  %8989 = vmatmul.mubr.msk.f32.gmra.mxu0 %vm569_vm3, %v10506_v47 }
  0xe4   : > { %v10520_v54 = vadd.f32 %v493_v50, %v449_v52  ;;  %14127 = vst [vmem:[#allocation10_spill] sm:$0xff] %v10522_v55  ;;  %v464_v56 = vadd.f32 %v8967_v53, %v10462_v22 }
  0xe5   : > { %v458_v57 = vpop.f32.mrf.mxu1 }
  0xe6   : > { %14126 = vst [vmem:[#allocation9_spill] sm:$0xff] %v10520_v54  ;;  %v459_v60 = vadd.f32 %v10462_v22, %v458_v57  ;;  %8991 = vmatprep.mubr.msk.f32.mxu0 %vm569_vm3, %v10520_v54  ;;  %v10538_v63 = vadd.f32 %v496_v59, %v464_v56 }
  0xe7   : > { %v8970_v61 = vpop.f32.mrf.mxu1  ;;  %8992 = vmatmul.mubr.msk.f32.gmra.mxu0 %vm569_vm3, %v10522_v55 }
  0xe8   : > { %v10536_v62 = vadd.f32 %v495_v58, %v459_v60  ;;  %14129 = vst [vmem:[#allocation12_spill] sm:$0xff] %v10538_v63  ;;  %v474_v0 = vadd.f32 %v8970_v61, %v10462_v22 }
  0xe9   : > { %v468_v1 = vpop.f32.mrf.mxu1 }
  0xea   : > { %14128 = vst [vmem:[#allocation11_spill] sm:$0xff] %v10536_v62  ;;  %v469_v4 = vadd.f32 %v10462_v22, %v468_v1  ;;  %8994 = vmatprep.mubr.msk.f32.mxu0 %vm569_vm3, %v10536_v62  ;;  %v10554_v7 = vadd.f32 %v498_v3, %v474_v0 }
  0xeb   : > { %v8973_v5 = vpop.f32.mrf.mxu1  ;;  %8995 = vmatmul.mubr.msk.f32.gmra.mxu0 %vm569_vm3, %v10538_v63 }
  0xec   : > { %v10552_v6 = vadd.f32 %v497_v2, %v469_v4  ;;  %14131 = vst [vmem:[#allocation14_spill] sm:$0xff] %v10554_v7  ;;  %v484_v8 = vadd.f32 %v8973_v5, %v10462_v22 }
  0xed   : > { %v478_v9 = vpop.f32.mrf.mxu1 }
  0xee   : > { %14130 = vst [vmem:[#allocation13_spill] sm:$0xff] %v10552_v6  ;;  %v479_v12 = vadd.f32 %v10462_v22, %v478_v9  ;;  %8997 = vmatprep.mubr.msk.f32.mxu0 %vm569_vm3, %v10552_v6  ;;  %v10570_v14 = vadd.f32 %v500_v11, %v484_v8 }
  0xef   : > { %8998 = vmatmul.mubr.msk.f32.gmra.mxu0 %vm569_vm3, %v10554_v7 }
  0xf0   : > { %v10568_v13 = vadd.f32 %v499_v10, %v479_v12  ;;  %14133 = vst [vmem:[#allocation16_spill] sm:$0xff] %v10570_v14 }
  0xf2   : > { %14132 = vst [vmem:[#allocation15_spill] sm:$0xff] %v10568_v13  ;;  %9000 = vmatprep.mubr.msk.f32.mxu0 %vm569_vm3, %v10568_v13 }
  0xf3   : > { %9001 = vmatmul.mubr.msk.f32.gmra.mxu0 %vm569_vm3, %v10570_v14 }
 0x19b   : > { %v8984_v17 = vpop.f32.mrf.mxu0 }
 0x19c   : > { %v10637_v51 = vadd.f32 %v8984_v17, %v8031_v18 }
 0x19d   : > { %v678_v19 = vpop.f32.mrf.mxu0 }
 0x19e   : > { %v10583_v20 = vadd.f32 %v8031_v18, %v678_v19 }
 0x19f   : > { %v8987_v21 = vpop.f32.mrf.mxu0 }
 0x1a0   : > { %9031 = vmatprep.mubr.msk.f32.mxu1 %vm199_vm1, %v10583_v20  ;;  %v10631_v50 = vadd.f32 %v8987_v21, %v8031_v18 }
 0x1a1   : > { %v688_v22 = vpop.f32.mrf.mxu0 }
 0x1a2   : > { %v10623_v48 = vadd.f32 %v8031_v18, %v688_v22 }
 0x1a3   : > { %v8990_v23 = vpop.f32.mrf.mxu0 }
 0x1a4   : > { %v10625_v49 = vadd.f32 %v8990_v23, %v8031_v18 }
 0x1a5   : > { %v698_v24 = vpop.f32.mrf.mxu0 }
 0x1a6   : > { %v10615_v44 = vadd.f32 %v8031_v18, %v698_v24 }
 0x1a7   : > { %v8993_v25 = vpop.f32.mrf.mxu0 }
 0x1a8   : > { %v10617_v45 = vadd.f32 %v8993_v25, %v8031_v18 }
 0x1a9   : > { %v708_v26 = vpop.f32.mrf.mxu0 }
 0x1aa   : > { %v10607_v42 = vadd.f32 %v8031_v18, %v708_v26 }
 0x1ab   : > { %v8996_v27 = vpop.f32.mrf.mxu0 }
 0x1ac   : > { %v10609_v43 = vadd.f32 %v8996_v27, %v8031_v18 }
 0x1ad   : > { %v718_v28 = vpop.f32.mrf.mxu0 }
 0x1ae   : > { %v10599_v40 = vadd.f32 %v8031_v18, %v718_v28 }
 0x1af   : > { %v8999_v29 = vpop.f32.mrf.mxu0 }
 0x1b0   : > { %v10587_v32 = vadd.f32 %v8999_v29, %v8031_v18 }
 0x1b1   : > { %v728_v33 = vpop.f32.mrf.mxu0 }
 0x1b2   : > { %788 = vrot.lane.b32.xlu1 %v10587_v32, %s10352_s17  ;;  %v10591_v35 = vadd.f32 %v8031_v18, %v728_v33  ;;  %v515_v33 = vlaneseq }
 0x1b3   : > { %v9002_v34 = vpop.f32.mrf.mxu0 }
 0x1b4   : > { %v10593_v36 = vadd.f32 %v9002_v34, %v8031_v18  ;;  %v10735_v34 = vshrl.u32 %v515_v33, 7 }
 0x1b5   : > { %v738_v37 = vpop.f32.mrf.mxu0 }
 0x1b6   : > { %792 = vrot.lane.b32.xlu0 %v10593_v36, %s10352_s17  ;;  %786 = vrot.lane.b32.xlu1 %v10591_v35, %s10352_s17  ;;  %v10601_v41 = vadd.f32 %v8031_v18, %v738_v37  ;;  %v10737_v37 = vand.u32 127, %v515_v33 }
 0x1b8   : > { %vm532_vm7 = vcmp.le.s32.totalorder %v10737_v37, %v10735_v34 }
 0x1ba   : > { %790 = vrot.lane.b32.xlu0 %v10601_v41, %s10352_s17  ;;  %782 = vrot.lane.b32.xlu1 %v10599_v40, %s10352_s17 }
 0x1be   : > { %784 = vrot.lane.b32.xlu0 %v10609_v43, %s10352_s17  ;;  %778 = vrot.lane.b32.xlu1 %v10607_v42, %s10352_s17 }
 0x1c2   : > { %780 = vrot.lane.b32.xlu0 %v10617_v45, %s10352_s17  ;;  %774 = vrot.lane.b32.xlu1 %v10615_v44, %s10352_s17 }
 0x1c6   : > { %776 = vrot.lane.b32.xlu0 %v10625_v49, %s10352_s17  ;;  %770 = vrot.lane.b32.xlu1 %v10623_v48, %s10352_s17 }
 0x1ca   : > { %772 = vrot.lane.b32.xlu0 %v10631_v50, %s10352_s17  ;;  %766 = vrot.lane.b32.xlu1 %v10583_v20, %s10352_s17 }
 0x1ce   : > { %768 = vrot.lane.b32.xlu0 %v10637_v51, %s10352_s17  ;;  %1188 = vrot.lane.b32.xlu1 %v10591_v35, %s10353_s19 }
 0x1d2   : > { %1194 = vrot.lane.b32.xlu0 %v10593_v36, %s10353_s19  ;;  %1184 = vrot.lane.b32.xlu1 %v10599_v40, %s10353_s19 }
 0x1d6   : > { %1190 = vrot.lane.b32.xlu0 %v10587_v32, %s10353_s19  ;;  %1180 = vrot.lane.b32.xlu1 %v10607_v42, %s10353_s19 }
 0x1da   : > { %1186 = vrot.lane.b32.xlu0 %v10609_v43, %s10353_s19  ;;  %1176 = vrot.lane.b32.xlu1 %v10615_v44, %s10353_s19 }
 0x1de   : > { %1182 = vrot.lane.b32.xlu0 %v10617_v45, %s10353_s19  ;;  %1172 = vrot.lane.b32.xlu1 %v10623_v48, %s10353_s19 }
 0x1e2   : > { %1178 = vrot.lane.b32.xlu0 %v10625_v49, %s10353_s19  ;;  %1168 = vrot.lane.b32.xlu1 %v10583_v20, %s10353_s19 }
 0x1e6   : > { %1174 = vrot.lane.b32.xlu0 %v10631_v50, %s10353_s19  ;;  %1451 = vrot.lane.b32.xlu1 %v10587_v32, %s10354_s20 }
 0x1ea   : > { %1170 = vrot.lane.b32.xlu0 %v10637_v51, %s10353_s19  ;;  %1447 = vrot.lane.b32.xlu1 %v10609_v43, %s10354_s20 }
 0x1ee   : > { %1455 = vrot.lane.b32.xlu0 %v10593_v36, %s10354_s20  ;;  %1192 = vrot.lane.b32.xlu1 %v10601_v41, %s10353_s19 }
 0x1f2   : > { %1449 = vrot.lane.b32.xlu0 %v10591_v35, %s10354_s20 }
 0x1f6   : > { %1445 = vrot.lane.b32.xlu0 %v10599_v40, %s10354_s20 }
 0x1fa   : > { %1443 = vrot.lane.b32.xlu0 %v10617_v45, %s10354_s20 }
 0x1fe   : > { %1453 = vrot.lane.b32.xlu0 %v10601_v41, %s10354_s20 }
 0x202   : > { %1439 = vrot.lane.b32.xlu0 %v10625_v49, %s10354_s20 }
 0x206   : > { %1437 = vrot.lane.b32.xlu0 %v10615_v44, %s10354_s20 }
 0x224   : > { %v789_v52 = vpop.permute.xlu1 %788 }
 0x228   : > { %v793_v53 = vpop.permute.xlu0 %792  ;;  %v787_v56 = vpop.permute.xlu1 %786 }
 0x229   : > { %9003 = vmatprep.subr.msk.mxu1 %vm199_vm1, %v793_v53 }
 0x22a   : > { %9004 = vmatpush3.xpose.msk.msra.mxu1 %vm199_vm1, %v793_v53  ;;  %v10355_v53 = vmov -1e+30  }
 0x22c   : > { %v791_v57 = vpop.permute.xlu0 %790  ;;  %v783_v58 = vpop.permute.xlu1 %782 }
 0x22d   : > { %9005 = vmatprep.subr.msk.mxu1 %vm199_vm1, %v791_v57 }
 0x22e   : > { %9006 = vmatpush3.xpose.msk.msra.mxu1 %vm199_vm1, %v791_v57  ;;  %v528_v57 = vadd.s32 96, %v10735_v34 }
 0x22f   : > { %9007 = vmatprep.subr.msk.mxu1 %vm199_vm1, %v789_v52 }
 0x230   : > { %v785_v59 = vpop.permute.xlu0 %784  ;;  %v779_v60 = vpop.permute.xlu1 %778  ;;  %vm544_vm5 = vcmp.le.s32.totalorder %v10737_v37, %v528_v57 }
 0x232   : > { %9008 = vmatpush3.xpose.msk.msra.mxu1 %vm199_vm1, %v789_v52  ;;  %v526_v52 = vadd.s32 80, %v10735_v34 }
 0x233   : > { %9009 = vmatprep.subr.msk.mxu1 %vm199_vm1, %v787_v56 }
 0x234   : > { %v781_v61 = vpop.permute.xlu0 %780  ;;  %v775_v0 = vpop.permute.xlu1 %774  ;;  %vm542_vm4 = vcmp.le.s32.totalorder %v10737_v37, %v526_v52 }
 0x236   : > { %9010 = vmatpush3.xpose.msk.msra.mxu1 %vm199_vm1, %v787_v56  ;;  %v10742_v56 = vsel %vm542_vm4, 0.0, %v10355_v53 }
 0x237   : > { %9011 = vmatprep.subr.msk.mxu1 %vm199_vm1, %v785_v59  ;;  %14136 = vst [vmem:[#allocation19_spill] sm:$0xff] %v10742_v56 }
 0x238   : > { %v777_v1 = vpop.permute.xlu0 %776  ;;  %v771_v2 = vpop.permute.xlu1 %770 }
 0x23a   : > { %9012 = vmatpush3.xpose.msk.msra.mxu1 %vm199_vm1, %v785_v59  ;;  %v517_v59 = vadd.s32 8, %v10735_v34 }
 0x23b   : > { %9013 = vmatprep.subr.msk.mxu1 %vm199_vm1, %v783_v58 }
 0x23c   : > { %v773_v3 = vpop.permute.xlu0 %772  ;;  %v767_v4 = vpop.permute.xlu1 %766  ;;  %vm533_vm6 = vcmp.le.s32.totalorder %v10737_v37, %v517_v59 }
 0x23e   : > { %9014 = vmatpush3.xpose.msk.msra.mxu1 %vm199_vm1, %v783_v58  ;;  %v10747_v58 = vsel %vm544_vm5, 0.0, %v10355_v53 }
 0x23f   : > { %9015 = vmatprep.subr.msk.mxu1 %vm199_vm1, %v781_v61  ;;  %14137 = vst [vmem:[#allocation20_spill] sm:$0xff] %v10747_v58 }
 0x240   : > { %v769_v5 = vpop.permute.xlu0 %768  ;;  %v1189_v8 = vpop.permute.xlu1 %1188 }
 0x242   : > { %9016 = vmatpush3.xpose.msk.msra.mxu1 %vm199_vm1, %v781_v61 }
 0x243   : > { %9017 = vmatprep.subr.msk.mxu1 %vm199_vm1, %v779_v60 }
 0x244   : > { %v1195_v9 = vpop.permute.xlu0 %1194  ;;  %v1185_v10 = vpop.permute.xlu1 %1184 }
 0x245   : > { %9052 = vmatprep.subr.mxu0 %v1195_v9 }
 0x246   : > { %9018 = vmatpush3.xpose.msk.msra.mxu1 %vm199_vm1, %v779_v60  ;;  %9053 = vmatpush3.msra.mxu0 %v1195_v9  ;;  %v519_v60 = vadd.s32 24, %v10735_v34 }
 0x247   : > { %9019 = vmatprep.subr.msk.mxu1 %vm199_vm1, %v777_v1 }
 0x248   : > { %v1181_v11 = vpop.permute.xlu1 %1180  ;;  %v1191_v19 = vpop.permute.xlu0 %1190  ;;  %vm535_vm8 = vcmp.le.s32.totalorder %v10737_v37, %v519_v60 }
 0x24a   : > { %9020 = vmatpush3.xpose.msk.msra.mxu1 %vm199_vm1, %v777_v1  ;;  %v518_v1 = vadd.s32 16, %v10735_v34 }
 0x24b   : > { %9021 = vmatprep.subr.msk.mxu1 %vm199_vm1, %v775_v0 }
 0x24c   : > { %v1177_v12 = vpop.permute.xlu1 %1176  ;;  %v1187_v22 = vpop.permute.xlu0 %1186  ;;  %vm534_vm10 = vcmp.le.s32.totalorder %v10737_v37, %v518_v1  ;;  %v525_v1 = vadd.s32 72, %v10735_v34 }
 0x24e   : > { %9022 = vmatpush3.xpose.msk.msra.mxu1 %vm199_vm1, %v775_v0  ;;  %v10755_v0 = vsel %vm533_vm6, 0.0, %v10355_v53  ;;  %vm541_vm13 = vcmp.le.s32.totalorder %v10737_v37, %v525_v1  ;;  %vm2105_vm6 = vcmask 130112  }
 0x24f   : > { %9023 = vmatprep.subr.msk.mxu1 %vm199_vm1, %v773_v3 }
 0x250   : > { %v1173_v17 = vpop.permute.xlu1 %1172  ;;  %v1183_v25 = vpop.permute.xlu0 %1182 }
 0x252   : > { %9024 = vmatpush3.xpose.msk.msra.mxu1 %vm199_vm1, %v773_v3 }
 0x253   : > { %9025 = vmatprep.subr.msk.mxu1 %vm199_vm1, %v771_v2 }
 0x254   : > { %v1169_v18 = vpop.permute.xlu1 %1168  ;;  %v1179_v26 = vpop.permute.xlu0 %1178 }
 0x256   : > { %9026 = vmatpush3.xpose.msk.msra.mxu1 %vm199_vm1, %v771_v2 }
 0x257   : > { %9027 = vmatprep.subr.msk.mxu1 %vm199_vm1, %v769_v5 }
 0x258   : > { %v10698_v21 = vpop.permute.xlu1 %1451  ;;  %v1175_v27 = vpop.permute.xlu0 %1174 }
 0x25a   : > { %9028 = vmatpush3.xpose.msk.msra.mxu1 %vm199_vm1, %v769_v5 }
 0x25b   : > { %9029 = vmatprep.subr.msk.mxu1 %vm199_vm1, %v767_v4 }
 0x25c   : > { %v10702_v23 = vpop.permute.xlu1 %1447  ;;  %v1171_v28 = vpop.permute.xlu0 %1170 }
 0x25e   : > { %9030 = vmatpush3.xpose.msk.msra.mxu1 %vm199_vm1, %v767_v4  ;;  %v10760_v4 = vsel %vm532_vm7, 0.0, %v10355_v53  ;;  %vm2824_vm7 = vcmask 195712  }
 0x260   : > { %v1193_v24 = vpop.permute.xlu1 %1192  ;;  %v10731_v29 = vpop.permute.xlu0 %1455 }
 0x261   : > { %9032 = vmatmul.mubr.msk.f32.vlgmr.msra.gmra.mxu1 %vm199_vm1, %v10637_v51  ;;  %9054 = vmatprep.subr.mxu0 %v1193_v24 }
 0x262   : > { %9034 = vmatprep.mubr.msk.f32.mxu1 %vm199_vm1, %v10623_v48  ;;  %9055 = vmatpush3.msra.mxu0 %v1193_v24 }
 0x263   : > { %9056 = vmatprep.subr.mxu0 %v1191_v19 }
 0x264   : > { %9057 = vmatpush3.msra.mxu0 %v1191_v19 }
 0x265   : > { %9035 = vmatmul.mubr.msk.f32.gmra.mxu1 %vm199_vm1, %v10631_v50  ;;  %9058 = vmatprep.subr.mxu0 %v1189_v8 }
 0x266   : > { %9037 = vmatprep.mubr.msk.f32.mxu1 %vm199_vm1, %v10615_v44  ;;  %9059 = vmatpush3.msra.mxu0 %v1189_v8 }
 0x267   : > { %9060 = vmatprep.subr.mxu0 %v1187_v22 }
 0x268   : > { %9061 = vmatpush3.msra.mxu0 %v1187_v22 }
 0x269   : > { %9038 = vmatmul.mubr.msk.f32.gmra.mxu1 %vm199_vm1, %v10625_v49  ;;  %9062 = vmatprep.subr.mxu0 %v1185_v10 }
 0x26a   : > { %9040 = vmatprep.mubr.msk.f32.mxu1 %vm199_vm1, %v10607_v42  ;;  %9063 = vmatpush3.msra.mxu0 %v1185_v10  ;;  %v10766_v10 = vsel %vm535_vm8, 0.0, %v10355_v53  ;;  %vm3543_vm8 = vcmask 261312  }
 0x26b   : > { %9064 = vmatprep.subr.mxu0 %v1183_v25 }
 0x26c   : > { %9065 = vmatpush3.msra.mxu0 %v1183_v25 }
 0x26d   : > { %9041 = vmatmul.mubr.msk.f32.gmra.mxu1 %vm199_vm1, %v10617_v45  ;;  %9066 = vmatprep.subr.mxu0 %v1181_v11 }
 0x26e   : > { %9043 = vmatprep.mubr.msk.f32.mxu1 %vm199_vm1, %v10599_v40  ;;  %9067 = vmatpush3.msra.mxu0 %v1181_v11 }
 0x26f   : > { %9068 = vmatprep.subr.mxu0 %v1179_v26 }
 0x270   : > { %9069 = vmatpush3.msra.mxu0 %v1179_v26 }
 0x271   : > { %9044 = vmatmul.mubr.msk.f32.gmra.mxu1 %vm199_vm1, %v10609_v43  ;;  %9070 = vmatprep.subr.mxu0 %v1177_v12 }
 0x272   : > { %9046 = vmatprep.mubr.msk.f32.mxu1 %vm199_vm1, %v10591_v35  ;;  %9071 = vmatpush3.msra.mxu0 %v1177_v12 }
 0x273   : > { %9072 = vmatprep.subr.mxu0 %v1175_v27 }
 0x274   : > { %9073 = vmatpush3.msra.mxu0 %v1175_v27  ;;  %v10781_v27 = vsel %vm534_vm10, 0.0, %v10355_v53 }
 0x275   : > { %9047 = vmatmul.mubr.msk.f32.gmra.mxu1 %vm199_vm1, %v10587_v32  ;;  %9074 = vmatprep.subr.mxu0 %v1173_v17 }
 0x276   : > { %9049 = vmatprep.mubr.msk.f32.mxu1 %vm199_vm1, %v10601_v41  ;;  %9075 = vmatpush3.msra.mxu0 %v1173_v17 }
 0x277   : > { %9076 = vmatprep.subr.mxu0 %v1171_v28 }
 0x278   : > { %9077 = vmatpush3.msra.mxu0 %v1171_v28  ;;  %v523_v28 = vadd.s32 56, %v10735_v34 }
 0x279   : > { %9050 = vmatmul.mubr.msk.f32.gmra.mxu1 %vm199_vm1, %v10593_v36  ;;  %9078 = vmatprep.subr.mxu0 %v1169_v18 }
 0x27a   : > { %9079 = vmatpush3.msra.mxu0 %v1169_v18  ;;  %v521_v18 = vadd.s32 40, %v10735_v34  ;;  %vm539_vm12 = vcmp.le.s32.totalorder %v10737_v37, %v523_v28 }
 0x27b   : > { %9101 = vmatprep.subr.msk.mxu0 %vm199_vm1, %v10731_v29 }
 0x27c   : > { %vm537_vm11 = vcmp.le.s32.totalorder %v10737_v37, %v521_v18  ;;  %v527_v18 = vadd.s32 88, %v10735_v34 }
 0x27e   : > { %vm543_vm14 = vcmp.le.s32.totalorder %v10737_v37, %v527_v18 }
 0x321   : > { %v9033_v61 = vpop.f32.mrf.mxu1 }
 0x322   : > { %v986_v2 = vmul.f32 0.35355338, %v9033_v61  ;;  %v10791_v61 = vsel %vm537_vm11, 0.0, %v10355_v53 }
 0x323   : > { %v916_v3 = vpop.f32.mrf.mxu1 }
 0x324   : > { %v985_v5 = vmul.f32 0.35355338, %v916_v3  ;;  %v10763_v8 = vadd.f32 %v986_v2, %v10755_v0 }
 0x325   : > { %v9036_v9 = vpop.f32.mrf.mxu1 }
 0x326   : > { %v988_v11 = vmul.f32 0.35355338, %v9036_v9  ;;  %v1017_v12 = vsel %vm1013_vm9, %v10763_v8, -inf  ;;  %v10772_v17 = vadd.f32 %v985_v5, %v10760_v4 }
 0x327   : > { %1018 = vmax.xlane.f32.xlu1 %v1017_v12  ;;  %v926_v19 = vpop.f32.mrf.mxu1  ;;  %v10801_v12 = vsel %vm539_vm12, 0.0, %v10355_v53 }
 0x328   : > { %v987_v22 = vmul.f32 0.35355338, %v926_v19  ;;  %v1014_v24 = vsel %vm1013_vm9, %v10772_v17, -inf  ;;  %v10778_v25 = vadd.f32 %v988_v11, %v10766_v10 }
 0x329   : > { %1015 = vmax.xlane.f32.xlu0 %v1014_v24  ;;  %v9039_v26 = vpop.f32.mrf.mxu1 }
 0x32a   : > { %v990_v52 = vmul.f32 0.35355338, %v9039_v26  ;;  %v1023_v57 = vsel %vm1013_vm9, %v10778_v25, -inf  ;;  %v10788_v59 = vadd.f32 %v987_v22, %v10781_v27 }
 0x32b   : > { %v936_v33 = vpop.f32.mrf.mxu1 }
 0x32c   : > { %v1020_v5 = vsel %vm1013_vm9, %v10788_v59, -inf  ;;  %v10798_v9 = vadd.f32 %v990_v52, %v10791_v61  ;;  %v10811_v52 = vsel %vm541_vm13, 0.0, %v10355_v53 }
 0x32d   : > { %1024 = vmax.xlane.f32.xlu0 %v1023_v57  ;;  %v9042_v60 = vpop.f32.mrf.mxu1  ;;  %v529_v57 = vadd.s32 104, %v10735_v34 }
 0x32e   : > { %v992_v3 = vmul.f32 0.35355338, %v9042_v60  ;;  %v1029_v24 = vsel %vm1013_vm9, %v10798_v9, -inf }
 0x32f   : > { %v946_v2 = vpop.f32.mrf.mxu1  ;;  %vm545_vm15 = vcmp.le.s32.totalorder %v10737_v37, %v529_v57 }
 0x330   : > { %v10808_v26 = vadd.f32 %v992_v3, %v10801_v12  ;;  %v10832_v13 = vsel %vm545_vm15, 0.0, %v10355_v53  ;;  %v991_v6 = vmul.f32 0.35355338, %v946_v2 }
 0x331   : > { %1021 = vmax.xlane.f32.xlu0 %v1020_v5  ;;  %v9045_v11 = vpop.f32.mrf.mxu1  ;;  %14138 = vst [vmem:[#allocation21_spill] sm:$0xff] %v10832_v13 }
 0x332   : > { %v994_v22 = vmul.f32 0.35355338, %v9045_v11  ;;  %v1035_v5 = vsel %vm1013_vm9, %v10808_v26, -inf }
 0x333   : > { %v956_v19 = vpop.f32.mrf.mxu1 }
 0x334   : > { %v10820_v3 = vadd.f32 %v994_v22, %v10811_v52 }
 0x335   : > { %1030 = vmax.xlane.f32.xlu0 %v1029_v24  ;;  %v9048_v28 = vpop.f32.mrf.mxu1  ;;  %v10823_v24 = vsel %vm543_vm14, 0.0, %v10355_v53 }
 0x336   : > { %v996_v1 = vmul.f32 0.35355338, %v9048_v28  ;;  %v1041_v28 = vsel %vm1013_vm9, %v10820_v3, -inf }
 0x337   : > { %v966_v60 = vpop.f32.mrf.mxu1 }
 0x338   : > { %1441 = vrot.lane.b32.xlu1 %v10607_v42, %s10354_s20  ;;  %v10829_v14 = vadd.f32 %v996_v1, %v10823_v24  ;;  %v522_v1 = vadd.s32 48, %v10735_v34  ;;  %v995_v2 = vmul.f32 0.35355338, %v966_v60 }
 0x339   : > { %1036 = vmax.xlane.f32.xlu0 %v1035_v5  ;;  %v9051_v11 = vpop.f32.mrf.mxu1 }
 0x33a   : > { %v998_v18 = vmul.f32 0.35355338, %v9051_v11  ;;  %v1047_v22 = vsel %vm1013_vm9, %v10829_v14, -inf  ;;  %v520_v11 = vadd.s32 32, %v10735_v34  ;;  %vm538_vm4 = vcmp.le.s32.totalorder %v10737_v37, %v522_v1 }
 0x33c   : > { %v10837_v5 = vadd.f32 %v998_v18, %v10832_v13  ;;  %vm536_vm2 = vcmp.le.s32.totalorder %v10737_v37, %v520_v11  ;;  %v524_v18 = vadd.s32 64, %v10735_v34  ;;  %v993_v11 = vmul.f32 0.35355338, %v956_v19  ;;  %v976_v19 = vpop.f32.mrf.mxu1 }
 0x33d   : > { %1042 = vmax.xlane.f32.xlu0 %v1041_v28  ;;  %v989_v28 = vmul.f32 0.35355338, %v936_v33  ;;  %v10845_v7 = vsel %vm536_vm2, 0.0, %v10355_v53 }
 0x33e   : > { %v1053_v57 = vsel %vm1013_vm9, %v10837_v5, -inf  ;;  %vm540_vm5 = vcmp.le.s32.totalorder %v10737_v37, %v524_v18  ;;  %v997_v18 = vmul.f32 0.35355338, %v976_v19 }
 0x33f   : > { %v10864_v34 = vsel %vm540_vm5, 0.0, %v10355_v53 }
 0x340   : > { %v10869_v37 = vadd.f32 %v993_v11, %v10864_v34  ;;  %v10879_v60 = vadd.f32 %v997_v18, %v10747_v58 }
 0x341   : > { %1048 = vmax.xlane.f32.xlu0 %v1047_v22  ;;  %v10850_v22 = vadd.f32 %v989_v28, %v10845_v7 }
 0x342   : > { %v1038_v63 = vsel %vm1013_vm9, %v10869_v37, -inf  ;;  %v1050_v11 = vsel %vm1013_vm9, %v10879_v60, -inf }
 0x343   : > { %v1026_v33 = vsel %vm1013_vm9, %v10850_v22, -inf }
 0x345   : > { %1054 = vmax.xlane.f32.xlu0 %v1053_v57  ;;  %v10853_v57 = vsel %vm538_vm4, 0.0, %v10355_v53 }
 0x346   : > { %v10861_v1 = vadd.f32 %v991_v6, %v10853_v57  ;;  %v10874_v6 = vadd.f32 %v995_v2, %v10742_v56 }
 0x348   : > { %v1032_v28 = vsel %vm1013_vm9, %v10861_v1, -inf  ;;  %v1044_v53 = vsel %vm1013_vm9, %v10874_v6, -inf }
 0x35b   : > { %1435 = vrot.lane.b32.xlu0 %v10631_v50, %s10354_s20 }
 0x35c   : > { %1027 = vmax.xlane.f32.xlu1 %v1026_v33  ;;  %v10883_v33 = vpop.permute.xlu0 %1449 }
 0x360   : > { %1033 = vmax.xlane.f32.xlu1 %v1032_v28  ;;  %v10885_v28 = vpop.permute.xlu0 %1445 }
 0x364   : > { %1039 = vmax.xlane.f32.xlu1 %v1038_v63  ;;  %v10887_v19 = vpop.permute.xlu0 %1443 }
 0x368   : > { %1045 = vmax.xlane.f32.xlu1 %v1044_v53  ;;  %v10889_v2 = vpop.permute.xlu0 %1453 }
 0x36c   : > { %1051 = vmax.xlane.f32.xlu1 %v1050_v11  ;;  %v10891_v63 = vpop.permute.xlu0 %1439 }
 0x370   : > { %v10893_v62 = vpop.permute.xlu0 %1437 }
 0x3b0   : > { %v1019_v55 = vpop.xlane.xlu1 %1018 }
 0x3b1   : > { %v1057_v18 = vsub.f32 %v10763_v8, %v1019_v55 }
 0x3b2   : > { %v1016_v53 = vpop.xlane.xlu0 %1015 }
 0x3b3   : > { %v1072_v54 = vmul.f32 1.442695, %v1057_v18  ;;  %v1056_v47 = vsub.f32 %v10772_v17, %v1016_v53 }
 0x3b5   : > { %9812 = vpow2.f32 %v1072_v54  ;;  %v1070_v11 = vmul.f32 1.442695, %v1056_v47 }
 0x3b6   : > { %v1025_v46 = vpop.xlane.xlu0 %1024 }
 0x3b7   : > { %9814 = vpow2.f32 %v1070_v11  ;;  %v1059_v39 = vsub.f32 %v10778_v25, %v1025_v46  ;;  %v10920_v25 = vpop.permute.xlu1 %1441 }
 0x3b9   : > { %v1076_v38 = vmul.f32 1.442695, %v1059_v39 }
 0x3ba   : > { %v1022_v30 = vpop.xlane.xlu0 %1021 }
 0x3bb   : > { %9816 = vpow2.f32 %v1076_v38  ;;  %v1058_v31 = vsub.f32 %v10788_v59, %v1022_v30 }
 0x3bd   : > { %v1074_v15 = vmul.f32 1.442695, %v1058_v31 }
 0x3be   : > { %v1031_v16 = vpop.xlane.xlu0 %1030 }
 0x3bf   : > { %9818 = vpow2.f32 %v1074_v15  ;;  %v1061_v55 = vsub.f32 %v10798_v9, %v1031_v16 }
 0x3c1   : > { %v1080_v8 = vmul.f32 1.442695, %v1061_v55 }
 0x3c2   : > { %v10900_v18 = vpop.eup %9812  ;;  %v1037_v17 = vpop.xlane.xlu0 %1036 }
 0x3c3   : > { %9820 = vpow2.f32 %v1080_v8  ;;  %v1101_v47 = vsel %vm1013_vm9, %v10900_v18, 0.0  ;;  %v1063_v59 = vsub.f32 %v10808_v26, %v1037_v17 }
 0x3c4   : > { %v10904_v54 = vpop.eup %9814  ;;  %1102 = vadd.xlane.f32.xlu1 %v1101_v47 }
 0x3c5   : > { %v1098_v38 = vsel %vm1013_vm9, %v10904_v54, 0.0  ;;  %v1084_v55 = vmul.f32 1.442695, %v1063_v59 }
 0x3c6   : > { %v1043_v9 = vpop.xlane.xlu0 %1042 }
 0x3c7   : > { %v1065_v8 = vsub.f32 %v10820_v3, %v1043_v9 }
 0x3c8   : > { %v10908_v39 = vpop.eup %9816  ;;  %1099 = vadd.xlane.f32.xlu1 %v1098_v38 }
 0x3c9   : > { %v1107_v30 = vsel %vm1013_vm9, %v10908_v39, 0.0 }
 0x3ca   : > { %1108 = vadd.xlane.f32.xlu0 %v1107_v30  ;;  %v1049_v58 = vpop.xlane.xlu0 %1048 }
 0x3cb   : > { %v1067_v17 = vsub.f32 %v10829_v14, %v1049_v58 }
 0x3cc   : > { %v10912_v31 = vpop.eup %9818 }
 0x3cd   : > { %v1104_v46 = vsel %vm1013_vm9, %v10912_v31, 0.0  ;;  %v1092_v59 = vmul.f32 1.442695, %v1067_v17 }
 0x3ce   : > { %1105 = vadd.xlane.f32.xlu1 %v1104_v46  ;;  %v1088_v46 = vmul.f32 1.442695, %v1065_v8 }
 0x3d0   : > { %v10916_v15 = vpop.eup %9820 }
 0x3d1   : > { %v1113_v16 = vsel %vm1013_vm9, %v10916_v15, 0.0 }
 0x3d2   : > { %1114 = vadd.xlane.f32.xlu1 %v1113_v16 }
 0x3e5   : > { %v1028_v53 = vpop.xlane.xlu1 %1027 }
 0x3e6   : > { %v1060_v11 = vsub.f32 %v10850_v22, %v1028_v53 }
 0x3e8   : > { %v1078_v47 = vmul.f32 1.442695, %v1060_v11 }
 0x3e9   : > { %v1034_v38 = vpop.xlane.xlu1 %1033 }
 0x3ea   : > { %9822 = vpow2.f32 %v1078_v47  ;;  %v1062_v30 = vsub.f32 %v10861_v1, %v1034_v38 }
 0x3eb   : > { %9824 = vpow2.f32 %v1084_v55 }
 0x3ec   : > { %v1082_v16 = vmul.f32 1.442695, %v1062_v30 }
 0x3ed   : > { %v1040_v56 = vpop.xlane.xlu1 %1039 }
 0x3ee   : > { %9826 = vpow2.f32 %v1082_v16  ;;  %v1064_v26 = vsub.f32 %v10869_v37, %v1040_v56  ;;  %v1055_v16 = vpop.xlane.xlu0 %1054 }
 0x3ef   : > { %9828 = vpow2.f32 %v1088_v46 }
 0x3f0   : > { %v1086_v22 = vmul.f32 1.442695, %v1064_v26  ;;  %v1069_v26 = vsub.f32 %v10837_v5, %v1055_v16 }
 0x3f1   : > { %v1046_v38 = vpop.xlane.xlu1 %1045 }
 0x3f2   : > { %9830 = vpow2.f32 %v1086_v22  ;;  %v1066_v30 = vsub.f32 %v10874_v6, %v1046_v38  ;;  %v1096_v22 = vmul.f32 1.442695, %v1069_v26 }
 0x3f3   : > { %9832 = vpow2.f32 %v1092_v59 }
 0x3f4   : > { %v1090_v46 = vmul.f32 1.442695, %v1066_v30 }
 0x3f5   : > { %v1052_v17 = vpop.xlane.xlu1 %1051 }
 0x3f6   : > { %9834 = vpow2.f32 %v1090_v46  ;;  %v1068_v59 = vsub.f32 %v10879_v60, %v1052_v17 }
 0x3f7   : > { %v10928_v3 = vpop.eup %9822  ;;  %9836 = vpow2.f32 %v1096_v22 }
 0x3f8   : > { %v1110_v1 = vsel %vm1013_vm9, %v10928_v3, 0.0  ;;  %v10932_v9 = vpop.eup %9824 }
 0x3f9   : > { %1111 = vadd.xlane.f32.xlu1 %v1110_v1  ;;  %v1119_v14 = vsel %vm1013_vm9, %v10932_v9, 0.0  ;;  %v1094_v1 = vmul.f32 1.442695, %v1068_v59 }
 0x3fb   : > { %v10934_v53 = vpop.eup %9826  ;;  %9838 = vpow2.f32 %v1094_v1 }
 0x3fc   : > { %v1116_v56 = vsel %vm1013_vm9, %v10934_v53, 0.0  ;;  %v10940_v58 = vpop.eup %9828 }
 0x3fd   : > { %1117 = vadd.xlane.f32.xlu0 %v1116_v56  ;;  %1120 = vadd.xlane.f32.xlu1 %v1119_v14  ;;  %v1125_v37 = vsel %vm1013_vm9, %v10940_v58, 0.0 }
 0x3ff   : > { %v10944_v11 = vpop.eup %9830 }
 0x400   : > { %v1122_v55 = vsel %vm1013_vm9, %v10944_v11, 0.0  ;;  %v10948_v8 = vpop.eup %9832 }
 0x401   : > { %1126 = vadd.xlane.f32.xlu1 %v1125_v37  ;;  %v1131_v47 = vsel %vm1013_vm9, %v10948_v8, 0.0 }
 0x403   : > { %v10959_v56 = vpop.eup %9834 }
 0x404   : > { %v1128_v6 = vsel %vm1013_vm9, %v10959_v56, 0.0  ;;  %v10963_v14 = vpop.eup %9836 }
 0x405   : > { %1123 = vadd.xlane.f32.xlu1 %v1122_v55  ;;  %v1137_v37 = vsel %vm1013_vm9, %v10963_v14, 0.0 }
 0x408   : > { %v10967_v55 = vpop.eup %9838 }
 0x409   : > { %1132 = vadd.xlane.f32.xlu1 %v1131_v47  ;;  %v1134_v5 = vsel %vm1013_vm9, %v10967_v55, 0.0  ;;  %v10975_v47 = vpop.permute.xlu0 %1435 }
 0x413   : > { %1433 = vrot.lane.b32.xlu0 %v10623_v48, %s10354_s20 }
 0x41a   : > { %1429 = vrot.lane.b32.xlu1 %v10583_v20, %s10354_s20 }
 0x432   : > { %1129 = vadd.xlane.f32.xlu0 %v1128_v6 }
 0x43e   : > { %1138 = vadd.xlane.f32.xlu1 %v1137_v37 }
 0x442   : > { %1135 = vadd.xlane.f32.xlu1 %v1134_v5 }
 0x448   : > { %1431 = vrot.lane.b32.xlu0 %v10637_v51, %s10354_s20 }
 0x44c   : > { %1401 = vrot.lane.b32.xlu0 %v10583_v20, %s10356_s21 }
 0x44d   : > { %v1103_v60 = vpop.xlane.xlu1 %1102 }
 0x44e   : > { %9840 = vrcp.f32 %v1103_v60 }
 0x450   : > { %1405 = vrot.lane.b32.xlu0 %v10623_v48, %s10356_s21 }
 0x451   : > { %v1100_v38 = vpop.xlane.xlu1 %1099 }
 0x452   : > { %9842 = vrcp.f32 %v1100_v38 }
 0x453   : > { %1403 = vrot.lane.b32.xlu1 %v10637_v51, %s10356_s21  ;;  %v1109_v30 = vpop.xlane.xlu0 %1108 }
 0x454   : > { %1409 = vrot.lane.b32.xlu0 %v10615_v44, %s10356_s21  ;;  %9844 = vrcp.f32 %v1109_v30 }
 0x457   : > { %1407 = vrot.lane.b32.xlu1 %v10631_v50, %s10356_s21  ;;  %v1106_v46 = vpop.xlane.xlu1 %1105 }
 0x458   : > { %9846 = vrcp.f32 %v1106_v46  ;;  %1413 = vrot.lane.b32.xlu0 %v10607_v42, %s10356_s21 }
 0x45b   : > { %1411 = vrot.lane.b32.xlu1 %v10625_v49, %s10356_s21  ;;  %v9841_v16 = vpop.eup %9840 }
 0x45c   : > { %1417 = vrot.lane.b32.xlu0 %v10599_v40, %s10356_s21  ;;  %v1155_v22 = vmul.f32 %v9841_v16, %v10900_v18 }
 0x45f   : > { %v9843_v26 = vpop.eup %9842  ;;  %1415 = vrot.lane.b32.xlu1 %v10617_v45, %s10356_s21 }
 0x460   : > { %1421 = vrot.lane.b32.xlu0 %v10591_v35, %s10356_s21  ;;  %v1154_v17 = vmul.f32 %v9843_v26, %v10904_v54 }
 0x461   : > { %v9845_v59 = vpop.eup %9844 }
 0x462   : > { %9080 = vmatprep.mubr.msk.f32.mxu0 %vm1013_vm9, %v1154_v17 }
 0x463   : > { %1419 = vrot.lane.b32.xlu1 %v10609_v43, %s10356_s21  ;;  %9081 = vmatmul.mubr.msk.f32.vlgmr.msra.gmra.mxu0 %vm1013_vm9, %v1155_v22 }
 0x464   : > { %9102 = vmatpush3.xpose.msk.msra.mxu0 %vm199_vm1, %v10731_v29  ;;  %1425 = vrot.lane.b32.xlu0 %v10601_v41, %s10356_s21  ;;  %v1157_v29 = vmul.f32 %v9845_v59, %v10908_v39 }
 0x465   : > { %v9847_v1 = vpop.eup %9846  ;;  %9103 = vmatprep.subr.msk.mxu0 %vm199_vm1, %v10889_v2 }
 0x466   : > { %v1156_v18 = vmul.f32 %v9847_v1, %v10912_v31 }
 0x467   : > { %1423 = vrot.lane.b32.xlu1 %v10587_v32, %s10356_s21 }
 0x468   : > { %9104 = vmatpush3.xpose.msk.msra.mxu0 %vm199_vm1, %v10889_v2  ;;  %1856 = vrot.lane.b32.xlu0 %v10593_v36, %s10357_s22 }
 0x469   : > { %9083 = vmatprep.mubr.msk.f32.mxu0 %vm1013_vm9, %v1156_v18  ;;  %9105 = vmatprep.subr.msk.mxu0 %vm199_vm1, %v10698_v21 }
 0x46a   : > { %9084 = vmatmul.mubr.msk.f32.gmra.mxu0 %vm1013_vm9, %v1157_v29 }
 0x46b   : > { %1427 = vrot.lane.b32.xlu1 %v10593_v36, %s10356_s21 }
 0x46c   : > { %9106 = vmatpush3.xpose.msk.msra.mxu0 %vm199_vm1, %v10698_v21  ;;  %1852 = vrot.lane.b32.xlu0 %v10587_v32, %s10357_s22  ;;  %v1115_v21 = vpop.xlane.xlu1 %1114 }
 0x46d   : > { %9107 = vmatprep.subr.msk.mxu0 %vm199_vm1, %v10883_v33  ;;  %9848 = vrcp.f32 %v1115_v21 }
 0x46f   : > { %1854 = vrot.lane.b32.xlu1 %v10601_v41, %s10357_s22 }
 0x470   : > { %9108 = vmatpush3.xpose.msk.msra.mxu0 %vm199_vm1, %v10883_v33  ;;  %1848 = vrot.lane.b32.xlu0 %v10609_v43, %s10357_s22 }
 0x471   : > { %9109 = vmatprep.subr.msk.mxu0 %vm199_vm1, %v10702_v23 }
 0x473   : > { %1850 = vrot.lane.b32.xlu1 %v10591_v35, %s10357_s22 }
 0x474   : > { %9110 = vmatpush3.xpose.msk.msra.mxu0 %vm199_vm1, %v10702_v23  ;;  %1844 = vrot.lane.b32.xlu0 %v10617_v45, %s10357_s22 }
 0x475   : > { %9111 = vmatprep.subr.msk.mxu0 %vm199_vm1, %v10885_v28 }
 0x477   : > { %1846 = vrot.lane.b32.xlu1 %v10599_v40, %s10357_s22 }
 0x478   : > { %9112 = vmatpush3.xpose.msk.msra.mxu0 %vm199_vm1, %v10885_v28  ;;  %1840 = vrot.lane.b32.xlu0 %v10625_v49, %s10357_s22 }
 0x479   : > { %9113 = vmatprep.subr.msk.mxu0 %vm199_vm1, %v10887_v19 }
 0x47b   : > { %1842 = vrot.lane.b32.xlu1 %v10607_v42, %s10357_s22 }
 0x47c   : > { %9114 = vmatpush3.xpose.msk.msra.mxu0 %vm199_vm1, %v10887_v19  ;;  %1836 = vrot.lane.b32.xlu0 %v10631_v50, %s10357_s22 }
 0x47d   : > { %9115 = vmatprep.subr.msk.mxu0 %vm199_vm1, %v10920_v25 }
 0x47f   : > { %1838 = vrot.lane.b32.xlu1 %v10615_v44, %s10357_s22 }
 0x480   : > { %9116 = vmatpush3.xpose.msk.msra.mxu0 %vm199_vm1, %v10920_v25  ;;  %1832 = vrot.lane.b32.xlu0 %v10637_v51, %s10357_s22 }
 0x481   : > { %9117 = vmatprep.subr.msk.mxu0 %vm199_vm1, %v10891_v63 }
 0x482   : > { %v1112_v23 = vpop.xlane.xlu1 %1111 }
 0x483   : > { %9850 = vrcp.f32 %v1112_v23  ;;  %1834 = vrot.lane.b32.xlu1 %v10623_v48, %s10357_s22 }
 0x484   : > { %9118 = vmatpush3.xpose.msk.msra.mxu0 %vm199_vm1, %v10891_v63  ;;  %2174 = vrot.lane.b32.xlu0 %v10593_v36, %s10358_s23  ;;  %v9849_v63 = vpop.eup %9848 }
 0x485   : > { %9119 = vmatprep.subr.msk.mxu0 %vm199_vm1, %v10893_v62  ;;  %v1159_v31 = vmul.f32 %v9849_v63, %v10916_v15 }
 0x486   : > { %v1118_v33 = vpop.xlane.xlu0 %1117  ;;  %v1121_v28 = vpop.xlane.xlu1 %1120 }
 0x487   : > { %9852 = vrcp.f32 %v1118_v33  ;;  %1830 = vrot.lane.b32.xlu1 %v10583_v20, %s10357_s22 }
 0x488   : > { %9854 = vrcp.f32 %v1121_v28  ;;  %9120 = vmatpush3.xpose.msk.msra.mxu0 %vm199_vm1, %v10893_v62  ;;  %2172 = vrot.lane.b32.xlu0 %v10601_v41, %s10358_s23 }
 0x489   : > { %9121 = vmatprep.subr.msk.mxu0 %vm199_vm1, %v10975_v47 }
 0x48a   : > { %v1434_v19 = vpop.permute.xlu0 %1433  ;;  %v1127_v2 = vpop.xlane.xlu1 %1126 }
 0x48b   : > { %2170 = vrot.lane.b32.xlu1 %v10587_v32, %s10358_s23  ;;  %9856 = vrcp.f32 %v1127_v2 }
 0x48c   : > { %9122 = vmatpush3.xpose.msk.msra.mxu0 %vm199_vm1, %v10975_v47  ;;  %2168 = vrot.lane.b32.xlu0 %v10591_v35, %s10358_s23 }
 0x48d   : > { %9123 = vmatprep.subr.msk.mxu0 %vm199_vm1, %v1434_v19 }
 0x48e   : > { %v1124_v62 = vpop.xlane.xlu1 %1123 }
 0x48f   : > { %9858 = vrcp.f32 %v1124_v62  ;;  %2166 = vrot.lane.b32.xlu1 %v10609_v43, %s10358_s23 }
 0x490   : > { %v9851_v54 = vpop.eup %9850  ;;  %9124 = vmatpush3.xpose.msk.msra.mxu0 %vm199_vm1, %v1434_v19  ;;  %2164 = vrot.lane.b32.xlu0 %v10599_v40, %s10358_s23 }
 0x491   : > { %v1158_v39 = vmul.f32 %v9851_v54, %v10928_v3 }
 0x493   : > { %9086 = vmatprep.mubr.msk.f32.mxu0 %vm1013_vm9, %v1158_v39 }
 0x494   : > { %v9853_v25 = vpop.eup %9852  ;;  %2162 = vrot.lane.b32.xlu0 %v10617_v45, %s10358_s23  ;;  %9087 = vmatmul.mubr.msk.f32.gmra.mxu0 %vm1013_vm9, %v1159_v31 }
 0x495   : > { %v9855_v6 = vpop.eup %9854  ;;  %v1160_v37 = vmul.f32 %v9853_v25, %v10934_v53 }
 0x496   : > { %v1161_v5 = vmul.f32 %v9855_v6, %v10932_v9  ;;  %v1133_v9 = vpop.xlane.xlu1 %1132 }
 0x497   : > { %9089 = vmatprep.mubr.msk.f32.mxu0 %vm1013_vm9, %v1160_v37  ;;  %9860 = vrcp.f32 %v1133_v9 }
 0x498   : > { %2158 = vrot.lane.b32.xlu0 %v10625_v49, %s10358_s23  ;;  %9090 = vmatmul.mubr.msk.f32.gmra.mxu0 %vm1013_vm9, %v1161_v5  ;;  %v9857_v15 = vpop.eup %9856 }
 0x499   : > { %v1163_v47 = vmul.f32 %v9857_v15, %v10940_v58 }
 0x49a   : > { %v1430_v30 = vpop.permute.xlu1 %1429 }
 0x49c   : > { %v9859_v3 = vpop.eup %9858  ;;  %2156 = vrot.lane.b32.xlu0 %v10615_v44, %s10358_s23 }
 0x49d   : > { %v1162_v60 = vmul.f32 %v9859_v3, %v10944_v11 }
 0x49f   : > { %9092 = vmatprep.mubr.msk.f32.mxu0 %vm1013_vm9, %v1162_v60 }
 0x4a0   : > { %9093 = vmatmul.mubr.msk.f32.gmra.mxu0 %vm1013_vm9, %v1163_v47 }
 0x4a4   : > { %v9861_v16 = vpop.eup %9860 }
 0x4a5   : > { %v1165_v1 = vmul.f32 %v9861_v16, %v10948_v8 }
 0x4bb   : > { %v1130_v53 = vpop.xlane.xlu0 %1129 }
 0x4bc   : > { %9862 = vrcp.f32 %v1130_v53 }
 0x4bf   : > { %v1432_v38 = vpop.permute.xlu0 %1431 }
 0x4c0   : > { %9125 = vmatprep.subr.msk.mxu0 %vm199_vm1, %v1432_v38 }
 0x4c1   : > { %9126 = vmatpush3.xpose.msk.msra.mxu0 %vm199_vm1, %v1432_v38 }
 0x4c2   : > { %9127 = vmatprep.subr.msk.mxu0 %vm199_vm1, %v1430_v30 }
 0x4c3   : > { %v1402_v46 = vpop.permute.xlu0 %1401 }
 0x4c5   : > { %9128 = vmatpush3.xpose.msk.msra.mxu0 %vm199_vm1, %v1430_v30 }
 0x4c7   : > { %v1406_v58 = vpop.permute.xlu0 %1405  ;;  %v1139_v11 = vpop.xlane.xlu1 %1138 }
 0x4c8   : > { %9864 = vrcp.f32 %v1139_v11 }
 0x4c9   : > { %v9863_v26 = vpop.eup %9862 }
 0x4ca   : > { %v1164_v17 = vmul.f32 %v9863_v26, %v10959_v56 }
 0x4cb   : > { %v1410_v22 = vpop.permute.xlu0 %1409  ;;  %v1136_v59 = vpop.xlane.xlu1 %1135 }
 0x4cc   : > { %9866 = vrcp.f32 %v1136_v59  ;;  %9095 = vmatprep.mubr.msk.f32.mxu0 %vm1013_vm9, %v1164_v17 }
 0x4cd   : > { %9096 = vmatmul.mubr.msk.f32.gmra.mxu0 %vm1013_vm9, %v1165_v1 }
 0x4cf   : > { %v1414_v18 = vpop.permute.xlu0 %1413  ;;  %v1404_v29 = vpop.permute.xlu1 %1403 }
 0x4d3   : > { %v1418_v21 = vpop.permute.xlu0 %1417  ;;  %v1408_v23 = vpop.permute.xlu1 %1407 }
 0x4d5   : > { %v9865_v19 = vpop.eup %9864 }
 0x4d6   : > { %v1167_v54 = vmul.f32 %v9865_v19, %v10963_v14 }
 0x4d7   : > { %v1422_v33 = vpop.permute.xlu0 %1421  ;;  %v1412_v28 = vpop.permute.xlu1 %1411 }
 0x4d9   : > { %v9867_v2 = vpop.eup %9866 }
 0x4da   : > { %v1166_v56 = vmul.f32 %v9867_v2, %v10967_v55 }
 0x4db   : > { %v1426_v62 = vpop.permute.xlu0 %1425  ;;  %v1416_v63 = vpop.permute.xlu1 %1415 }
 0x4dc   : > { %9098 = vmatprep.mubr.msk.f32.mxu0 %vm1013_vm9, %v1166_v56 }
 0x4dd   : > { %9099 = vmatmul.mubr.msk.f32.gmra.mxu0 %vm1013_vm9, %v1167_v54 }
 0x4de   : > { %9129 = vmatprep.mubr.msk.f32.mxu0 %vm199_vm1, %v1402_v46 }
 0x4df   : > { %v1857_v8 = vpop.permute.xlu0 %1856  ;;  %v1420_v39 = vpop.permute.xlu1 %1419 }
 0x4e0   : > { %9150 = vmatprep.subr.mxu1 %v1857_v8 }
 0x4e1   : > { %9130 = vmatmul.mubr.msk.f32.vlgmr.msra.gmra.mxu0 %vm199_vm1, %v1404_v29  ;;  %9151 = vmatpush3.msra.mxu1 %v1857_v8 }
 0x4e2   : > { %9132 = vmatprep.mubr.msk.f32.mxu0 %vm199_vm1, %v1406_v58 }
 0x4e3   : > { %v1853_v31 = vpop.permute.xlu0 %1852  ;;  %v1424_v55 = vpop.permute.xlu1 %1423 }
 0x4e5   : > { %9133 = vmatmul.mubr.msk.f32.gmra.mxu0 %vm199_vm1, %v1408_v23 }
 0x4e6   : > { %9135 = vmatprep.mubr.msk.f32.mxu0 %vm199_vm1, %v1410_v22 }
 0x4e7   : > { %v1849_v14 = vpop.permute.xlu0 %1848  ;;  %v1428_v25 = vpop.permute.xlu1 %1427 }
 0x4e9   : > { %9136 = vmatmul.mubr.msk.f32.gmra.mxu0 %vm199_vm1, %v1412_v28 }
 0x4ea   : > { %9138 = vmatprep.mubr.msk.f32.mxu0 %vm199_vm1, %v1414_v18 }
 0x4eb   : > { %v1855_v6 = vpop.permute.xlu1 %1854  ;;  %v1845_v37 = vpop.permute.xlu0 %1844 }
 0x4ec   : > { %9152 = vmatprep.subr.mxu1 %v1855_v6 }
 0x4ed   : > { %9139 = vmatmul.mubr.msk.f32.gmra.mxu0 %vm199_vm1, %v1416_v63  ;;  %9153 = vmatpush3.msra.mxu1 %v1855_v6 }
 0x4ee   : > { %9141 = vmatprep.mubr.msk.f32.mxu0 %vm199_vm1, %v1418_v21  ;;  %9154 = vmatprep.subr.mxu1 %v1853_v31 }
 0x4ef   : > { %9155 = vmatpush3.msra.mxu1 %v1853_v31  ;;  %v1851_v5 = vpop.permute.xlu1 %1850  ;;  %v1841_v15 = vpop.permute.xlu0 %1840 }
 0x4f0   : > { %9156 = vmatprep.subr.mxu1 %v1851_v5 }
 0x4f1   : > { %9142 = vmatmul.mubr.msk.f32.gmra.mxu0 %vm199_vm1, %v1420_v39  ;;  %9157 = vmatpush3.msra.mxu1 %v1851_v5 }
 0x4f2   : > { %9144 = vmatprep.mubr.msk.f32.mxu0 %vm199_vm1, %v1422_v33  ;;  %9158 = vmatprep.subr.mxu1 %v1849_v14 }
 0x4f3   : > { %9159 = vmatpush3.msra.mxu1 %v1849_v14  ;;  %v1847_v3 = vpop.permute.xlu1 %1846  ;;  %v1837_v47 = vpop.permute.xlu0 %1836 }
 0x4f4   : > { %9160 = vmatprep.subr.mxu1 %v1847_v3 }
 0x4f5   : > { %9145 = vmatmul.mubr.msk.f32.gmra.mxu0 %vm199_vm1, %v1424_v55  ;;  %9161 = vmatpush3.msra.mxu1 %v1847_v3 }
 0x4f6   : > { %9147 = vmatprep.mubr.msk.f32.mxu0 %vm199_vm1, %v1426_v62  ;;  %9162 = vmatprep.subr.mxu1 %v1845_v37 }
 0x4f7   : > { %9163 = vmatpush3.msra.mxu1 %v1845_v37  ;;  %v1843_v60 = vpop.permute.xlu1 %1842  ;;  %v1833_v53 = vpop.permute.xlu0 %1832 }
 0x4f8   : > { %9164 = vmatprep.subr.mxu1 %v1843_v60 }
 0x4f9   : > { %9148 = vmatmul.mubr.msk.f32.gmra.mxu0 %vm199_vm1, %v1428_v25  ;;  %9165 = vmatpush3.msra.mxu1 %v1843_v60 }
 0x4fa   : > { %9166 = vmatprep.subr.mxu1 %v1841_v15 }
 0x4fb   : > { %9167 = vmatpush3.msra.mxu1 %v1841_v15  ;;  %v1839_v9 = vpop.permute.xlu1 %1838  ;;  %v11139_v46 = vpop.permute.xlu0 %2174 }
 0x4fc   : > { %9168 = vmatprep.subr.mxu1 %v1839_v9 }
 0x4fd   : > { %9169 = vmatpush3.msra.mxu1 %v1839_v9 }
 0x4fe   : > { %9170 = vmatprep.subr.mxu1 %v1837_v47 }
 0x4ff   : > { %9171 = vmatpush3.msra.mxu1 %v1837_v47  ;;  %v1835_v38 = vpop.permute.xlu1 %1834 }
 0x500   : > { %9172 = vmatprep.subr.mxu1 %v1835_v38 }
 0x501   : > { %9173 = vmatpush3.msra.mxu1 %v1835_v38 }
 0x502   : > { %9174 = vmatprep.subr.mxu1 %v1833_v53 }
 0x503   : > { %9175 = vmatpush3.msra.mxu1 %v1833_v53  ;;  %v1831_v30 = vpop.permute.xlu1 %1830 }
 0x504   : > { %9176 = vmatprep.subr.mxu1 %v1831_v30 }
 0x505   : > { %9177 = vmatpush3.msra.mxu1 %v1831_v30 }
 0x506   : > { %9199 = vmatprep.subr.msk.mxu1 %vm199_vm1, %v11139_v46 }
 0x523   : > { %v9082_v58 = vpop.f32.mrf.mxu0 }
 0x524   : > { %1388 = vst.msk [vmem:[#allocation2 + $0x8] sm:$0xff] %vm199_vm1, %v9082_v58 }
 0x525   : > { %v1318_v11 = vpop.f32.mrf.mxu0 }
 0x526   : > { %1387 = vst.msk [vmem:[#allocation2] sm:$0xff] %vm199_vm1, %v1318_v11 }
 0x52a   : > { %v9085_v16 = vpop.f32.mrf.mxu0 }
 0x52b   : > { %1390 = vst.msk [vmem:[#allocation2 + $0x18] sm:$0xff] %vm199_vm1, %v9085_v16 }
 0x52c   : > { %v1328_v26 = vpop.f32.mrf.mxu0 }
 0x52d   : > { %1389 = vst.msk [vmem:[#allocation2 + $0x10] sm:$0xff] %vm199_vm1, %v1328_v26 }
 0x554   : > { %v9088_v17 = vpop.f32.mrf.mxu0 }
 0x555   : > { %1392 = vst.msk [vmem:[#allocation2 + $0x28] sm:$0xff] %vm199_vm1, %v9088_v17 }
 0x556   : > { %v1338_v22 = vpop.f32.mrf.mxu0 }
 0x557   : > { %1391 = vst.msk [vmem:[#allocation2 + $0x20] sm:$0xff] %vm199_vm1, %v1338_v22 }
 0x558   : > { %v9091_v59 = vpop.f32.mrf.mxu0 }
 0x559   : > { %1394 = vst.msk [vmem:[#allocation2 + $0x38] sm:$0xff] %vm199_vm1, %v9091_v59 }
 0x55a   : > { %v1348_v1 = vpop.f32.mrf.mxu0 }
 0x55b   : > { %1393 = vst.msk [vmem:[#allocation2 + $0x30] sm:$0xff] %vm199_vm1, %v1348_v1 }
 0x560   : > { %v9094_v18 = vpop.f32.mrf.mxu0 }
 0x561   : > { %1396 = vst.msk [vmem:[#allocation2 + $0x48] sm:$0xff] %vm199_vm1, %v9094_v18 }
 0x562   : > { %v1358_v29 = vpop.f32.mrf.mxu0 }
 0x563   : > { %1395 = vst.msk [vmem:[#allocation2 + $0x40] sm:$0xff] %vm199_vm1, %v1358_v29 }
 0x58d   : > { %v9097_v21 = vpop.f32.mrf.mxu0 }
 0x58e   : > { %1398 = vst.msk [vmem:[#allocation2 + $0x58] sm:$0xff] %vm199_vm1, %v9097_v21 }
 0x58f   : > { %v1368_v23 = vpop.f32.mrf.mxu0 }
 0x590   : > { %1397 = vst.msk [vmem:[#allocation2 + $0x50] sm:$0xff] %vm199_vm1, %v1368_v23 }
 0x59d   : > { %v9100_v33 = vpop.f32.mrf.mxu0 }
 0x59e   : > { %1400 = vst.msk [vmem:[#allocation2 + $0x68] sm:$0xff] %vm199_vm1, %v9100_v33 }
 0x59f   : > { %v1378_v28 = vpop.f32.mrf.mxu0 }
 0x5a0   : > { %1399 = vst.msk [vmem:[#allocation2 + $0x60] sm:$0xff] %vm199_vm1, %v1378_v28 }
 0x5a1   : > { %v9131_v19 = vpop.f32.mrf.mxu0 }
 0x5a2   : > { %v1649_v2 = vmul.f32 0.35355338, %v9131_v19 }
 0x5a3   : > { %v1579_v56 = vpop.f32.mrf.mxu0 }
 0x5a4   : > { %v11158_v62 = vadd.f32 %v1649_v2, %v10755_v0  ;;  %v1648_v63 = vmul.f32 0.35355338, %v1579_v56 }
 0x5a5   : > { %v9134_v54 = vpop.f32.mrf.mxu0 }
 0x5a6   : > { %v1651_v8 = vmul.f32 0.35355338, %v9134_v54  ;;  %v1679_v39 = vsel %vm1013_vm9, %v11158_v62, -inf  ;;  %v11163_v31 = vadd.f32 %v1648_v63, %v10760_v4 }
 0x5a7   : > { %1680 = vmax.xlane.f32.xlu1 %v1679_v39  ;;  %v1589_v55 = vpop.f32.mrf.mxu0 }
 0x5a8   : > { %v11166_v14 = vadd.f32 %v1651_v8, %v10766_v10  ;;  %v1650_v25 = vmul.f32 0.35355338, %v1589_v55  ;;  %v1676_v6 = vsel %vm1013_vm9, %v11163_v31, -inf }
 0x5a9   : > { %1677 = vmax.xlane.f32.xlu0 %v1676_v6  ;;  %v9137_v37 = vpop.f32.mrf.mxu0 }
 0x5aa   : > { %v1653_v15 = vmul.f32 0.35355338, %v9137_v37  ;;  %v1685_v3 = vsel %vm1013_vm9, %v11166_v14, -inf  ;;  %v11173_v60 = vadd.f32 %v1650_v25, %v10781_v27 }
 0x5ab   : > { %v1599_v5 = vpop.f32.mrf.mxu0 }
 0x5ac   : > { %v11176_v53 = vadd.f32 %v1653_v15, %v10791_v61  ;;  %v1682_v30 = vsel %vm1013_vm9, %v11173_v60, -inf  ;;  %v1652_v63 = vmul.f32 0.35355338, %v1599_v5 }
 0x5ad   : > { %1686 = vmax.xlane.f32.xlu0 %v1685_v3  ;;  %v9140_v47 = vpop.f32.mrf.mxu0 }
 0x5ae   : > { %v1655_v38 = vmul.f32 0.35355338, %v9140_v47  ;;  %v1691_v17 = vsel %vm1013_vm9, %v11176_v53, -inf  ;;  %v11205_v8 = vadd.f32 %v1652_v63, %v10845_v7 }
 0x5af   : > { %v1609_v9 = vpop.f32.mrf.mxu0 }
 0x5b0   : > { %v11181_v16 = vadd.f32 %v1655_v38, %v10801_v12  ;;  %v1654_v54 = vmul.f32 0.35355338, %v1609_v9  ;;  %v1688_v55 = vsel %vm1013_vm9, %v11205_v8, -inf  ;;  %v14139_v9 = vld [vmem:[#allocation19_spill] sm:$0xff] }
 0x5b1   : > { %1683 = vmax.xlane.f32.xlu0 %v1682_v30  ;;  %v9143_v58 = vpop.f32.mrf.mxu0 }
 0x5b2   : > { %v1657_v26 = vmul.f32 0.35355338, %v9143_v58  ;;  %v1697_v29 = vsel %vm1013_vm9, %v11181_v16, -inf  ;;  %v11212_v25 = vadd.f32 %v1654_v54, %v10853_v57  ;;  %v14140_v58 = vld [vmem:[#allocation20_spill] sm:$0xff] }
 0x5b3   : > { %v1619_v11 = vpop.f32.mrf.mxu0 }
 0x5b4   : > { %v11186_v1 = vadd.f32 %v1657_v26, %v10811_v52  ;;  %v1656_v39 = vmul.f32 0.35355338, %v1619_v11  ;;  %v1694_v37 = vsel %vm1013_vm9, %v11212_v25, -inf }
 0x5b5   : > { %1692 = vmax.xlane.f32.xlu0 %v1691_v17  ;;  %v9146_v22 = vpop.f32.mrf.mxu0  ;;  %v11231_v17 = vpop.permute.xlu0 %2172 }
 0x5b6   : > { %v1659_v18 = vmul.f32 0.35355338, %v9146_v22  ;;  %v1703_v28 = vsel %vm1013_vm9, %v11186_v1, -inf  ;;  %v11217_v5 = vadd.f32 %v1656_v39, %v10864_v34 }
 0x5b7   : > { %v1629_v59 = vpop.f32.mrf.mxu0 }
 0x5b8   : > { %2160 = vrot.lane.b32.xlu1 %v10607_v42, %s10358_s23  ;;  %v11193_v23 = vadd.f32 %v1659_v18, %v10823_v24  ;;  %v1658_v6 = vmul.f32 0.35355338, %v1629_v59  ;;  %v1700_v47 = vsel %vm1013_vm9, %v11217_v5, -inf }
 0x5b9   : > { %1698 = vmax.xlane.f32.xlu0 %v1697_v29  ;;  %v9149_v21 = vpop.f32.mrf.mxu0  ;;  %v11233_v22 = vpop.permute.xlu0 %2168 }
 0x5ba   : > { %v1661_v33 = vmul.f32 0.35355338, %v9149_v21  ;;  %v1709_v2 = vsel %vm1013_vm9, %v11193_v23, -inf  ;;  %v11222_v38 = vadd.f32 %v1658_v6, %v14139_v9  ;;  %v11239_v29 = vpop.permute.xlu1 %2170 }
 0x5bb   : > { %v1639_v15 = vpop.f32.mrf.mxu0 }
 0x5bc   : > { %v11198_v19 = vadd.f32 %v1661_v33, %v10832_v13  ;;  %v1660_v3 = vmul.f32 0.35355338, %v1639_v15  ;;  %v1706_v30 = vsel %vm1013_vm9, %v11222_v38, -inf }
 0x5bd   : > { %1704 = vmax.xlane.f32.xlu0 %v1703_v28  ;;  %v11235_v59 = vpop.permute.xlu0 %2164 }
 0x5be   : > { %v1715_v56 = vsel %vm1013_vm9, %v11198_v19, -inf  ;;  %v11227_v11 = vadd.f32 %v1660_v3, %v14140_v58  ;;  %v11243_v33 = vpop.permute.xlu1 %2166 }
 0x5c0   : > { %v1712_v26 = vsel %vm1013_vm9, %v11227_v11, -inf }
 0x5c1   : > { %1710 = vmax.xlane.f32.xlu0 %v1709_v2  ;;  %v11237_v18 = vpop.permute.xlu0 %2162 }
 0x5c5   : > { %1716 = vmax.xlane.f32.xlu0 %v1715_v56  ;;  %v11241_v21 = vpop.permute.xlu0 %2158 }
 0x5c9   : > { %v11245_v28 = vpop.permute.xlu0 %2156 }
 0x5db   : > { %2154 = vrot.lane.b32.xlu0 %v10631_v50, %s10358_s23 }
 0x5dc   : > { %1689 = vmax.xlane.f32.xlu1 %v1688_v55 }
 0x5e0   : > { %1695 = vmax.xlane.f32.xlu1 %v1694_v37 }
 0x5e4   : > { %1701 = vmax.xlane.f32.xlu1 %v1700_v47 }
 0x5e8   : > { %1707 = vmax.xlane.f32.xlu1 %v1706_v30 }
 0x5ec   : > { %1713 = vmax.xlane.f32.xlu1 %v1712_v26 }
 0x630   : > { %v1681_v2 = vpop.xlane.xlu1 %1680 }
 0x631   : > { %v1719_v56 = vsub.f32 %v11158_v62, %v1681_v2 }
 0x632   : > { %v1678_v63 = vpop.xlane.xlu0 %1677 }
 0x633   : > { %v1734_v54 = vmul.f32 1.442695, %v1719_v56  ;;  %v1718_v39 = vsub.f32 %v11163_v31, %v1678_v63 }
 0x635   : > { %9868 = vpow2.f32 %v1734_v54  ;;  %v1732_v55 = vmul.f32 1.442695, %v1718_v39 }
 0x636   : > { %v1687_v6 = vpop.xlane.xlu0 %1686 }
 0x637   : > { %9870 = vpow2.f32 %v1732_v55  ;;  %v1721_v37 = vsub.f32 %v11166_v14, %v1687_v6 }
 0x639   : > { %v1738_v15 = vmul.f32 1.442695, %v1721_v37 }
 0x63a   : > { %v1684_v3 = vpop.xlane.xlu0 %1683 }
 0x63b   : > { %9872 = vpow2.f32 %v1738_v15  ;;  %v1720_v47 = vsub.f32 %v11173_v60, %v1684_v3  ;;  %v11272_v15 = vpop.permute.xlu1 %2160 }
 0x63d   : > { %v1736_v30 = vmul.f32 1.442695, %v1720_v47 }
 0x63e   : > { %v1693_v26 = vpop.xlane.xlu0 %1692 }
 0x63f   : > { %9874 = vpow2.f32 %v1736_v30  ;;  %v1723_v62 = vsub.f32 %v11176_v53, %v1693_v26 }
 0x641   : > { %v1742_v2 = vmul.f32 1.442695, %v1723_v62 }
 0x642   : > { %v11252_v56 = vpop.eup %9868  ;;  %v1699_v37 = vpop.xlane.xlu0 %1698 }
 0x643   : > { %9876 = vpow2.f32 %v1742_v2  ;;  %v1763_v31 = vsel %vm1013_vm9, %v11252_v56, 0.0  ;;  %v1725_v3 = vsub.f32 %v11181_v16, %v1699_v37 }
 0x644   : > { %v11256_v63 = vpop.eup %9870  ;;  %1764 = vadd.xlane.f32.xlu1 %v1763_v31 }
 0x645   : > { %v1760_v14 = vsel %vm1013_vm9, %v11256_v63, 0.0  ;;  %v1746_v62 = vmul.f32 1.442695, %v1725_v3 }
 0x646   : > { %v1705_v47 = vpop.xlane.xlu0 %1704 }
 0x647   : > { %v1727_v2 = vsub.f32 %v11186_v1, %v1705_v47 }
 0x648   : > { %v11260_v54 = vpop.eup %9872  ;;  %1761 = vadd.xlane.f32.xlu1 %v1760_v14 }
 0x649   : > { %v1769_v60 = vsel %vm1013_vm9, %v11260_v54, 0.0 }
 0x64a   : > { %1770 = vadd.xlane.f32.xlu0 %v1769_v60  ;;  %v1711_v58 = vpop.xlane.xlu0 %1710 }
 0x64b   : > { %v1729_v37 = vsub.f32 %v11193_v23, %v1711_v58 }
 0x64c   : > { %v11264_v53 = vpop.eup %9874 }
 0x64d   : > { %v1766_v39 = vsel %vm1013_vm9, %v11264_v53, 0.0  ;;  %v1754_v3 = vmul.f32 1.442695, %v1729_v37 }
 0x64e   : > { %1767 = vadd.xlane.f32.xlu1 %v1766_v39  ;;  %v1750_v39 = vmul.f32 1.442695, %v1727_v2 }
 0x650   : > { %v11268_v55 = vpop.eup %9876 }
 0x651   : > { %v1775_v6 = vsel %vm1013_vm9, %v11268_v55, 0.0 }
 0x652   : > { %1776 = vadd.xlane.f32.xlu1 %v1775_v6 }
 0x665   : > { %v1690_v30 = vpop.xlane.xlu1 %1689 }
 0x666   : > { %v1722_v26 = vsub.f32 %v11205_v8, %v1690_v30 }
 0x668   : > { %v1740_v31 = vmul.f32 1.442695, %v1722_v26 }
 0x669   : > { %v1696_v14 = vpop.xlane.xlu1 %1695 }
 0x66a   : > { %9878 = vpow2.f32 %v1740_v31  ;;  %v1724_v60 = vsub.f32 %v11212_v25, %v1696_v14 }
 0x66b   : > { %9880 = vpow2.f32 %v1746_v62 }
 0x66c   : > { %v1744_v6 = vmul.f32 1.442695, %v1724_v60 }
 0x66d   : > { %v1702_v9 = vpop.xlane.xlu1 %1701 }
 0x66e   : > { %9882 = vpow2.f32 %v1744_v6  ;;  %v1726_v16 = vsub.f32 %v11217_v5, %v1702_v9  ;;  %v1717_v6 = vpop.xlane.xlu0 %1716 }
 0x66f   : > { %9884 = vpow2.f32 %v1750_v39 }
 0x670   : > { %v1748_v8 = vmul.f32 1.442695, %v1726_v16  ;;  %v1731_v16 = vsub.f32 %v11198_v19, %v1717_v6 }
 0x671   : > { %v1708_v14 = vpop.xlane.xlu1 %1707 }
 0x672   : > { %9886 = vpow2.f32 %v1748_v8  ;;  %v1728_v60 = vsub.f32 %v11222_v38, %v1708_v14  ;;  %v1758_v8 = vmul.f32 1.442695, %v1731_v16 }
 0x673   : > { %9888 = vpow2.f32 %v1754_v3 }
 0x674   : > { %v1752_v39 = vmul.f32 1.442695, %v1728_v60 }
 0x675   : > { %v1714_v37 = vpop.xlane.xlu1 %1713 }
 0x676   : > { %9890 = vpow2.f32 %v1752_v39  ;;  %v1730_v3 = vsub.f32 %v11227_v11, %v1714_v37 }
 0x677   : > { %v11280_v1 = vpop.eup %9878  ;;  %9892 = vpow2.f32 %v1758_v8 }
 0x678   : > { %v1772_v25 = vsel %vm1013_vm9, %v11280_v1, 0.0  ;;  %v11284_v47 = vpop.eup %9880 }
 0x679   : > { %1773 = vadd.xlane.f32.xlu1 %v1772_v25  ;;  %v1781_v5 = vsel %vm1013_vm9, %v11284_v47, 0.0  ;;  %v1756_v25 = vmul.f32 1.442695, %v1730_v3 }
 0x67b   : > { %v11286_v30 = vpop.eup %9882  ;;  %9894 = vpow2.f32 %v1756_v25 }
 0x67c   : > { %v1778_v23 = vsel %vm1013_vm9, %v11286_v30, 0.0  ;;  %v11292_v9 = vpop.eup %9884 }
 0x67d   : > { %1782 = vadd.xlane.f32.xlu1 %v1781_v5  ;;  %1779 = vadd.xlane.f32.xlu0 %v1778_v23  ;;  %v1787_v58 = vsel %vm1013_vm9, %v11292_v9, 0.0 }
 0x67f   : > { %v11296_v26 = vpop.eup %9886 }
 0x680   : > { %v1784_v62 = vsel %vm1013_vm9, %v11296_v26, 0.0  ;;  %v11300_v2 = vpop.eup %9888 }
 0x681   : > { %1788 = vadd.xlane.f32.xlu1 %v1787_v58  ;;  %v1793_v31 = vsel %vm1013_vm9, %v11300_v2, 0.0 }
 0x683   : > { %v11311_v5 = vpop.eup %9890 }
 0x684   : > { %v1790_v38 = vsel %vm1013_vm9, %v11311_v5, 0.0  ;;  %v11315_v23 = vpop.eup %9892 }
 0x685   : > { %1785 = vadd.xlane.f32.xlu1 %v1784_v62  ;;  %v1799_v58 = vsel %vm1013_vm9, %v11315_v23, 0.0 }
 0x688   : > { %v11319_v62 = vpop.eup %9894 }
 0x689   : > { %1794 = vadd.xlane.f32.xlu1 %v1793_v31  ;;  %v1796_v19 = vsel %vm1013_vm9, %v11319_v62, 0.0  ;;  %v11327_v31 = vpop.permute.xlu0 %2154 }
 0x693   : > { %2152 = vrot.lane.b32.xlu0 %v10623_v48, %s10358_s23 }
 0x69a   : > { %2148 = vrot.lane.b32.xlu1 %v10583_v20, %s10358_s23 }
 0x6b2   : > { %1791 = vadd.xlane.f32.xlu0 %v1790_v38 }
 0x6be   : > { %1800 = vadd.xlane.f32.xlu1 %v1799_v58 }
 0x6c2   : > { %1797 = vadd.xlane.f32.xlu1 %v1796_v19 }
 0x6c8   : > { %2150 = vrot.lane.b32.xlu0 %v10637_v51, %s10358_s23 }
 0x6cc   : > { %2120 = vrot.lane.b32.xlu0 %v10583_v20, %s10359_s24 }
 0x6cd   : > { %v1765_v11 = vpop.xlane.xlu1 %1764 }
 0x6ce   : > { %9896 = vrcp.f32 %v1765_v11 }
 0x6d0   : > { %2124 = vrot.lane.b32.xlu0 %v10623_v48, %s10359_s24 }
 0x6d1   : > { %v1762_v14 = vpop.xlane.xlu1 %1761 }
 0x6d2   : > { %9898 = vrcp.f32 %v1762_v14 }
 0x6d3   : > { %2122 = vrot.lane.b32.xlu1 %v10637_v51, %s10359_s24  ;;  %v1771_v60 = vpop.xlane.xlu0 %1770 }
 0x6d4   : > { %2128 = vrot.lane.b32.xlu0 %v10615_v44, %s10359_s24  ;;  %9900 = vrcp.f32 %v1771_v60 }
 0x6d7   : > { %2126 = vrot.lane.b32.xlu1 %v10631_v50, %s10359_s24  ;;  %v1768_v39 = vpop.xlane.xlu1 %1767 }
 0x6d8   : > { %9902 = vrcp.f32 %v1768_v39  ;;  %2132 = vrot.lane.b32.xlu0 %v10607_v42, %s10359_s24 }
 0x6db   : > { %2130 = vrot.lane.b32.xlu1 %v10625_v49, %s10359_s24  ;;  %v9897_v6 = vpop.eup %9896 }
 0x6dc   : > { %2136 = vrot.lane.b32.xlu0 %v10599_v40, %s10359_s24  ;;  %v1817_v8 = vmul.f32 %v9897_v6, %v11252_v56 }
 0x6df   : > { %v9899_v16 = vpop.eup %9898  ;;  %2134 = vrot.lane.b32.xlu1 %v10617_v45, %s10359_s24 }
 0x6e0   : > { %2140 = vrot.lane.b32.xlu0 %v10591_v35, %s10359_s24  ;;  %v1816_v37 = vmul.f32 %v9899_v16, %v11256_v63 }
 0x6e1   : > { %v9901_v3 = vpop.eup %9900 }
 0x6e2   : > { %9178 = vmatprep.mubr.msk.f32.mxu1 %vm1013_vm9, %v1816_v37 }
 0x6e3   : > { %2138 = vrot.lane.b32.xlu1 %v10609_v43, %s10359_s24  ;;  %9179 = vmatmul.mubr.msk.f32.vlgmr.msra.gmra.mxu1 %vm1013_vm9, %v1817_v8 }
 0x6e4   : > { %9200 = vmatpush3.xpose.msk.msra.mxu1 %vm199_vm1, %v11139_v46  ;;  %2144 = vrot.lane.b32.xlu0 %v10601_v41, %s10359_s24  ;;  %v1819_v46 = vmul.f32 %v9901_v3, %v11260_v54 }
 0x6e5   : > { %v9903_v25 = vpop.eup %9902  ;;  %9201 = vmatprep.subr.msk.mxu1 %vm199_vm1, %v11231_v17 }
 0x6e6   : > { %v1818_v56 = vmul.f32 %v9903_v25, %v11264_v53 }
 0x6e7   : > { %2142 = vrot.lane.b32.xlu1 %v10587_v32, %s10359_s24 }
 0x6e8   : > { %9202 = vmatpush3.xpose.msk.msra.mxu1 %vm199_vm1, %v11231_v17  ;;  %2575 = vrot.lane.b32.xlu0 %v10593_v36, %s10360_s25  ;;  %v1777_v17 = vpop.xlane.xlu1 %1776 }
 0x6e9   : > { %9181 = vmatprep.mubr.msk.f32.mxu1 %vm1013_vm9, %v1818_v56  ;;  %9203 = vmatprep.subr.msk.mxu1 %vm199_vm1, %v11239_v29  ;;  %9904 = vrcp.f32 %v1777_v17 }
 0x6ea   : > { %9182 = vmatmul.mubr.msk.f32.gmra.mxu1 %vm1013_vm9, %v1819_v46 }
 0x6eb   : > { %2146 = vrot.lane.b32.xlu1 %v10593_v36, %s10359_s24 }
 0x6ec   : > { %9204 = vmatpush3.xpose.msk.msra.mxu1 %vm199_vm1, %v11239_v29  ;;  %2571 = vrot.lane.b32.xlu0 %v10587_v32, %s10360_s25 }
 0x6ed   : > { %9205 = vmatprep.subr.msk.mxu1 %vm199_vm1, %v11233_v22 }
 0x6ef   : > { %2573 = vrot.lane.b32.xlu1 %v10601_v41, %s10360_s25 }
 0x6f0   : > { %9206 = vmatpush3.xpose.msk.msra.mxu1 %vm199_vm1, %v11233_v22  ;;  %2567 = vrot.lane.b32.xlu0 %v10609_v43, %s10360_s25 }
 0x6f1   : > { %9207 = vmatprep.subr.msk.mxu1 %vm199_vm1, %v11243_v33 }
 0x6f3   : > { %2569 = vrot.lane.b32.xlu1 %v10591_v35, %s10360_s25 }
 0x6f4   : > { %9208 = vmatpush3.xpose.msk.msra.mxu1 %vm199_vm1, %v11243_v33  ;;  %2563 = vrot.lane.b32.xlu0 %v10617_v45, %s10360_s25 }
 0x6f5   : > { %9209 = vmatprep.subr.msk.mxu1 %vm199_vm1, %v11235_v59 }
 0x6f7   : > { %2565 = vrot.lane.b32.xlu1 %v10599_v40, %s10360_s25 }
 0x6f8   : > { %9210 = vmatpush3.xpose.msk.msra.mxu1 %vm199_vm1, %v11235_v59  ;;  %2559 = vrot.lane.b32.xlu0 %v10625_v49, %s10360_s25 }
 0x6f9   : > { %9211 = vmatprep.subr.msk.mxu1 %vm199_vm1, %v11237_v18 }
 0x6fb   : > { %2561 = vrot.lane.b32.xlu1 %v10607_v42, %s10360_s25 }
 0x6fc   : > { %9212 = vmatpush3.xpose.msk.msra.mxu1 %vm199_vm1, %v11237_v18  ;;  %2555 = vrot.lane.b32.xlu0 %v10631_v50, %s10360_s25 }
 0x6fd   : > { %9213 = vmatprep.subr.msk.mxu1 %vm199_vm1, %v11272_v15 }
 0x6ff   : > { %2557 = vrot.lane.b32.xlu1 %v10615_v44, %s10360_s25 }
 0x700   : > { %9214 = vmatpush3.xpose.msk.msra.mxu1 %vm199_vm1, %v11272_v15  ;;  %2551 = vrot.lane.b32.xlu0 %v10637_v51, %s10360_s25 }
 0x701   : > { %9215 = vmatprep.subr.msk.mxu1 %vm199_vm1, %v11241_v21 }
 0x702   : > { %v1774_v22 = vpop.xlane.xlu1 %1773 }
 0x703   : > { %9906 = vrcp.f32 %v1774_v22  ;;  %2553 = vrot.lane.b32.xlu1 %v10623_v48, %s10360_s25 }
 0x704   : > { %9216 = vmatpush3.xpose.msk.msra.mxu1 %vm199_vm1, %v11241_v21  ;;  %2893 = vrot.lane.b32.xlu0 %v10593_v36, %s10361_s26 }
 0x705   : > { %9217 = vmatprep.subr.msk.mxu1 %vm199_vm1, %v11245_v28 }
 0x706   : > { %v1780_v59 = vpop.xlane.xlu0 %1779  ;;  %v1783_v18 = vpop.xlane.xlu1 %1782 }
 0x707   : > { %9908 = vrcp.f32 %v1780_v59  ;;  %2549 = vrot.lane.b32.xlu1 %v10583_v20, %s10360_s25  ;;  %s14068_s25 = scalar_lea.vmem %s14090_s3, %s9788_s18 }
 0x708   : > { %9910 = vrcp.f32 %v1783_v18  ;;  %9218 = vmatpush3.xpose.msk.msra.mxu1 %vm199_vm1, %v11245_v28  ;;  %2891 = vrot.lane.b32.xlu0 %v10601_v41, %s10361_s26  ;;  %v9905_v28 = vpop.eup %9904 }
 0x709   : > { %9219 = vmatprep.subr.msk.mxu1 %vm199_vm1, %v11327_v31  ;;  %v1821_v53 = vmul.f32 %v9905_v28, %v11268_v55 }
 0x70a   : > { %v2153_v29 = vpop.permute.xlu0 %2152  ;;  %v1789_v21 = vpop.xlane.xlu1 %1788 }
 0x70b   : > { %2889 = vrot.lane.b32.xlu1 %v10587_v32, %s10361_s26  ;;  %9912 = vrcp.f32 %v1789_v21 }
 0x70c   : > { %9220 = vmatpush3.xpose.msk.msra.mxu1 %vm199_vm1, %v11327_v31  ;;  %2887 = vrot.lane.b32.xlu0 %v10591_v35, %s10361_s26 }
 0x70d   : > { %9221 = vmatprep.subr.msk.mxu1 %vm199_vm1, %v2153_v29 }
 0x70e   : > { %v1786_v33 = vpop.xlane.xlu1 %1785 }
 0x70f   : > { %9914 = vrcp.f32 %v1786_v33  ;;  %2885 = vrot.lane.b32.xlu1 %v10609_v43, %s10361_s26 }
 0x710   : > { %v9907_v63 = vpop.eup %9906  ;;  %9222 = vmatpush3.xpose.msk.msra.mxu1 %vm199_vm1, %v2153_v29  ;;  %2883 = vrot.lane.b32.xlu0 %v10599_v40, %s10361_s26 }
 0x711   : > { %v1820_v54 = vmul.f32 %v9907_v63, %v11280_v1 }
 0x713   : > { %9184 = vmatprep.mubr.msk.f32.mxu1 %vm1013_vm9, %v1820_v54 }
 0x714   : > { %v9909_v15 = vpop.eup %9908  ;;  %2881 = vrot.lane.b32.xlu0 %v10617_v45, %s10361_s26  ;;  %9185 = vmatmul.mubr.msk.f32.gmra.mxu1 %vm1013_vm9, %v1821_v53 }
 0x715   : > { %v9911_v38 = vpop.eup %9910  ;;  %v1822_v58 = vmul.f32 %v9909_v15, %v11286_v30 }
 0x716   : > { %v1823_v19 = vmul.f32 %v9911_v38, %v11284_v47  ;;  %v1795_v47 = vpop.xlane.xlu1 %1794 }
 0x717   : > { %9187 = vmatprep.mubr.msk.f32.mxu1 %vm1013_vm9, %v1822_v58  ;;  %9916 = vrcp.f32 %v1795_v47 }
 0x718   : > { %2877 = vrot.lane.b32.xlu0 %v10625_v49, %s10361_s26  ;;  %9188 = vmatmul.mubr.msk.f32.gmra.mxu1 %vm1013_vm9, %v1823_v19  ;;  %v9913_v55 = vpop.eup %9912 }
 0x719   : > { %v1825_v31 = vmul.f32 %v9913_v55, %v11292_v9 }
 0x71a   : > { %v2149_v60 = vpop.permute.xlu1 %2148 }
 0x71c   : > { %v9915_v1 = vpop.eup %9914  ;;  %2875 = vrot.lane.b32.xlu0 %v10615_v44, %s10361_s26 }
 0x71d   : > { %v1824_v11 = vmul.f32 %v9915_v1, %v11296_v26 }
 0x71f   : > { %9190 = vmatprep.mubr.msk.f32.mxu1 %vm1013_vm9, %v1824_v11 }
 0x720   : > { %9191 = vmatmul.mubr.msk.f32.gmra.mxu1 %vm1013_vm9, %v1825_v31 }
 0x724   : > { %v9917_v6 = vpop.eup %9916 }
 0x725   : > { %v1827_v25 = vmul.f32 %v9917_v6, %v11300_v2 }
 0x73b   : > { %v1792_v30 = vpop.xlane.xlu0 %1791 }
 0x73c   : > { %9918 = vrcp.f32 %v1792_v30 }
 0x73f   : > { %v2151_v14 = vpop.permute.xlu0 %2150 }
 0x740   : > { %9223 = vmatprep.subr.msk.mxu1 %vm199_vm1, %v2151_v14 }
 0x741   : > { %9224 = vmatpush3.xpose.msk.msra.mxu1 %vm199_vm1, %v2151_v14 }
 0x742   : > { %9225 = vmatprep.subr.msk.mxu1 %vm199_vm1, %v2149_v60 }
 0x743   : > { %v2121_v39 = vpop.permute.xlu0 %2120 }
 0x745   : > { %9226 = vmatpush3.xpose.msk.msra.mxu1 %vm199_vm1, %v2149_v60 }
 0x747   : > { %v2125_v9 = vpop.permute.xlu0 %2124  ;;  %v1801_v26 = vpop.xlane.xlu1 %1800 }
 0x748   : > { %9920 = vrcp.f32 %v1801_v26 }
 0x749   : > { %v9919_v16 = vpop.eup %9918 }
 0x74a   : > { %v1826_v37 = vmul.f32 %v9919_v16, %v11311_v5 }
 0x74b   : > { %v2129_v8 = vpop.permute.xlu0 %2128  ;;  %v1798_v3 = vpop.xlane.xlu1 %1797 }
 0x74c   : > { %9922 = vrcp.f32 %v1798_v3  ;;  %9193 = vmatprep.mubr.msk.f32.mxu1 %vm1013_vm9, %v1826_v37 }
 0x74d   : > { %9194 = vmatmul.mubr.msk.f32.gmra.mxu1 %vm1013_vm9, %v1827_v25 }
 0x74f   : > { %v2133_v56 = vpop.permute.xlu0 %2132  ;;  %v2123_v46 = vpop.permute.xlu1 %2122 }
 0x753   : > { %v2137_v17 = vpop.permute.xlu0 %2136  ;;  %v2127_v22 = vpop.permute.xlu1 %2126 }
 0x755   : > { %v9921_v29 = vpop.eup %9920 }
 0x756   : > { %v1829_v63 = vmul.f32 %v9921_v29, %v11315_v23 }
 0x757   : > { %v2141_v59 = vpop.permute.xlu0 %2140  ;;  %v2131_v18 = vpop.permute.xlu1 %2130 }
 0x759   : > { %v9923_v21 = vpop.eup %9922 }
 0x75a   : > { %v1828_v5 = vmul.f32 %v9923_v21, %v11319_v62 }
 0x75b   : > { %v2145_v33 = vpop.permute.xlu0 %2144  ;;  %v2135_v28 = vpop.permute.xlu1 %2134 }
 0x75c   : > { %9196 = vmatprep.mubr.msk.f32.mxu1 %vm1013_vm9, %v1828_v5 }
 0x75d   : > { %9197 = vmatmul.mubr.msk.f32.gmra.mxu1 %vm1013_vm9, %v1829_v63 }
 0x75e   : > { %9227 = vmatprep.mubr.msk.f32.mxu1 %vm199_vm1, %v2121_v39 }
 0x75f   : > { %v2576_v2 = vpop.permute.xlu0 %2575  ;;  %v2139_v54 = vpop.permute.xlu1 %2138 }
 0x760   : > { %9248 = vmatprep.subr.mxu0 %v2576_v2 }
 0x761   : > { %9228 = vmatmul.mubr.msk.f32.vlgmr.msra.gmra.mxu1 %vm199_vm1, %v2123_v46  ;;  %9249 = vmatpush3.msra.mxu0 %v2576_v2 }
 0x762   : > { %9230 = vmatprep.mubr.msk.f32.mxu1 %vm199_vm1, %v2125_v9 }
 0x763   : > { %v2572_v53 = vpop.permute.xlu0 %2571  ;;  %v2143_v62 = vpop.permute.xlu1 %2142 }
 0x765   : > { %9231 = vmatmul.mubr.msk.f32.gmra.mxu1 %vm199_vm1, %v2127_v22 }
 0x766   : > { %9233 = vmatprep.mubr.msk.f32.mxu1 %vm199_vm1, %v2129_v8 }
 0x767   : > { %v2568_v23 = vpop.permute.xlu0 %2567  ;;  %v2147_v15 = vpop.permute.xlu1 %2146 }
 0x769   : > { %9234 = vmatmul.mubr.msk.f32.gmra.mxu1 %vm199_vm1, %v2131_v18 }
 0x76a   : > { %9236 = vmatprep.mubr.msk.f32.mxu1 %vm199_vm1, %v2133_v56 }
 0x76b   : > { %v2574_v38 = vpop.permute.xlu1 %2573  ;;  %v2564_v58 = vpop.permute.xlu0 %2563 }
 0x76c   : > { %9250 = vmatprep.subr.mxu0 %v2574_v38 }
 0x76d   : > { %9237 = vmatmul.mubr.msk.f32.gmra.mxu1 %vm199_vm1, %v2135_v28  ;;  %9251 = vmatpush3.msra.mxu0 %v2574_v38 }
 0x76e   : > { %9239 = vmatprep.mubr.msk.f32.mxu1 %vm199_vm1, %v2137_v17  ;;  %9252 = vmatprep.subr.mxu0 %v2572_v53 }
 0x76f   : > { %9253 = vmatpush3.msra.mxu0 %v2572_v53  ;;  %v2570_v19 = vpop.permute.xlu1 %2569  ;;  %v2560_v55 = vpop.permute.xlu0 %2559 }
 0x770   : > { %9254 = vmatprep.subr.mxu0 %v2570_v19 }
 0x771   : > { %9240 = vmatmul.mubr.msk.f32.gmra.mxu1 %vm199_vm1, %v2139_v54  ;;  %9255 = vmatpush3.msra.mxu0 %v2570_v19 }
 0x772   : > { %9242 = vmatprep.mubr.msk.f32.mxu1 %vm199_vm1, %v2141_v59  ;;  %9256 = vmatprep.subr.mxu0 %v2568_v23 }
 0x773   : > { %9257 = vmatpush3.msra.mxu0 %v2568_v23  ;;  %v2566_v1 = vpop.permute.xlu1 %2565  ;;  %v2556_v31 = vpop.permute.xlu0 %2555 }
 0x774   : > { %9258 = vmatprep.subr.mxu0 %v2566_v1 }
 0x775   : > { %9243 = vmatmul.mubr.msk.f32.gmra.mxu1 %vm199_vm1, %v2143_v62  ;;  %9259 = vmatpush3.msra.mxu0 %v2566_v1 }
 0x776   : > { %9245 = vmatprep.mubr.msk.f32.mxu1 %vm199_vm1, %v2145_v33  ;;  %9260 = vmatprep.subr.mxu0 %v2564_v58 }
 0x777   : > { %9261 = vmatpush3.msra.mxu0 %v2564_v58  ;;  %v2562_v11 = vpop.permute.xlu1 %2561  ;;  %v2552_v30 = vpop.permute.xlu0 %2551 }
 0x778   : > { %9262 = vmatprep.subr.mxu0 %v2562_v11 }
 0x779   : > { %9246 = vmatmul.mubr.msk.f32.gmra.mxu1 %vm199_vm1, %v2147_v15  ;;  %9263 = vmatpush3.msra.mxu0 %v2562_v11 }
 0x77a   : > { %9264 = vmatprep.subr.mxu0 %v2560_v55 }
 0x77b   : > { %9265 = vmatpush3.msra.mxu0 %v2560_v55  ;;  %v2558_v47 = vpop.permute.xlu1 %2557  ;;  %v11491_v39 = vpop.permute.xlu0 %2893 }
 0x77c   : > { %9266 = vmatprep.subr.mxu0 %v2558_v47 }
 0x77d   : > { %9267 = vmatpush3.msra.mxu0 %v2558_v47 }
 0x77e   : > { %9268 = vmatprep.subr.mxu0 %v2556_v31 }
 0x77f   : > { %9269 = vmatpush3.msra.mxu0 %v2556_v31  ;;  %v2554_v14 = vpop.permute.xlu1 %2553 }
 0x780   : > { %9270 = vmatprep.subr.mxu0 %v2554_v14 }
 0x781   : > { %9271 = vmatpush3.msra.mxu0 %v2554_v14 }
 0x782   : > { %9272 = vmatprep.subr.mxu0 %v2552_v30 }
 0x783   : > { %9273 = vmatpush3.msra.mxu0 %v2552_v30  ;;  %v2550_v60 = vpop.permute.xlu1 %2549 }
 0x784   : > { %9274 = vmatprep.subr.mxu0 %v2550_v60 }
 0x785   : > { %9275 = vmatpush3.msra.mxu0 %v2550_v60 }
 0x786   : > { %9297 = vmatprep.subr.msk.mxu0 %vm199_vm1, %v11491_v39 }
 0x7a3   : > { %v11495_v9 = vpop.f32.mrf.mxu1 }
 0x7a4   : > { %14141 = vst [vmem:[#allocation22_spill] sm:$0xff] %v11495_v9 }
 0x7a5   : > { %v11497_v26 = vpop.f32.mrf.mxu1 }
 0x7a6   : > { %14142 = vst [vmem:[#allocation23_spill] sm:$0xff] %v11497_v26 }
 0x7aa   : > { %v11499_v6 = vpop.f32.mrf.mxu1 }
 0x7ab   : > { %14143 = vst [vmem:[#allocation24_spill] sm:$0xff] %v11499_v6 }
 0x7ac   : > { %v11501_v16 = vpop.f32.mrf.mxu1 }
 0x7ad   : > { %14144 = vst [vmem:[#allocation25_spill] sm:$0xff] %v11501_v16 }
 0x7d4   : > { %v11503_v37 = vpop.f32.mrf.mxu1 }
 0x7d5   : > { %14145 = vst [vmem:[#allocation26_spill] sm:$0xff] %v11503_v37 }
 0x7d6   : > { %v11505_v8 = vpop.f32.mrf.mxu1 }
 0x7d7   : > { %14146 = vst [vmem:[#allocation27_spill] sm:$0xff] %v11505_v8 }
 0x7d8   : > { %v11507_v3 = vpop.f32.mrf.mxu1 }
 0x7d9   : > { %14147 = vst [vmem:[#allocation28_spill] sm:$0xff] %v11507_v3 }
 0x7da   : > { %v11509_v25 = vpop.f32.mrf.mxu1 }
 0x7db   : > { %14148 = vst [vmem:[#allocation29_spill] sm:$0xff] %v11509_v25 }
 0x7e0   : > { %v11511_v56 = vpop.f32.mrf.mxu1 }
 0x7e1   : > { %14149 = vst [vmem:[#allocation30_spill] sm:$0xff] %v11511_v56 }
 0x7e2   : > { %v11513_v46 = vpop.f32.mrf.mxu1 }
 0x7e3   : > { %14150 = vst [vmem:[#allocation31_spill] sm:$0xff] %v11513_v46 }
 0x80d   : > { %v11515_v17 = vpop.f32.mrf.mxu1 }
 0x80e   : > { %14151 = vst [vmem:[#allocation32_spill] sm:$0xff] %v11515_v17 }
 0x80f   : > { %v11517_v22 = vpop.f32.mrf.mxu1 }
 0x810   : > { %14152 = vst [vmem:[#allocation33_spill] sm:$0xff] %v11517_v22 }
 0x81d   : > { %v11519_v59 = vpop.f32.mrf.mxu1 }
 0x81e   : > { %14153 = vst [vmem:[#allocation34_spill] sm:$0xff] %v11519_v59 }
 0x81f   : > { %v11521_v18 = vpop.f32.mrf.mxu1 }
 0x820   : > { %14154 = vst [vmem:[#allocation35_spill] sm:$0xff] %v11521_v18 }
 0x821   : > { %v9229_v29 = vpop.f32.mrf.mxu1 }
 0x822   : > { %v2368_v21 = vmul.f32 0.35355338, %v9229_v29 }
 0x823   : > { %v2298_v5 = vpop.f32.mrf.mxu1 }
 0x824   : > { %v11524_v33 = vadd.f32 %v2368_v21, %v10755_v0  ;;  %v2367_v28 = vmul.f32 0.35355338, %v2298_v5 }
 0x825   : > { %v9232_v63 = vpop.f32.mrf.mxu1 }
 0x826   : > { %v2370_v2 = vmul.f32 0.35355338, %v9232_v63  ;;  %v2398_v54 = vsel %vm1013_vm9, %v11524_v33, -inf  ;;  %v11529_v53 = vadd.f32 %v2367_v28, %v10760_v4 }
 0x827   : > { %2399 = vmax.xlane.f32.xlu1 %v2398_v54  ;;  %v2308_v62 = vpop.f32.mrf.mxu1 }
 0x828   : > { %v11532_v23 = vadd.f32 %v2370_v2, %v10766_v10  ;;  %v2369_v15 = vmul.f32 0.35355338, %v2308_v62  ;;  %v2395_v38 = vsel %vm1013_vm9, %v11529_v53, -inf }
 0x829   : > { %2396 = vmax.xlane.f32.xlu0 %v2395_v38  ;;  %v9235_v58 = vpop.f32.mrf.mxu1 }
 0x82a   : > { %v2372_v55 = vmul.f32 0.35355338, %v9235_v58  ;;  %v2404_v1 = vsel %vm1013_vm9, %v11532_v23, -inf  ;;  %v11539_v11 = vadd.f32 %v2369_v15, %v10781_v27 }
 0x82b   : > { %v2318_v19 = vpop.f32.mrf.mxu1 }
 0x82c   : > { %v11542_v30 = vadd.f32 %v2372_v55, %v10791_v61  ;;  %v2401_v60 = vsel %vm1013_vm9, %v11539_v11, -inf }
 0x82d   : > { %2405 = vmax.xlane.f32.xlu0 %v2404_v1  ;;  %v9238_v31 = vpop.f32.mrf.mxu1 }
 0x82e   : > { %v2374_v14 = vmul.f32 0.35355338, %v9238_v31  ;;  %v2410_v63 = vsel %vm1013_vm9, %v11542_v30, -inf }
 0x82f   : > { %v2328_v47 = vpop.f32.mrf.mxu1 }
 0x830   : > { %v11547_v5 = vadd.f32 %v2374_v14, %v10801_v12 }
 0x831   : > { %2402 = vmax.xlane.f32.xlu0 %v2401_v60  ;;  %v9241_v29 = vpop.f32.mrf.mxu1 }
 0x832   : > { %v2376_v28 = vmul.f32 0.35355338, %v9241_v29  ;;  %v2416_v38 = vsel %vm1013_vm9, %v11547_v5, -inf }
 0x833   : > { %v2338_v21 = vpop.f32.mrf.mxu1 }
 0x834   : > { %v11552_v62 = vadd.f32 %v2376_v28, %v10811_v52  ;;  %v2371_v28 = vmul.f32 0.35355338, %v2318_v19 }
 0x835   : > { %2411 = vmax.xlane.f32.xlu0 %v2410_v63  ;;  %v9244_v2 = vpop.f32.mrf.mxu1  ;;  %v2373_v63 = vmul.f32 0.35355338, %v2328_v47 }
 0x836   : > { %v2378_v15 = vmul.f32 0.35355338, %v9244_v2  ;;  %v2422_v31 = vsel %vm1013_vm9, %v11552_v62, -inf  ;;  %v11571_v2 = vadd.f32 %v2371_v28, %v10845_v7 }
 0x837   : > { %v2348_v54 = vpop.f32.mrf.mxu1 }
 0x838   : > { %2879 = vrot.lane.b32.xlu1 %v10607_v42, %s10361_s26  ;;  %v11559_v55 = vadd.f32 %v2378_v15, %v10823_v24  ;;  %v2375_v15 = vmul.f32 0.35355338, %v2338_v21 }
 0x839   : > { %2417 = vmax.xlane.f32.xlu0 %v2416_v38  ;;  %v9247_v58 = vpop.f32.mrf.mxu1  ;;  %v2407_v38 = vsel %vm1013_vm9, %v11571_v2, -inf }
 0x83a   : > { %v2380_v1 = vmul.f32 0.35355338, %v9247_v58  ;;  %v2428_v60 = vsel %vm1013_vm9, %v11559_v55, -inf  ;;  %v11578_v58 = vadd.f32 %v2373_v63, %v10853_v57  ;;  %v11583_v19 = vadd.f32 %v2375_v15, %v10864_v34 }
 0x83b   : > { %v2358_v47 = vpop.f32.mrf.mxu1 }
 0x83c   : > { %v11564_v14 = vadd.f32 %v2380_v1, %v10832_v13  ;;  %v2377_v1 = vmul.f32 0.35355338, %v2348_v54  ;;  %v2379_v21 = vmul.f32 0.35355338, %v2358_v47  ;;  %v14156_v54 = vld [vmem:[#allocation20_spill] sm:$0xff] }
 0x83d   : > { %2423 = vmax.xlane.f32.xlu0 %v2422_v31  ;;  %v2413_v31 = vsel %vm1013_vm9, %v11578_v58, -inf }
 0x83e   : > { %v2434_v29 = vsel %vm1013_vm9, %v11564_v14, -inf }
 0x841   : > { %2429 = vmax.xlane.f32.xlu0 %v2428_v60  ;;  %v2419_v60 = vsel %vm1013_vm9, %v11583_v19, -inf }
 0x845   : > { %2435 = vmax.xlane.f32.xlu0 %v2434_v29  ;;  %v14155_v29 = vld [vmem:[#allocation19_spill] sm:$0xff] }
 0x846   : > { %v11588_v28 = vadd.f32 %v2377_v1, %v14155_v29 }
 0x848   : > { %v2425_v63 = vsel %vm1013_vm9, %v11588_v28, -inf }
 0x85b   : > { %2873 = vrot.lane.b32.xlu0 %v10631_v50, %s10361_s26 }
 0x85c   : > { %2408 = vmax.xlane.f32.xlu1 %v2407_v38  ;;  %v11593_v38 = vadd.f32 %v2379_v21, %v14156_v54 }
 0x85e   : > { %v2431_v15 = vsel %vm1013_vm9, %v11593_v38, -inf }
 0x860   : > { %2414 = vmax.xlane.f32.xlu1 %v2413_v31  ;;  %v11597_v31 = vpop.permute.xlu0 %2891 }
 0x864   : > { %2420 = vmax.xlane.f32.xlu1 %v2419_v60  ;;  %v11599_v47 = vpop.permute.xlu0 %2887  ;;  %v11605_v60 = vpop.permute.xlu1 %2889 }
 0x868   : > { %2426 = vmax.xlane.f32.xlu1 %v2425_v63  ;;  %v11601_v59 = vpop.permute.xlu0 %2883  ;;  %v11609_v17 = vpop.permute.xlu1 %2885 }
 0x86c   : > { %2432 = vmax.xlane.f32.xlu1 %v2431_v15  ;;  %v11603_v1 = vpop.permute.xlu0 %2881 }
 0x870   : > { %v11607_v18 = vpop.permute.xlu0 %2877 }
 0x874   : > { %v11611_v21 = vpop.permute.xlu0 %2875 }
 0x8b0   : > { %v2400_v63 = vpop.xlane.xlu1 %2399 }
 0x8b1   : > { %v2438_v22 = vsub.f32 %v11524_v33, %v2400_v63 }
 0x8b2   : > { %v2397_v15 = vpop.xlane.xlu0 %2396 }
 0x8b3   : > { %v2453_v56 = vmul.f32 1.442695, %v2438_v22  ;;  %v2437_v46 = vsub.f32 %v11529_v53, %v2397_v15 }
 0x8b4   : > { %v11638_v53 = vpop.permute.xlu1 %2879 }
 0x8b5   : > { %9924 = vpow2.f32 %v2453_v56  ;;  %v2451_v3 = vmul.f32 1.442695, %v2437_v46 }
 0x8b6   : > { %v2406_v25 = vpop.xlane.xlu0 %2405 }
 0x8b7   : > { %9926 = vpow2.f32 %v2451_v3  ;;  %v2440_v37 = vsub.f32 %v11532_v23, %v2406_v25 }
 0x8b9   : > { %v2457_v8 = vmul.f32 1.442695, %v2440_v37 }
 0x8ba   : > { %v2403_v6 = vpop.xlane.xlu0 %2402 }
 0x8bb   : > { %9928 = vpow2.f32 %v2457_v8  ;;  %v2439_v16 = vsub.f32 %v11539_v11, %v2403_v6 }
 0x8bd   : > { %v2455_v9 = vmul.f32 1.442695, %v2439_v16 }
 0x8be   : > { %v2412_v26 = vpop.xlane.xlu0 %2411 }
 0x8bf   : > { %9930 = vpow2.f32 %v2455_v9  ;;  %v2442_v33 = vsub.f32 %v11542_v30, %v2412_v26 }
 0x8c1   : > { %v2461_v63 = vmul.f32 1.442695, %v2442_v33 }
 0x8c2   : > { %v11618_v22 = vpop.eup %9924  ;;  %v2418_v46 = vpop.xlane.xlu0 %2417 }
 0x8c3   : > { %9932 = vpow2.f32 %v2461_v63  ;;  %v2482_v56 = vsel %vm1013_vm9, %v11618_v22, 0.0  ;;  %v2444_v23 = vsub.f32 %v11547_v5, %v2418_v46 }
 0x8c4   : > { %v11622_v3 = vpop.eup %9926  ;;  %2483 = vadd.xlane.f32.xlu1 %v2482_v56 }
 0x8c5   : > { %v2479_v37 = vsel %vm1013_vm9, %v11622_v3, 0.0  ;;  %v2465_v33 = vmul.f32 1.442695, %v2444_v23 }
 0x8c6   : > { %v2424_v11 = vpop.xlane.xlu0 %2423 }
 0x8c7   : > { %v2446_v63 = vsub.f32 %v11552_v62, %v2424_v11 }
 0x8c8   : > { %v11626_v8 = vpop.eup %9928  ;;  %2480 = vadd.xlane.f32.xlu1 %v2479_v37 }
 0x8c9   : > { %v2488_v9 = vsel %vm1013_vm9, %v11626_v8, 0.0 }
 0x8ca   : > { %2489 = vadd.xlane.f32.xlu0 %v2488_v9  ;;  %v2430_v13 = vpop.xlane.xlu0 %2429 }
 0x8cb   : > { %v2448_v46 = vsub.f32 %v11559_v55, %v2430_v13 }
 0x8cc   : > { %v11630_v26 = vpop.eup %9930 }
 0x8cd   : > { %v2485_v6 = vsel %vm1013_vm9, %v11630_v26, 0.0  ;;  %v2473_v23 = vmul.f32 1.442695, %v2448_v46 }
 0x8ce   : > { %2486 = vadd.xlane.f32.xlu1 %v2485_v6  ;;  %v2469_v6 = vmul.f32 1.442695, %v2446_v63 }
 0x8d0   : > { %v11634_v16 = vpop.eup %9932 }
 0x8d1   : > { %v2494_v25 = vsel %vm1013_vm9, %v11634_v16, 0.0 }
 0x8d2   : > { %2495 = vadd.xlane.f32.xlu1 %v2494_v25 }
 0x8e5   : > { %v2409_v30 = vpop.xlane.xlu1 %2408 }
 0x8e6   : > { %v2441_v15 = vsub.f32 %v11571_v2, %v2409_v30 }
 0x8e8   : > { %v2459_v56 = vmul.f32 1.442695, %v2441_v15 }
 0x8e9   : > { %v2415_v37 = vpop.xlane.xlu1 %2414 }
 0x8ea   : > { %9934 = vpow2.f32 %v2459_v56  ;;  %v2443_v9 = vsub.f32 %v11578_v58, %v2415_v37 }
 0x8eb   : > { %9936 = vpow2.f32 %v2465_v33 }
 0x8ec   : > { %v2463_v25 = vmul.f32 1.442695, %v2443_v9 }
 0x8ed   : > { %v2421_v54 = vpop.xlane.xlu1 %2420 }
 0x8ee   : > { %9938 = vpow2.f32 %v2463_v25  ;;  %v2445_v5 = vsub.f32 %v11583_v19, %v2421_v54  ;;  %v2436_v25 = vpop.xlane.xlu0 %2435 }
 0x8ef   : > { %9940 = vpow2.f32 %v2469_v6 }
 0x8f0   : > { %v2467_v2 = vmul.f32 1.442695, %v2445_v5  ;;  %v2450_v5 = vsub.f32 %v11564_v14, %v2436_v25 }
 0x8f1   : > { %v2427_v37 = vpop.xlane.xlu1 %2426 }
 0x8f2   : > { %9942 = vpow2.f32 %v2467_v2  ;;  %v2447_v9 = vsub.f32 %v11588_v28, %v2427_v37  ;;  %v2477_v2 = vmul.f32 1.442695, %v2450_v5 }
 0x8f3   : > { %9944 = vpow2.f32 %v2473_v23 }
 0x8f4   : > { %v2471_v6 = vmul.f32 1.442695, %v2447_v9 }
 0x8f5   : > { %v2433_v46 = vpop.xlane.xlu1 %2432 }
 0x8f6   : > { %9946 = vpow2.f32 %v2471_v6  ;;  %v2449_v23 = vsub.f32 %v11593_v38, %v2433_v46 }
 0x8f7   : > { %v11646_v62 = vpop.eup %9934  ;;  %9948 = vpow2.f32 %v2477_v2 }
 0x8f8   : > { %v2491_v58 = vsel %vm1013_vm9, %v11646_v62, 0.0  ;;  %v11650_v11 = vpop.eup %9936 }
 0x8f9   : > { %2492 = vadd.xlane.f32.xlu1 %v2491_v58  ;;  %v2500_v19 = vsel %vm1013_vm9, %v11650_v11, 0.0  ;;  %v2475_v58 = vmul.f32 1.442695, %v2449_v23 }
 0x8fb   : > { %v11652_v30 = vpop.eup %9938  ;;  %9950 = vpow2.f32 %v2475_v58 }
 0x8fc   : > { %v2497_v13 = vsel %vm1013_vm9, %v11652_v30, 0.0  ;;  %v11658_v55 = vpop.eup %9940 }
 0x8fd   : > { %2501 = vadd.xlane.f32.xlu1 %v2500_v19  ;;  %2498 = vadd.xlane.f32.xlu0 %v2497_v13  ;;  %v2506_v54 = vsel %vm1013_vm9, %v11658_v55, 0.0 }
 0x8ff   : > { %v11662_v15 = vpop.eup %9942 }
 0x900   : > { %v2503_v33 = vsel %vm1013_vm9, %v11662_v15, 0.0  ;;  %v11666_v63 = vpop.eup %9944 }
 0x901   : > { %2507 = vadd.xlane.f32.xlu1 %v2506_v54  ;;  %v2512_v56 = vsel %vm1013_vm9, %v11666_v63, 0.0 }
 0x903   : > { %v11677_v19 = vpop.eup %9946 }
 0x904   : > { %v2509_v28 = vsel %vm1013_vm9, %v11677_v19, 0.0  ;;  %v11681_v13 = vpop.eup %9948 }
 0x905   : > { %2504 = vadd.xlane.f32.xlu1 %v2503_v33  ;;  %v2518_v54 = vsel %vm1013_vm9, %v11681_v13, 0.0 }
 0x908   : > { %v11685_v33 = vpop.eup %9950 }
 0x909   : > { %2513 = vadd.xlane.f32.xlu1 %v2512_v56  ;;  %v2515_v14 = vsel %vm1013_vm9, %v11685_v33, 0.0  ;;  %v11693_v56 = vpop.permute.xlu0 %2873 }
 0x913   : > { %2871 = vrot.lane.b32.xlu0 %v10623_v48, %s10361_s26 }
 0x91a   : > { %2867 = vrot.lane.b32.xlu1 %v10583_v20, %s10361_s26 }
 0x932   : > { %2510 = vadd.xlane.f32.xlu0 %v2509_v28 }
 0x93e   : > { %2519 = vadd.xlane.f32.xlu1 %v2518_v54 }
 0x942   : > { %2516 = vadd.xlane.f32.xlu1 %v2515_v14 }
 0x948   : > { %2869 = vrot.lane.b32.xlu0 %v10637_v51, %s10361_s26 }
 0x94c   : > { %2839 = vrot.lane.b32.xlu0 %v10583_v20, %s10362_s27 }
 0x94d   : > { %v2484_v38 = vpop.xlane.xlu1 %2483 }
 0x94e   : > { %9952 = vrcp.f32 %v2484_v38 }
 0x950   : > { %2843 = vrot.lane.b32.xlu0 %v10623_v48, %s10362_s27 }
 0x951   : > { %v2481_v37 = vpop.xlane.xlu1 %2480 }
 0x952   : > { %9954 = vrcp.f32 %v2481_v37 }
 0x953   : > { %2841 = vrot.lane.b32.xlu1 %v10637_v51, %s10362_s27  ;;  %v2490_v9 = vpop.xlane.xlu0 %2489 }
 0x954   : > { %2847 = vrot.lane.b32.xlu0 %v10615_v44, %s10362_s27  ;;  %9956 = vrcp.f32 %v2490_v9 }
 0x957   : > { %2845 = vrot.lane.b32.xlu1 %v10631_v50, %s10362_s27  ;;  %v2487_v6 = vpop.xlane.xlu1 %2486 }
 0x958   : > { %9958 = vrcp.f32 %v2487_v6  ;;  %2851 = vrot.lane.b32.xlu0 %v10607_v42, %s10362_s27 }
 0x95b   : > { %2849 = vrot.lane.b32.xlu1 %v10625_v49, %s10362_s27  ;;  %v9953_v25 = vpop.eup %9952 }
 0x95c   : > { %2855 = vrot.lane.b32.xlu0 %v10599_v40, %s10362_s27  ;;  %v2536_v2 = vmul.f32 %v9953_v25, %v11618_v22 }
 0x95f   : > { %v9955_v5 = vpop.eup %9954  ;;  %2853 = vrot.lane.b32.xlu1 %v10617_v45, %s10362_s27 }
 0x960   : > { %2859 = vrot.lane.b32.xlu0 %v10591_v35, %s10362_s27  ;;  %v2535_v46 = vmul.f32 %v9955_v5, %v11622_v3 }
 0x961   : > { %v9957_v23 = vpop.eup %9956 }
 0x962   : > { %9276 = vmatprep.mubr.msk.f32.mxu0 %vm1013_vm9, %v2535_v46 }
 0x963   : > { %2857 = vrot.lane.b32.xlu1 %v10609_v43, %s10362_s27  ;;  %9277 = vmatmul.mubr.msk.f32.vlgmr.msra.gmra.mxu0 %vm1013_vm9, %v2536_v2 }
 0x964   : > { %9298 = vmatpush3.xpose.msk.msra.mxu0 %vm199_vm1, %v11491_v39  ;;  %2863 = vrot.lane.b32.xlu0 %v10601_v41, %s10362_s27  ;;  %v2538_v39 = vmul.f32 %v9957_v23, %v11626_v8 }
 0x965   : > { %v9959_v58 = vpop.eup %9958  ;;  %9299 = vmatprep.subr.msk.mxu0 %vm199_vm1, %v11597_v31 }
 0x966   : > { %v2537_v22 = vmul.f32 %v9959_v58, %v11630_v26 }
 0x967   : > { %2861 = vrot.lane.b32.xlu1 %v10587_v32, %s10362_s27 }
 0x968   : > { %9300 = vmatpush3.xpose.msk.msra.mxu0 %vm199_vm1, %v11597_v31  ;;  %3292 = vrot.lane.b32.xlu0 %v10601_v41, %s10363_s28 }
 0x969   : > { %9279 = vmatprep.mubr.msk.f32.mxu0 %vm1013_vm9, %v2537_v22  ;;  %9301 = vmatprep.subr.msk.mxu0 %vm199_vm1, %v11605_v60 }
 0x96a   : > { %9280 = vmatmul.mubr.msk.f32.gmra.mxu0 %vm1013_vm9, %v2538_v39 }
 0x96b   : > { %2865 = vrot.lane.b32.xlu1 %v10593_v36, %s10362_s27 }
 0x96c   : > { %9302 = vmatpush3.xpose.msk.msra.mxu0 %vm199_vm1, %v11605_v60  ;;  %3288 = vrot.lane.b32.xlu0 %v10591_v35, %s10363_s28 }
 0x96d   : > { %9303 = vmatprep.subr.msk.mxu0 %vm199_vm1, %v11599_v47 }
 0x96f   : > { %3294 = vrot.lane.b32.xlu1 %v10593_v36, %s10363_s28 }
 0x970   : > { %9304 = vmatpush3.xpose.msk.msra.mxu0 %vm199_vm1, %v11599_v47  ;;  %3284 = vrot.lane.b32.xlu0 %v10599_v40, %s10363_s28 }
 0x971   : > { %9305 = vmatprep.subr.msk.mxu0 %vm199_vm1, %v11609_v17 }
 0x973   : > { %3290 = vrot.lane.b32.xlu1 %v10587_v32, %s10363_s28  ;;  %v2496_v32 = vpop.xlane.xlu1 %2495 }
 0x974   : > { %9306 = vmatpush3.xpose.msk.msra.mxu0 %vm199_vm1, %v11609_v17  ;;  %3280 = vrot.lane.b32.xlu0 %v10607_v42, %s10363_s28  ;;  %9960 = vrcp.f32 %v2496_v32 }
 0x975   : > { %9307 = vmatprep.subr.msk.mxu0 %vm199_vm1, %v11601_v59 }
 0x977   : > { %3286 = vrot.lane.b32.xlu1 %v10609_v43, %s10363_s28 }
 0x978   : > { %9308 = vmatpush3.xpose.msk.msra.mxu0 %vm199_vm1, %v11601_v59  ;;  %3276 = vrot.lane.b32.xlu0 %v10615_v44, %s10363_s28 }
 0x979   : > { %9309 = vmatprep.subr.msk.mxu0 %vm199_vm1, %v11603_v1 }
 0x97b   : > { %3282 = vrot.lane.b32.xlu1 %v10617_v45, %s10363_s28 }
 0x97c   : > { %9310 = vmatpush3.xpose.msk.msra.mxu0 %vm199_vm1, %v11603_v1 }
 0x97d   : > { %9311 = vmatprep.subr.msk.mxu0 %vm199_vm1, %v11638_v53 }
 0x97f   : > { %3278 = vrot.lane.b32.xlu1 %v10625_v49, %s10363_s28 }
 0x980   : > { %9312 = vmatpush3.xpose.msk.msra.mxu0 %vm199_vm1, %v11638_v53 }
 0x981   : > { %9313 = vmatprep.subr.msk.mxu0 %vm199_vm1, %v11607_v18  ;;  %v9961_v44 = vpop.eup %9960 }
 0x982   : > { %v2493_v35 = vpop.xlane.xlu1 %2492  ;;  %v2540_v17 = vmul.f32 %v9961_v44, %v11634_v16 }
 0x983   : > { %9962 = vrcp.f32 %v2493_v35 }
 0x984   : > { %9314 = vmatpush3.xpose.msk.msra.mxu0 %vm199_vm1, %v11607_v18 }
 0x985   : > { %9315 = vmatprep.subr.msk.mxu0 %vm199_vm1, %v11611_v21 }
 0x986   : > { %v2499_v36 = vpop.xlane.xlu0 %2498  ;;  %v2502_v40 = vpop.xlane.xlu1 %2501 }
 0x987   : > { %9964 = vrcp.f32 %v2499_v36 }
 0x988   : > { %9966 = vrcp.f32 %v2502_v40  ;;  %9316 = vmatpush3.xpose.msk.msra.mxu0 %vm199_vm1, %v11611_v21 }
 0x989   : > { %9317 = vmatprep.subr.msk.mxu0 %vm199_vm1, %v11693_v56 }
 0x98a   : > { %v2872_v41 = vpop.permute.xlu0 %2871  ;;  %v2508_v42 = vpop.xlane.xlu1 %2507 }
 0x98b   : > { %9968 = vrcp.f32 %v2508_v42 }
 0x98c   : > { %9318 = vmatpush3.xpose.msk.msra.mxu0 %vm199_vm1, %v11693_v56 }
 0x98d   : > { %9319 = vmatprep.subr.msk.mxu0 %vm199_vm1, %v2872_v41 }
 0x98e   : > { %v2505_v43 = vpop.xlane.xlu1 %2504 }
 0x98f   : > { %9970 = vrcp.f32 %v2505_v43 }
 0x990   : > { %v9963_v45 = vpop.eup %9962  ;;  %9320 = vmatpush3.xpose.msk.msra.mxu0 %vm199_vm1, %v2872_v41 }
 0x991   : > { %v2539_v49 = vmul.f32 %v9963_v45, %v11646_v62 }
 0x992   : > { %v2514_v8 = vpop.xlane.xlu1 %2513 }
 0x993   : > { %9282 = vmatprep.mubr.msk.f32.mxu0 %vm1013_vm9, %v2539_v49  ;;  %9972 = vrcp.f32 %v2514_v8 }
 0x994   : > { %v9965_v59 = vpop.eup %9964  ;;  %9283 = vmatmul.mubr.msk.f32.gmra.mxu0 %vm1013_vm9, %v2540_v17 }
 0x995   : > { %v9967_v18 = vpop.eup %9966  ;;  %v2541_v31 = vmul.f32 %v9965_v59, %v11652_v30 }
 0x996   : > { %v2542_v47 = vmul.f32 %v9967_v18, %v11650_v11  ;;  %v2868_v53 = vpop.permute.xlu1 %2867 }
 0x997   : > { %9285 = vmatprep.mubr.msk.f32.mxu0 %vm1013_vm9, %v2541_v31 }
 0x998   : > { %9286 = vmatmul.mubr.msk.f32.gmra.mxu0 %vm1013_vm9, %v2542_v47  ;;  %v9969_v1 = vpop.eup %9968 }
 0x999   : > { %v2544_v3 = vmul.f32 %v9969_v1, %v11658_v55 }
 0x99c   : > { %v9971_v60 = vpop.eup %9970 }
 0x99d   : > { %v2543_v21 = vmul.f32 %v9971_v60, %v11662_v15 }
 0x99f   : > { %9288 = vmatprep.mubr.msk.f32.mxu0 %vm1013_vm9, %v2543_v21 }
 0x9a0   : > { %9289 = vmatmul.mubr.msk.f32.gmra.mxu0 %vm1013_vm9, %v2544_v3  ;;  %v9973_v55 = vpop.eup %9972 }
 0x9a1   : > { %v2546_v38 = vmul.f32 %v9973_v55, %v11666_v63 }
 0x9bb   : > { %v2511_v26 = vpop.xlane.xlu0 %2510 }
 0x9bc   : > { %9974 = vrcp.f32 %v2511_v26 }
 0x9bf   : > { %v2870_v16 = vpop.permute.xlu0 %2869 }
 0x9c0   : > { %9321 = vmatprep.subr.msk.mxu0 %vm199_vm1, %v2870_v16 }
 0x9c1   : > { %9322 = vmatpush3.xpose.msk.msra.mxu0 %vm199_vm1, %v2870_v16 }
 0x9c2   : > { %9323 = vmatprep.subr.msk.mxu0 %vm199_vm1, %v2868_v53 }
 0x9c3   : > { %v2840_v62 = vpop.permute.xlu0 %2839 }
 0x9c5   : > { %9324 = vmatpush3.xpose.msk.msra.mxu0 %vm199_vm1, %v2868_v53 }
 0x9c7   : > { %v2844_v11 = vpop.permute.xlu0 %2843  ;;  %v2520_v30 = vpop.xlane.xlu1 %2519 }
 0x9c8   : > { %9976 = vrcp.f32 %v2520_v30 }
 0x9c9   : > { %v9975_v15 = vpop.eup %9974 }
 0x9ca   : > { %v2545_v28 = vmul.f32 %v9975_v15, %v11677_v19 }
 0x9cb   : > { %v2848_v54 = vpop.permute.xlu0 %2847  ;;  %v2517_v14 = vpop.xlane.xlu1 %2516 }
 0x9cc   : > { %9978 = vrcp.f32 %v2517_v14  ;;  %9291 = vmatprep.mubr.msk.f32.mxu0 %vm1013_vm9, %v2545_v28 }
 0x9cd   : > { %9292 = vmatmul.mubr.msk.f32.gmra.mxu0 %vm1013_vm9, %v2546_v38 }
 0x9cf   : > { %v2852_v56 = vpop.permute.xlu0 %2851  ;;  %v2842_v37 = vpop.permute.xlu1 %2841 }
 0x9d3   : > { %v2856_v9 = vpop.permute.xlu0 %2855  ;;  %v2846_v6 = vpop.permute.xlu1 %2845 }
 0x9d5   : > { %v9977_v5 = vpop.eup %9976 }
 0x9d6   : > { %v2548_v58 = vmul.f32 %v9977_v5, %v11681_v13 }
 0x9d7   : > { %v2850_v25 = vpop.permute.xlu1 %2849  ;;  %v2860_v2 = vpop.permute.xlu0 %2859 }
 0x9d9   : > { %v9979_v46 = vpop.eup %9978 }
 0x9da   : > { %v2547_v19 = vmul.f32 %v9979_v46, %v11685_v33 }
 0x9db   : > { %v2854_v23 = vpop.permute.xlu1 %2853  ;;  %v2864_v63 = vpop.permute.xlu0 %2863 }
 0x9dc   : > { %9294 = vmatprep.mubr.msk.f32.mxu0 %vm1013_vm9, %v2547_v19 }
 0x9dd   : > { %9295 = vmatmul.mubr.msk.f32.gmra.mxu0 %vm1013_vm9, %v2548_v58 }
 0x9de   : > { %9325 = vmatprep.mubr.msk.f32.mxu0 %vm199_vm1, %v2840_v62 }
 0x9df   : > { %v2858_v22 = vpop.permute.xlu1 %2857  ;;  %v3293_v32 = vpop.permute.xlu0 %3292 }
 0x9e1   : > { %9326 = vmatmul.mubr.msk.f32.vlgmr.msra.gmra.mxu0 %vm199_vm1, %v2842_v37 }
 0x9e2   : > { %9328 = vmatprep.mubr.msk.f32.mxu0 %vm199_vm1, %v2844_v11 }
 0x9e3   : > { %v2862_v39 = vpop.permute.xlu1 %2861  ;;  %v3289_v13 = vpop.permute.xlu0 %3288 }
 0x9e5   : > { %9329 = vmatmul.mubr.msk.f32.gmra.mxu0 %vm199_vm1, %v2846_v6 }
 0x9e6   : > { %9331 = vmatprep.mubr.msk.f32.mxu0 %vm199_vm1, %v2848_v54 }
 0x9e7   : > { %v2866_v33 = vpop.permute.xlu1 %2865  ;;  %v3285_v40 = vpop.permute.xlu0 %3284 }
 0x9e9   : > { %9332 = vmatmul.mubr.msk.f32.gmra.mxu0 %vm199_vm1, %v2850_v25 }
 0x9ea   : > { %9334 = vmatprep.mubr.msk.f32.mxu0 %vm199_vm1, %v2852_v56 }
 0x9eb   : > { %v3295_v35 = vpop.permute.xlu1 %3294  ;;  %v3281_v42 = vpop.permute.xlu0 %3280 }
 0x9ec   : > { %9346 = vmatprep.subr.mxu1 %v3295_v35 }
 0x9ed   : > { %9335 = vmatmul.mubr.msk.f32.gmra.mxu0 %vm199_vm1, %v2854_v23  ;;  %9347 = vmatpush3.msra.mxu1 %v3295_v35 }
 0x9ee   : > { %9337 = vmatprep.mubr.msk.f32.mxu0 %vm199_vm1, %v2856_v9  ;;  %9348 = vmatprep.subr.mxu1 %v3293_v32 }
 0x9ef   : > { %9349 = vmatpush3.msra.mxu1 %v3293_v32  ;;  %v3291_v36 = vpop.permute.xlu1 %3290  ;;  %v3277_v45 = vpop.permute.xlu0 %3276 }
 0x9f0   : > { %9350 = vmatprep.subr.mxu1 %v3291_v36 }
 0x9f1   : > { %9338 = vmatmul.mubr.msk.f32.gmra.mxu0 %vm199_vm1, %v2858_v22  ;;  %9351 = vmatpush3.msra.mxu1 %v3291_v36 }
 0x9f2   : > { %9340 = vmatprep.mubr.msk.f32.mxu0 %vm199_vm1, %v2860_v2  ;;  %9352 = vmatprep.subr.mxu1 %v3289_v13 }
 0x9f3   : > { %9353 = vmatpush3.msra.mxu1 %v3289_v13  ;;  %v3287_v41 = vpop.permute.xlu1 %3286 }
 0x9f4   : > { %9354 = vmatprep.subr.mxu1 %v3287_v41 }
 0x9f5   : > { %9341 = vmatmul.mubr.msk.f32.gmra.mxu0 %vm199_vm1, %v2862_v39  ;;  %9355 = vmatpush3.msra.mxu1 %v3287_v41 }
 0x9f6   : > { %9343 = vmatprep.mubr.msk.f32.mxu0 %vm199_vm1, %v2864_v63  ;;  %9356 = vmatprep.subr.mxu1 %v3285_v40 }
 0x9f7   : > { %9357 = vmatpush3.msra.mxu1 %v3285_v40  ;;  %v3283_v43 = vpop.permute.xlu1 %3282 }
 0x9f8   : > { %9358 = vmatprep.subr.mxu1 %v3283_v43 }
 0x9f9   : > { %9344 = vmatmul.mubr.msk.f32.gmra.mxu0 %vm199_vm1, %v2866_v33  ;;  %9359 = vmatpush3.msra.mxu1 %v3283_v43 }
 0x9fa   : > { %9360 = vmatprep.subr.mxu1 %v3281_v42 }
 0x9fb   : > { %9361 = vmatpush3.msra.mxu1 %v3281_v42  ;;  %v3279_v44 = vpop.permute.xlu1 %3278 }
 0x9fc   : > { %9362 = vmatprep.subr.mxu1 %v3279_v44 }
 0x9fd   : > { %9363 = vmatpush3.msra.mxu1 %v3279_v44 }
 0x9fe   : > { %9364 = vmatprep.subr.mxu1 %v3277_v45 }
 0x9ff   : > { %9365 = vmatpush3.msra.mxu1 %v3277_v45 }
 0xa23   : > { %v11831_v49 = vpop.f32.mrf.mxu0 }
 0xa25   : > { %v11833_v17 = vpop.f32.mrf.mxu0 }
 0xa2a   : > { %v11835_v59 = vpop.f32.mrf.mxu0 }
 0xa2c   : > { %v11837_v18 = vpop.f32.mrf.mxu0 }
 0xa54   : > { %v11839_v31 = vpop.f32.mrf.mxu0 }
 0xa56   : > { %v11841_v47 = vpop.f32.mrf.mxu0 }
 0xa58   : > { %v11843_v1 = vpop.f32.mrf.mxu0 }
 0xa5a   : > { %v11845_v60 = vpop.f32.mrf.mxu0 }
 0xa60   : > { %v11847_v21 = vpop.f32.mrf.mxu0 }
 0xa62   : > { %v11849_v3 = vpop.f32.mrf.mxu0 }
 0xa8d   : > { %v11851_v8 = vpop.f32.mrf.mxu0 }
 0xa8f   : > { %v11853_v26 = vpop.f32.mrf.mxu0 }
 0xa9d   : > { %v11855_v16 = vpop.f32.mrf.mxu0 }
 0xa9f   : > { %v11857_v53 = vpop.f32.mrf.mxu0 }
 0xaa1   : > { %v9327_v62 = vpop.f32.mrf.mxu0 }
 0xaa2   : > { %v3087_v11 = vmul.f32 0.35355338, %v9327_v62 }
 0xaa3   : > { %v3017_v30 = vpop.f32.mrf.mxu0 }
 0xaa4   : > { %v11860_v55 = vadd.f32 %v3087_v11, %v10755_v0  ;;  %v3086_v15 = vmul.f32 0.35355338, %v3017_v30 }
 0xaa5   : > { %v9330_v28 = vpop.f32.mrf.mxu0 }
 0xaa6   : > { %v11863_v54 = vadd.f32 %v3086_v15, %v10760_v4  ;;  %v3089_v14 = vmul.f32 0.35355338, %v9330_v28  ;;  %v3117_v38 = vsel %vm1013_vm9, %v11860_v55, -inf }
 0xaa7   : > { %3118 = vmax.xlane.f32.xlu1 %v3117_v38  ;;  %v3027_v56 = vpop.f32.mrf.mxu0 }
 0xaa8   : > { %v11868_v37 = vadd.f32 %v3089_v14, %v10766_v10  ;;  %v3088_v9 = vmul.f32 0.35355338, %v3027_v56  ;;  %v3114_v6 = vsel %vm1013_vm9, %v11863_v54, -inf  ;;  %v14157_v56 = vld [vmem:[#allocation20_spill] sm:$0xff] }
 0xaa9   : > { %3115 = vmax.xlane.f32.xlu0 %v3114_v6  ;;  %v9333_v0 = vpop.f32.mrf.mxu0  ;;  %v14158_v6 = vld [vmem:[#allocation21_spill] sm:$0xff] }
 0xaaa   : > { %v3091_v25 = vmul.f32 0.35355338, %v9333_v0  ;;  %v11873_v4 = vadd.f32 %v3088_v9, %v10781_v27  ;;  %v3123_v2 = vsel %vm1013_vm9, %v11868_v37, -inf }
 0xaab   : > { %v3037_v5 = vpop.f32.mrf.mxu0 }
 0xaac   : > { %v3090_v46 = vmul.f32 0.35355338, %v3037_v5  ;;  %v11881_v23 = vadd.f32 %v3091_v25, %v10791_v61  ;;  %v3120_v39 = vsel %vm1013_vm9, %v11873_v4, -inf }
 0xaad   : > { %3124 = vmax.xlane.f32.xlu0 %v3123_v2  ;;  %v9336_v19 = vpop.f32.mrf.mxu0 }
 0xaae   : > { %v11878_v10 = vadd.f32 %v3090_v46, %v10845_v7  ;;  %v3093_v63 = vmul.f32 0.35355338, %v9336_v19  ;;  %v3129_v36 = vsel %vm1013_vm9, %v11881_v23, -inf }
 0xaaf   : > { %v3047_v58 = vpop.f32.mrf.mxu0 }
 0xab0   : > { %v3092_v22 = vmul.f32 0.35355338, %v3047_v58  ;;  %v3126_v27 = vsel %vm1013_vm9, %v11878_v10, -inf  ;;  %v11891_v61 = vadd.f32 %v3093_v63, %v10801_v12 }
 0xab1   : > { %3121 = vmax.xlane.f32.xlu0 %v3120_v39  ;;  %3127 = vmax.xlane.f32.xlu1 %v3126_v27  ;;  %v9339_v32 = vpop.f32.mrf.mxu0 }
 0xab2   : > { %v11888_v33 = vadd.f32 %v3092_v22, %v10853_v57  ;;  %v3095_v7 = vmul.f32 0.35355338, %v9339_v32  ;;  %v3135_v45 = vsel %vm1013_vm9, %v11891_v61, -inf }
 0xab3   : > { %v3057_v13 = vpop.f32.mrf.mxu0 }
 0xab4   : > { %v3094_v35 = vmul.f32 0.35355338, %v3057_v13  ;;  %v3132_v40 = vsel %vm1013_vm9, %v11888_v33, -inf  ;;  %v11901_v57 = vadd.f32 %v3095_v7, %v10811_v52 }
 0xab5   : > { %3130 = vmax.xlane.f32.xlu0 %v3129_v36  ;;  %3133 = vmax.xlane.f32.xlu1 %v3132_v40  ;;  %v9342_v41 = vpop.f32.mrf.mxu0 }
 0xab6   : > { %v11898_v42 = vadd.f32 %v3094_v35, %v10864_v34  ;;  %v3097_v44 = vmul.f32 0.35355338, %v9342_v41  ;;  %v3141_v52 = vsel %vm1013_vm9, %v11901_v57, -inf }
 0xab7   : > { %v3067_v43 = vpop.f32.mrf.mxu0 }
 0xab8   : > { %v3096_v12 = vmul.f32 0.35355338, %v3067_v43  ;;  %v3138_v62 = vsel %vm1013_vm9, %v11898_v42, -inf  ;;  %v11913_v15 = vadd.f32 %v3097_v44, %v10823_v24 }
 0xab9   : > { %3136 = vmax.xlane.f32.xlu0 %v3135_v45  ;;  %3139 = vmax.xlane.f32.xlu1 %v3138_v62  ;;  %v9345_v11 = vpop.f32.mrf.mxu0 }
 0xaba   : > { %v11908_v30 = vadd.f32 %v3096_v12, %v14155_v29  ;;  %v3099_v28 = vmul.f32 0.35355338, %v9345_v11  ;;  %v3147_v0 = vsel %vm1013_vm9, %v11913_v15, -inf }
 0xabb   : > { %v3077_v34 = vpop.f32.mrf.mxu0 }
 0xabc   : > { %v3098_v14 = vmul.f32 0.35355338, %v3077_v34  ;;  %v3144_v38 = vsel %vm1013_vm9, %v11908_v30, -inf  ;;  %v11921_v29 = vadd.f32 %v3099_v28, %v14158_v6 }
 0xabd   : > { %3142 = vmax.xlane.f32.xlu0 %v3141_v52  ;;  %3145 = vmax.xlane.f32.xlu1 %v3144_v38 }
 0xabe   : > { %v11918_v9 = vadd.f32 %v3098_v14, %v14157_v56  ;;  %v3153_v25 = vsel %vm1013_vm9, %v11921_v29, -inf }
 0xac0   : > { %v3150_v24 = vsel %vm1013_vm9, %v11918_v9, -inf }
 0xac1   : > { %3148 = vmax.xlane.f32.xlu0 %v3147_v0  ;;  %3151 = vmax.xlane.f32.xlu1 %v3150_v24 }
 0xac5   : > { %3154 = vmax.xlane.f32.xlu0 %v3153_v25 }
 0xad2   : > { %3274 = vrot.lane.b32.xlu1 %v10631_v50, %s10363_s28 }
 0xadb   : > { %3272 = vrot.lane.b32.xlu0 %v10623_v48, %s10363_s28 }
 0xb30   : > { %v3119_v5 = vpop.xlane.xlu1 %3118 }
 0xb31   : > { %v3157_v46 = vsub.f32 %v11860_v55, %v3119_v5 }
 0xb32   : > { %v3116_v2 = vpop.xlane.xlu0 %3115 }
 0xb33   : > { %v3172_v19 = vmul.f32 1.442695, %v3157_v46  ;;  %v3156_v58 = vsub.f32 %v11863_v54, %v3116_v2 }
 0xb35   : > { %9980 = vpow2.f32 %v3172_v19  ;;  %v3170_v63 = vmul.f32 1.442695, %v3156_v58 }
 0xb36   : > { %v3125_v22 = vpop.xlane.xlu0 %3124 }
 0xb37   : > { %9982 = vpow2.f32 %v3170_v63  ;;  %v3159_v39 = vsub.f32 %v11868_v37, %v3125_v22 }
 0xb39   : > { %v3176_v27 = vmul.f32 1.442695, %v3159_v39 }
 0xb3a   : > { %v3122_v32 = vpop.xlane.xlu0 %3121  ;;  %v3128_v7 = vpop.xlane.xlu1 %3127 }
 0xb3b   : > { %9984 = vpow2.f32 %v3176_v27  ;;  %v3158_v50 = vsub.f32 %v11873_v4, %v3122_v32  ;;  %v3160_v48 = vsub.f32 %v11878_v10, %v3128_v7 }
 0xb3d   : > { %v3174_v13 = vmul.f32 1.442695, %v3158_v50  ;;  %v3178_v55 = vmul.f32 1.442695, %v3160_v48 }
 0xb3e   : > { %v3131_v35 = vpop.xlane.xlu0 %3130  ;;  %v3134_v36 = vpop.xlane.xlu1 %3133 }
 0xb3f   : > { %9986 = vpow2.f32 %v3174_v13  ;;  %v3161_v54 = vsub.f32 %v11881_v23, %v3131_v35  ;;  %v3162_v40 = vsub.f32 %v11888_v33, %v3134_v36 }
 0xb40   : > { %9988 = vpow2.f32 %v3178_v55 }
 0xb41   : > { %v3180_v41 = vmul.f32 1.442695, %v3161_v54  ;;  %v3182_v37 = vmul.f32 1.442695, %v3162_v40 }
 0xb42   : > { %v11940_v43 = vpop.eup %9980  ;;  %v3137_v44 = vpop.xlane.xlu0 %3136 }
 0xb43   : > { %v3140_v12 = vpop.xlane.xlu1 %3139  ;;  %9990 = vpow2.f32 %v3180_v41  ;;  %v3163_v4 = vsub.f32 %v11891_v61, %v3137_v44  ;;  %v3201_v45 = vsel %vm1013_vm9, %v11940_v43, 0.0 }
 0xb44   : > { %v3164_v10 = vsub.f32 %v11898_v42, %v3140_v12  ;;  %v11946_v62 = vpop.eup %9982  ;;  %3202 = vadd.xlane.f32.xlu0 %v3201_v45  ;;  %9992 = vpow2.f32 %v3182_v37  ;;  %v14160_v45 = vld [vmem:[#allocation22_spill] sm:$0xff] }
 0xb45   : > { %v3184_v23 = vmul.f32 1.442695, %v3163_v4  ;;  %v3198_v11 = vsel %vm1013_vm9, %v11946_v62, 0.0 }
 0xb46   : > { %v3186_v33 = vmul.f32 1.442695, %v3164_v10  ;;  %v3143_v34 = vpop.xlane.xlu0 %3142  ;;  %3199 = vadd.xlane.f32.xlu1 %v3198_v11  ;;  %v14159_v10 = vld [vmem:[#allocation23_spill] sm:$0xff] }
 0xb47   : > { %v3146_v52 = vpop.xlane.xlu1 %3145  ;;  %9994 = vpow2.f32 %v3184_v23  ;;  %v3165_v61 = vsub.f32 %v11901_v57, %v3143_v34  ;;  %v14161_v23 = vld [vmem:[#allocation25_spill] sm:$0xff] }
 0xb48   : > { %v3166_v42 = vsub.f32 %v11908_v30, %v3146_v52  ;;  %v11952_v28 = vpop.eup %9984  ;;  %9996 = vpow2.f32 %v3186_v33 }
 0xb49   : > { %v3188_v14 = vmul.f32 1.442695, %v3165_v61  ;;  %v3207_v56 = vsel %vm1013_vm9, %v11952_v28, 0.0 }
 0xb4a   : > { %v3190_v38 = vmul.f32 1.442695, %v3166_v42  ;;  %v3149_v6 = vpop.xlane.xlu0 %3148  ;;  %3208 = vadd.xlane.f32.xlu0 %v3207_v56 }
 0xb4b   : > { %v3152_v0 = vpop.xlane.xlu1 %3151  ;;  %9998 = vpow2.f32 %v3188_v14  ;;  %v3167_v24 = vsub.f32 %v11913_v15, %v3149_v6 }
 0xb4c   : > { %v3168_v25 = vsub.f32 %v11918_v9, %v3152_v0  ;;  %v11958_v5 = vpop.eup %9986  ;;  %10000 = vpow2.f32 %v3190_v38 }
 0xb4d   : > { %v3192_v57 = vmul.f32 1.442695, %v3167_v24  ;;  %v3204_v46 = vsel %vm1013_vm9, %v11958_v5, 0.0  ;;  %v11962_v2 = vpop.eup %9988 }
 0xb4e   : > { %v3194_v30 = vmul.f32 1.442695, %v3168_v25  ;;  %v3155_v19 = vpop.xlane.xlu0 %3154  ;;  %3205 = vadd.xlane.f32.xlu1 %v3204_v46  ;;  %v3210_v39 = vsel %vm1013_vm9, %v11962_v2, 0.0 }
 0xb4f   : > { %v3275_v58 = vpop.permute.xlu1 %3274  ;;  %10002 = vpow2.f32 %v3192_v57  ;;  %v3169_v63 = vsub.f32 %v11921_v29, %v3155_v19 }
 0xb50   : > { %9366 = vmatprep.subr.mxu1 %v3275_v58  ;;  %v11965_v15 = vpop.eup %9990  ;;  %10004 = vpow2.f32 %v3194_v30 }
 0xb51   : > { %9367 = vmatpush3.msra.mxu1 %v3275_v58  ;;  %v3196_v9 = vmul.f32 1.442695, %v3169_v63  ;;  %v3213_v22 = vsel %vm1013_vm9, %v11965_v15, 0.0  ;;  %v11971_v27 = vpop.eup %9992 }
 0xb52   : > { %v3273_v32 = vpop.permute.xlu0 %3272  ;;  %3214 = vadd.xlane.f32.xlu0 %v3213_v22  ;;  %3211 = vadd.xlane.f32.xlu1 %v3210_v39  ;;  %v3216_v50 = vsel %vm1013_vm9, %v11971_v27, 0.0 }
 0xb53   : > { %10006 = vpow2.f32 %v3196_v9  ;;  %9368 = vmatprep.subr.mxu1 %v3273_v32 }
 0xb54   : > { %v11973_v29 = vpop.eup %9994  ;;  %9369 = vmatpush3.msra.mxu1 %v3273_v32 }
 0xb55   : > { %v3219_v7 = vsel %vm1013_vm9, %v11973_v29, 0.0  ;;  %v11979_v48 = vpop.eup %9996 }
 0xb56   : > { %3220 = vadd.xlane.f32.xlu0 %v3219_v7  ;;  %3217 = vadd.xlane.f32.xlu1 %v3216_v50  ;;  %v3222_v35 = vsel %vm1013_vm9, %v11979_v48, 0.0 }
 0xb58   : > { %v11981_v13 = vpop.eup %9998 }
 0xb59   : > { %v3225_v55 = vsel %vm1013_vm9, %v11981_v13, 0.0  ;;  %v11987_v36 = vpop.eup %10000 }
 0xb5a   : > { %3226 = vadd.xlane.f32.xlu0 %v3225_v55  ;;  %3223 = vadd.xlane.f32.xlu1 %v3222_v35  ;;  %v3228_v41 = vsel %vm1013_vm9, %v11987_v36, 0.0 }
 0xb5c   : > { %v11989_v54 = vpop.eup %10002 }
 0xb5d   : > { %v3231_v40 = vsel %vm1013_vm9, %v11989_v54, 0.0  ;;  %v11995_v37 = vpop.eup %10004 }
 0xb5e   : > { %3232 = vadd.xlane.f32.xlu0 %v3231_v40  ;;  %3229 = vadd.xlane.f32.xlu1 %v3228_v41  ;;  %v3234_v4 = vsel %vm1013_vm9, %v11995_v37, 0.0 }
 0xb60   : > { %v11997_v44 = vpop.eup %10006 }
 0xb61   : > { %v3237_v12 = vsel %vm1013_vm9, %v11997_v44, 0.0 }
 0xb62   : > { %3238 = vadd.xlane.f32.xlu0 %v3237_v12  ;;  %3235 = vadd.xlane.f32.xlu1 %v3234_v4 }
 0xb73   : > { %3270 = vrot.lane.b32.xlu1 %v10637_v51, %s10363_s28  ;;  %v14162_v51 = vld [vmem:[#allocation24_spill] sm:$0xff] }
 0xb77   : > { %2063 = vrot.lane.b32.xlu1 %v14159_v10, %s10364_s29 }
 0xb78   : > { %3268 = vrot.lane.b32.xlu0 %v10583_v20, %s10363_s28  ;;  %v14163_v20 = vld [vmem:[#allocation27_spill] sm:$0xff] }
 0xb7b   : > { %2065 = vrot.lane.b32.xlu1 %v14160_v45, %s10364_s29 }
 0xb7c   : > { %2782 = vrot.lane.b32.xlu0 %v11833_v17, %s10365_s30  ;;  %v14164_v17 = vld [vmem:[#allocation26_spill] sm:$0xff] }
 0xb7f   : > { %2784 = vrot.lane.b32.xlu1 %v11831_v49, %s10365_s30  ;;  %v14165_v49 = vld [vmem:[#allocation29_spill] sm:$0xff] }
 0xb80   : > { %2067 = vrot.lane.b32.xlu0 %v14161_v23, %s10364_s29 }
 0xb83   : > { %2069 = vrot.lane.b32.xlu1 %v14162_v51, %s10364_s29 }
 0xb84   : > { %2786 = vrot.lane.b32.xlu0 %v11837_v18, %s10365_s30  ;;  %v14166_v18 = vld [vmem:[#allocation28_spill] sm:$0xff] }
 0xb87   : > { %2788 = vrot.lane.b32.xlu1 %v11835_v59, %s10365_s30  ;;  %v14167_v59 = vld [vmem:[#allocation31_spill] sm:$0xff] }
 0xb88   : > { %2071 = vrot.lane.b32.xlu0 %v14163_v20, %s10364_s29 }
 0xb8b   : > { %2073 = vrot.lane.b32.xlu1 %v14164_v17, %s10364_s29 }
 0xb8c   : > { %2790 = vrot.lane.b32.xlu0 %v11841_v47, %s10365_s30  ;;  %v14168_v47 = vld [vmem:[#allocation30_spill] sm:$0xff] }
 0xb8f   : > { %2792 = vrot.lane.b32.xlu1 %v11839_v31, %s10365_s30  ;;  %v14169_v31 = vld [vmem:[#allocation33_spill] sm:$0xff] }
 0xb90   : > { %2075 = vrot.lane.b32.xlu0 %v14165_v49, %s10364_s29 }
 0xb93   : > { %2077 = vrot.lane.b32.xlu1 %v14166_v18, %s10364_s29 }
 0xb94   : > { %2794 = vrot.lane.b32.xlu0 %v11845_v60, %s10365_s30  ;;  %v14170_v60 = vld [vmem:[#allocation32_spill] sm:$0xff] }
 0xb97   : > { %2796 = vrot.lane.b32.xlu1 %v11843_v1, %s10365_s30  ;;  %v14171_v1 = vld [vmem:[#allocation35_spill] sm:$0xff] }
 0xb98   : > { %2079 = vrot.lane.b32.xlu0 %v14167_v59, %s10364_s29 }
 0xb9b   : > { %2081 = vrot.lane.b32.xlu1 %v14168_v47, %s10364_s29 }
 0xb9c   : > { %2798 = vrot.lane.b32.xlu0 %v11849_v3, %s10365_s30  ;;  %v14172_v3 = vld [vmem:[#allocation34_spill] sm:$0xff] }
 0xb9f   : > { %2800 = vrot.lane.b32.xlu1 %v11847_v21, %s10365_s30 }
 0xba0   : > { %2083 = vrot.lane.b32.xlu0 %v14169_v31, %s10364_s29 }
 0xba3   : > { %2085 = vrot.lane.b32.xlu1 %v14170_v60, %s10364_s29 }
 0xba4   : > { %2802 = vrot.lane.b32.xlu0 %v11853_v26, %s10365_s30 }
 0xba7   : > { %2804 = vrot.lane.b32.xlu1 %v11851_v8, %s10365_s30 }
 0xba8   : > { %2087 = vrot.lane.b32.xlu0 %v14171_v1, %s10364_s29 }
 0xbab   : > { %2089 = vrot.lane.b32.xlu1 %v14172_v3, %s10364_s29 }
 0xbac   : > { %2806 = vrot.lane.b32.xlu0 %v11857_v53, %s10365_s30 }
 0xbaf   : > { %2808 = vrot.lane.b32.xlu1 %v11855_v16, %s10365_s30 }
 0xbcd   : > { %v3203_v33 = vpop.xlane.xlu0 %3202 }
 0xbcf   : > { %v3200_v21 = vpop.xlane.xlu1 %3199 }
 0xbd0   : > { %10008 = vrcp.f32 %v3200_v21 }
 0xbd1   : > { %10010 = vrcp.f32 %v3203_v33 }
 0xbd3   : > { %v3209_v11 = vpop.xlane.xlu0 %3208 }
 0xbd7   : > { %v3206_v26 = vpop.xlane.xlu1 %3205 }
 0xbd8   : > { %10012 = vrcp.f32 %v3206_v26 }
 0xbd9   : > { %10014 = vrcp.f32 %v3209_v11 }
 0xbdb   : > { %v3215_v34 = vpop.xlane.xlu0 %3214  ;;  %v3212_v52 = vpop.xlane.xlu1 %3211 }
 0xbdc   : > { %10016 = vrcp.f32 %v3212_v52 }
 0xbdd   : > { %v10009_v8 = vpop.eup %10008  ;;  %10018 = vrcp.f32 %v3215_v34 }
 0xbde   : > { %v3254_v61 = vmul.f32 %v10009_v8, %v11946_v62  ;;  %v10011_v24 = vpop.eup %10010 }
 0xbdf   : > { %v3221_v42 = vpop.xlane.xlu0 %3220  ;;  %v3218_v14 = vpop.xlane.xlu1 %3217  ;;  %v3255_v30 = vmul.f32 %v10011_v24, %v11940_v43 }
 0xbe0   : > { %9374 = vmatprep.mubr.msk.f32.mxu1 %vm1013_vm9, %v3254_v61  ;;  %10020 = vrcp.f32 %v3218_v14  ;;  %v749_v14 = vld [vmem:[%s14089_s2 + $0xc0] sm:$0xff] }
 0xbe1   : > { %10022 = vrcp.f32 %v3221_v42  ;;  %v750_v42 = vld [vmem:[%s14089_s2 + $0xc8] sm:$0xff] }
 0xbe3   : > { %v3227_v53 = vpop.xlane.xlu0 %3226  ;;  %v3224_v38 = vpop.xlane.xlu1 %3223 }
 0xbe4   : > { %10024 = vrcp.f32 %v3224_v38  ;;  %v747_v38 = vld [vmem:[%s14089_s2 + $0xb0] sm:$0xff] }
 0xbe5   : > { %v10013_v57 = vpop.eup %10012  ;;  %10026 = vrcp.f32 %v3227_v53  ;;  %v748_v53 = vld [vmem:[%s14089_s2 + $0xb8] sm:$0xff] }
 0xbe6   : > { %v10015_v46 = vpop.eup %10014  ;;  %v3256_v63 = vmul.f32 %v10013_v57, %v11958_v5 }
 0xbe7   : > { %v3233_v16 = vpop.xlane.xlu0 %3232  ;;  %v3230_v56 = vpop.xlane.xlu1 %3229  ;;  %v3257_v43 = vmul.f32 %v10015_v46, %v11952_v28 }
 0xbe8   : > { %10028 = vrcp.f32 %v3230_v56 }
 0xbe9   : > { %v10017_v9 = vpop.eup %10016  ;;  %10030 = vrcp.f32 %v3233_v16 }
 0xbea   : > { %v10019_v22 = vpop.eup %10018  ;;  %v3258_v7 = vmul.f32 %v10017_v9, %v11962_v2 }
 0xbeb   : > { %v3239_v6 = vpop.xlane.xlu0 %3238  ;;  %v3236_v0 = vpop.xlane.xlu1 %3235  ;;  %v3259_v5 = vmul.f32 %v10019_v22, %v11965_v15 }
 0xbec   : > { %10032 = vrcp.f32 %v3236_v0 }
 0xbed   : > { %v10021_v50 = vpop.eup %10020  ;;  %10034 = vrcp.f32 %v3239_v6 }
 0xbee   : > { %v10023_v55 = vpop.eup %10022  ;;  %v3260_v40 = vmul.f32 %v10021_v50, %v11971_v27 }
 0xbef   : > { %v3269_v62 = vpop.permute.xlu0 %3268  ;;  %v3271_v25 = vpop.permute.xlu1 %3270  ;;  %v3261_v2 = vmul.f32 %v10023_v55, %v11973_v29 }
 0xbf0   : > { %9370 = vmatprep.subr.mxu1 %v3271_v25 }
 0xbf1   : > { %9371 = vmatpush3.msra.mxu1 %v3271_v25  ;;  %v10025_v41 = vpop.eup %10024 }
 0xbf2   : > { %9372 = vmatprep.subr.mxu1 %v3269_v62  ;;  %v10027_v12 = vpop.eup %10026  ;;  %v3262_v15 = vmul.f32 %v10025_v41, %v11979_v48  ;;  %v4175_v41 = vld [vmem:[%s14089_s2 + $0xf8] sm:$0xff] }
 0xbf3   : > { %v2783_v19 = vpop.permute.xlu0 %2782  ;;  %9373 = vmatpush3.msra.mxu1 %v3269_v62  ;;  %v2064_v58 = vpop.permute.xlu1 %2063  ;;  %v3263_v27 = vmul.f32 %v10027_v12, %v11981_v13 }
 0xbf4   : > { %2106 = vst.msk [vmem:[#allocation2] sm:$0xff] %vm2105_vm6, %v2064_v58  ;;  %9375 = vmatmul.mubr.msk.f32.vlgmr.msra.gmra.mxu1 %vm1013_vm9, %v3255_v30  ;;  %9395 = vmatprep.subr.mxu1 %v750_v42 }
 0xbf5   : > { %9377 = vmatprep.mubr.msk.f32.mxu1 %vm1013_vm9, %v3256_v63  ;;  %2825 = vst.msk [vmem:[#allocation2] sm:$0xff] %vm2824_vm7, %v2783_v19  ;;  %v10029_v45 = vpop.eup %10028  ;;  %9396 = vmatpush3.msra.mxu1 %v750_v42  ;;  %v4177_v19 = vld [vmem:[%s14089_s2 + $0x108] sm:$0xff] }
 0xbf6   : > { %v10031_v23 = vpop.eup %10030  ;;  %v3264_v29 = vmul.f32 %v10029_v45, %v11987_v36  ;;  %9397 = vmatprep.subr.mxu1 %v749_v14 }
 0xbf7   : > { %v2068_v39 = vpop.permute.xlu0 %2067  ;;  %v2066_v32 = vpop.permute.xlu1 %2065  ;;  %v3265_v48 = vmul.f32 %v10031_v23, %v11989_v54  ;;  %9398 = vmatpush3.msra.mxu1 %v749_v14 }
 0xbf8   : > { %2108 = vst.msk [vmem:[#allocation2 + $0x10] sm:$0xff] %vm2105_vm6, %v2068_v39  ;;  %2107 = vst.msk [vmem:[#allocation2 + $0x8] sm:$0xff] %vm2105_vm6, %v2066_v32  ;;  %9378 = vmatmul.mubr.msk.f32.gmra.mxu1 %vm1013_vm9, %v3257_v43  ;;  %9399 = vmatprep.subr.mxu1 %v748_v53 }
 0xbf9   : > { %9380 = vmatprep.mubr.msk.f32.mxu1 %vm1013_vm9, %v3258_v7  ;;  %v10033_v17 = vpop.eup %10032  ;;  %9400 = vmatpush3.msra.mxu1 %v748_v53 }
 0xbfa   : > { %v10035_v49 = vpop.eup %10034  ;;  %v3266_v13 = vmul.f32 %v10033_v17, %v11995_v37  ;;  %9401 = vmatprep.subr.mxu1 %v747_v38 }
 0xbfb   : > { %v2787_v28 = vpop.permute.xlu0 %2786  ;;  %v2785_v35 = vpop.permute.xlu1 %2784  ;;  %v3267_v36 = vmul.f32 %v10035_v49, %v11997_v44  ;;  %9402 = vmatpush3.msra.mxu1 %v747_v38  ;;  %v14175_v38 = vld [vmem:[#allocation4_spill] sm:$0xff] }
 0xbfc   : > { %2827 = vst.msk [vmem:[#allocation2 + $0x10] sm:$0xff] %vm2824_vm7, %v2787_v28  ;;  %2826 = vst.msk [vmem:[#allocation2 + $0x8] sm:$0xff] %vm2824_vm7, %v2785_v35  ;;  %9381 = vmatmul.mubr.msk.f32.gmra.mxu1 %vm1013_vm9, %v3259_v5  ;;  %9453 = vmatprep.subr.mxu1 %v4177_v19  ;;  %v4176_v35 = vld [vmem:[%s14089_s2 + $0x100] sm:$0xff] }
 0xbfd   : > { %9383 = vmatprep.mubr.msk.f32.mxu1 %vm1013_vm9, %v3260_v40 }
 0xbff   : > { %v2072_v4 = vpop.permute.xlu0 %2071  ;;  %v2070_v10 = vpop.permute.xlu1 %2069 }
 0xc00   : > { %2110 = vst.msk [vmem:[#allocation2 + $0x20] sm:$0xff] %vm2105_vm6, %v2072_v4  ;;  %2109 = vst.msk [vmem:[#allocation2 + $0x18] sm:$0xff] %vm2105_vm6, %v2070_v10  ;;  %9384 = vmatmul.mubr.msk.f32.gmra.mxu1 %vm1013_vm9, %v3261_v2  ;;  %v4174_v10 = vld [vmem:[%s14089_s2 + $0xf0] sm:$0xff] }
 0xc01   : > { %9386 = vmatprep.mubr.msk.f32.mxu1 %vm1013_vm9, %v3262_v15 }
 0xc03   : > { %v2791_v51 = vpop.permute.xlu0 %2790  ;;  %v2789_v20 = vpop.permute.xlu1 %2788 }
 0xc04   : > { %2829 = vst.msk [vmem:[#allocation2 + $0x20] sm:$0xff] %vm2824_vm7, %v2791_v51  ;;  %2828 = vst.msk [vmem:[#allocation2 + $0x18] sm:$0xff] %vm2824_vm7, %v2789_v20  ;;  %9387 = vmatmul.mubr.msk.f32.gmra.mxu1 %vm1013_vm9, %v3263_v27 }
 0xc05   : > { %9389 = vmatprep.mubr.msk.f32.mxu1 %vm1013_vm9, %v3264_v29 }
 0xc07   : > { %v2076_v18 = vpop.permute.xlu0 %2075  ;;  %v2074_v59 = vpop.permute.xlu1 %2073 }
 0xc08   : > { %2112 = vst.msk [vmem:[#allocation2 + $0x30] sm:$0xff] %vm2105_vm6, %v2076_v18  ;;  %2111 = vst.msk [vmem:[#allocation2 + $0x28] sm:$0xff] %vm2105_vm6, %v2074_v59  ;;  %9390 = vmatmul.mubr.msk.f32.gmra.mxu1 %vm1013_vm9, %v3265_v48 }
 0xc09   : > { %9392 = vmatprep.mubr.msk.f32.mxu1 %vm1013_vm9, %v3266_v13  ;;  %v8012_v13 = vld [vmem:[%s14089_s2 + $0x1b0] ss:$0 sm:$0xff] }
 0xc0b   : > { %v2795_v47 = vpop.permute.xlu0 %2794  ;;  %v2793_v31 = vpop.permute.xlu1 %2792 }
 0xc0c   : > { %2831 = vst.msk [vmem:[#allocation2 + $0x30] sm:$0xff] %vm2824_vm7, %v2795_v47  ;;  %2830 = vst.msk [vmem:[#allocation2 + $0x28] sm:$0xff] %vm2824_vm7, %v2793_v31  ;;  %9393 = vmatmul.mubr.msk.f32.gmra.mxu1 %vm1013_vm9, %v3267_v36  ;;  %v14173_v47 = vld [vmem:[#allocation18_spill] sm:$0xff]  ;;  %vm4466_vm9 = vcmask 97280  }
 0xc0d   : > { %v273_v31 = vadd.f32 %v8012_v13, %v14173_v47 }
 0xc0f   : > { %v2080_v54 = vpop.permute.xlu0 %2079  ;;  %v2078_v37 = vpop.permute.xlu1 %2077 }
 0xc10   : > { %2114 = vst.msk [vmem:[#allocation2 + $0x40] sm:$0xff] %vm2105_vm6, %v2080_v54  ;;  %2113 = vst.msk [vmem:[#allocation2 + $0x38] sm:$0xff] %vm2105_vm6, %v2078_v37  ;;  %v281_v37 = vld [vmem:[%s14089_s2 + $0x70] sm:$0xff] }
 0xc13   : > { %v2799_v60 = vpop.permute.xlu0 %2798  ;;  %v2797_v1 = vpop.permute.xlu1 %2796 }
 0xc14   : > { %2833 = vst.msk [vmem:[#allocation2 + $0x40] sm:$0xff] %vm2824_vm7, %v2799_v60  ;;  %2832 = vst.msk [vmem:[#allocation2 + $0x38] sm:$0xff] %vm2824_vm7, %v2797_v1  ;;  %v14174_v60 = vld [vmem:[#allocation17_spill] sm:$0xff] }
 0xc15   : > { %v278_v1 = vadd.f32 %v14174_v60, %v8012_v13  ;;  %v14184_v13 = vld [vmem:[#allocation12_spill] sm:$0xff] }
 0xc17   : > { %v2084_v44 = vpop.permute.xlu0 %2083  ;;  %v2082_v3 = vpop.permute.xlu1 %2081 }
 0xc18   : > { %2116 = vst.msk [vmem:[#allocation2 + $0x50] sm:$0xff] %vm2105_vm6, %v2084_v44  ;;  %2115 = vst.msk [vmem:[#allocation2 + $0x48] sm:$0xff] %vm2105_vm6, %v2082_v3  ;;  %v282_v3 = vld [vmem:[%s14089_s2 + $0x78] sm:$0xf] }
 0xc1b   : > { %v2803_v21 = vpop.permute.xlu0 %2802  ;;  %v2801_v33 = vpop.permute.xlu1 %2800 }
 0xc1c   : > { %2835 = vst.msk [vmem:[#allocation2 + $0x50] sm:$0xff] %vm2824_vm7, %v2803_v21  ;;  %2834 = vst.msk [vmem:[#allocation2 + $0x48] sm:$0xff] %vm2824_vm7, %v2801_v33  ;;  %v283_v21 = vadd.f32 %v281_v37, %v273_v31 }
 0xc1f   : > { %v2088_v11 = vpop.permute.xlu0 %2087  ;;  %v2086_v26 = vpop.permute.xlu1 %2085 }
 0xc20   : > { %2118 = vst.msk [vmem:[#allocation2 + $0x60] sm:$0xff] %vm2105_vm6, %v2088_v11  ;;  %2117 = vst.msk [vmem:[#allocation2 + $0x58] sm:$0xff] %vm2105_vm6, %v2086_v26  ;;  %v284_v11 = vadd.f32 %v282_v3, %v278_v1  ;;  %v3991_v26 = vld [vmem:[%s14089_s2 + $0xe8] sm:$0xff] }
 0xc21   : > { %9424 = vmatprep.subr.mxu0 %v3991_v26 }
 0xc22   : > { %9425 = vmatpush3.msra.mxu0 %v3991_v26  ;;  %v14186_v26 = vld [vmem:[#allocation14_spill] sm:$0xff] }
 0xc23   : > { %v2807_v34 = vpop.permute.xlu0 %2806  ;;  %v2805_v52 = vpop.permute.xlu1 %2804 }
 0xc24   : > { %2837 = vst.msk [vmem:[#allocation2 + $0x60] sm:$0xff] %vm2824_vm7, %v2807_v34  ;;  %2836 = vst.msk [vmem:[#allocation2 + $0x58] sm:$0xff] %vm2824_vm7, %v2805_v52  ;;  %v3990_v34 = vld [vmem:[%s14089_s2 + $0xe0] sm:$0xff]  ;;  %v3989_v52 = vld [vmem:[%s14089_s2 + $0xd8] sm:$0xff] }
 0xc25   : > { %9426 = vmatprep.subr.mxu0 %v3990_v34 }
 0xc26   : > { %9427 = vmatpush3.msra.mxu0 %v3990_v34 }
 0xc27   : > { %v2090_v8 = vpop.permute.xlu1 %2089  ;;  %9428 = vmatprep.subr.mxu0 %v3989_v52 }
 0xc28   : > { %2119 = vst.msk [vmem:[#allocation2 + $0x68] sm:$0xff] %vm2105_vm6, %v2090_v8  ;;  %9429 = vmatpush3.msra.mxu0 %v3989_v52  ;;  %v3988_v8 = vld [vmem:[%s14089_s2 + $0xd0] sm:$0xff] }
 0xc29   : > { %9430 = vmatprep.subr.mxu0 %v3988_v8 }
 0xc2a   : > { %9431 = vmatpush3.msra.mxu0 %v3988_v8 }
 0xc2b   : > { %v2809_v61 = vpop.permute.xlu1 %2808 }
 0xc2c   : > { %2838 = vst.msk [vmem:[#allocation2 + $0x68] sm:$0xff] %vm2824_vm7, %v2809_v61  ;;  %v8214_v61 = vld [vmem:[%s14089_s2 + $0x1c8] ss:$0 sm:$0xff] }
 0xcb4   : > { %v9376_v16 = vpop.f32.mrf.mxu1 }
 0xcb5   : > { %3503 = vrot.lane.b32.xlu1 %v9376_v16, %s10366_s14 }
 0xcb6   : > { %v3418_v56 = vpop.f32.mrf.mxu1 }
 0xcb7   : > { %3501 = vrot.lane.b32.xlu0 %v3418_v56, %s10366_s14 }
 0xcb8   : > { %v9379_v6 = vpop.f32.mrf.mxu1 }
 0xcb9   : > { %3507 = vrot.lane.b32.xlu1 %v9379_v6, %s10366_s14 }
 0xcba   : > { %v3428_v0 = vpop.f32.mrf.mxu1 }
 0xcbb   : > { %3505 = vrot.lane.b32.xlu0 %v3428_v0, %s10366_s14  ;;  %v14176_v0 = vld [vmem:[#allocation3_spill] sm:$0xff] }
 0xcbc   : > { %v9382_v24 = vpop.f32.mrf.mxu1 }
 0xcbd   : > { %3511 = vrot.lane.b32.xlu1 %v9382_v24, %s10366_s14 }
 0xcbe   : > { %v3438_v62 = vpop.f32.mrf.mxu1 }
 0xcbf   : > { %3509 = vrot.lane.b32.xlu0 %v3438_v62, %s10366_s14 }
 0xcc0   : > { %v9385_v25 = vpop.f32.mrf.mxu1 }
 0xcc1   : > { %3515 = vrot.lane.b32.xlu1 %v9385_v25, %s10366_s14 }
 0xcc2   : > { %v3448_v57 = vpop.f32.mrf.mxu1 }
 0xcc3   : > { %3513 = vrot.lane.b32.xlu0 %v3448_v57, %s10366_s14 }
 0xcc4   : > { %v9388_v30 = vpop.f32.mrf.mxu1 }
 0xcc5   : > { %3519 = vrot.lane.b32.xlu1 %v9388_v30, %s10366_s14 }
 0xcc6   : > { %v3458_v46 = vpop.f32.mrf.mxu1 }
 0xcc7   : > { %3517 = vrot.lane.b32.xlu0 %v3458_v46, %s10366_s14 }
 0xcc8   : > { %v9391_v58 = vpop.f32.mrf.mxu1 }
 0xcc9   : > { %3523 = vrot.lane.b32.xlu1 %v9391_v58, %s10366_s14  ;;  %v14177_v58 = vld [vmem:[#allocation5_spill] sm:$0xff] }
 0xcca   : > { %v3468_v63 = vpop.f32.mrf.mxu1 }
 0xccb   : > { %3521 = vrot.lane.b32.xlu0 %v3468_v63, %s10366_s14 }
 0xccc   : > { %v9394_v9 = vpop.f32.mrf.mxu1 }
 0xccd   : > { %3527 = vrot.lane.b32.xlu1 %v9394_v9, %s10366_s14  ;;  %v14178_v9 = vld [vmem:[#allocation6_spill] sm:$0xff] }
 0xcce   : > { %v3478_v43 = vpop.f32.mrf.mxu1 }
 0xccf   : > { %3525 = vrot.lane.b32.xlu0 %v3478_v43, %s10366_s14 }
 0xd27   : > { %v3504_v22 = vpop.permute.xlu1 %3503 }
 0xd28   : > { %3545 = vst.msk [vmem:[#allocation2 + $0x8] sm:$0xff] %vm3543_vm8, %v3504_v22 }
 0xd29   : > { %v3502_v39 = vpop.permute.xlu0 %3501 }
 0xd2a   : > { %3544 = vst.msk [vmem:[#allocation2] sm:$0xff] %vm3543_vm8, %v3502_v39 }
 0xd2b   : > { %v3508_v32 = vpop.permute.xlu1 %3507 }
 0xd2c   : > { %3547 = vst.msk [vmem:[#allocation2 + $0x18] sm:$0xff] %vm3543_vm8, %v3508_v32 }
 0xd2d   : > { %v3506_v7 = vpop.permute.xlu0 %3505 }
 0xd2e   : > { %3546 = vst.msk [vmem:[#allocation2 + $0x10] sm:$0xff] %vm3543_vm8, %v3506_v7 }
 0xd2f   : > { %v3512_v50 = vpop.permute.xlu1 %3511  ;;  %v3559_v28 = vld [vmem:[#allocation2 + $0x8] sm:$0xff] }
 0xd30   : > { %3549 = vst.msk [vmem:[#allocation2 + $0x28] sm:$0xff] %vm3543_vm8, %v3512_v50 }
 0xd31   : > { %v3510_v5 = vpop.permute.xlu0 %3509  ;;  %v3558_v55 = vld [vmem:[#allocation2] sm:$0xff] }
 0xd32   : > { %3548 = vst.msk [vmem:[#allocation2 + $0x20] sm:$0xff] %vm3543_vm8, %v3510_v5  ;;  %9403 = vmatprep.mubr.msk.f32.mxu1 %vm569_vm3, %v3558_v55  ;;  %v14179_v5 = vld [vmem:[#allocation7_spill] sm:$0xff] }
 0xd33   : > { %9404 = vmatmul.mubr.msk.f32.vlgmr.msra.gmra.mxu1 %vm569_vm3, %v3559_v28  ;;  %v3516_v40 = vpop.permute.xlu1 %3515  ;;  %v3561_v4 = vld [vmem:[#allocation2 + $0x18] sm:$0xff] }
 0xd34   : > { %3551 = vst.msk [vmem:[#allocation2 + $0x38] sm:$0xff] %vm3543_vm8, %v3516_v40  ;;  %9454 = vmatpush3.msra.mxu1 %v4177_v19  ;;  %v14180_v40 = vld [vmem:[#allocation8_spill] sm:$0xff] }
 0xd35   : > { %v3514_v2 = vpop.permute.xlu0 %3513  ;;  %v3560_v12 = vld [vmem:[#allocation2 + $0x10] sm:$0xff]  ;;  %9455 = vmatprep.subr.mxu1 %v4176_v35 }
 0xd36   : > { %3550 = vst.msk [vmem:[#allocation2 + $0x30] sm:$0xff] %vm3543_vm8, %v3514_v2  ;;  %9406 = vmatprep.mubr.msk.f32.mxu1 %vm569_vm3, %v3560_v12  ;;  %9456 = vmatpush3.msra.mxu1 %v4176_v35 }
 0xd37   : > { %9407 = vmatmul.mubr.msk.f32.gmra.mxu1 %vm569_vm3, %v3561_v4  ;;  %v3520_v15 = vpop.permute.xlu1 %3519  ;;  %9457 = vmatprep.subr.mxu1 %v4175_v41  ;;  %v3563_v23 = vld [vmem:[#allocation2 + $0x28] sm:$0xff] }
 0xd38   : > { %3553 = vst.msk [vmem:[#allocation2 + $0x48] sm:$0xff] %vm3543_vm8, %v3520_v15  ;;  %9458 = vmatpush3.msra.mxu1 %v4175_v41  ;;  %v14181_v15 = vld [vmem:[#allocation9_spill] sm:$0xff] }
 0xd39   : > { %v3518_v45 = vpop.permute.xlu0 %3517  ;;  %v3562_v27 = vld [vmem:[#allocation2 + $0x20] sm:$0xff]  ;;  %9459 = vmatprep.subr.mxu1 %v4174_v10 }
 0xd3a   : > { %3552 = vst.msk [vmem:[#allocation2 + $0x40] sm:$0xff] %vm3543_vm8, %v3518_v45  ;;  %9409 = vmatprep.mubr.msk.f32.mxu1 %vm569_vm3, %v3562_v27  ;;  %9460 = vmatpush3.msra.mxu1 %v4174_v10 }
 0xd3b   : > { %9410 = vmatmul.mubr.msk.f32.gmra.mxu1 %vm569_vm3, %v3563_v23  ;;  %v3524_v51 = vpop.permute.xlu1 %3523  ;;  %v3565_v17 = vld [vmem:[#allocation2 + $0x38] sm:$0xff] }
 0xd3c   : > { %3555 = vst.msk [vmem:[#allocation2 + $0x58] sm:$0xff] %vm3543_vm8, %v3524_v51  ;;  %v14182_v51 = vld [vmem:[#allocation10_spill] sm:$0xff] }
 0xd3d   : > { %v3522_v20 = vpop.permute.xlu0 %3521  ;;  %v3564_v29 = vld [vmem:[#allocation2 + $0x30] sm:$0xff] }
 0xd3e   : > { %3554 = vst.msk [vmem:[#allocation2 + $0x50] sm:$0xff] %vm3543_vm8, %v3522_v20  ;;  %9412 = vmatprep.mubr.msk.f32.mxu1 %vm569_vm3, %v3564_v29 }
 0xd3f   : > { %9413 = vmatmul.mubr.msk.f32.gmra.mxu1 %vm569_vm3, %v3565_v17  ;;  %v3528_v48 = vpop.permute.xlu1 %3527  ;;  %v3567_v59 = vld [vmem:[#allocation2 + $0x48] sm:$0xff] }
 0xd40   : > { %3557 = vst.msk [vmem:[#allocation2 + $0x68] sm:$0xff] %vm3543_vm8, %v3528_v48 }
 0xd41   : > { %v3526_v49 = vpop.permute.xlu0 %3525  ;;  %v3566_v18 = vld [vmem:[#allocation2 + $0x40] sm:$0xff] }
 0xd42   : > { %3556 = vst.msk [vmem:[#allocation2 + $0x60] sm:$0xff] %vm3543_vm8, %v3526_v49  ;;  %9415 = vmatprep.mubr.msk.f32.mxu1 %vm569_vm3, %v3566_v18  ;;  %v14183_v18 = vld [vmem:[#allocation11_spill] sm:$0xff] }
 0xd43   : > { %9416 = vmatmul.mubr.msk.f32.gmra.mxu1 %vm569_vm3, %v3567_v59  ;;  %v3569_v54 = vld [vmem:[#allocation2 + $0x58] sm:$0xff] }
 0xd45   : > { %v3568_v36 = vld [vmem:[#allocation2 + $0x50] sm:$0xff] }
 0xd46   : > { %9418 = vmatprep.mubr.msk.f32.mxu1 %vm569_vm3, %v3568_v36 }
 0xd47   : > { %9419 = vmatmul.mubr.msk.f32.gmra.mxu1 %vm569_vm3, %v3569_v54  ;;  %v3571_v33 = vld [vmem:[#allocation2 + $0x68] sm:$0xff] }
 0xd49   : > { %v3570_v44 = vld [vmem:[#allocation2 + $0x60] sm:$0xff] }
 0xd4a   : > { %9421 = vmatprep.mubr.msk.f32.mxu1 %vm569_vm3, %v3570_v44  ;;  %v14185_v44 = vld [vmem:[#allocation13_spill] sm:$0xff] }
 0xd4b   : > { %9422 = vmatmul.mubr.msk.f32.gmra.mxu1 %vm569_vm3, %v3571_v33 }
 0xd4c   : > { %9461 = vmatprep.mubr.msk.f32.mxu1 %vm569_vm3, %v283_v21 }
 0xd4f   : > { %9462 = vmatmul.mubr.msk.f32.vlgmr.msra.gmra.mxu1 %vm569_vm3, %v284_v11  ;;  %v12269_v11 = vld [vmem:[%s14089_s2 + $0x1d8] ss:$0 sm:$0xff] }
 0xdf3   : > { %v9405_v42 = vpop.f32.mrf.mxu1 }
 0xdf4   : > { %v3690_v14 = vadd.f32 %v9405_v42, %v8214_v61 }
 0xdf5   : > { %v3684_v53 = vpop.f32.mrf.mxu1 }
 0xdf6   : > { %v12214_v16 = vadd.f32 %v3690_v14, %v14175_v38  ;;  %v3685_v56 = vadd.f32 %v8214_v61, %v3684_v53  ;;  %v14187_v53 = vld [vmem:[#allocation15_spill] sm:$0xff] }
 0xdf7   : > { %v9408_v6 = vpop.f32.mrf.mxu1 }
 0xdf8   : > { %v12217_v24 = vadd.f32 %v3685_v56, %v14176_v0  ;;  %v3772_v62 = vsel %vm569_vm3, %v12214_v16, 0.0  ;;  %v3700_v25 = vadd.f32 %v9408_v6, %v8214_v61  ;;  %v14188_v6 = vld [vmem:[#allocation16_spill] sm:$0xff] }
 0xdf9   : > { %3773 = vadd.xlane.f32.xlu1 %v3772_v62  ;;  %v3694_v57 = vpop.f32.mrf.mxu1 }
 0xdfa   : > { %v3695_v30 = vadd.f32 %v8214_v61, %v3694_v57  ;;  %v3769_v46 = vsel %vm569_vm3, %v12217_v24, 0.0  ;;  %v12227_v43 = vadd.f32 %v3700_v25, %v14178_v9 }
 0xdfb   : > { %3770 = vadd.xlane.f32.xlu0 %v3769_v46  ;;  %v9411_v19 = vpop.f32.mrf.mxu1 }
 0xdfc   : > { %v12224_v63 = vadd.f32 %v3695_v30, %v14177_v58  ;;  %v3710_v39 = vadd.f32 %v9411_v19, %v8214_v61  ;;  %v3778_v35 = vsel %vm569_vm3, %v12227_v43, 0.0 }
 0xdfd   : > { %v3704_v22 = vpop.f32.mrf.mxu1 }
 0xdfe   : > { %v3705_v32 = vadd.f32 %v8214_v61, %v3704_v22  ;;  %v3775_v7 = vsel %vm569_vm3, %v12224_v63, 0.0  ;;  %v12237_v41 = vadd.f32 %v3710_v39, %v14180_v40 }
 0xdff   : > { %3776 = vadd.xlane.f32.xlu0 %v3775_v7  ;;  %v9414_v50 = vpop.f32.mrf.mxu1 }
 0xe00   : > { %v12232_v55 = vadd.f32 %v3705_v32, %v14179_v5  ;;  %v3720_v2 = vadd.f32 %v9414_v50, %v8214_v61  ;;  %v3784_v17 = vsel %vm569_vm3, %v12237_v41, 0.0 }
 0xe01   : > { %v3714_v28 = vpop.f32.mrf.mxu1 }
 0xe02   : > { %v3715_v12 = vadd.f32 %v8214_v61, %v3714_v28  ;;  %v3781_v4 = vsel %vm569_vm3, %v12232_v55, 0.0  ;;  %v12245_v20 = vadd.f32 %v3720_v2, %v14182_v51 }
 0xe03   : > { %3779 = vadd.xlane.f32.xlu0 %v3778_v35  ;;  %3782 = vadd.xlane.f32.xlu1 %v3781_v4  ;;  %v9417_v10 = vpop.f32.mrf.mxu1 }
 0xe04   : > { %v12242_v45 = vadd.f32 %v3715_v12, %v14181_v15  ;;  %v3730_v27 = vadd.f32 %v9417_v10, %v8214_v61  ;;  %v3790_v37 = vsel %vm569_vm3, %v12245_v20, 0.0 }
 0xe05   : > { %v3724_v23 = vpop.f32.mrf.mxu1 }
 0xe06   : > { %v3725_v29 = vadd.f32 %v8214_v61, %v3724_v23  ;;  %v3787_v48 = vsel %vm569_vm3, %v12242_v45, 0.0  ;;  %v12255_v36 = vadd.f32 %v3730_v27, %v14184_v13 }
 0xe07   : > { %3785 = vadd.xlane.f32.xlu0 %v3784_v17  ;;  %3788 = vadd.xlane.f32.xlu1 %v3787_v48  ;;  %v9420_v49 = vpop.f32.mrf.mxu1 }
 0xe08   : > { %v12252_v59 = vadd.f32 %v3725_v29, %v14183_v18  ;;  %v3740_v31 = vadd.f32 %v9420_v49, %v8214_v61  ;;  %v3796_v33 = vsel %vm569_vm3, %v12255_v36, 0.0 }
 0xe09   : > { %v3734_v47 = vpop.f32.mrf.mxu1 }
 0xe0a   : > { %v3735_v54 = vadd.f32 %v8214_v61, %v3734_v47  ;;  %v3793_v60 = vsel %vm569_vm3, %v12252_v59, 0.0  ;;  %v12272_v34 = vadd.f32 %v3740_v31, %v14186_v26 }
 0xe0b   : > { %3791 = vadd.xlane.f32.xlu0 %v3790_v37  ;;  %3794 = vadd.xlane.f32.xlu1 %v3793_v60  ;;  %v9423_v1 = vpop.f32.mrf.mxu1 }
 0xe0c   : > { %v12262_v3 = vadd.f32 %v3735_v54, %v14185_v44  ;;  %v3750_v52 = vadd.f32 %v9423_v1, %v8214_v61 }
 0xe0d   : > { %v3744_v21 = vpop.f32.mrf.mxu1 }
 0xe0e   : > { %v3745_v8 = vadd.f32 %v8214_v61, %v3744_v21  ;;  %v3799_v42 = vsel %vm569_vm3, %v12262_v3, 0.0  ;;  %v12283_v0 = vadd.f32 %v3750_v52, %v14188_v6  ;;  %v3802_v61 = vsel %vm569_vm3, %v12272_v34, 0.0 }
 0xe0f   : > { %3797 = vadd.xlane.f32.xlu0 %v3796_v33  ;;  %3800 = vadd.xlane.f32.xlu1 %v3799_v42  ;;  %v9463_v14 = vpop.f32.mrf.mxu1 }
 0xe10   : > { %v12277_v38 = vadd.f32 %v3745_v8, %v14187_v53  ;;  %v12280_v56 = vadd.f32 %v9463_v14, %v12269_v11  ;;  %v3808_v25 = vsel %vm569_vm3, %v12283_v0, 0.0 }
 0xe12   : > { %9464 = vmatprep.subr.msk.mxu0 %vm199_vm1, %v12280_v56  ;;  %v3805_v62 = vsel %vm569_vm3, %v12277_v38, 0.0 }
 0xe13   : > { %3803 = vadd.xlane.f32.xlu0 %v3802_v61  ;;  %3806 = vadd.xlane.f32.xlu1 %v3805_v62 }
 0xe17   : > { %3809 = vadd.xlane.f32.xlu0 %v3808_v25 }
 0xe82   : > { %v3774_v57 = vpop.xlane.xlu1 %3773 }
 0xe83   : > { %v3813_v30 = vmul.f32 0.03125, %v3774_v57 }
 0xe84   : > { %v3771_v46 = vpop.xlane.xlu0 %3770 }
 0xe85   : > { %v12294_v19 = vsub.f32 %v12214_v16, %v3813_v30  ;;  %v3812_v58 = vmul.f32 0.03125, %v3771_v46 }
 0xe87   : > { %v12297_v9 = vsub.f32 %v12217_v24, %v3812_v58  ;;  %v3841_v22 = vmul.f32 %v12294_v19, %v12294_v19 }
 0xe88   : > { %v3777_v39 = vpop.xlane.xlu0 %3776 }
 0xe89   : > { %v3814_v32 = vmul.f32 0.03125, %v3777_v39  ;;  %v3857_v7 = vsel %vm569_vm3, %v3841_v22, 0.0  ;;  %v3840_v50 = vmul.f32 %v12297_v9, %v12297_v9 }
 0xe8a   : > { %3858 = vadd.xlane.f32.xlu0 %v3857_v7 }
 0xe8b   : > { %v12305_v5 = vsub.f32 %v12224_v63, %v3814_v32  ;;  %v3854_v16 = vsel %vm569_vm3, %v3840_v50, 0.0 }
 0xe8c   : > { %v3780_v28 = vpop.xlane.xlu0 %3779  ;;  %3855 = vadd.xlane.f32.xlu1 %v3854_v16  ;;  %v3783_v24 = vpop.xlane.xlu1 %3782 }
 0xe8d   : > { %v3815_v35 = vmul.f32 0.03125, %v3780_v28  ;;  %v3816_v40 = vmul.f32 0.03125, %v3783_v24  ;;  %v3842_v2 = vmul.f32 %v12305_v5, %v12305_v5 }
 0xe8f   : > { %v12311_v12 = vsub.f32 %v12227_v43, %v3815_v35  ;;  %v12314_v4 = vsub.f32 %v12232_v55, %v3816_v40  ;;  %v3860_v10 = vsel %vm569_vm3, %v3842_v2, 0.0 }
 0xe90   : > { %v3786_v63 = vpop.xlane.xlu0 %3785  ;;  %3861 = vadd.xlane.f32.xlu1 %v3860_v10  ;;  %v3789_v15 = vpop.xlane.xlu1 %3788 }
 0xe91   : > { %v3817_v27 = vmul.f32 0.03125, %v3786_v63  ;;  %v3818_v23 = vmul.f32 0.03125, %v3789_v15  ;;  %v3843_v51 = vmul.f32 %v12311_v12, %v12311_v12  ;;  %v3844_v29 = vmul.f32 %v12314_v4, %v12314_v4 }
 0xe93   : > { %v12322_v17 = vsub.f32 %v12237_v41, %v3817_v27  ;;  %v12325_v43 = vsub.f32 %v12242_v45, %v3818_v23  ;;  %v3863_v55 = vsel %vm569_vm3, %v3843_v51, 0.0  ;;  %v3866_v48 = vsel %vm569_vm3, %v3844_v29, 0.0 }
 0xe94   : > { %v3792_v49 = vpop.xlane.xlu0 %3791  ;;  %3864 = vadd.xlane.f32.xlu0 %v3863_v55  ;;  %3867 = vadd.xlane.f32.xlu1 %v3866_v48  ;;  %v3795_v18 = vpop.xlane.xlu1 %3794 }
 0xe95   : > { %v3819_v13 = vmul.f32 0.03125, %v3792_v49  ;;  %v3820_v47 = vmul.f32 0.03125, %v3795_v18  ;;  %v3845_v31 = vmul.f32 %v12322_v17, %v12322_v17  ;;  %v3846_v41 = vmul.f32 %v12325_v43, %v12325_v43 }
 0xe97   : > { %v12334_v54 = vsub.f32 %v12245_v20, %v3819_v13  ;;  %v12337_v45 = vsub.f32 %v12252_v59, %v3820_v47  ;;  %v3869_v37 = vsel %vm569_vm3, %v3845_v31, 0.0  ;;  %v3872_v60 = vsel %vm569_vm3, %v3846_v41, 0.0 }
 0xe98   : > { %v3798_v1 = vpop.xlane.xlu0 %3797  ;;  %3870 = vadd.xlane.f32.xlu0 %v3869_v37  ;;  %3873 = vadd.xlane.f32.xlu1 %v3872_v60  ;;  %v3801_v44 = vpop.xlane.xlu1 %3800 }
 0xe99   : > { %v3821_v21 = vmul.f32 0.03125, %v3798_v1  ;;  %v3822_v33 = vmul.f32 0.03125, %v3801_v44  ;;  %v3847_v26 = vmul.f32 %v12334_v54, %v12334_v54  ;;  %v3848_v20 = vmul.f32 %v12337_v45, %v12337_v45  ;;  %v12380_v1 = vld [vmem:[%s14089_s2 + $0x1f8] ss:$0 sm:$0xff] }
 0xe9b   : > { %v12346_v52 = vsub.f32 %v12255_v36, %v3821_v21  ;;  %v12349_v59 = vsub.f32 %v12262_v3, %v3822_v33  ;;  %v3875_v8 = vsel %vm569_vm3, %v3847_v26, 0.0  ;;  %v3878_v42 = vsel %vm569_vm3, %v3848_v20, 0.0 }
 0xe9c   : > { %v3804_v14 = vpop.xlane.xlu0 %3803  ;;  %3876 = vadd.xlane.f32.xlu0 %v3875_v8  ;;  %3879 = vadd.xlane.f32.xlu1 %v3878_v42  ;;  %v3807_v53 = vpop.xlane.xlu1 %3806 }
 0xe9d   : > { %v3823_v6 = vmul.f32 0.03125, %v3804_v14  ;;  %v3824_v61 = vmul.f32 0.03125, %v3807_v53  ;;  %v3849_v62 = vmul.f32 %v12346_v52, %v12346_v52  ;;  %v3850_v36 = vmul.f32 %v12349_v59, %v12349_v59 }
 0xe9f   : > { %v12358_v25 = vsub.f32 %v12272_v34, %v3823_v6  ;;  %v12361_v3 = vsub.f32 %v12277_v38, %v3824_v61  ;;  %v3881_v57 = vsel %vm569_vm3, %v3849_v62, 0.0  ;;  %v3884_v30 = vsel %vm569_vm3, %v3850_v36, 0.0 }
 0xea0   : > { %v3810_v46 = vpop.xlane.xlu0 %3809  ;;  %3882 = vadd.xlane.f32.xlu0 %v3881_v57  ;;  %3885 = vadd.xlane.f32.xlu1 %v3884_v30  ;;  %v4255_v30 = vpop.f32.mrf.mxu1 }
 0xea1   : > { %v3825_v58 = vmul.f32 0.03125, %v3810_v46  ;;  %v3851_v22 = vmul.f32 %v12358_v25, %v12358_v25  ;;  %v3852_v39 = vmul.f32 %v12361_v3, %v12361_v3 }
 0xea3   : > { %v12370_v34 = vsub.f32 %v12283_v0, %v3825_v58  ;;  %v3887_v38 = vsel %vm569_vm3, %v3851_v22, 0.0  ;;  %v3890_v32 = vsel %vm569_vm3, %v3852_v39, 0.0 }
 0xea4   : > { %3888 = vadd.xlane.f32.xlu0 %v3887_v38  ;;  %3891 = vadd.xlane.f32.xlu1 %v3890_v32 }
 0xea5   : > { %v3853_v7 = vmul.f32 %v12370_v34, %v12370_v34 }
 0xea7   : > { %v3893_v50 = vsel %vm569_vm3, %v3853_v7, 0.0 }
 0xea8   : > { %3894 = vadd.xlane.f32.xlu0 %v3893_v50 }
 0xf13   : > { %v3859_v16 = vpop.xlane.xlu0 %3858 }
 0xf14   : > { %v3897_v28 = vmul.f32 0.03125, %v3859_v16 }
 0xf15   : > { %v3856_v24 = vpop.xlane.xlu1 %3855 }
 0xf16   : > { %v3911_v35 = vadd.f32 1e-05, %v3897_v28  ;;  %v3896_v40 = vmul.f32 0.03125, %v3856_v24  ;;  %v12402_v24 = vadd.f32 %v12269_v11, %v4255_v30 }
 0xf18   : > { %10036 = vrsqrt.f32 %v3911_v35  ;;  %v3910_v0 = vadd.f32 1e-05, %v3896_v40 }
 0xf19   : > { %v3862_v2 = vpop.xlane.xlu1 %3861 }
 0xf1a   : > { %10038 = vrsqrt.f32 %v3910_v0  ;;  %v3898_v10 = vmul.f32 0.03125, %v3862_v2 }
 0xf1c   : > { %v3912_v63 = vadd.f32 1e-05, %v3898_v10 }
 0xf1d   : > { %v3865_v15 = vpop.xlane.xlu0 %3864  ;;  %v3868_v27 = vpop.xlane.xlu1 %3867 }
 0xf1e   : > { %10040 = vrsqrt.f32 %v3912_v63  ;;  %v3899_v23 = vmul.f32 0.03125, %v3865_v15  ;;  %v3900_v51 = vmul.f32 0.03125, %v3868_v27 }
 0xf20   : > { %v3913_v29 = vadd.f32 1e-05, %v3899_v23  ;;  %v3914_v55 = vadd.f32 1e-05, %v3900_v51 }
 0xf21   : > { %v3871_v48 = vpop.xlane.xlu0 %3870  ;;  %v3874_v49 = vpop.xlane.xlu1 %3873 }
 0xf22   : > { %10042 = vrsqrt.f32 %v3913_v29  ;;  %v3901_v18 = vmul.f32 0.03125, %v3871_v48  ;;  %v3902_v13 = vmul.f32 0.03125, %v3874_v49 }
 0xf23   : > { %10044 = vrsqrt.f32 %v3914_v55 }
 0xf24   : > { %v3915_v47 = vadd.f32 1e-05, %v3901_v18  ;;  %v3916_v31 = vadd.f32 1e-05, %v3902_v13 }
 0xf25   : > { %v10037_v41 = vpop.eup %10036  ;;  %v3877_v37 = vpop.xlane.xlu0 %3876 }
 0xf26   : > { %v3880_v60 = vpop.xlane.xlu1 %3879  ;;  %v3939_v44 = vmul.f32 %v10037_v41, %v12294_v19  ;;  %10046 = vrsqrt.f32 %v3915_v47  ;;  %v3903_v21 = vmul.f32 0.03125, %v3877_v37  ;;  %v12388_v19 = vld [vmem:[%s14089_s2 + $0x200] ss:$0 sm:$0xff] }
 0xf27   : > { %v3904_v33 = vmul.f32 0.03125, %v3880_v60  ;;  %v10039_v26 = vpop.eup %10038  ;;  %10048 = vrsqrt.f32 %v3916_v31 }
 0xf28   : > { %v3917_v20 = vadd.f32 1e-05, %v3903_v21  ;;  %v3938_v42 = vmul.f32 %v10039_v26, %v12297_v9  ;;  %v3957_v14 = vmul.f32 %v12380_v1, %v3939_v44 }
 0xf29   : > { %v3918_v8 = vadd.f32 1e-05, %v3904_v33  ;;  %v3883_v53 = vpop.xlane.xlu0 %3882 }
 0xf2a   : > { %v3886_v6 = vpop.xlane.xlu1 %3885  ;;  %10050 = vrsqrt.f32 %v3917_v20  ;;  %v3905_v61 = vmul.f32 0.03125, %v3883_v53  ;;  %v3956_v36 = vmul.f32 %v12380_v1, %v3938_v42  ;;  %v12396_v32 = vadd.f32 %v12388_v19, %v3957_v14 }
 0xf2b   : > { %v3906_v62 = vmul.f32 0.03125, %v3886_v6  ;;  %v10041_v57 = vpop.eup %10040  ;;  %10052 = vrsqrt.f32 %v3918_v8 }
 0xf2c   : > { %v3919_v46 = vadd.f32 1e-05, %v3905_v61  ;;  %v12392_v9 = vadd.f32 %v12388_v19, %v3956_v36  ;;  %v3940_v22 = vmul.f32 %v10041_v57, %v12305_v5 }
 0xf2d   : > { %v3920_v58 = vadd.f32 1e-05, %v3906_v62  ;;  %v3889_v39 = vpop.xlane.xlu0 %3888 }
 0xf2e   : > { %v3892_v38 = vpop.xlane.xlu1 %3891  ;;  %10054 = vrsqrt.f32 %v3919_v46  ;;  %v3907_v7 = vmul.f32 0.03125, %v3889_v39  ;;  %9432 = vmatprep.mubr.msk.f32.mxu0 %vm569_vm3, %v12392_v9  ;;  %v3958_v16 = vmul.f32 %v12380_v1, %v3940_v22 }
 0xf2f   : > { %v3908_v50 = vmul.f32 0.03125, %v3892_v38  ;;  %v10043_v28 = vpop.eup %10042  ;;  %10056 = vrsqrt.f32 %v3920_v58  ;;  %9433 = vmatmul.mubr.msk.f32.vlgmr.msra.gmra.mxu0 %vm569_vm3, %v12396_v32 }
 0xf30   : > { %v10045_v5 = vpop.eup %10044  ;;  %v3921_v35 = vadd.f32 1e-05, %v3907_v7  ;;  %9465 = vmatpush3.xpose.msk.msra.mxu0 %vm199_vm1, %v12280_v56  ;;  %v12409_v0 = vadd.f32 %v12388_v19, %v3958_v16  ;;  %v3941_v2 = vmul.f32 %v10043_v28, %v12311_v12 }
 0xf31   : > { %v3922_v40 = vadd.f32 1e-05, %v3908_v50  ;;  %9466 = vmatprep.subr.msk.mxu0 %vm199_vm1, %v12402_v24  ;;  %v3895_v11 = vpop.xlane.xlu0 %3894  ;;  %v3942_v10 = vmul.f32 %v10045_v5, %v12314_v4 }
 0xf32   : > { %10058 = vrsqrt.f32 %v3921_v35  ;;  %v3909_v63 = vmul.f32 0.03125, %v3895_v11  ;;  %9435 = vmatprep.mubr.msk.f32.mxu0 %vm569_vm3, %v12409_v0  ;;  %v3959_v15 = vmul.f32 %v12380_v1, %v3941_v2 }
 0xf33   : > { %v10047_v27 = vpop.eup %10046  ;;  %10060 = vrsqrt.f32 %v3922_v40  ;;  %v3960_v23 = vmul.f32 %v12380_v1, %v3942_v10 }
 0xf34   : > { %v10049_v51 = vpop.eup %10048  ;;  %v3923_v29 = vadd.f32 1e-05, %v3909_v63  ;;  %9467 = vmatpush3.xpose.msk.msra.mxu0 %vm199_vm1, %v12402_v24  ;;  %v12422_v12 = vadd.f32 %v12388_v19, %v3959_v15  ;;  %v3943_v4 = vmul.f32 %v10047_v27, %v12322_v17 }
 0xf35   : > { %v12426_v55 = vadd.f32 %v12388_v19, %v3960_v23  ;;  %v3944_v48 = vmul.f32 %v10049_v51, %v12325_v43 }
 0xf36   : > { %10062 = vrsqrt.f32 %v3923_v29  ;;  %9436 = vmatmul.mubr.msk.f32.gmra.mxu0 %vm569_vm3, %v12422_v12  ;;  %v3961_v49 = vmul.f32 %v12380_v1, %v3943_v4 }
 0xf37   : > { %14189 = vst [vmem:[#allocation19_spill] sm:$0xff] %v12426_v55  ;;  %v10051_v18 = vpop.eup %10050  ;;  %9438 = vmatprep.mubr.msk.f32.mxu0 %vm569_vm3, %v12426_v55  ;;  %v3962_v13 = vmul.f32 %v12380_v1, %v3944_v48 }
 0xf38   : > { %v10053_v47 = vpop.eup %10052  ;;  %v12436_v17 = vadd.f32 %v12388_v19, %v3961_v49  ;;  %v3945_v31 = vmul.f32 %v10051_v18, %v12334_v54 }
 0xf39   : > { %v12440_v43 = vadd.f32 %v12388_v19, %v3962_v13  ;;  %v3946_v41 = vmul.f32 %v10053_v47, %v12337_v45 }
 0xf3a   : > { %14190 = vst [vmem:[#allocation20_spill] sm:$0xff] %v12436_v17  ;;  %9439 = vmatmul.mubr.msk.f32.gmra.mxu0 %vm569_vm3, %v12436_v17  ;;  %v3963_v37 = vmul.f32 %v12380_v1, %v3945_v31 }
 0xf3b   : > { %14191 = vst [vmem:[#allocation21_spill] sm:$0xff] %v12440_v43  ;;  %v10055_v60 = vpop.eup %10054  ;;  %9441 = vmatprep.mubr.msk.f32.mxu0 %vm569_vm3, %v12440_v43  ;;  %v3964_v44 = vmul.f32 %v12380_v1, %v3946_v41 }
 0xf3c   : > { %v10057_v21 = vpop.eup %10056  ;;  %v12450_v33 = vadd.f32 %v12388_v19, %v3963_v37  ;;  %v3947_v54 = vmul.f32 %v10055_v60, %v12346_v52 }
 0xf3d   : > { %v12454_v26 = vadd.f32 %v12388_v19, %v3964_v44  ;;  %v3948_v45 = vmul.f32 %v10057_v21, %v12349_v59 }
 0xf3e   : > { %14192 = vst [vmem:[#allocation23_spill] sm:$0xff] %v12450_v33  ;;  %9442 = vmatmul.mubr.msk.f32.gmra.mxu0 %vm569_vm3, %v12450_v33  ;;  %v3965_v20 = vmul.f32 %v12380_v1, %v3947_v54 }
 0xf3f   : > { %14193 = vst [vmem:[#allocation22_spill] sm:$0xff] %v12454_v26  ;;  %v10059_v8 = vpop.eup %10058  ;;  %9444 = vmatprep.mubr.msk.f32.mxu0 %vm569_vm3, %v12454_v26  ;;  %v3966_v42 = vmul.f32 %v12380_v1, %v3948_v45 }
 0xf40   : > { %v10061_v14 = vpop.eup %10060  ;;  %v12464_v53 = vadd.f32 %v12388_v19, %v3965_v20  ;;  %v3949_v52 = vmul.f32 %v10059_v8, %v12358_v25 }
 0xf41   : > { %v12468_v6 = vadd.f32 %v12388_v19, %v3966_v42  ;;  %v3950_v59 = vmul.f32 %v10061_v14, %v12361_v3 }
 0xf42   : > { %14194 = vst [vmem:[#allocation25_spill] sm:$0xff] %v12464_v53  ;;  %9445 = vmatmul.mubr.msk.f32.gmra.mxu0 %vm569_vm3, %v12464_v53  ;;  %v3967_v61 = vmul.f32 %v12380_v1, %v3949_v52 }
 0xf43   : > { %14195 = vst [vmem:[#allocation24_spill] sm:$0xff] %v12468_v6  ;;  %v10063_v62 = vpop.eup %10062  ;;  %9447 = vmatprep.mubr.msk.f32.mxu0 %vm569_vm3, %v12468_v6  ;;  %v3968_v36 = vmul.f32 %v12380_v1, %v3950_v59 }
 0xf44   : > { %v12478_v57 = vadd.f32 %v12388_v19, %v3967_v61  ;;  %v3951_v25 = vmul.f32 %v10063_v62, %v12370_v34  ;;  %v8231_v34 = vld [vmem:[%s14089_s2 + $0x1d0] ss:$0 sm:$0xff] }
 0xf45   : > { %v12482_v30 = vadd.f32 %v12388_v19, %v3968_v36 }
 0xf46   : > { %14196 = vst [vmem:[#allocation27_spill] sm:$0xff] %v12478_v57  ;;  %9448 = vmatmul.mubr.msk.f32.gmra.mxu0 %vm569_vm3, %v12478_v57  ;;  %v3969_v3 = vmul.f32 %v12380_v1, %v3951_v25 }
 0xf47   : > { %14197 = vst [vmem:[#allocation26_spill] sm:$0xff] %v12482_v30  ;;  %9450 = vmatprep.mubr.msk.f32.mxu0 %vm569_vm3, %v12482_v30 }
 0xf48   : > { %v12490_v46 = vadd.f32 %v12388_v19, %v3969_v3 }
 0xf4a   : > { %14198 = vst [vmem:[#allocation29_spill] sm:$0xff] %v12490_v46  ;;  %9451 = vmatmul.mubr.msk.f32.gmra.mxu0 %vm569_vm3, %v12490_v46 }
 0xfef   : > { %v9434_v58 = vpop.f32.mrf.mxu0 }
 0xff0   : > { %v12499_v38 = vadd.f32 %v9434_v58, %v8231_v34 }
 0xff1   : > { %v4105_v22 = vpop.f32.mrf.mxu0 }
 0xff2   : > { %v12497_v39 = vadd.f32 %v8231_v34, %v4105_v22 }
 0xff4   : > { %9468 = vmatprep.mubr.msk.f32.mxu0 %vm199_vm1, %v12497_v39 }
 0xff5   : > { %9469 = vmatmul.mubr.msk.f32.vlgmr.msra.gmra.mxu0 %vm199_vm1, %v12499_v38 }
 0xff6   : > { %v9437_v1 = vpop.f32.mrf.mxu0 }
 0xff7   : > { %v12507_v50 = vadd.f32 %v9437_v1, %v8231_v34 }
 0xff8   : > { %v4115_v19 = vpop.f32.mrf.mxu0 }
 0xff9   : > { %v12505_v7 = vadd.f32 %v8231_v34, %v4115_v19 }
 0xffa   : > { %v9440_v16 = vpop.f32.mrf.mxu0 }
 0xffb   : > { %9471 = vmatprep.mubr.msk.f32.mxu0 %vm199_vm1, %v12505_v7  ;;  %v12515_v35 = vadd.f32 %v9440_v16, %v8231_v34 }
 0xffc   : > { %v4125_v28 = vpop.f32.mrf.mxu0  ;;  %9472 = vmatmul.mubr.msk.f32.gmra.mxu0 %vm199_vm1, %v12507_v50 }
 0xffd   : > { %v12513_v5 = vadd.f32 %v8231_v34, %v4125_v28 }
 0xffe   : > { %v9443_v40 = vpop.f32.mrf.mxu0 }
 0xfff   : > { %9474 = vmatprep.mubr.msk.f32.mxu0 %vm199_vm1, %v12513_v5  ;;  %v12523_v10 = vadd.f32 %v9443_v40, %v8231_v34 }
0x1000   : > { %v4135_v2 = vpop.f32.mrf.mxu0  ;;  %9475 = vmatmul.mubr.msk.f32.gmra.mxu0 %vm199_vm1, %v12515_v35 }
0x1001   : > { %v12521_v11 = vadd.f32 %v8231_v34, %v4135_v2 }
0x1002   : > { %v9446_v63 = vpop.f32.mrf.mxu0 }
0x1003   : > { %9477 = vmatprep.mubr.msk.f32.mxu0 %vm199_vm1, %v12521_v11  ;;  %v12531_v23 = vadd.f32 %v9446_v63, %v8231_v34 }
0x1004   : > { %v4145_v15 = vpop.f32.mrf.mxu0  ;;  %9478 = vmatmul.mubr.msk.f32.gmra.mxu0 %vm199_vm1, %v12523_v10 }
0x1005   : > { %v12529_v27 = vadd.f32 %v8231_v34, %v4145_v15 }
0x1006   : > { %v9449_v51 = vpop.f32.mrf.mxu0 }
0x1007   : > { %9480 = vmatprep.mubr.msk.f32.mxu0 %vm199_vm1, %v12529_v27  ;;  %v12539_v48 = vadd.f32 %v9449_v51, %v8231_v34 }
0x1008   : > { %v4155_v29 = vpop.f32.mrf.mxu0  ;;  %9481 = vmatmul.mubr.msk.f32.gmra.mxu0 %vm199_vm1, %v12531_v23 }
0x1009   : > { %v12537_v4 = vadd.f32 %v8231_v34, %v4155_v29 }
0x100a   : > { %v9452_v49 = vpop.f32.mrf.mxu0 }
0x100b   : > { %9483 = vmatprep.mubr.msk.f32.mxu0 %vm199_vm1, %v12537_v4  ;;  %v12547_v47 = vadd.f32 %v9452_v49, %v8231_v34 }
0x100c   : > { %v4165_v18 = vpop.f32.mrf.mxu0  ;;  %9484 = vmatmul.mubr.msk.f32.gmra.mxu0 %vm199_vm1, %v12539_v48 }
0x100d   : > { %v12545_v13 = vadd.f32 %v8231_v34, %v4165_v18 }
0x100f   : > { %9486 = vmatprep.mubr.msk.f32.mxu0 %vm199_vm1, %v12545_v13 }
0x1010   : > { %9487 = vmatmul.mubr.msk.f32.gmra.mxu0 %vm199_vm1, %v12547_v47 }
0x10b5   : > { %v9470_v31 = vpop.f32.mrf.mxu0 }
0x10b6   : > { %v12553_v41 = vmul.f32 0.35355338, %v9470_v31 }
0x10b7   : > { %v4383_v37 = vpop.f32.mrf.mxu0 }
0x10b8   : > { %v12555_v60 = vmul.f32 0.35355338, %v4383_v37  ;;  %v4470_v44 = vsel %vm4466_vm9, %v12553_v41, -inf }
0x10b9   : > { %4471 = vmax.xlane.f32.xlu0 %v4470_v44 }
0x10ba   : > { %v4467_v21 = vsel %vm4466_vm9, %v12555_v60, -inf }
0x10bb   : > { %4468 = vmax.xlane.f32.xlu1 %v4467_v21 }
0x10bc   : > { %v9473_v54 = vpop.f32.mrf.mxu0 }
0x10bd   : > { %v12561_v45 = vmul.f32 0.35355338, %v9473_v54 }
0x10be   : > { %v4393_v20 = vpop.f32.mrf.mxu0 }
0x10bf   : > { %v12563_v8 = vmul.f32 0.35355338, %v4393_v20  ;;  %v4476_v42 = vsel %vm4466_vm9, %v12561_v45, -inf }
0x10c0   : > { %4477 = vmax.xlane.f32.xlu0 %v4476_v42  ;;  %v9476_v14 = vpop.f32.mrf.mxu0 }
0x10c1   : > { %v12567_v52 = vmul.f32 0.35355338, %v9476_v14  ;;  %v4473_v59 = vsel %vm4466_vm9, %v12563_v8, -inf }
0x10c2   : > { %4474 = vmax.xlane.f32.xlu1 %v4473_v59  ;;  %v4403_v61 = vpop.f32.mrf.mxu0 }
0x10c3   : > { %v12571_v62 = vmul.f32 0.35355338, %v4403_v61  ;;  %v4482_v36 = vsel %vm4466_vm9, %v12567_v52, -inf }
0x10c4   : > { %4483 = vmax.xlane.f32.xlu0 %v4482_v36  ;;  %v9479_v25 = vpop.f32.mrf.mxu0 }
0x10c5   : > { %v12575_v3 = vmul.f32 0.35355338, %v9479_v25  ;;  %v4479_v58 = vsel %vm4466_vm9, %v12571_v62, -inf }
0x10c6   : > { %4480 = vmax.xlane.f32.xlu1 %v4479_v58  ;;  %v4413_v34 = vpop.f32.mrf.mxu0 }
0x10c7   : > { %v12579_v22 = vmul.f32 0.35355338, %v4413_v34  ;;  %v4488_v1 = vsel %vm4466_vm9, %v12575_v3, -inf }
0x10c8   : > { %4489 = vmax.xlane.f32.xlu0 %v4488_v1  ;;  %v9482_v19 = vpop.f32.mrf.mxu0 }
0x10c9   : > { %v12583_v16 = vmul.f32 0.35355338, %v9482_v19  ;;  %v4485_v28 = vsel %vm4466_vm9, %v12579_v22, -inf }
0x10ca   : > { %4486 = vmax.xlane.f32.xlu1 %v4485_v28  ;;  %v4423_v40 = vpop.f32.mrf.mxu0 }
0x10cb   : > { %v12587_v2 = vmul.f32 0.35355338, %v4423_v40  ;;  %v4494_v63 = vsel %vm4466_vm9, %v12583_v16, -inf }
0x10cc   : > { %4495 = vmax.xlane.f32.xlu0 %v4494_v63  ;;  %v9485_v15 = vpop.f32.mrf.mxu0 }
0x10cd   : > { %v12591_v51 = vmul.f32 0.35355338, %v9485_v15  ;;  %v4491_v29 = vsel %vm4466_vm9, %v12587_v2, -inf }
0x10ce   : > { %4492 = vmax.xlane.f32.xlu1 %v4491_v29  ;;  %v4433_v49 = vpop.f32.mrf.mxu0 }
0x10cf   : > { %v12595_v18 = vmul.f32 0.35355338, %v4433_v49  ;;  %v4500_v31 = vsel %vm4466_vm9, %v12591_v51, -inf }
0x10d0   : > { %4501 = vmax.xlane.f32.xlu0 %v4500_v31  ;;  %v9488_v37 = vpop.f32.mrf.mxu0 }
0x10d1   : > { %v12599_v44 = vmul.f32 0.35355338, %v9488_v37  ;;  %v4497_v21 = vsel %vm4466_vm9, %v12595_v18, -inf }
0x10d2   : > { %4498 = vmax.xlane.f32.xlu1 %v4497_v21  ;;  %v4443_v20 = vpop.f32.mrf.mxu0 }
0x10d3   : > { %v4506_v54 = vsel %vm4466_vm9, %v12599_v44, -inf  ;;  %v12613_v42 = vmul.f32 0.35355338, %v4443_v20 }
0x10d4   : > { %4507 = vmax.xlane.f32.xlu0 %v4506_v54 }
0x10d5   : > { %v4503_v14 = vsel %vm4466_vm9, %v12613_v42, -inf }
0x10e3   : > { %4623 = vrot.lane.b32.xlu1 %v12280_v56, %s10352_s17 }
0x10ea   : > { %4621 = vrot.lane.b32.xlu0 %v12402_v24, %s10352_s17 }
0x10ee   : > { %4819 = vrot.lane.b32.xlu0 %v12497_v39, %s10356_s21 }
0x10f2   : > { %4823 = vrot.lane.b32.xlu0 %v12505_v7, %s10356_s21 }
0x1107   : > { %4504 = vmax.xlane.f32.xlu1 %v4503_v14 }
0x1118   : > { %4849 = vrot.lane.b32.xlu1 %v12280_v56, %s10356_s21 }
0x111c   : > { %4847 = vrot.lane.b32.xlu1 %v12402_v24, %s10356_s21 }
0x1120   : > { %4821 = vrot.lane.b32.xlu1 %v12499_v38, %s10356_s21 }
0x1124   : > { %4825 = vrot.lane.b32.xlu1 %v12507_v50, %s10356_s21 }
0x1142   : > { %v4472_v59 = vpop.xlane.xlu0 %4471 }
0x1143   : > { %v4510_v61 = vsub.f32 %v12553_v41, %v4472_v59 }
0x1144   : > { %v4469_v36 = vpop.xlane.xlu1 %4468 }
0x1145   : > { %v4525_v25 = vmul.f32 1.442695, %v4510_v61  ;;  %v4509_v58 = vsub.f32 %v12555_v60, %v4469_v36 }
0x1147   : > { %10064 = vpow2.f32 %v4525_v25  ;;  %v4523_v34 = vmul.f32 1.442695, %v4509_v58 }
0x1149   : > { %10066 = vpow2.f32 %v4523_v34  ;;  %v4478_v1 = vpop.xlane.xlu0 %4477 }
0x114a   : > { %v4512_v19 = vsub.f32 %v12561_v45, %v4478_v1 }
0x114b   : > { %v4475_v28 = vpop.xlane.xlu1 %4474 }
0x114c   : > { %v4529_v40 = vmul.f32 1.442695, %v4512_v19  ;;  %v4511_v63 = vsub.f32 %v12563_v8, %v4475_v28 }
0x114d   : > { %v4484_v15 = vpop.xlane.xlu0 %4483 }
0x114e   : > { %10068 = vpow2.f32 %v4529_v40  ;;  %v4527_v29 = vmul.f32 1.442695, %v4511_v63  ;;  %v4514_v49 = vsub.f32 %v12567_v52, %v4484_v15 }
0x114f   : > { %v4481_v41 = vpop.xlane.xlu1 %4480 }
0x1150   : > { %10070 = vpow2.f32 %v4527_v29  ;;  %v4533_v31 = vmul.f32 1.442695, %v4514_v49  ;;  %v4513_v60 = vsub.f32 %v12571_v62, %v4481_v41 }
0x1151   : > { %v4490_v37 = vpop.xlane.xlu0 %4489 }
0x1152   : > { %10072 = vpow2.f32 %v4533_v31  ;;  %v4531_v21 = vmul.f32 1.442695, %v4513_v60  ;;  %v4516_v54 = vsub.f32 %v12575_v3, %v4490_v37 }
0x1153   : > { %v4487_v45 = vpop.xlane.xlu1 %4486 }
0x1154   : > { %v12632_v20 = vpop.eup %10064  ;;  %10074 = vpow2.f32 %v4531_v21  ;;  %v4537_v8 = vmul.f32 1.442695, %v4516_v54  ;;  %v4515_v14 = vsub.f32 %v12579_v22, %v4487_v45 }
0x1155   : > { %v4496_v59 = vpop.xlane.xlu0 %4495  ;;  %v4554_v52 = vsel %vm4466_vm9, %v12632_v20, 0.0 }
0x1156   : > { %v12637_v61 = vpop.eup %10066  ;;  %10076 = vpow2.f32 %v4537_v8  ;;  %v4535_v62 = vmul.f32 1.442695, %v4515_v14  ;;  %v4518_v36 = vsub.f32 %v12583_v16, %v4496_v59  ;;  %4555 = vadd.xlane.f32.xlu0 %v4554_v52 }
0x1157   : > { %v4493_v25 = vpop.xlane.xlu1 %4492  ;;  %v4551_v3 = vsel %vm4466_vm9, %v12637_v61, 0.0 }
0x1158   : > { %10078 = vpow2.f32 %v4535_v62  ;;  %v4541_v58 = vmul.f32 1.442695, %v4518_v36  ;;  %v4517_v34 = vsub.f32 %v12587_v2, %v4493_v25  ;;  %4552 = vadd.xlane.f32.xlu1 %v4551_v3 }
0x1159   : > { %v4502_v22 = vpop.xlane.xlu0 %4501 }
0x115a   : > { %10080 = vpow2.f32 %v4541_v58  ;;  %v4539_v1 = vmul.f32 1.442695, %v4517_v34  ;;  %v4520_v19 = vsub.f32 %v12591_v51, %v4502_v22 }
0x115b   : > { %v12644_v28 = vpop.eup %10068  ;;  %v4499_v40 = vpop.xlane.xlu1 %4498 }
0x115c   : > { %10082 = vpow2.f32 %v4539_v1  ;;  %v4545_v16 = vmul.f32 1.442695, %v4520_v19  ;;  %v4519_v63 = vsub.f32 %v12595_v18, %v4499_v40  ;;  %v4560_v15 = vsel %vm4466_vm9, %v12644_v28, 0.0 }
0x115d   : > { %v12649_v29 = vpop.eup %10070  ;;  %4561 = vadd.xlane.f32.xlu0 %v4560_v15  ;;  %v4508_v2 = vpop.xlane.xlu0 %4507 }
0x115e   : > { %10084 = vpow2.f32 %v4545_v16  ;;  %v4543_v49 = vmul.f32 1.442695, %v4519_v63  ;;  %v4522_v41 = vsub.f32 %v12599_v44, %v4508_v2  ;;  %v4557_v51 = vsel %vm4466_vm9, %v12649_v29, 0.0 }
0x115f   : > { %v12654_v31 = vpop.eup %10072  ;;  %v4624_v60 = vpop.permute.xlu1 %4623  ;;  %4558 = vadd.xlane.f32.xlu1 %v4557_v51 }
0x1160   : > { %10086 = vpow2.f32 %v4543_v49  ;;  %v4549_v18 = vmul.f32 1.442695, %v4522_v41  ;;  %9489 = vmatprep.subr.msk.mxu1 %vm348_vm0, %v4624_v60  ;;  %v4566_v37 = vsel %vm4466_vm9, %v12654_v31, 0.0 }
0x1161   : > { %v12659_v21 = vpop.eup %10074  ;;  %9490 = vmatpush3.msk.msra.mxu1 %vm348_vm0, %v4624_v60  ;;  %4567 = vadd.xlane.f32.xlu0 %v4566_v37  ;;  %v4622_v44 = vpop.permute.xlu0 %4621 }
0x1162   : > { %10088 = vpow2.f32 %v4549_v18  ;;  %9491 = vmatprep.subr.mxu1 %v4622_v44  ;;  %v4563_v54 = vsel %vm4466_vm9, %v12659_v21, 0.0 }
0x1163   : > { %v12664_v45 = vpop.eup %10076  ;;  %9492 = vmatpush3.msra.mxu1 %v4622_v44  ;;  %4564 = vadd.xlane.f32.xlu1 %v4563_v54 }
0x1164   : > { %v4572_v8 = vsel %vm4466_vm9, %v12664_v45, 0.0 }
0x1165   : > { %v12668_v14 = vpop.eup %10078  ;;  %4573 = vadd.xlane.f32.xlu0 %v4572_v8 }
0x1166   : > { %v4569_v59 = vsel %vm4466_vm9, %v12668_v14, 0.0 }
0x1167   : > { %v12672_v52 = vpop.eup %10080  ;;  %4570 = vadd.xlane.f32.xlu1 %v4569_v59 }
0x1168   : > { %v4578_v62 = vsel %vm4466_vm9, %v12672_v52, 0.0 }
0x1169   : > { %v12676_v36 = vpop.eup %10082  ;;  %4579 = vadd.xlane.f32.xlu0 %v4578_v62 }
0x116a   : > { %v4575_v25 = vsel %vm4466_vm9, %v12676_v36, 0.0 }
0x116b   : > { %v12680_v3 = vpop.eup %10084  ;;  %4576 = vadd.xlane.f32.xlu1 %v4575_v25 }
0x116c   : > { %v4584_v58 = vsel %vm4466_vm9, %v12680_v3, 0.0 }
0x116d   : > { %v12684_v34 = vpop.eup %10086  ;;  %4585 = vadd.xlane.f32.xlu0 %v4584_v58 }
0x116e   : > { %v4581_v22 = vsel %vm4466_vm9, %v12684_v34, 0.0 }
0x116f   : > { %v12688_v1 = vpop.eup %10088  ;;  %4582 = vadd.xlane.f32.xlu1 %v4581_v22 }
0x1170   : > { %v4590_v19 = vsel %vm4466_vm9, %v12688_v1, 0.0 }
0x1171   : > { %4591 = vadd.xlane.f32.xlu0 %v4590_v19 }
0x1187   : > { %4827 = vrot.lane.b32.xlu0 %v12513_v5, %s10356_s21 }
0x118b   : > { %4831 = vrot.lane.b32.xlu0 %v12521_v11, %s10356_s21 }
0x118f   : > { %4835 = vrot.lane.b32.xlu0 %v12529_v27, %s10356_s21 }
0x1190   : > { %v4505_v40 = vpop.xlane.xlu1 %4504 }
0x1191   : > { %v4521_v16 = vsub.f32 %v12613_v42, %v4505_v40 }
0x1193   : > { %v4547_v63 = vmul.f32 1.442695, %v4521_v16  ;;  %4839 = vrot.lane.b32.xlu0 %v12537_v4, %s10356_s21 }
0x1194   : > { %v12701_v15 = vpop.permute.xlu1 %4849 }
0x1195   : > { %10090 = vpow2.f32 %v4547_v63  ;;  %9514 = vmatprep.subr.msk.mxu1 %vm199_vm1, %v12701_v15 }
0x1197   : > { %5470 = vrot.lane.b32.xlu0 %v12280_v56, %s10359_s24 }
0x119b   : > { %4845 = vrot.lane.b32.xlu0 %v12547_v47, %s10356_s21 }
0x119f   : > { %5440 = vrot.lane.b32.xlu0 %v12497_v39, %s10359_s24 }
0x11a2   : > { %v12711_v42 = vpop.eup %10090 }
0x11a3   : > { %5444 = vrot.lane.b32.xlu0 %v12505_v7, %s10359_s24  ;;  %v4587_v2 = vsel %vm4466_vm9, %v12711_v42, 0.0 }
0x11a4   : > { %4588 = vadd.xlane.f32.xlu1 %v4587_v2 }
0x11a7   : > { %5448 = vrot.lane.b32.xlu0 %v12513_v5, %s10359_s24 }
0x11ab   : > { %5452 = vrot.lane.b32.xlu0 %v12521_v11, %s10359_s24 }
0x11af   : > { %5456 = vrot.lane.b32.xlu0 %v12529_v27, %s10359_s24 }
0x11b3   : > { %5460 = vrot.lane.b32.xlu0 %v12537_v4, %s10359_s24 }
0x11b5   : > { %4829 = vrot.lane.b32.xlu1 %v12515_v35, %s10356_s21 }
0x11b7   : > { %6091 = vrot.lane.b32.xlu0 %v12280_v56, %s10362_s27 }
0x11b9   : > { %4833 = vrot.lane.b32.xlu1 %v12523_v10, %s10356_s21 }
0x11bb   : > { %5466 = vrot.lane.b32.xlu0 %v12547_v47, %s10359_s24 }
0x11bd   : > { %4837 = vrot.lane.b32.xlu1 %v12531_v23, %s10356_s21 }
0x11bf   : > { %6061 = vrot.lane.b32.xlu0 %v12497_v39, %s10362_s27  ;;  %v4848_v39 = vpop.permute.xlu1 %4847 }
0x11c1   : > { %4841 = vrot.lane.b32.xlu1 %v12539_v48, %s10356_s21 }
0x11c3   : > { %6065 = vrot.lane.b32.xlu0 %v12505_v7, %s10362_s27  ;;  %v12757_v7 = vpop.permute.xlu0 %4819 }
0x11c5   : > { %4843 = vrot.lane.b32.xlu1 %v12545_v13, %s10356_s21 }
0x11c7   : > { %6069 = vrot.lane.b32.xlu0 %v12513_v5, %s10362_s27  ;;  %v12761_v5 = vpop.permute.xlu1 %4821 }
0x11c9   : > { %5468 = vrot.lane.b32.xlu1 %v12402_v24, %s10359_s24 }
0x11cb   : > { %6073 = vrot.lane.b32.xlu0 %v12521_v11, %s10362_s27  ;;  %v12767_v11 = vpop.permute.xlu0 %4823 }
0x11cd   : > { %5442 = vrot.lane.b32.xlu1 %v12499_v38, %s10359_s24 }
0x11cf   : > { %6077 = vrot.lane.b32.xlu0 %v12529_v27, %s10362_s27  ;;  %v12771_v27 = vpop.permute.xlu1 %4825 }
0x11d1   : > { %5446 = vrot.lane.b32.xlu1 %v12507_v50, %s10359_s24 }
0x11d3   : > { %6081 = vrot.lane.b32.xlu0 %v12537_v4, %s10362_s27 }
0x11d5   : > { %5450 = vrot.lane.b32.xlu1 %v12515_v35, %s10359_s24 }
0x11d7   : > { %6085 = vrot.lane.b32.xlu0 %v12545_v13, %s10362_s27 }
0x11d9   : > { %5454 = vrot.lane.b32.xlu1 %v12523_v10, %s10359_s24 }
0x11db   : > { %5186 = vrot.lane.b32.xlu0 %v12402_v24, %s10354_s20 }
0x11dd   : > { %5458 = vrot.lane.b32.xlu1 %v12531_v23, %s10359_s24 }
0x11df   : > { %5807 = vrot.lane.b32.xlu0 %v12402_v24, %s10358_s23  ;;  %v4556_v4 = vpop.xlane.xlu0 %4555 }
0x11e0   : > { %10092 = vrcp.f32 %v4556_v4 }
0x11e1   : > { %5462 = vrot.lane.b32.xlu1 %v12539_v48, %s10359_s24  ;;  %v4553_v49 = vpop.xlane.xlu1 %4552 }
0x11e2   : > { %10094 = vrcp.f32 %v4553_v49 }
0x11e5   : > { %5464 = vrot.lane.b32.xlu1 %v12545_v13, %s10359_s24 }
0x11e6   : > { %v4562_v41 = vpop.xlane.xlu0 %4561 }
0x11e7   : > { %10096 = vrcp.f32 %v4562_v41 }
0x11e8   : > { %v4559_v51 = vpop.xlane.xlu1 %4558 }
0x11e9   : > { %10098 = vrcp.f32 %v4559_v51  ;;  %6089 = vrot.lane.b32.xlu1 %v12402_v24, %s10362_s27 }
0x11ea   : > { %v4568_v60 = vpop.xlane.xlu0 %4567 }
0x11eb   : > { %10100 = vrcp.f32 %v4568_v60 }
0x11ec   : > { %v4565_v18 = vpop.xlane.xlu1 %4564 }
0x11ed   : > { %10102 = vrcp.f32 %v4565_v18  ;;  %6063 = vrot.lane.b32.xlu1 %v12499_v38, %s10362_s27  ;;  %v10093_v37 = vpop.eup %10092 }
0x11ee   : > { %v4574_v44 = vpop.xlane.xlu0 %4573  ;;  %v4608_v59 = vmul.f32 %v10093_v37, %v12632_v20 }
0x11ef   : > { %v10095_v54 = vpop.eup %10094  ;;  %10104 = vrcp.f32 %v4574_v44 }
0x11f0   : > { %v4571_v8 = vpop.xlane.xlu1 %4570  ;;  %v4607_v13 = vmul.f32 %v10095_v54, %v12637_v61 }
0x11f1   : > { %10106 = vrcp.f32 %v4571_v8  ;;  %6067 = vrot.lane.b32.xlu1 %v12507_v50, %s10362_s27 }
0x11f2   : > { %v4580_v62 = vpop.xlane.xlu0 %4579  ;;  %9493 = vmatprep.mubr.msk.f32.mxu1 %vm4466_vm9, %v4607_v13 }
0x11f3   : > { %9494 = vmatmul.mubr.msk.f32.vlgmr.msra.gmra.mxu1 %vm4466_vm9, %v4608_v59  ;;  %10108 = vrcp.f32 %v4580_v62 }
0x11f4   : > { %9515 = vmatpush3.xpose.msk.msra.mxu1 %vm199_vm1, %v12701_v15  ;;  %v4577_v38 = vpop.xlane.xlu1 %4576  ;;  %v10097_v25 = vpop.eup %10096 }
0x11f5   : > { %9516 = vmatprep.subr.msk.mxu1 %vm199_vm1, %v4848_v39  ;;  %10110 = vrcp.f32 %v4577_v38  ;;  %6071 = vrot.lane.b32.xlu1 %v12515_v35, %s10362_s27  ;;  %v4610_v22 = vmul.f32 %v10097_v25, %v12644_v28 }
0x11f6   : > { %v10099_v50 = vpop.eup %10098  ;;  %v4586_v61 = vpop.xlane.xlu0 %4585 }
0x11f7   : > { %v4609_v20 = vmul.f32 %v10099_v50, %v12649_v29  ;;  %10112 = vrcp.f32 %v4586_v61 }
0x11f8   : > { %9517 = vmatpush3.xpose.msk.msra.mxu1 %vm199_vm1, %v4848_v39  ;;  %v4583_v58 = vpop.xlane.xlu1 %4582  ;;  %v10101_v19 = vpop.eup %10100 }
0x11f9   : > { %10114 = vrcp.f32 %v4583_v58  ;;  %6075 = vrot.lane.b32.xlu1 %v12523_v10, %s10362_s27  ;;  %9496 = vmatprep.mubr.msk.f32.mxu1 %vm4466_vm9, %v4609_v20  ;;  %v4612_v29 = vmul.f32 %v10101_v19, %v12654_v31 }
0x11fa   : > { %v10103_v40 = vpop.eup %10102  ;;  %v4592_v16 = vpop.xlane.xlu0 %4591  ;;  %9497 = vmatmul.mubr.msk.f32.gmra.mxu1 %vm4466_vm9, %v4610_v22 }
0x11fb   : > { %v4611_v35 = vmul.f32 %v10103_v40, %v12659_v21  ;;  %10116 = vrcp.f32 %v4592_v16 }
0x11fc   : > { %v10105_v63 = vpop.eup %10104 }
0x11fd   : > { %6079 = vrot.lane.b32.xlu1 %v12531_v23, %s10362_s27  ;;  %9499 = vmatprep.mubr.msk.f32.mxu1 %vm4466_vm9, %v4611_v35  ;;  %v4614_v2 = vmul.f32 %v10105_v63, %v12664_v45 }
0x11fe   : > { %v10107_v28 = vpop.eup %10106  ;;  %v4828_v15 = vpop.permute.xlu0 %4827  ;;  %9500 = vmatmul.mubr.msk.f32.gmra.mxu1 %vm4466_vm9, %v4612_v29 }
0x11ff   : > { %v4613_v10 = vmul.f32 %v10107_v28, %v12668_v14 }
0x1200   : > { %v10109_v39 = vpop.eup %10108 }
0x1201   : > { %6083 = vrot.lane.b32.xlu1 %v12539_v48, %s10362_s27  ;;  %9502 = vmatprep.mubr.msk.f32.mxu1 %vm4466_vm9, %v4613_v10  ;;  %v4616_v4 = vmul.f32 %v10109_v39, %v12672_v52 }
0x1202   : > { %v10111_v31 = vpop.eup %10110  ;;  %v4832_v21 = vpop.permute.xlu0 %4831  ;;  %9503 = vmatmul.mubr.msk.f32.gmra.mxu1 %vm4466_vm9, %v4614_v2 }
0x1203   : > { %v4615_v23 = vmul.f32 %v10111_v31, %v12676_v36 }
0x1204   : > { %v10113_v49 = vpop.eup %10112 }
0x1205   : > { %6087 = vrot.lane.b32.xlu1 %v12547_v47, %s10362_s27  ;;  %9505 = vmatprep.mubr.msk.f32.mxu1 %vm4466_vm9, %v4615_v23  ;;  %v4618_v41 = vmul.f32 %v10113_v49, %v12680_v3 }
0x1206   : > { %v10115_v45 = vpop.eup %10114  ;;  %v4836_v14 = vpop.permute.xlu0 %4835  ;;  %9506 = vmatmul.mubr.msk.f32.gmra.mxu1 %vm4466_vm9, %v4616_v4 }
0x1207   : > { %v4617_v48 = vmul.f32 %v10115_v45, %v12684_v34 }
0x1208   : > { %v10117_v8 = vpop.eup %10116 }
0x1209   : > { %5188 = vrot.lane.b32.xlu1 %v12280_v56, %s10354_s20  ;;  %9508 = vmatprep.mubr.msk.f32.mxu1 %vm4466_vm9, %v4617_v48  ;;  %v4620_v25 = vmul.f32 %v10117_v8, %v12688_v1 }
0x120a   : > { %v4840_v52 = vpop.permute.xlu0 %4839  ;;  %9509 = vmatmul.mubr.msk.f32.gmra.mxu1 %vm4466_vm9, %v4618_v41 }
0x120d   : > { %5809 = vrot.lane.b32.xlu1 %v12280_v56, %s10358_s23 }
0x120e   : > { %v5471_v47 = vpop.permute.xlu0 %5470 }
0x120f   : > { %9564 = vmatprep.subr.msk.mxu1 %vm199_vm1, %v5471_v47 }
0x1212   : > { %v4846_v36 = vpop.permute.xlu0 %4845 }
0x1216   : > { %v5441_v51 = vpop.permute.xlu0 %5440 }
0x121a   : > { %v5445_v60 = vpop.permute.xlu0 %5444 }
0x121e   : > { %v5449_v3 = vpop.permute.xlu0 %5448 }
0x1222   : > { %v5453_v44 = vpop.permute.xlu0 %5452 }
0x1226   : > { %v5457_v59 = vpop.permute.xlu0 %5456 }
0x122a   : > { %v5461_v61 = vpop.permute.xlu0 %5460 }
0x122d   : > { %v4589_v34 = vpop.xlane.xlu1 %4588 }
0x122e   : > { %10118 = vrcp.f32 %v4589_v34  ;;  %v6092_v1 = vpop.permute.xlu0 %6091 }
0x1231   : > { %v4830_v18 = vpop.permute.xlu1 %4829 }
0x1232   : > { %v5467_v20 = vpop.permute.xlu0 %5466 }
0x1235   : > { %v4834_v37 = vpop.permute.xlu1 %4833 }
0x1236   : > { %v6062_v22 = vpop.permute.xlu0 %6061 }
0x1239   : > { %v4838_v54 = vpop.permute.xlu1 %4837 }
0x123a   : > { %v6066_v16 = vpop.permute.xlu0 %6065 }
0x123b   : > { %v10119_v13 = vpop.eup %10118 }
0x123c   : > { %v4619_v62 = vmul.f32 %v10119_v13, %v12711_v42 }
0x123d   : > { %v4842_v38 = vpop.permute.xlu1 %4841 }
0x123e   : > { %9511 = vmatprep.mubr.msk.f32.mxu1 %vm4466_vm9, %v4619_v62  ;;  %v6070_v29 = vpop.permute.xlu0 %6069 }
0x123f   : > { %9512 = vmatmul.mubr.msk.f32.gmra.mxu1 %vm4466_vm9, %v4620_v25 }
0x1240   : > { %9518 = vmatprep.mubr.msk.f32.mxu1 %vm199_vm1, %v12757_v7 }
0x1241   : > { %v4844_v50 = vpop.permute.xlu1 %4843 }
0x1243   : > { %9519 = vmatmul.mubr.msk.f32.vlgmr.msra.gmra.mxu1 %vm199_vm1, %v12761_v5 }
0x1244   : > { %9565 = vmatpush3.xpose.msk.msra.mxu1 %vm199_vm1, %v5471_v47  ;;  %9521 = vmatprep.mubr.msk.f32.mxu1 %vm199_vm1, %v12767_v11 }
0x1245   : > { %v5469_v42 = vpop.permute.xlu1 %5468 }
0x1246   : > { %9566 = vmatprep.subr.msk.mxu1 %vm199_vm1, %v5469_v42 }
0x1247   : > { %9522 = vmatmul.mubr.msk.f32.gmra.mxu1 %vm199_vm1, %v12771_v27 }
0x1248   : > { %9567 = vmatpush3.xpose.msk.msra.mxu1 %vm199_vm1, %v5469_v42  ;;  %9524 = vmatprep.mubr.msk.f32.mxu1 %vm199_vm1, %v4828_v15  ;;  %v6074_v15 = vpop.permute.xlu0 %6073 }
0x1249   : > { %9614 = vmatprep.subr.msk.mxu1 %vm199_vm1, %v6092_v1  ;;  %v5443_v7 = vpop.permute.xlu1 %5442 }
0x124b   : > { %9525 = vmatmul.mubr.msk.f32.gmra.mxu1 %vm199_vm1, %v4830_v18 }
0x124c   : > { %9527 = vmatprep.mubr.msk.f32.mxu1 %vm199_vm1, %v4832_v21  ;;  %v6078_v2 = vpop.permute.xlu0 %6077 }
0x124d   : > { %v5447_v5 = vpop.permute.xlu1 %5446 }
0x124f   : > { %9528 = vmatmul.mubr.msk.f32.gmra.mxu1 %vm199_vm1, %v4834_v37 }
0x1250   : > { %9530 = vmatprep.mubr.msk.f32.mxu1 %vm199_vm1, %v4836_v14  ;;  %v6082_v21 = vpop.permute.xlu0 %6081 }
0x1251   : > { %v5451_v11 = vpop.permute.xlu1 %5450 }
0x1253   : > { %9531 = vmatmul.mubr.msk.f32.gmra.mxu1 %vm199_vm1, %v4838_v54 }
0x1254   : > { %9533 = vmatprep.mubr.msk.f32.mxu1 %vm199_vm1, %v4840_v52  ;;  %v6086_v4 = vpop.permute.xlu0 %6085 }
0x1255   : > { %v5455_v27 = vpop.permute.xlu1 %5454 }
0x1257   : > { %9534 = vmatmul.mubr.msk.f32.gmra.mxu1 %vm199_vm1, %v4842_v38 }
0x1258   : > { %9536 = vmatprep.mubr.msk.f32.mxu1 %vm199_vm1, %v4844_v50  ;;  %v5187_v14 = vpop.permute.xlu0 %5186 }
0x1259   : > { %v5459_v58 = vpop.permute.xlu1 %5458 }
0x125b   : > { %9537 = vmatmul.mubr.msk.f32.gmra.mxu1 %vm199_vm1, %v4846_v36 }
0x125c   : > { %9568 = vmatprep.mubr.msk.f32.mxu1 %vm199_vm1, %v5441_v51 }
0x125d   : > { %v5463_v19 = vpop.permute.xlu1 %5462 }
0x125f   : > { %9569 = vmatmul.mubr.msk.f32.vlgmr.msra.gmra.mxu1 %vm199_vm1, %v5443_v7 }
0x1260   : > { %9615 = vmatpush3.xpose.msk.msra.mxu1 %vm199_vm1, %v6092_v1  ;;  %9571 = vmatprep.mubr.msk.f32.mxu1 %vm199_vm1, %v5445_v60 }
0x1261   : > { %v5465_v40 = vpop.permute.xlu1 %5464 }
0x1263   : > { %9572 = vmatmul.mubr.msk.f32.gmra.mxu1 %vm199_vm1, %v5447_v5 }
0x1264   : > { %9574 = vmatprep.mubr.msk.f32.mxu1 %vm199_vm1, %v5449_v3 }
0x1265   : > { %v6090_v35 = vpop.permute.xlu1 %6089 }
0x1266   : > { %9616 = vmatprep.subr.msk.mxu1 %vm199_vm1, %v6090_v35 }
0x1267   : > { %9575 = vmatmul.mubr.msk.f32.gmra.mxu1 %vm199_vm1, %v5451_v11 }
0x1268   : > { %9617 = vmatpush3.xpose.msk.msra.mxu1 %vm199_vm1, %v6090_v35  ;;  %9577 = vmatprep.mubr.msk.f32.mxu1 %vm199_vm1, %v5453_v44 }
0x1269   : > { %v6064_v63 = vpop.permute.xlu1 %6063 }
0x126b   : > { %9578 = vmatmul.mubr.msk.f32.gmra.mxu1 %vm199_vm1, %v5455_v27 }
0x126c   : > { %9580 = vmatprep.mubr.msk.f32.mxu1 %vm199_vm1, %v5457_v59 }
0x126d   : > { %v6068_v28 = vpop.permute.xlu1 %6067 }
0x126f   : > { %9581 = vmatmul.mubr.msk.f32.gmra.mxu1 %vm199_vm1, %v5459_v58 }
0x1270   : > { %9583 = vmatprep.mubr.msk.f32.mxu1 %vm199_vm1, %v5461_v61 }
0x1271   : > { %v6072_v10 = vpop.permute.xlu1 %6071 }
0x1273   : > { %9584 = vmatmul.mubr.msk.f32.gmra.mxu1 %vm199_vm1, %v5463_v19 }
0x1274   : > { %9586 = vmatprep.mubr.msk.f32.mxu1 %vm199_vm1, %v5465_v40 }
0x1275   : > { %v6076_v39 = vpop.permute.xlu1 %6075 }
0x1277   : > { %9587 = vmatmul.mubr.msk.f32.gmra.mxu1 %vm199_vm1, %v5467_v20 }
0x1278   : > { %9618 = vmatprep.mubr.msk.f32.mxu1 %vm199_vm1, %v6062_v22 }
0x1279   : > { %v6080_v31 = vpop.permute.xlu1 %6079 }
0x127b   : > { %9619 = vmatmul.mubr.msk.f32.vlgmr.msra.gmra.mxu1 %vm199_vm1, %v6064_v63 }
0x127c   : > { %9621 = vmatprep.mubr.msk.f32.mxu1 %vm199_vm1, %v6066_v16 }
0x127d   : > { %v6084_v23 = vpop.permute.xlu1 %6083 }
0x127f   : > { %9622 = vmatmul.mubr.msk.f32.gmra.mxu1 %vm199_vm1, %v6068_v28 }
0x1280   : > { %9624 = vmatprep.mubr.msk.f32.mxu1 %vm199_vm1, %v6070_v29 }
0x1281   : > { %v6088_v49 = vpop.permute.xlu1 %6087 }
0x1283   : > { %9625 = vmatmul.mubr.msk.f32.gmra.mxu1 %vm199_vm1, %v6072_v10 }
0x1284   : > { %9627 = vmatprep.mubr.msk.f32.mxu1 %vm199_vm1, %v6074_v15 }
0x1285   : > { %v5189_v45 = vpop.permute.xlu1 %5188 }
0x1286   : > { %9539 = vmatprep.subr.msk.mxu0 %vm348_vm0, %v5189_v45 }
0x1287   : > { %9540 = vmatpush3.msk.msra.mxu0 %vm348_vm0, %v5189_v45  ;;  %9628 = vmatmul.mubr.msk.f32.gmra.mxu1 %vm199_vm1, %v6076_v39 }
0x1288   : > { %9541 = vmatprep.subr.mxu0 %v5187_v14  ;;  %9630 = vmatprep.mubr.msk.f32.mxu1 %vm199_vm1, %v6078_v2 }
0x1289   : > { %9542 = vmatpush3.msra.mxu0 %v5187_v14  ;;  %v12884_v48 = vpop.permute.xlu1 %5809 }
0x128a   : > { %9589 = vmatprep.subr.msk.mxu0 %vm348_vm0, %v12884_v48 }
0x128b   : > { %9631 = vmatmul.mubr.msk.f32.gmra.mxu1 %vm199_vm1, %v6080_v31 }
0x128c   : > { %9633 = vmatprep.mubr.msk.f32.mxu1 %vm199_vm1, %v6082_v21 }
0x128f   : > { %9634 = vmatmul.mubr.msk.f32.gmra.mxu1 %vm199_vm1, %v6084_v23 }
0x1290   : > { %9636 = vmatprep.mubr.msk.f32.mxu1 %vm199_vm1, %v6086_v4 }
0x1293   : > { %9637 = vmatmul.mubr.msk.f32.gmra.mxu1 %vm199_vm1, %v6088_v49 }
0x12b3   : > { %v9495_v41 = vpop.f32.mrf.mxu1 }
0x12b4   : > { %4806 = vst.msk [vmem:[#allocation2 + $0x8] sm:$0xff] %vm199_vm1, %v9495_v41 }
0x12b5   : > { %v4736_v52 = vpop.f32.mrf.mxu1 }
0x12b6   : > { %4805 = vst.msk [vmem:[#allocation2] sm:$0xff] %vm199_vm1, %v4736_v52 }
0x12ba   : > { %v9498_v47 = vpop.f32.mrf.mxu1 }
0x12bb   : > { %4808 = vst.msk [vmem:[#allocation2 + $0x18] sm:$0xff] %vm199_vm1, %v9498_v47 }
0x12bc   : > { %v4746_v36 = vpop.f32.mrf.mxu1 }
0x12bd   : > { %4807 = vst.msk [vmem:[#allocation2 + $0x10] sm:$0xff] %vm199_vm1, %v4746_v36 }
0x12be   : > { %v9501_v51 = vpop.f32.mrf.mxu1 }
0x12bf   : > { %4810 = vst.msk [vmem:[#allocation2 + $0x28] sm:$0xff] %vm199_vm1, %v9501_v51 }
0x12c0   : > { %v4756_v60 = vpop.f32.mrf.mxu1 }
0x12c1   : > { %4809 = vst.msk [vmem:[#allocation2 + $0x20] sm:$0xff] %vm199_vm1, %v4756_v60 }
0x12c2   : > { %v9504_v34 = vpop.f32.mrf.mxu1 }
0x12c3   : > { %4812 = vst.msk [vmem:[#allocation2 + $0x38] sm:$0xff] %vm199_vm1, %v9504_v34 }
0x12c4   : > { %v4766_v3 = vpop.f32.mrf.mxu1 }
0x12c5   : > { %4811 = vst.msk [vmem:[#allocation2 + $0x30] sm:$0xff] %vm199_vm1, %v4766_v3 }
0x12c6   : > { %v9507_v18 = vpop.f32.mrf.mxu1 }
0x12c7   : > { %4814 = vst.msk [vmem:[#allocation2 + $0x48] sm:$0xff] %vm199_vm1, %v9507_v18 }
0x12c8   : > { %v4776_v37 = vpop.f32.mrf.mxu1 }
0x12c9   : > { %4813 = vst.msk [vmem:[#allocation2 + $0x40] sm:$0xff] %vm199_vm1, %v4776_v37 }
0x12ca   : > { %v9510_v44 = vpop.f32.mrf.mxu1 }
0x12cb   : > { %4816 = vst.msk [vmem:[#allocation2 + $0x58] sm:$0xff] %vm199_vm1, %v9510_v44 }
0x12cc   : > { %v4786_v54 = vpop.f32.mrf.mxu1 }
0x12cd   : > { %4815 = vst.msk [vmem:[#allocation2 + $0x50] sm:$0xff] %vm199_vm1, %v4786_v54 }
0x12ff   : > { %v9513_v8 = vpop.f32.mrf.mxu1 }
0x1300   : > { %4818 = vst.msk [vmem:[#allocation2 + $0x68] sm:$0xff] %vm199_vm1, %v9513_v8 }
0x1301   : > { %v4796_v13 = vpop.f32.mrf.mxu1 }
0x1302   : > { %4817 = vst.msk [vmem:[#allocation2 + $0x60] sm:$0xff] %vm199_vm1, %v4796_v13 }
0x1303   : > { %v9520_v59 = vpop.f32.mrf.mxu1 }
0x1304   : > { %v12907_v62 = vmul.f32 0.35355338, %v9520_v59 }
0x1305   : > { %v4949_v38 = vpop.f32.mrf.mxu1 }
0x1306   : > { %v12909_v25 = vmul.f32 0.35355338, %v4949_v38  ;;  %v5035_v50 = vsel %vm4466_vm9, %v12907_v62, -inf }
0x1307   : > { %5036 = vmax.xlane.f32.xlu1 %v5035_v50  ;;  %v9523_v61 = vpop.f32.mrf.mxu1 }
0x1308   : > { %v12913_v42 = vmul.f32 0.35355338, %v9523_v61  ;;  %v5032_v1 = vsel %vm4466_vm9, %v12909_v25, -inf }
0x1309   : > { %5033 = vmax.xlane.f32.xlu0 %v5032_v1  ;;  %v4959_v7 = vpop.f32.mrf.mxu1 }
0x130a   : > { %v12917_v11 = vmul.f32 0.35355338, %v4959_v7  ;;  %v5041_v27 = vsel %vm4466_vm9, %v12913_v42, -inf }
0x130b   : > { %v9526_v5 = vpop.f32.mrf.mxu1 }
0x130c   : > { %v12923_v19 = vmul.f32 0.35355338, %v9526_v5  ;;  %v5038_v40 = vsel %vm4466_vm9, %v12917_v11, -inf }
0x130d   : > { %5042 = vmax.xlane.f32.xlu0 %v5041_v27  ;;  %v4969_v20 = vpop.f32.mrf.mxu1 }
0x130e   : > { %v12921_v58 = vmul.f32 0.35355338, %v4969_v20  ;;  %v5047_v15 = vsel %vm4466_vm9, %v12923_v19, -inf }
0x130f   : > { %v9529_v22 = vpop.f32.mrf.mxu1 }
0x1310   : > { %v5044_v16 = vsel %vm4466_vm9, %v12921_v58, -inf  ;;  %v12931_v28 = vmul.f32 0.35355338, %v9529_v22 }
0x1311   : > { %5039 = vmax.xlane.f32.xlu0 %v5038_v40  ;;  %5045 = vmax.xlane.f32.xlu1 %v5044_v16  ;;  %v4979_v35 = vpop.f32.mrf.mxu1 }
0x1312   : > { %v12929_v29 = vmul.f32 0.35355338, %v4979_v35  ;;  %v5053_v23 = vsel %vm4466_vm9, %v12931_v28, -inf }
0x1313   : > { %v9532_v63 = vpop.f32.mrf.mxu1 }
0x1314   : > { %v5050_v10 = vsel %vm4466_vm9, %v12929_v29, -inf  ;;  %v12939_v21 = vmul.f32 0.35355338, %v9532_v63 }
0x1315   : > { %5048 = vmax.xlane.f32.xlu0 %v5047_v15  ;;  %5051 = vmax.xlane.f32.xlu1 %v5050_v10  ;;  %v4989_v2 = vpop.f32.mrf.mxu1 }
0x1316   : > { %v12937_v39 = vmul.f32 0.35355338, %v4989_v2  ;;  %v5059_v52 = vsel %vm4466_vm9, %v12939_v21, -inf }
0x1317   : > { %v9535_v31 = vpop.f32.mrf.mxu1 }
0x1318   : > { %v5056_v4 = vsel %vm4466_vm9, %v12937_v39, -inf  ;;  %v12947_v41 = vmul.f32 0.35355338, %v9535_v31 }
0x1319   : > { %5054 = vmax.xlane.f32.xlu0 %v5053_v23  ;;  %5057 = vmax.xlane.f32.xlu1 %v5056_v4  ;;  %v4999_v49 = vpop.f32.mrf.mxu1 }
0x131a   : > { %v12945_v45 = vmul.f32 0.35355338, %v4999_v49  ;;  %v5065_v3 = vsel %vm4466_vm9, %v12947_v41, -inf }
0x131b   : > { %v9538_v14 = vpop.f32.mrf.mxu1 }
0x131c   : > { %v5062_v47 = vsel %vm4466_vm9, %v12945_v45, -inf  ;;  %v12955_v34 = vmul.f32 0.35355338, %v9538_v14 }
0x131d   : > { %5060 = vmax.xlane.f32.xlu0 %v5059_v52  ;;  %5063 = vmax.xlane.f32.xlu1 %v5062_v47  ;;  %v5009_v36 = vpop.f32.mrf.mxu1 }
0x131e   : > { %v12953_v51 = vmul.f32 0.35355338, %v5009_v36  ;;  %v5071_v13 = vsel %vm4466_vm9, %v12955_v34, -inf }
0x131f   : > { %v9570_v60 = vpop.f32.mrf.mxu1 }
0x1320   : > { %v5068_v18 = vsel %vm4466_vm9, %v12953_v51, -inf  ;;  %v12963_v8 = vmul.f32 0.35355338, %v9570_v60 }
0x1321   : > { %5066 = vmax.xlane.f32.xlu0 %v5065_v3  ;;  %5069 = vmax.xlane.f32.xlu1 %v5068_v18  ;;  %v5570_v37 = vpop.f32.mrf.mxu1 }
0x1322   : > { %v12961_v44 = vmul.f32 0.35355338, %v5570_v37  ;;  %v5656_v7 = vsel %vm4466_vm9, %v12963_v8, -inf }
0x1323   : > { %v9573_v54 = vpop.f32.mrf.mxu1 }
0x1324   : > { %v5653_v59 = vsel %vm4466_vm9, %v12961_v44, -inf  ;;  %v12971_v1 = vmul.f32 0.35355338, %v9573_v54 }
0x1325   : > { %5072 = vmax.xlane.f32.xlu0 %v5071_v13  ;;  %5654 = vmax.xlane.f32.xlu1 %v5653_v59  ;;  %v5580_v38 = vpop.f32.mrf.mxu1 }
0x1326   : > { %v12969_v50 = vmul.f32 0.35355338, %v5580_v38  ;;  %v5662_v16 = vsel %vm4466_vm9, %v12971_v1, -inf }
0x1327   : > { %v9576_v61 = vpop.f32.mrf.mxu1 }
0x1328   : > { %v5659_v5 = vsel %vm4466_vm9, %v12969_v50, -inf  ;;  %v12979_v40 = vmul.f32 0.35355338, %v9576_v61 }
0x1329   : > { %5657 = vmax.xlane.f32.xlu0 %v5656_v7  ;;  %5660 = vmax.xlane.f32.xlu1 %v5659_v5  ;;  %v5590_v27 = vpop.f32.mrf.mxu1 }
0x132a   : > { %v12977_v20 = vmul.f32 0.35355338, %v5590_v27  ;;  %v5668_v31 = vsel %vm4466_vm9, %v12979_v40, -inf }
0x132b   : > { %v9579_v22 = vpop.f32.mrf.mxu1 }
0x132c   : > { %v5665_v35 = vsel %vm4466_vm9, %v12977_v20, -inf  ;;  %v12987_v2 = vmul.f32 0.35355338, %v9579_v22 }
0x132d   : > { %5663 = vmax.xlane.f32.xlu0 %v5662_v16  ;;  %5666 = vmax.xlane.f32.xlu1 %v5665_v35  ;;  %v5600_v63 = vpop.f32.mrf.mxu1 }
0x132e   : > { %v12985_v15 = vmul.f32 0.35355338, %v5600_v63  ;;  %v5674_v47 = vsel %vm4466_vm9, %v12987_v2, -inf }
0x132f   : > { %v9582_v10 = vpop.f32.mrf.mxu1 }
0x1330   : > { %v5671_v23 = vsel %vm4466_vm9, %v12985_v15, -inf  ;;  %v12995_v52 = vmul.f32 0.35355338, %v9582_v10 }
0x1331   : > { %5669 = vmax.xlane.f32.xlu0 %v5668_v31  ;;  %5672 = vmax.xlane.f32.xlu1 %v5671_v23  ;;  %v5610_v4 = vpop.f32.mrf.mxu1 }
0x1332   : > { %v12993_v49 = vmul.f32 0.35355338, %v5610_v4  ;;  %v5680_v54 = vsel %vm4466_vm9, %v12995_v52, -inf }
0x1333   : > { %v9585_v14 = vpop.f32.mrf.mxu1 }
0x1334   : > { %v5677_v36 = vsel %vm4466_vm9, %v12993_v49, -inf  ;;  %v13003_v37 = vmul.f32 0.35355338, %v9585_v14 }
0x1335   : > { %5675 = vmax.xlane.f32.xlu0 %v5674_v47  ;;  %5678 = vmax.xlane.f32.xlu1 %v5677_v36  ;;  %v5620_v60 = vpop.f32.mrf.mxu1 }
0x1336   : > { %v13001_v3 = vmul.f32 0.35355338, %v5620_v60  ;;  %v5686_v5 = vsel %vm4466_vm9, %v13003_v37, -inf }
0x1337   : > { %v9588_v18 = vpop.f32.mrf.mxu1 }
0x1338   : > { %v5683_v13 = vsel %vm4466_vm9, %v13001_v3, -inf  ;;  %v13011_v7 = vmul.f32 0.35355338, %v9588_v18 }
0x1339   : > { %5681 = vmax.xlane.f32.xlu0 %v5680_v54  ;;  %5684 = vmax.xlane.f32.xlu1 %v5683_v13  ;;  %v5630_v59 = vpop.f32.mrf.mxu1 }
0x133a   : > { %v13009_v38 = vmul.f32 0.35355338, %v5630_v59  ;;  %v5692_v10 = vsel %vm4466_vm9, %v13011_v7, -inf }
0x133b   : > { %v9620_v61 = vpop.f32.mrf.mxu1 }
0x133c   : > { %v5689_v27 = vsel %vm4466_vm9, %v13009_v38, -inf  ;;  %v13019_v63 = vmul.f32 0.35355338, %v9620_v61 }
0x133d   : > { %5687 = vmax.xlane.f32.xlu0 %v5686_v5  ;;  %5690 = vmax.xlane.f32.xlu1 %v5689_v27  ;;  %v6191_v22 = vpop.f32.mrf.mxu1 }
0x133e   : > { %v13017_v16 = vmul.f32 0.35355338, %v6191_v22  ;;  %v6277_v36 = vsel %vm4466_vm9, %v13019_v63, -inf }
0x133f   : > { %v9623_v35 = vpop.f32.mrf.mxu1 }
0x1340   : > { %v6274_v31 = vsel %vm4466_vm9, %v13017_v16, -inf  ;;  %v13027_v47 = vmul.f32 0.35355338, %v9623_v35 }
0x1341   : > { %5693 = vmax.xlane.f32.xlu0 %v5692_v10  ;;  %6275 = vmax.xlane.f32.xlu1 %v6274_v31  ;;  %v6201_v23 = vpop.f32.mrf.mxu1 }
0x1342   : > { %v13025_v4 = vmul.f32 0.35355338, %v6201_v23  ;;  %v6283_v61 = vsel %vm4466_vm9, %v13027_v47, -inf }
0x1343   : > { %v9626_v14 = vpop.f32.mrf.mxu1 }
0x1344   : > { %v6280_v60 = vsel %vm4466_vm9, %v13025_v4, -inf  ;;  %v13035_v59 = vmul.f32 0.35355338, %v9626_v14 }
0x1345   : > { %6278 = vmax.xlane.f32.xlu0 %v6277_v36  ;;  %6281 = vmax.xlane.f32.xlu1 %v6280_v60  ;;  %v6211_v18 = vpop.f32.mrf.mxu1 }
0x1346   : > { %v13033_v54 = vmul.f32 0.35355338, %v6211_v18  ;;  %v6289_v31 = vsel %vm4466_vm9, %v13035_v59, -inf }
0x1347   : > { %v9629_v13 = vpop.f32.mrf.mxu1 }
0x1348   : > { %v6286_v5 = vsel %vm4466_vm9, %v13033_v54, -inf  ;;  %v13043_v10 = vmul.f32 0.35355338, %v9629_v13 }
0x1349   : > { %6284 = vmax.xlane.f32.xlu0 %v6283_v61  ;;  %6287 = vmax.xlane.f32.xlu1 %v6286_v5  ;;  %v6221_v27 = vpop.f32.mrf.mxu1 }
0x134a   : > { %v13041_v22 = vmul.f32 0.35355338, %v6221_v27  ;;  %v6295_v61 = vsel %vm4466_vm9, %v13043_v10, -inf }
0x134b   : > { %v9632_v35 = vpop.f32.mrf.mxu1 }
0x134c   : > { %v6292_v23 = vsel %vm4466_vm9, %v13041_v22, -inf  ;;  %v13051_v18 = vmul.f32 0.35355338, %v9632_v35 }
0x134d   : > { %6290 = vmax.xlane.f32.xlu0 %v6289_v31  ;;  %6293 = vmax.xlane.f32.xlu1 %v6292_v23  ;;  %v6231_v14 = vpop.f32.mrf.mxu1 }
0x134e   : > { %v13049_v36 = vmul.f32 0.35355338, %v6231_v14  ;;  %v6301_v23 = vsel %vm4466_vm9, %v13051_v18, -inf }
0x134f   : > { %v9635_v60 = vpop.f32.mrf.mxu1 }
0x1350   : > { %v6298_v13 = vsel %vm4466_vm9, %v13049_v36, -inf  ;;  %v13059_v31 = vmul.f32 0.35355338, %v9635_v60 }
0x1351   : > { %6296 = vmax.xlane.f32.xlu0 %v6295_v61  ;;  %6299 = vmax.xlane.f32.xlu1 %v6298_v13  ;;  %v6241_v5 = vpop.f32.mrf.mxu1 }
0x1352   : > { %v13057_v27 = vmul.f32 0.35355338, %v6241_v5  ;;  %v6307_v61 = vsel %vm4466_vm9, %v13059_v31, -inf  ;;  %v13075_v5 = vpop.permute.xlu0 %5807 }
0x1353   : > { %v9638_v46 = vpop.f32.mrf.mxu1 }
0x1354   : > { %v6304_v35 = vsel %vm4466_vm9, %v13057_v27, -inf  ;;  %v13067_v57 = vmul.f32 0.35355338, %v9638_v46 }
0x1355   : > { %6302 = vmax.xlane.f32.xlu0 %v6301_v23  ;;  %6305 = vmax.xlane.f32.xlu1 %v6304_v35  ;;  %v6251_v14 = vpop.f32.mrf.mxu1 }
0x1356   : > { %v13065_v30 = vmul.f32 0.35355338, %v6251_v14  ;;  %v6313_v13 = vsel %vm4466_vm9, %v13067_v57, -inf }
0x1358   : > { %v6310_v60 = vsel %vm4466_vm9, %v13065_v30, -inf }
0x1359   : > { %6308 = vmax.xlane.f32.xlu0 %v6307_v61  ;;  %6311 = vmax.xlane.f32.xlu1 %v6310_v60 }
0x135d   : > { %6314 = vmax.xlane.f32.xlu0 %v6313_v13 }
0x1390   : > { %v5037_v23 = vpop.xlane.xlu1 %5036 }
0x1391   : > { %v5075_v35 = vsub.f32 %v12907_v62, %v5037_v23 }
0x1392   : > { %v5034_v14 = vpop.xlane.xlu0 %5033 }
0x1393   : > { %v5090_v46 = vmul.f32 1.442695, %v5075_v35  ;;  %v5074_v6 = vsub.f32 %v12909_v25, %v5034_v14 }
0x1395   : > { %10120 = vpow2.f32 %v5090_v46  ;;  %v5088_v53 = vmul.f32 1.442695, %v5074_v6 }
0x1396   : > { %v5043_v26 = vpop.xlane.xlu0 %5042 }
0x1397   : > { %10122 = vpow2.f32 %v5088_v53  ;;  %v5077_v61 = vsub.f32 %v12913_v42, %v5043_v26 }
0x1399   : > { %v5094_v60 = vmul.f32 1.442695, %v5077_v61 }
0x139a   : > { %v5040_v33 = vpop.xlane.xlu0 %5039  ;;  %v5046_v43 = vpop.xlane.xlu1 %5045 }
0x139b   : > { %10124 = vpow2.f32 %v5094_v60  ;;  %v5076_v13 = vsub.f32 %v12917_v11, %v5040_v33  ;;  %v5078_v17 = vsub.f32 %v12921_v58, %v5046_v43 }
0x139d   : > { %v5092_v55 = vmul.f32 1.442695, %v5076_v13  ;;  %v5096_v62 = vmul.f32 1.442695, %v5078_v17 }
0x139e   : > { %v5049_v23 = vpop.xlane.xlu0 %5048  ;;  %v5052_v35 = vpop.xlane.xlu1 %5051 }
0x139f   : > { %10126 = vpow2.f32 %v5092_v55  ;;  %v5079_v25 = vsub.f32 %v12923_v19, %v5049_v23  ;;  %v5080_v6 = vsub.f32 %v12929_v29, %v5052_v35 }
0x13a0   : > { %10128 = vpow2.f32 %v5096_v62 }
0x13a1   : > { %v5098_v53 = vmul.f32 1.442695, %v5079_v25  ;;  %v5100_v26 = vmul.f32 1.442695, %v5080_v6 }
0x13a2   : > { %v13084_v42 = vpop.eup %10120  ;;  %v5055_v14 = vpop.xlane.xlu0 %5054 }
0x13a3   : > { %v5058_v46 = vpop.xlane.xlu1 %5057  ;;  %10130 = vpow2.f32 %v5098_v53  ;;  %v5081_v33 = vsub.f32 %v12931_v28, %v5055_v14  ;;  %v5119_v17 = vsel %vm4466_vm9, %v13084_v42, 0.0 }
0x13a4   : > { %v5082_v43 = vsub.f32 %v12937_v39, %v5058_v46  ;;  %v13090_v55 = vpop.eup %10122  ;;  %5120 = vadd.xlane.f32.xlu0 %v5119_v17  ;;  %10132 = vpow2.f32 %v5100_v26 }
0x13a5   : > { %v5102_v11 = vmul.f32 1.442695, %v5081_v33  ;;  %v5116_v19 = vsel %vm4466_vm9, %v13090_v55, 0.0 }
0x13a6   : > { %v5104_v58 = vmul.f32 1.442695, %v5082_v43  ;;  %v5061_v29 = vpop.xlane.xlu0 %5060  ;;  %5117 = vadd.xlane.f32.xlu1 %v5116_v19 }
0x13a7   : > { %v5064_v61 = vpop.xlane.xlu1 %5063  ;;  %10134 = vpow2.f32 %v5102_v11  ;;  %v5083_v28 = vsub.f32 %v12939_v21, %v5061_v29 }
0x13a8   : > { %v5084_v39 = vsub.f32 %v12945_v45, %v5064_v61  ;;  %v13096_v60 = vpop.eup %10124  ;;  %10136 = vpow2.f32 %v5104_v58 }
0x13a9   : > { %v5106_v13 = vmul.f32 1.442695, %v5083_v28  ;;  %v5125_v23 = vsel %vm4466_vm9, %v13096_v60, 0.0 }
0x13aa   : > { %v5108_v62 = vmul.f32 1.442695, %v5084_v39  ;;  %v5067_v35 = vpop.xlane.xlu0 %5066  ;;  %5126 = vadd.xlane.f32.xlu0 %v5125_v23 }
0x13ab   : > { %v5070_v25 = vpop.xlane.xlu1 %5069  ;;  %10138 = vpow2.f32 %v5106_v13  ;;  %v5085_v6 = vsub.f32 %v12947_v41, %v5067_v35 }
0x13ac   : > { %v5086_v53 = vsub.f32 %v12953_v51, %v5070_v25  ;;  %v13102_v26 = vpop.eup %10126  ;;  %10140 = vpow2.f32 %v5108_v62 }
0x13ad   : > { %v5110_v21 = vmul.f32 1.442695, %v5085_v6  ;;  %v5122_v14 = vsel %vm4466_vm9, %v13102_v26, 0.0  ;;  %v13106_v46 = vpop.eup %10128 }
0x13ae   : > { %v5112_v45 = vmul.f32 1.442695, %v5086_v53  ;;  %v5073_v33 = vpop.xlane.xlu0 %5072  ;;  %5123 = vadd.xlane.f32.xlu1 %v5122_v14  ;;  %v5128_v29 = vsel %vm4466_vm9, %v13106_v46, 0.0 }
0x13af   : > { %v5655_v43 = vpop.xlane.xlu1 %5654  ;;  %10142 = vpow2.f32 %v5110_v21  ;;  %v5087_v17 = vsub.f32 %v12955_v34, %v5073_v33 }
0x13b0   : > { %v5695_v41 = vsub.f32 %v12961_v44, %v5655_v43  ;;  %v13110_v11 = vpop.eup %10130  ;;  %10144 = vpow2.f32 %v5112_v45 }
0x13b1   : > { %v5114_v51 = vmul.f32 1.442695, %v5087_v17  ;;  %v5131_v19 = vsel %vm4466_vm9, %v13110_v11, 0.0  ;;  %v13116_v61 = vpop.eup %10132 }
0x13b2   : > { %v5709_v58 = vmul.f32 1.442695, %v5695_v41  ;;  %v5658_v28 = vpop.xlane.xlu0 %5657  ;;  %5132 = vadd.xlane.f32.xlu0 %v5131_v19  ;;  %5129 = vadd.xlane.f32.xlu1 %v5128_v29  ;;  %v5134_v6 = vsel %vm4466_vm9, %v13116_v61, 0.0 }
0x13b3   : > { %v5661_v39 = vpop.xlane.xlu1 %5660  ;;  %10146 = vpow2.f32 %v5114_v51  ;;  %v5696_v34 = vsub.f32 %v12963_v8, %v5658_v28 }
0x13b4   : > { %v5697_v44 = vsub.f32 %v12969_v50, %v5661_v39  ;;  %v13120_v13 = vpop.eup %10134  ;;  %10148 = vpow2.f32 %v5709_v58 }
0x13b5   : > { %v13122_v62 = vpop.eup %10136  ;;  %v5711_v23 = vmul.f32 1.442695, %v5696_v34  ;;  %v5137_v25 = vsel %vm4466_vm9, %v13120_v13, 0.0 }
0x13b6   : > { %v5713_v35 = vmul.f32 1.442695, %v5697_v44  ;;  %v5664_v53 = vpop.xlane.xlu0 %5663  ;;  %5138 = vadd.xlane.f32.xlu0 %v5137_v25  ;;  %5135 = vadd.xlane.f32.xlu1 %v5134_v6  ;;  %v5140_v14 = vsel %vm4466_vm9, %v13122_v62, 0.0 }
0x13b7   : > { %v5667_v21 = vpop.xlane.xlu1 %5666  ;;  %10150 = vpow2.f32 %v5711_v23  ;;  %v5698_v8 = vsub.f32 %v12971_v1, %v5664_v53 }
0x13b8   : > { %v5699_v50 = vsub.f32 %v12977_v20, %v5667_v21  ;;  %v13130_v45 = vpop.eup %10138  ;;  %10152 = vpow2.f32 %v5713_v35 }
0x13b9   : > { %v13134_v33 = vpop.eup %10140  ;;  %v5715_v43 = vmul.f32 1.442695, %v5698_v8  ;;  %v5143_v41 = vsel %vm4466_vm9, %v13130_v45, 0.0 }
0x13ba   : > { %v5717_v17 = vmul.f32 1.442695, %v5699_v50  ;;  %v5670_v51 = vpop.xlane.xlu0 %5669  ;;  %5144 = vadd.xlane.f32.xlu0 %v5143_v41  ;;  %5141 = vadd.xlane.f32.xlu1 %v5140_v14  ;;  %v5146_v29 = vsel %vm4466_vm9, %v13134_v33, 0.0 }
0x13bb   : > { %v5673_v58 = vpop.xlane.xlu1 %5672  ;;  %10154 = vpow2.f32 %v5715_v43  ;;  %v5700_v1 = vsub.f32 %v12979_v40, %v5670_v51 }
0x13bc   : > { %v5701_v20 = vsub.f32 %v12985_v15, %v5673_v58  ;;  %v13140_v19 = vpop.eup %10142  ;;  %10156 = vpow2.f32 %v5717_v17 }
0x13bd   : > { %v13144_v28 = vpop.eup %10144  ;;  %v5719_v39 = vmul.f32 1.442695, %v5700_v1  ;;  %v5149_v44 = vsel %vm4466_vm9, %v13140_v19, 0.0 }
0x13be   : > { %v5721_v34 = vmul.f32 1.442695, %v5701_v20  ;;  %v5676_v23 = vpop.xlane.xlu0 %5675  ;;  %5150 = vadd.xlane.f32.xlu0 %v5149_v44  ;;  %5147 = vadd.xlane.f32.xlu1 %v5146_v29  ;;  %v5152_v6 = vsel %vm4466_vm9, %v13144_v28, 0.0 }
0x13bf   : > { %v5679_v35 = vpop.xlane.xlu1 %5678  ;;  %10158 = vpow2.f32 %v5719_v39  ;;  %v5702_v40 = vsub.f32 %v12987_v2, %v5676_v23 }
0x13c0   : > { %v5703_v15 = vsub.f32 %v12993_v49, %v5679_v35  ;;  %v13150_v25 = vpop.eup %10146  ;;  %10160 = vpow2.f32 %v5721_v34 }
0x13c1   : > { %v13154_v53 = vpop.eup %10148  ;;  %v5723_v21 = vmul.f32 1.442695, %v5702_v40  ;;  %v5155_v50 = vsel %vm4466_vm9, %v13150_v25, 0.0 }
0x13c2   : > { %v5725_v8 = vmul.f32 1.442695, %v5703_v15  ;;  %v5682_v14 = vpop.xlane.xlu0 %5681  ;;  %5156 = vadd.xlane.f32.xlu0 %v5155_v50  ;;  %5153 = vadd.xlane.f32.xlu1 %v5152_v6  ;;  %v5737_v41 = vsel %vm4466_vm9, %v13154_v53, 0.0 }
0x13c3   : > { %v5685_v43 = vpop.xlane.xlu1 %5684  ;;  %10162 = vpow2.f32 %v5723_v21  ;;  %v5704_v2 = vsub.f32 %v12995_v52, %v5682_v14 }
0x13c4   : > { %v5705_v49 = vsub.f32 %v13001_v3, %v5685_v43  ;;  %v13160_v17 = vpop.eup %10150  ;;  %10164 = vpow2.f32 %v5725_v8 }
0x13c5   : > { %v5727_v51 = vmul.f32 1.442695, %v5704_v2  ;;  %v5740_v1 = vsel %vm4466_vm9, %v13160_v17, 0.0  ;;  %v13166_v20 = vpop.eup %10152 }
0x13c6   : > { %v5729_v58 = vmul.f32 1.442695, %v5705_v49  ;;  %v5688_v29 = vpop.xlane.xlu0 %5687  ;;  %5741 = vadd.xlane.f32.xlu0 %v5740_v1  ;;  %5738 = vadd.xlane.f32.xlu1 %v5737_v41  ;;  %v5743_v40 = vsel %vm4466_vm9, %v13166_v20, 0.0 }
0x13c7   : > { %v5691_v39 = vpop.xlane.xlu1 %5690  ;;  %10166 = vpow2.f32 %v5727_v51  ;;  %v5706_v52 = vsub.f32 %v13003_v37, %v5688_v29 }
0x13c8   : > { %v5707_v3 = vsub.f32 %v13009_v38, %v5691_v39  ;;  %v13170_v34 = vpop.eup %10154  ;;  %10168 = vpow2.f32 %v5729_v58 }
0x13c9   : > { %v5731_v44 = vmul.f32 1.442695, %v5706_v52  ;;  %v5746_v35 = vsel %vm4466_vm9, %v13170_v34, 0.0  ;;  %v13176_v15 = vpop.eup %10156 }
0x13ca   : > { %v5733_v23 = vmul.f32 1.442695, %v5707_v3  ;;  %v5694_v6 = vpop.xlane.xlu0 %5693  ;;  %5747 = vadd.xlane.f32.xlu0 %v5746_v35  ;;  %5744 = vadd.xlane.f32.xlu1 %v5743_v40  ;;  %v5749_v2 = vsel %vm4466_vm9, %v13176_v15, 0.0 }
0x13cb   : > { %v6276_v21 = vpop.xlane.xlu1 %6275  ;;  %10170 = vpow2.f32 %v5731_v44  ;;  %v5708_v37 = vsub.f32 %v13011_v7, %v5694_v6 }
0x13cc   : > { %v6316_v38 = vsub.f32 %v13017_v16, %v6276_v21  ;;  %v13180_v8 = vpop.eup %10158  ;;  %10172 = vpow2.f32 %v5733_v23 }
0x13cd   : > { %v5735_v50 = vmul.f32 1.442695, %v5708_v37  ;;  %v5752_v43 = vsel %vm4466_vm9, %v13180_v8, 0.0  ;;  %v13186_v49 = vpop.eup %10160 }
0x13ce   : > { %v6330_v14 = vmul.f32 1.442695, %v6316_v38  ;;  %v6279_v41 = vpop.xlane.xlu0 %6278  ;;  %5753 = vadd.xlane.f32.xlu0 %v5752_v43  ;;  %5750 = vadd.xlane.f32.xlu1 %v5749_v2  ;;  %v5755_v52 = vsel %vm4466_vm9, %v13186_v49, 0.0 }
0x13cf   : > { %v6282_v51 = vpop.xlane.xlu1 %6281  ;;  %10174 = vpow2.f32 %v5735_v50  ;;  %v6317_v7 = vsub.f32 %v13019_v63, %v6279_v41 }
0x13d0   : > { %v6318_v16 = vsub.f32 %v13025_v4, %v6282_v51  ;;  %v13190_v58 = vpop.eup %10162  ;;  %10176 = vpow2.f32 %v6330_v14 }
0x13d1   : > { %v6332_v1 = vmul.f32 1.442695, %v6317_v7  ;;  %v5758_v39 = vsel %vm4466_vm9, %v13190_v58, 0.0  ;;  %v13196_v3 = vpop.eup %10164 }
0x13d2   : > { %v6334_v29 = vmul.f32 1.442695, %v6318_v16  ;;  %v6285_v44 = vpop.xlane.xlu0 %6284  ;;  %5759 = vadd.xlane.f32.xlu0 %v5758_v39  ;;  %5756 = vadd.xlane.f32.xlu1 %v5755_v52  ;;  %v5761_v38 = vsel %vm4466_vm9, %v13196_v3, 0.0 }
0x13d3   : > { %v6288_v23 = vpop.xlane.xlu1 %6287  ;;  %10178 = vpow2.f32 %v6332_v1  ;;  %v6319_v63 = vsub.f32 %v13027_v47, %v6285_v44 }
0x13d4   : > { %v6320_v4 = vsub.f32 %v13033_v54, %v6288_v23  ;;  %v13200_v35 = vpop.eup %10166  ;;  %10180 = vpow2.f32 %v6334_v29 }
0x13d5   : > { %v13202_v40 = vpop.eup %10168  ;;  %v6336_v6 = vmul.f32 1.442695, %v6319_v63  ;;  %v5764_v37 = vsel %vm4466_vm9, %v13200_v35, 0.0 }
0x13d6   : > { %v6338_v21 = vmul.f32 1.442695, %v6320_v4  ;;  %v6291_v50 = vpop.xlane.xlu0 %6290  ;;  %5765 = vadd.xlane.f32.xlu0 %v5764_v37  ;;  %5762 = vadd.xlane.f32.xlu1 %v5761_v38  ;;  %v5767_v2 = vsel %vm4466_vm9, %v13202_v40, 0.0 }
0x13d7   : > { %v6294_v14 = vpop.xlane.xlu1 %6293  ;;  %10182 = vpow2.f32 %v6336_v6  ;;  %v6321_v47 = vsub.f32 %v13035_v59, %v6291_v50 }
0x13d8   : > { %v6322_v54 = vsub.f32 %v13041_v22, %v6294_v14  ;;  %v13210_v43 = vpop.eup %10170  ;;  %10184 = vpow2.f32 %v6338_v21 }
0x13d9   : > { %v13214_v41 = vpop.eup %10172  ;;  %v6340_v51 = vmul.f32 1.442695, %v6321_v47  ;;  %v5770_v16 = vsel %vm4466_vm9, %v13210_v43, 0.0 }
0x13da   : > { %v6342_v7 = vmul.f32 1.442695, %v6322_v54  ;;  %v6297_v1 = vpop.xlane.xlu0 %6296  ;;  %5771 = vadd.xlane.f32.xlu0 %v5770_v16  ;;  %5768 = vadd.xlane.f32.xlu1 %v5767_v2  ;;  %v5773_v52 = vsel %vm4466_vm9, %v13214_v41, 0.0 }
0x13db   : > { %v6300_v29 = vpop.xlane.xlu1 %6299  ;;  %10186 = vpow2.f32 %v6340_v51  ;;  %v6323_v59 = vsub.f32 %v13043_v10, %v6297_v1 }
0x13dc   : > { %v6324_v22 = vsub.f32 %v13049_v36, %v6300_v29  ;;  %v13220_v39 = vpop.eup %10174  ;;  %10188 = vpow2.f32 %v6342_v7 }
0x13dd   : > { %v13224_v44 = vpop.eup %10176  ;;  %v6344_v23 = vmul.f32 1.442695, %v6323_v59  ;;  %v5776_v4 = vsel %vm4466_vm9, %v13220_v39, 0.0 }
0x13de   : > { %v6346_v63 = vmul.f32 1.442695, %v6324_v22  ;;  %v6303_v6 = vpop.xlane.xlu0 %6302  ;;  %5777 = vadd.xlane.f32.xlu0 %v5776_v4  ;;  %5774 = vadd.xlane.f32.xlu1 %v5773_v52  ;;  %v6358_v38 = vsel %vm4466_vm9, %v13224_v44, 0.0 }
0x13df   : > { %v6306_v21 = vpop.xlane.xlu1 %6305  ;;  %10190 = vpow2.f32 %v6344_v23  ;;  %v6325_v10 = vsub.f32 %v13051_v18, %v6303_v6 }
0x13e0   : > { %v6326_v36 = vsub.f32 %v13057_v27, %v6306_v21  ;;  %v13230_v37 = vpop.eup %10178  ;;  %10192 = vpow2.f32 %v6346_v63 }
0x13e1   : > { %v13234_v50 = vpop.eup %10180  ;;  %v6348_v14 = vmul.f32 1.442695, %v6325_v10  ;;  %v6361_v54 = vsel %vm4466_vm9, %v13230_v37, 0.0 }
0x13e2   : > { %v6350_v47 = vmul.f32 1.442695, %v6326_v36  ;;  %v6309_v2 = vpop.xlane.xlu0 %6308  ;;  %6362 = vadd.xlane.f32.xlu0 %v6361_v54  ;;  %6359 = vadd.xlane.f32.xlu1 %v6358_v38  ;;  %v6364_v16 = vsel %vm4466_vm9, %v13234_v50, 0.0 }
0x13e3   : > { %v6312_v51 = vpop.xlane.xlu1 %6311  ;;  %10194 = vpow2.f32 %v6348_v14  ;;  %v6327_v18 = vsub.f32 %v13059_v31, %v6309_v2 }
0x13e4   : > { %v6328_v27 = vsub.f32 %v13065_v30, %v6312_v51  ;;  %v13240_v7 = vpop.eup %10182  ;;  %10196 = vpow2.f32 %v6350_v47 }
0x13e5   : > { %v6352_v1 = vmul.f32 1.442695, %v6327_v18  ;;  %v6367_v59 = vsel %vm4466_vm9, %v13240_v7, 0.0  ;;  %v13246_v22 = vpop.eup %10184 }
0x13e6   : > { %v6354_v29 = vmul.f32 1.442695, %v6328_v27  ;;  %v6315_v52 = vpop.xlane.xlu0 %6314  ;;  %6368 = vadd.xlane.f32.xlu0 %v6367_v59  ;;  %6365 = vadd.xlane.f32.xlu1 %v6364_v16  ;;  %v6370_v4 = vsel %vm4466_vm9, %v13246_v22, 0.0 }
0x13e7   : > { %10198 = vpow2.f32 %v6352_v1  ;;  %v6329_v31 = vsub.f32 %v13067_v57, %v6315_v52 }
0x13e8   : > { %v13249_v30 = vpop.eup %10186  ;;  %10200 = vpow2.f32 %v6354_v29 }
0x13e9   : > { %v6356_v23 = vmul.f32 1.442695, %v6329_v31  ;;  %v6373_v63 = vsel %vm4466_vm9, %v13249_v30, 0.0  ;;  %v13255_v6 = vpop.eup %10188 }
0x13ea   : > { %6374 = vadd.xlane.f32.xlu0 %v6373_v63  ;;  %6371 = vadd.xlane.f32.xlu1 %v6370_v4  ;;  %v6376_v10 = vsel %vm4466_vm9, %v13255_v6, 0.0 }
0x13eb   : > { %10202 = vpow2.f32 %v6356_v23 }
0x13ec   : > { %v13257_v21 = vpop.eup %10190 }
0x13ed   : > { %v6379_v57 = vsel %vm4466_vm9, %v13257_v21, 0.0  ;;  %v13263_v36 = vpop.eup %10192 }
0x13ee   : > { %6380 = vadd.xlane.f32.xlu0 %v6379_v57  ;;  %6377 = vadd.xlane.f32.xlu1 %v6376_v10  ;;  %v6382_v47 = vsel %vm4466_vm9, %v13263_v36, 0.0 }
0x13f0   : > { %v13265_v38 = vpop.eup %10194 }
0x13f1   : > { %v6385_v14 = vsel %vm4466_vm9, %v13265_v38, 0.0  ;;  %v13271_v54 = vpop.eup %10196 }
0x13f2   : > { %6386 = vadd.xlane.f32.xlu0 %v6385_v14  ;;  %6383 = vadd.xlane.f32.xlu1 %v6382_v47  ;;  %v6388_v18 = vsel %vm4466_vm9, %v13271_v54, 0.0 }
0x13f4   : > { %v13273_v2 = vpop.eup %10198 }
0x13f5   : > { %v6391_v51 = vsel %vm4466_vm9, %v13273_v2, 0.0  ;;  %v13279_v27 = vpop.eup %10200 }
0x13f6   : > { %6392 = vadd.xlane.f32.xlu0 %v6391_v51  ;;  %6389 = vadd.xlane.f32.xlu1 %v6388_v18  ;;  %v6394_v29 = vsel %vm4466_vm9, %v13279_v27, 0.0 }
0x13f8   : > { %v13281_v16 = vpop.eup %10202 }
0x13f9   : > { %v6397_v1 = vsel %vm4466_vm9, %v13281_v16, 0.0 }
0x13fa   : > { %6398 = vadd.xlane.f32.xlu0 %v6397_v1  ;;  %6395 = vadd.xlane.f32.xlu1 %v6394_v29 }
0x140b   : > { %6430 = vrot.lane.b32.xlu1 %v12280_v56, %s10361_s26 }
0x1410   : > { %6428 = vrot.lane.b32.xlu0 %v12402_v24, %s10361_s26 }
0x142d   : > { %v5121_v59 = vpop.xlane.xlu0 %5120 }
0x142e   : > { %10204 = vrcp.f32 %v5121_v59 }
0x142f   : > { %v5118_v52 = vpop.xlane.xlu1 %5117 }
0x1430   : > { %10206 = vrcp.f32 %v5118_v52 }
0x1433   : > { %v5127_v31 = vpop.xlane.xlu0 %5126 }
0x1434   : > { %10208 = vrcp.f32 %v5127_v31 }
0x1437   : > { %v5124_v23 = vpop.xlane.xlu1 %5123 }
0x1438   : > { %10210 = vrcp.f32 %v5124_v23 }
0x143b   : > { %v5133_v63 = vpop.xlane.xlu0 %5132  ;;  %v5130_v4 = vpop.xlane.xlu1 %5129 }
0x143c   : > { %v10205_v57 = vpop.eup %10204  ;;  %10212 = vrcp.f32 %v5133_v63 }
0x143d   : > { %v10207_v10 = vpop.eup %10206  ;;  %10214 = vrcp.f32 %v5130_v4  ;;  %v5173_v56 = vmul.f32 %v10205_v57, %v13084_v42 }
0x143e   : > { %v5172_v14 = vmul.f32 %v10207_v10, %v13090_v55 }
0x143f   : > { %v5139_v47 = vpop.xlane.xlu0 %5138  ;;  %v5136_v24 = vpop.xlane.xlu1 %5135 }
0x1440   : > { %10216 = vrcp.f32 %v5139_v47  ;;  %9543 = vmatprep.mubr.msk.f32.mxu0 %vm4466_vm9, %v5172_v14 }
0x1441   : > { %10218 = vrcp.f32 %v5136_v24  ;;  %9544 = vmatmul.mubr.msk.f32.vlgmr.msra.gmra.mxu0 %vm4466_vm9, %v5173_v56  ;;  %v10209_v1 = vpop.eup %10208 }
0x1442   : > { %9590 = vmatpush3.msk.msra.mxu0 %vm348_vm0, %v12884_v48  ;;  %v5175_v52 = vmul.f32 %v10209_v1, %v13096_v60 }
0x1443   : > { %9591 = vmatprep.subr.mxu0 %v13075_v5  ;;  %v5145_v51 = vpop.xlane.xlu0 %5144  ;;  %v5142_v18 = vpop.xlane.xlu1 %5141 }
0x1444   : > { %10220 = vrcp.f32 %v5145_v51  ;;  %9592 = vmatpush3.msra.mxu0 %v13075_v5 }
0x1445   : > { %v10211_v42 = vpop.eup %10210  ;;  %10222 = vrcp.f32 %v5142_v18 }
0x1446   : > { %v5174_v55 = vmul.f32 %v10211_v42, %v13102_v26 }
0x1447   : > { %v5151_v29 = vpop.xlane.xlu0 %5150  ;;  %v5148_v59 = vpop.xlane.xlu1 %5147 }
0x1448   : > { %10224 = vrcp.f32 %v5151_v29  ;;  %9546 = vmatprep.mubr.msk.f32.mxu0 %vm4466_vm9, %v5174_v55 }
0x1449   : > { %v10213_v48 = vpop.eup %10212  ;;  %10226 = vrcp.f32 %v5148_v59  ;;  %9547 = vmatmul.mubr.msk.f32.gmra.mxu0 %vm4466_vm9, %v5175_v52 }
0x144a   : > { %v10215_v31 = vpop.eup %10214  ;;  %v5177_v23 = vmul.f32 %v10213_v48, %v13110_v11 }
0x144b   : > { %v5157_v63 = vpop.xlane.xlu0 %5156  ;;  %v5154_v5 = vpop.xlane.xlu1 %5153  ;;  %v5176_v4 = vmul.f32 %v10215_v31, %v13106_v46 }
0x144c   : > { %10228 = vrcp.f32 %v5157_v63 }
0x144d   : > { %v10217_v26 = vpop.eup %10216  ;;  %10230 = vrcp.f32 %v5154_v5  ;;  %9549 = vmatprep.mubr.msk.f32.mxu0 %vm4466_vm9, %v5176_v4 }
0x144e   : > { %v10219_v60 = vpop.eup %10218  ;;  %9550 = vmatmul.mubr.msk.f32.gmra.mxu0 %vm4466_vm9, %v5177_v23  ;;  %v5179_v57 = vmul.f32 %v10217_v26, %v13120_v13 }
0x144f   : > { %v5742_v10 = vpop.xlane.xlu0 %5741  ;;  %v5739_v14 = vpop.xlane.xlu1 %5738  ;;  %v5178_v56 = vmul.f32 %v10219_v60, %v13116_v61 }
0x1450   : > { %10232 = vrcp.f32 %v5742_v10 }
0x1451   : > { %v10221_v11 = vpop.eup %10220  ;;  %10234 = vrcp.f32 %v5739_v14  ;;  %9552 = vmatprep.mubr.msk.f32.mxu0 %vm4466_vm9, %v5178_v56 }
0x1452   : > { %v10223_v46 = vpop.eup %10222  ;;  %9553 = vmatmul.mubr.msk.f32.gmra.mxu0 %vm4466_vm9, %v5179_v57  ;;  %v5181_v47 = vmul.f32 %v10221_v11, %v13130_v45 }
0x1453   : > { %v5748_v24 = vpop.xlane.xlu0 %5747  ;;  %v5745_v51 = vpop.xlane.xlu1 %5744  ;;  %v5180_v18 = vmul.f32 %v10223_v46, %v13122_v62 }
0x1454   : > { %10236 = vrcp.f32 %v5748_v24 }
0x1455   : > { %v10225_v13 = vpop.eup %10224  ;;  %10238 = vrcp.f32 %v5745_v51  ;;  %9555 = vmatprep.mubr.msk.f32.mxu0 %vm4466_vm9, %v5180_v18 }
0x1456   : > { %v10227_v61 = vpop.eup %10226  ;;  %9556 = vmatmul.mubr.msk.f32.gmra.mxu0 %vm4466_vm9, %v5181_v47  ;;  %v5183_v1 = vmul.f32 %v10225_v13, %v13140_v19 }
0x1457   : > { %v5754_v42 = vpop.xlane.xlu0 %5753  ;;  %v5751_v55 = vpop.xlane.xlu1 %5750  ;;  %v5182_v29 = vmul.f32 %v10227_v61, %v13134_v33 }
0x1458   : > { %10240 = vrcp.f32 %v5754_v42 }
0x1459   : > { %v10229_v45 = vpop.eup %10228  ;;  %10242 = vrcp.f32 %v5751_v55  ;;  %9558 = vmatprep.mubr.msk.f32.mxu0 %vm4466_vm9, %v5182_v29 }
0x145a   : > { %v10231_v62 = vpop.eup %10230  ;;  %9559 = vmatmul.mubr.msk.f32.gmra.mxu0 %vm4466_vm9, %v5183_v1  ;;  %v5185_v59 = vmul.f32 %v10229_v45, %v13150_v25 }
0x145b   : > { %v5760_v52 = vpop.xlane.xlu0 %5759  ;;  %v5757_v48 = vpop.xlane.xlu1 %5756  ;;  %v5184_v31 = vmul.f32 %v10231_v62, %v13144_v28 }
0x145c   : > { %10244 = vrcp.f32 %v5760_v52 }
0x145d   : > { %v10233_v19 = vpop.eup %10232  ;;  %10246 = vrcp.f32 %v5757_v48  ;;  %9561 = vmatprep.mubr.msk.f32.mxu0 %vm4466_vm9, %v5184_v31 }
0x145e   : > { %v10235_v33 = vpop.eup %10234  ;;  %v5794_v23 = vmul.f32 %v10233_v19, %v13160_v17  ;;  %9562 = vmatmul.mubr.msk.f32.gmra.mxu0 %vm4466_vm9, %v5185_v59 }
0x145f   : > { %v5766_v63 = vpop.xlane.xlu0 %5765  ;;  %v5763_v5 = vpop.xlane.xlu1 %5762  ;;  %v5793_v4 = vmul.f32 %v10235_v33, %v13154_v53 }
0x1460   : > { %10248 = vrcp.f32 %v5766_v63 }
0x1461   : > { %v10237_v25 = vpop.eup %10236  ;;  %10250 = vrcp.f32 %v5763_v5  ;;  %9593 = vmatprep.mubr.msk.f32.mxu0 %vm4466_vm9, %v5793_v4 }
0x1462   : > { %v10239_v28 = vpop.eup %10238  ;;  %9594 = vmatmul.mubr.msk.f32.vlgmr.msra.gmra.mxu0 %vm4466_vm9, %v5794_v23  ;;  %v5796_v26 = vmul.f32 %v10237_v25, %v13170_v34 }
0x1463   : > { %v5772_v60 = vpop.xlane.xlu0 %5771  ;;  %v5769_v57 = vpop.xlane.xlu1 %5768  ;;  %v5795_v17 = vmul.f32 %v10239_v28, %v13166_v20 }
0x1464   : > { %10252 = vrcp.f32 %v5772_v60 }
0x1465   : > { %v10241_v10 = vpop.eup %10240  ;;  %10254 = vrcp.f32 %v5769_v57  ;;  %9596 = vmatprep.mubr.msk.f32.mxu0 %vm4466_vm9, %v5795_v17 }
0x1466   : > { %v10243_v53 = vpop.eup %10242  ;;  %9597 = vmatmul.mubr.msk.f32.gmra.mxu0 %vm4466_vm9, %v5796_v26  ;;  %v5798_v14 = vmul.f32 %v10241_v10, %v13180_v8 }
0x1467   : > { %v5778_v56 = vpop.xlane.xlu0 %5777  ;;  %v5775_v11 = vpop.xlane.xlu1 %5774  ;;  %v5797_v46 = vmul.f32 %v10243_v53, %v13176_v15 }
0x1468   : > { %10256 = vrcp.f32 %v5778_v56 }
0x1469   : > { %v10245_v34 = vpop.eup %10244  ;;  %10258 = vrcp.f32 %v5775_v11  ;;  %9599 = vmatprep.mubr.msk.f32.mxu0 %vm4466_vm9, %v5797_v46 }
0x146a   : > { %v10247_v20 = vpop.eup %10246  ;;  %9600 = vmatmul.mubr.msk.f32.gmra.mxu0 %vm4466_vm9, %v5798_v14  ;;  %v5800_v47 = vmul.f32 %v10245_v34, %v13190_v58 }
0x146b   : > { %v6363_v24 = vpop.xlane.xlu0 %6362  ;;  %v6360_v51 = vpop.xlane.xlu1 %6359  ;;  %v5799_v18 = vmul.f32 %v10247_v20, %v13186_v49 }
0x146c   : > { %10260 = vrcp.f32 %v6360_v51 }
0x146d   : > { %v10249_v13 = vpop.eup %10248  ;;  %9602 = vmatprep.mubr.msk.f32.mxu0 %vm4466_vm9, %v5799_v18  ;;  %10262 = vrcp.f32 %v6363_v24 }
0x146e   : > { %v10251_v8 = vpop.eup %10250  ;;  %9603 = vmatmul.mubr.msk.f32.gmra.mxu0 %vm4466_vm9, %v5800_v47  ;;  %v5802_v15 = vmul.f32 %v10249_v13, %v13200_v35 }
0x146f   : > { %v6369_v61 = vpop.xlane.xlu0 %6368  ;;  %v6366_v1 = vpop.xlane.xlu1 %6365  ;;  %v5801_v42 = vmul.f32 %v10251_v8, %v13196_v3 }
0x1470   : > { %10264 = vrcp.f32 %v6366_v1 }
0x1471   : > { %v10253_v55 = vpop.eup %10252  ;;  %9605 = vmatprep.mubr.msk.f32.mxu0 %vm4466_vm9, %v5801_v42  ;;  %10266 = vrcp.f32 %v6369_v61 }
0x1472   : > { %v10255_v58 = vpop.eup %10254  ;;  %9606 = vmatmul.mubr.msk.f32.gmra.mxu0 %vm4466_vm9, %v5802_v15  ;;  %v5804_v49 = vmul.f32 %v10253_v55, %v13210_v43 }
0x1473   : > { %v6375_v29 = vpop.xlane.xlu0 %6374  ;;  %v6372_v45 = vpop.xlane.xlu1 %6371  ;;  %v5803_v62 = vmul.f32 %v10255_v58, %v13202_v40 }
0x1474   : > { %10268 = vrcp.f32 %v6372_v45 }
0x1475   : > { %v10257_v59 = vpop.eup %10256  ;;  %9608 = vmatprep.mubr.msk.f32.mxu0 %vm4466_vm9, %v5803_v62  ;;  %10270 = vrcp.f32 %v6375_v29 }
0x1476   : > { %v10259_v35 = vpop.eup %10258  ;;  %9609 = vmatmul.mubr.msk.f32.gmra.mxu0 %vm4466_vm9, %v5804_v49  ;;  %v5806_v3 = vmul.f32 %v10257_v59, %v13220_v39 }
0x1477   : > { %v6381_v52 = vpop.xlane.xlu0 %6380  ;;  %v6378_v48 = vpop.xlane.xlu1 %6377  ;;  %v5805_v31 = vmul.f32 %v10259_v35, %v13214_v41 }
0x1478   : > { %10272 = vrcp.f32 %v6378_v48 }
0x1479   : > { %9611 = vmatprep.mubr.msk.f32.mxu0 %vm4466_vm9, %v5805_v31  ;;  %v10261_v19 = vpop.eup %10260  ;;  %10274 = vrcp.f32 %v6381_v52 }
0x147a   : > { %9612 = vmatmul.mubr.msk.f32.gmra.mxu0 %vm4466_vm9, %v5806_v3  ;;  %v6414_v33 = vmul.f32 %v10261_v19, %v13224_v44  ;;  %v10263_v5 = vpop.eup %10262 }
0x147b   : > { %v6387_v40 = vpop.xlane.xlu0 %6386  ;;  %v6384_v43 = vpop.xlane.xlu1 %6383  ;;  %v6415_v44 = vmul.f32 %v10263_v5, %v13230_v37 }
0x147c   : > { %9643 = vmatprep.mubr.msk.f32.mxu0 %vm4466_vm9, %v6414_v33  ;;  %10276 = vrcp.f32 %v6384_v43 }
0x147d   : > { %v10265_v25 = vpop.eup %10264  ;;  %10278 = vrcp.f32 %v6387_v40 }
0x147e   : > { %v10267_v26 = vpop.eup %10266  ;;  %v6416_v60 = vmul.f32 %v10265_v25, %v13234_v50 }
0x147f   : > { %v6393_v39 = vpop.xlane.xlu0 %6392  ;;  %v6390_v23 = vpop.xlane.xlu1 %6389  ;;  %v6417_v17 = vmul.f32 %v10267_v26, %v13240_v7 }
0x1480   : > { %10280 = vrcp.f32 %v6390_v23  ;;  %v4266_v23 = vld [vmem:[%s14089_s2 + $0x120] sm:$0xff] }
0x1481   : > { %v10269_v57 = vpop.eup %10268  ;;  %10282 = vrcp.f32 %v6393_v39  ;;  %v4267_v39 = vld [vmem:[%s14089_s2 + $0x128] sm:$0xff] }
0x1482   : > { %v10271_v10 = vpop.eup %10270  ;;  %v6418_v53 = vmul.f32 %v10269_v57, %v13246_v22  ;;  %9664 = vmatprep.subr.mxu1 %v4267_v39 }
0x1483   : > { %v6399_v41 = vpop.xlane.xlu0 %6398  ;;  %v6396_v63 = vpop.xlane.xlu1 %6395  ;;  %v6419_v50 = vmul.f32 %v10271_v10, %v13249_v30  ;;  %9665 = vmatpush3.msra.mxu1 %v4267_v39 }
0x1484   : > { %10284 = vrcp.f32 %v6396_v63  ;;  %9666 = vmatprep.subr.mxu1 %v4266_v23  ;;  %v4264_v63 = vld [vmem:[%s14089_s2 + $0x110] sm:$0xff] }
0x1485   : > { %v10273_v37 = vpop.eup %10272  ;;  %10286 = vrcp.f32 %v6399_v41  ;;  %9667 = vmatpush3.msra.mxu1 %v4266_v23  ;;  %v4265_v41 = vld [vmem:[%s14089_s2 + $0x118] sm:$0xff] }
0x1486   : > { %v10275_v14 = vpop.eup %10274  ;;  %v6420_v56 = vmul.f32 %v10273_v37, %v13255_v6  ;;  %9668 = vmatprep.subr.mxu1 %v4265_v41 }
0x1487   : > { %v6431_v4 = vpop.permute.xlu1 %6430  ;;  %v6429_v28 = vpop.permute.xlu0 %6428  ;;  %v6421_v7 = vmul.f32 %v10275_v14, %v13257_v21  ;;  %9669 = vmatpush3.msra.mxu1 %v4265_v41 }
0x1488   : > { %9639 = vmatprep.subr.msk.mxu0 %vm348_vm0, %v6431_v4  ;;  %9670 = vmatprep.subr.mxu1 %v4264_v63 }
0x1489   : > { %9640 = vmatpush3.msk.msra.mxu0 %vm348_vm0, %v6431_v4  ;;  %v10277_v11 = vpop.eup %10276  ;;  %9671 = vmatpush3.msra.mxu1 %v4264_v63  ;;  %vm7324_vm0 = vcmask 523264  }
0x148a   : > { %9641 = vmatprep.subr.mxu0 %v6429_v28  ;;  %v10279_v46 = vpop.eup %10278  ;;  %v6422_v22 = vmul.f32 %v10277_v11, %v13263_v36 }
0x148b   : > { %9642 = vmatpush3.msra.mxu0 %v6429_v28  ;;  %v6423_v30 = vmul.f32 %v10279_v46, %v13265_v38 }
0x148c   : > { %9644 = vmatmul.mubr.msk.f32.vlgmr.msra.gmra.mxu0 %vm4466_vm9, %v6415_v44 }
0x148d   : > { %9646 = vmatprep.mubr.msk.f32.mxu0 %vm4466_vm9, %v6416_v60  ;;  %v10281_v34 = vpop.eup %10280 }
0x148e   : > { %v10283_v20 = vpop.eup %10282  ;;  %v6424_v6 = vmul.f32 %v10281_v34, %v13271_v54 }
0x148f   : > { %v6425_v21 = vmul.f32 %v10283_v20, %v13273_v2 }
0x1490   : > { %9647 = vmatmul.mubr.msk.f32.gmra.mxu0 %vm4466_vm9, %v6417_v17 }
0x1491   : > { %9649 = vmatprep.mubr.msk.f32.mxu0 %vm4466_vm9, %v6418_v53  ;;  %v10285_v47 = vpop.eup %10284 }
0x1492   : > { %v10287_v24 = vpop.eup %10286  ;;  %v6426_v36 = vmul.f32 %v10285_v47, %v13279_v27 }
0x1493   : > { %v6427_v51 = vmul.f32 %v10287_v24, %v13281_v16 }
0x1494   : > { %9650 = vmatmul.mubr.msk.f32.gmra.mxu0 %vm4466_vm9, %v6419_v50 }
0x1495   : > { %9652 = vmatprep.mubr.msk.f32.mxu0 %vm4466_vm9, %v6420_v56 }
0x1498   : > { %9653 = vmatmul.mubr.msk.f32.gmra.mxu0 %vm4466_vm9, %v6421_v7 }
0x1499   : > { %9655 = vmatprep.mubr.msk.f32.mxu0 %vm4466_vm9, %v6422_v22 }
0x149c   : > { %9656 = vmatmul.mubr.msk.f32.gmra.mxu0 %vm4466_vm9, %v6423_v30 }
0x149d   : > { %9658 = vmatprep.mubr.msk.f32.mxu0 %vm4466_vm9, %v6424_v6 }
0x14a0   : > { %9659 = vmatmul.mubr.msk.f32.gmra.mxu0 %vm4466_vm9, %v6425_v21 }
0x14a1   : > { %9661 = vmatprep.mubr.msk.f32.mxu0 %vm4466_vm9, %v6426_v36 }
0x14a4   : > { %9662 = vmatmul.mubr.msk.f32.gmra.mxu0 %vm4466_vm9, %v6427_v51 }
0x1501   : > { %v9545_v38 = vpop.f32.mrf.mxu0 }
0x1502   : > { %5386 = vrot.lane.b32.xlu1 %v9545_v38, %s10364_s29 }
0x1503   : > { %v5301_v54 = vpop.f32.mrf.mxu0 }
0x1506   : > { %5384 = vrot.lane.b32.xlu1 %v5301_v54, %s10364_s29 }
0x1509   : > { %v9548_v18 = vpop.f32.mrf.mxu0 }
0x150a   : > { %5390 = vrot.lane.b32.xlu1 %v9548_v18, %s10364_s29 }
0x150b   : > { %v5311_v2 = vpop.f32.mrf.mxu0 }
0x150c   : > { %5388 = vrot.lane.b32.xlu0 %v5311_v2, %s10364_s29 }
0x150e   : > { %v9551_v27 = vpop.f32.mrf.mxu0 }
0x150f   : > { %5394 = vrot.lane.b32.xlu1 %v9551_v27, %s10364_s29 }
0x1510   : > { %v5321_v13 = vpop.f32.mrf.mxu0 }
0x1511   : > { %5392 = vrot.lane.b32.xlu0 %v5321_v13, %s10364_s29 }
0x1512   : > { %v9554_v16 = vpop.f32.mrf.mxu0 }
0x1513   : > { %5398 = vrot.lane.b32.xlu1 %v9554_v16, %s10364_s29 }
0x1514   : > { %v5331_v8 = vpop.f32.mrf.mxu0 }
0x1515   : > { %5396 = vrot.lane.b32.xlu0 %v5331_v8, %s10364_s29 }
0x1516   : > { %v9557_v15 = vpop.f32.mrf.mxu0 }
0x1517   : > { %5402 = vrot.lane.b32.xlu1 %v9557_v15, %s10364_s29 }
0x1518   : > { %v5341_v61 = vpop.f32.mrf.mxu0 }
0x1519   : > { %5400 = vrot.lane.b32.xlu0 %v5341_v61, %s10364_s29 }
0x151a   : > { %v9560_v1 = vpop.f32.mrf.mxu0 }
0x151b   : > { %5406 = vrot.lane.b32.xlu1 %v9560_v1, %s10364_s29 }
0x151c   : > { %v5351_v42 = vpop.f32.mrf.mxu0 }
0x151d   : > { %5404 = vrot.lane.b32.xlu0 %v5351_v42, %s10364_s29 }
0x151e   : > { %v9563_v55 = vpop.f32.mrf.mxu0 }
0x151f   : > { %5410 = vrot.lane.b32.xlu1 %v9563_v55, %s10364_s29 }
0x1520   : > { %v5361_v58 = vpop.f32.mrf.mxu0 }
0x1521   : > { %5408 = vrot.lane.b32.xlu0 %v5361_v58, %s10364_s29 }
0x1522   : > { %v9595_v49 = vpop.f32.mrf.mxu0 }
0x1523   : > { %6007 = vrot.lane.b32.xlu1 %v9595_v49, %s10365_s30 }
0x1524   : > { %v5922_v29 = vpop.f32.mrf.mxu0 }
0x1525   : > { %6005 = vrot.lane.b32.xlu0 %v5922_v29, %s10365_s30 }
0x1526   : > { %v9598_v45 = vpop.f32.mrf.mxu0 }
0x1527   : > { %6011 = vrot.lane.b32.xlu1 %v9598_v45, %s10365_s30 }
0x1528   : > { %v5932_v62 = vpop.f32.mrf.mxu0 }
0x1529   : > { %6009 = vrot.lane.b32.xlu0 %v5932_v62, %s10365_s30 }
0x152a   : > { %v9601_v59 = vpop.f32.mrf.mxu0 }
0x152b   : > { %6015 = vrot.lane.b32.xlu1 %v9601_v59, %s10365_s30 }
0x152c   : > { %v5942_v35 = vpop.f32.mrf.mxu0 }
0x152d   : > { %6013 = vrot.lane.b32.xlu0 %v5942_v35, %s10365_s30 }
0x152e   : > { %v9604_v3 = vpop.f32.mrf.mxu0 }
0x152f   : > { %6019 = vrot.lane.b32.xlu1 %v9604_v3, %s10365_s30 }
0x1530   : > { %v5952_v52 = vpop.f32.mrf.mxu0 }
0x1531   : > { %6017 = vrot.lane.b32.xlu0 %v5952_v52, %s10365_s30 }
0x1532   : > { %v9607_v48 = vpop.f32.mrf.mxu0 }
0x1533   : > { %6023 = vrot.lane.b32.xlu1 %v9607_v48, %s10365_s30 }
0x1534   : > { %v5962_v31 = vpop.f32.mrf.mxu0 }
0x1535   : > { %6021 = vrot.lane.b32.xlu0 %v5962_v31, %s10365_s30 }
0x1536   : > { %v9610_v19 = vpop.f32.mrf.mxu0 }
0x1537   : > { %6027 = vrot.lane.b32.xlu1 %v9610_v19, %s10365_s30 }
0x1538   : > { %v5972_v40 = vpop.f32.mrf.mxu0 }
0x1539   : > { %6025 = vrot.lane.b32.xlu0 %v5972_v40, %s10365_s30 }
0x153a   : > { %v9613_v43 = vpop.f32.mrf.mxu0 }
0x153b   : > { %6031 = vrot.lane.b32.xlu1 %v9613_v43, %s10365_s30 }
0x153c   : > { %v5982_v33 = vpop.f32.mrf.mxu0 }
0x153d   : > { %6029 = vrot.lane.b32.xlu0 %v5982_v33, %s10365_s30 }
0x154c   : > { %v9645_v5 = vpop.f32.mrf.mxu0 }
0x154d   : > { %6628 = vrot.lane.b32.xlu1 %v9645_v5, %s10366_s14 }
0x154e   : > { %v6543_v4 = vpop.f32.mrf.mxu0 }
0x154f   : > { %6626 = vrot.lane.b32.xlu0 %v6543_v4, %s10366_s14 }
0x1550   : > { %v9648_v25 = vpop.f32.mrf.mxu0 }
0x1551   : > { %6632 = vrot.lane.b32.xlu1 %v9648_v25, %s10366_s14 }
0x1552   : > { %v6553_v28 = vpop.f32.mrf.mxu0 }
0x1553   : > { %6630 = vrot.lane.b32.xlu0 %v6553_v28, %s10366_s14 }
0x1554   : > { %v9651_v44 = vpop.f32.mrf.mxu0 }
0x1555   : > { %6636 = vrot.lane.b32.xlu1 %v9651_v44, %s10366_s14 }
0x1556   : > { %v6563_v26 = vpop.f32.mrf.mxu0 }
0x1557   : > { %6634 = vrot.lane.b32.xlu0 %v6563_v26, %s10366_s14 }
0x1558   : > { %v9654_v60 = vpop.f32.mrf.mxu0 }
0x1559   : > { %6640 = vrot.lane.b32.xlu1 %v9654_v60, %s10366_s14 }
0x155a   : > { %v6573_v57 = vpop.f32.mrf.mxu0 }
0x155b   : > { %6638 = vrot.lane.b32.xlu0 %v6573_v57, %s10366_s14 }
0x155c   : > { %v9657_v17 = vpop.f32.mrf.mxu0 }
0x155d   : > { %6644 = vrot.lane.b32.xlu1 %v9657_v17, %s10366_s14 }
0x155e   : > { %v6583_v10 = vpop.f32.mrf.mxu0 }
0x155f   : > { %6642 = vrot.lane.b32.xlu0 %v6583_v10, %s10366_s14 }
0x1560   : > { %v9660_v53 = vpop.f32.mrf.mxu0 }
0x1561   : > { %6648 = vrot.lane.b32.xlu1 %v9660_v53, %s10366_s14  ;;  %v8373_v53 = vld [vmem:[%s14089_s2 + $0x1e0] ss:$0 sm:$0xff] }
0x1562   : > { %v6593_v37 = vpop.f32.mrf.mxu0 }
0x1563   : > { %6646 = vrot.lane.b32.xlu0 %v6593_v37, %s10366_s14 }
0x1564   : > { %v9663_v50 = vpop.f32.mrf.mxu0 }
0x1565   : > { %6652 = vrot.lane.b32.xlu1 %v9663_v50, %s10366_s14 }
0x1566   : > { %v6603_v14 = vpop.f32.mrf.mxu0 }
0x1567   : > { %6650 = vrot.lane.b32.xlu0 %v6603_v14, %s10366_s14 }
0x1574   : > { %v5387_v56 = vpop.permute.xlu1 %5386 }
0x1575   : > { %5427 = vst.msk [vmem:[#allocation2 + $0x8] sm:$0xff] %vm2105_vm6, %v5387_v56 }
0x1578   : > { %v5385_v11 = vpop.permute.xlu1 %5384 }
0x1579   : > { %5426 = vst.msk [vmem:[#allocation2] sm:$0xff] %vm2105_vm6, %v5385_v11 }
0x157c   : > { %v5391_v7 = vpop.permute.xlu1 %5390 }
0x157d   : > { %5429 = vst.msk [vmem:[#allocation2 + $0x18] sm:$0xff] %vm2105_vm6, %v5391_v7 }
0x157e   : > { %v5389_v46 = vpop.permute.xlu0 %5388 }
0x157f   : > { %5428 = vst.msk [vmem:[#allocation2 + $0x10] sm:$0xff] %vm2105_vm6, %v5389_v46 }
0x1581   : > { %v5395_v22 = vpop.permute.xlu1 %5394 }
0x1582   : > { %5431 = vst.msk [vmem:[#allocation2 + $0x28] sm:$0xff] %vm2105_vm6, %v5395_v22 }
0x1583   : > { %v5393_v34 = vpop.permute.xlu0 %5392 }
0x1584   : > { %5430 = vst.msk [vmem:[#allocation2 + $0x20] sm:$0xff] %vm2105_vm6, %v5393_v34 }
0x1585   : > { %v5399_v30 = vpop.permute.xlu1 %5398 }
0x1586   : > { %5433 = vst.msk [vmem:[#allocation2 + $0x38] sm:$0xff] %vm2105_vm6, %v5399_v30 }
0x1587   : > { %v5397_v20 = vpop.permute.xlu0 %5396 }
0x1588   : > { %5432 = vst.msk [vmem:[#allocation2 + $0x30] sm:$0xff] %vm2105_vm6, %v5397_v20 }
0x1589   : > { %v5403_v6 = vpop.permute.xlu1 %5402 }
0x158a   : > { %5435 = vst.msk [vmem:[#allocation2 + $0x48] sm:$0xff] %vm2105_vm6, %v5403_v6 }
0x158b   : > { %v5401_v47 = vpop.permute.xlu0 %5400 }
0x158c   : > { %5434 = vst.msk [vmem:[#allocation2 + $0x40] sm:$0xff] %vm2105_vm6, %v5401_v47 }
0x158d   : > { %v5407_v21 = vpop.permute.xlu1 %5406 }
0x158e   : > { %5437 = vst.msk [vmem:[#allocation2 + $0x58] sm:$0xff] %vm2105_vm6, %v5407_v21 }
0x158f   : > { %v5405_v24 = vpop.permute.xlu0 %5404 }
0x1590   : > { %5436 = vst.msk [vmem:[#allocation2 + $0x50] sm:$0xff] %vm2105_vm6, %v5405_v24 }
0x1591   : > { %v5411_v36 = vpop.permute.xlu1 %5410 }
0x1592   : > { %5439 = vst.msk [vmem:[#allocation2 + $0x68] sm:$0xff] %vm2105_vm6, %v5411_v36 }
0x1593   : > { %v5409_v51 = vpop.permute.xlu0 %5408 }
0x1594   : > { %5438 = vst.msk [vmem:[#allocation2 + $0x60] sm:$0xff] %vm2105_vm6, %v5409_v51 }
0x1595   : > { %v6008_v38 = vpop.permute.xlu1 %6007 }
0x1596   : > { %6048 = vst.msk [vmem:[#allocation2 + $0x8] sm:$0xff] %vm2824_vm7, %v6008_v38 }
0x1597   : > { %v6006_v54 = vpop.permute.xlu0 %6005 }
0x1598   : > { %6047 = vst.msk [vmem:[#allocation2] sm:$0xff] %vm2824_vm7, %v6006_v54  ;;  %v14199_v54 = vld [vmem:[#allocation19_spill] sm:$0xff] }
0x1599   : > { %v6012_v18 = vpop.permute.xlu1 %6011 }
0x159a   : > { %6050 = vst.msk [vmem:[#allocation2 + $0x18] sm:$0xff] %vm2824_vm7, %v6012_v18 }
0x159b   : > { %v6010_v2 = vpop.permute.xlu0 %6009 }
0x159c   : > { %6049 = vst.msk [vmem:[#allocation2 + $0x10] sm:$0xff] %vm2824_vm7, %v6010_v2 }
0x159d   : > { %v6016_v27 = vpop.permute.xlu1 %6015 }
0x159e   : > { %6052 = vst.msk [vmem:[#allocation2 + $0x28] sm:$0xff] %vm2824_vm7, %v6016_v27 }
0x159f   : > { %v6014_v13 = vpop.permute.xlu0 %6013 }
0x15a0   : > { %6051 = vst.msk [vmem:[#allocation2 + $0x20] sm:$0xff] %vm2824_vm7, %v6014_v13 }
0x15a1   : > { %v6020_v16 = vpop.permute.xlu1 %6019 }
0x15a2   : > { %6054 = vst.msk [vmem:[#allocation2 + $0x38] sm:$0xff] %vm2824_vm7, %v6020_v16 }
0x15a3   : > { %v6018_v8 = vpop.permute.xlu0 %6017 }
0x15a4   : > { %6053 = vst.msk [vmem:[#allocation2 + $0x30] sm:$0xff] %vm2824_vm7, %v6018_v8 }
0x15a5   : > { %v6024_v15 = vpop.permute.xlu1 %6023 }
0x15a6   : > { %6056 = vst.msk [vmem:[#allocation2 + $0x48] sm:$0xff] %vm2824_vm7, %v6024_v15 }
0x15a7   : > { %v6022_v61 = vpop.permute.xlu0 %6021 }
0x15a8   : > { %6055 = vst.msk [vmem:[#allocation2 + $0x40] sm:$0xff] %vm2824_vm7, %v6022_v61  ;;  %v14201_v61 = vld [vmem:[#allocation21_spill] sm:$0xff] }
0x15a9   : > { %v6028_v1 = vpop.permute.xlu1 %6027 }
0x15aa   : > { %6058 = vst.msk [vmem:[#allocation2 + $0x58] sm:$0xff] %vm2824_vm7, %v6028_v1 }
0x15ab   : > { %v6026_v42 = vpop.permute.xlu0 %6025 }
0x15ac   : > { %6057 = vst.msk [vmem:[#allocation2 + $0x50] sm:$0xff] %vm2824_vm7, %v6026_v42 }
0x15ad   : > { %v6032_v55 = vpop.permute.xlu1 %6031 }
0x15ae   : > { %6060 = vst.msk [vmem:[#allocation2 + $0x68] sm:$0xff] %vm2824_vm7, %v6032_v55 }
0x15af   : > { %v6030_v58 = vpop.permute.xlu0 %6029 }
0x15b0   : > { %6059 = vst.msk [vmem:[#allocation2 + $0x60] sm:$0xff] %vm2824_vm7, %v6030_v58  ;;  %v14202_v58 = vld [vmem:[#allocation23_spill] sm:$0xff] }
0x15bf   : > { %v6629_v49 = vpop.permute.xlu1 %6628 }
0x15c0   : > { %6669 = vst.msk [vmem:[#allocation2 + $0x8] sm:$0xff] %vm3543_vm8, %v6629_v49 }
0x15c1   : > { %v6627_v29 = vpop.permute.xlu0 %6626 }
0x15c2   : > { %6668 = vst.msk [vmem:[#allocation2] sm:$0xff] %vm3543_vm8, %v6627_v29 }
0x15c3   : > { %v6633_v45 = vpop.permute.xlu1 %6632 }
0x15c4   : > { %6671 = vst.msk [vmem:[#allocation2 + $0x18] sm:$0xff] %vm3543_vm8, %v6633_v45 }
0x15c5   : > { %v6631_v62 = vpop.permute.xlu0 %6630 }
0x15c6   : > { %6670 = vst.msk [vmem:[#allocation2 + $0x10] sm:$0xff] %vm3543_vm8, %v6631_v62 }
0x15c7   : > { %v6637_v59 = vpop.permute.xlu1 %6636  ;;  %v6683_v52 = vld [vmem:[#allocation2 + $0x8] sm:$0xff] }
0x15c8   : > { %6673 = vst.msk [vmem:[#allocation2 + $0x28] sm:$0xff] %vm3543_vm8, %v6637_v59 }
0x15c9   : > { %v6635_v35 = vpop.permute.xlu0 %6634  ;;  %v6682_v3 = vld [vmem:[#allocation2] sm:$0xff] }
0x15ca   : > { %6672 = vst.msk [vmem:[#allocation2 + $0x20] sm:$0xff] %vm3543_vm8, %v6635_v35  ;;  %9672 = vmatprep.mubr.msk.f32.mxu1 %vm569_vm3, %v6682_v3  ;;  %v14203_v35 = vld [vmem:[#allocation22_spill] sm:$0xff] }
0x15cb   : > { %9673 = vmatmul.mubr.msk.f32.vlgmr.msra.gmra.mxu1 %vm569_vm3, %v6683_v52  ;;  %v6641_v48 = vpop.permute.xlu1 %6640  ;;  %v6685_v40 = vld [vmem:[#allocation2 + $0x18] sm:$0xff]  ;;  %v14204_v52 = vld [vmem:[#allocation25_spill] sm:$0xff] }
0x15cc   : > { %6675 = vst.msk [vmem:[#allocation2 + $0x38] sm:$0xff] %vm3543_vm8, %v6641_v48 }
0x15cd   : > { %v6639_v31 = vpop.permute.xlu0 %6638  ;;  %v6684_v19 = vld [vmem:[#allocation2 + $0x10] sm:$0xff] }
0x15ce   : > { %6674 = vst.msk [vmem:[#allocation2 + $0x30] sm:$0xff] %vm3543_vm8, %v6639_v31  ;;  %9675 = vmatprep.mubr.msk.f32.mxu1 %vm569_vm3, %v6684_v19 }
0x15cf   : > { %9676 = vmatmul.mubr.msk.f32.gmra.mxu1 %vm569_vm3, %v6685_v40  ;;  %v6645_v43 = vpop.permute.xlu1 %6644  ;;  %v6687_v23 = vld [vmem:[#allocation2 + $0x28] sm:$0xff] }
0x15d0   : > { %6677 = vst.msk [vmem:[#allocation2 + $0x48] sm:$0xff] %vm3543_vm8, %v6645_v43 }
0x15d1   : > { %v6643_v33 = vpop.permute.xlu0 %6642  ;;  %v6686_v39 = vld [vmem:[#allocation2 + $0x20] sm:$0xff] }
0x15d2   : > { %6676 = vst.msk [vmem:[#allocation2 + $0x40] sm:$0xff] %vm3543_vm8, %v6643_v33  ;;  %9678 = vmatprep.mubr.msk.f32.mxu1 %vm569_vm3, %v6686_v39 }
0x15d3   : > { %9679 = vmatmul.mubr.msk.f32.gmra.mxu1 %vm569_vm3, %v6687_v23  ;;  %v6649_v41 = vpop.permute.xlu1 %6648  ;;  %v6689_v4 = vld [vmem:[#allocation2 + $0x38] sm:$0xff] }
0x15d4   : > { %6679 = vst.msk [vmem:[#allocation2 + $0x58] sm:$0xff] %vm3543_vm8, %v6649_v41  ;;  %v14205_v23 = vld [vmem:[#allocation24_spill] sm:$0xff] }
0x15d5   : > { %v6647_v63 = vpop.permute.xlu0 %6646  ;;  %v6688_v5 = vld [vmem:[#allocation2 + $0x30] sm:$0xff] }
0x15d6   : > { %6678 = vst.msk [vmem:[#allocation2 + $0x50] sm:$0xff] %vm3543_vm8, %v6647_v63  ;;  %9681 = vmatprep.mubr.msk.f32.mxu1 %vm569_vm3, %v6688_v5 }
0x15d7   : > { %9682 = vmatmul.mubr.msk.f32.gmra.mxu1 %vm569_vm3, %v6689_v4  ;;  %v6653_v25 = vpop.permute.xlu1 %6652  ;;  %v6691_v26 = vld [vmem:[#allocation2 + $0x48] sm:$0xff]  ;;  %v14206_v4 = vld [vmem:[#allocation27_spill] sm:$0xff] }
0x15d8   : > { %6681 = vst.msk [vmem:[#allocation2 + $0x68] sm:$0xff] %vm3543_vm8, %v6653_v25 }
0x15d9   : > { %v6651_v28 = vpop.permute.xlu0 %6650  ;;  %v6690_v44 = vld [vmem:[#allocation2 + $0x40] sm:$0xff] }
0x15da   : > { %6680 = vst.msk [vmem:[#allocation2 + $0x60] sm:$0xff] %vm3543_vm8, %v6651_v28  ;;  %9684 = vmatprep.mubr.msk.f32.mxu1 %vm569_vm3, %v6690_v44 }
0x15db   : > { %9685 = vmatmul.mubr.msk.f32.gmra.mxu1 %vm569_vm3, %v6691_v26  ;;  %v6693_v57 = vld [vmem:[#allocation2 + $0x58] sm:$0xff] }
0x15dd   : > { %v6692_v60 = vld [vmem:[#allocation2 + $0x50] sm:$0xff] }
0x15de   : > { %9687 = vmatprep.mubr.msk.f32.mxu1 %vm569_vm3, %v6692_v60  ;;  %v14207_v60 = vld [vmem:[#allocation26_spill] sm:$0xff] }
0x15df   : > { %9688 = vmatmul.mubr.msk.f32.gmra.mxu1 %vm569_vm3, %v6693_v57  ;;  %v6695_v10 = vld [vmem:[#allocation2 + $0x68] sm:$0xff] }
0x15e1   : > { %v6694_v17 = vld [vmem:[#allocation2 + $0x60] sm:$0xff] }
0x15e2   : > { %9690 = vmatprep.mubr.msk.f32.mxu1 %vm569_vm3, %v6694_v17  ;;  %v14208_v17 = vld [vmem:[#allocation29_spill] sm:$0xff] }
0x15e3   : > { %9691 = vmatmul.mubr.msk.f32.gmra.mxu1 %vm569_vm3, %v6695_v10 }
0x168b   : > { %v9674_v37 = vpop.f32.mrf.mxu1 }
0x168c   : > { %v6814_v50 = vadd.f32 %v9674_v37, %v8373_v53 }
0x168d   : > { %v6808_v14 = vpop.f32.mrf.mxu1 }
0x168e   : > { %v13495_v56 = vadd.f32 %v6814_v50, %v12396_v32  ;;  %v6809_v11 = vadd.f32 %v8373_v53, %v6808_v14 }
0x168f   : > { %v9677_v7 = vpop.f32.mrf.mxu1 }
0x1690   : > { %v13498_v46 = vadd.f32 %v6809_v11, %v12392_v9  ;;  %v6896_v22 = vsel %vm569_vm3, %v13495_v56, 0.0  ;;  %v6824_v34 = vadd.f32 %v9677_v7, %v8373_v53 }
0x1691   : > { %6897 = vadd.xlane.f32.xlu1 %v6896_v22  ;;  %v6818_v30 = vpop.f32.mrf.mxu1 }
0x1692   : > { %v6819_v20 = vadd.f32 %v8373_v53, %v6818_v30  ;;  %v6893_v6 = vsel %vm569_vm3, %v13498_v46, 0.0  ;;  %v13508_v21 = vadd.f32 %v6824_v34, %v12422_v12 }
0x1693   : > { %6894 = vadd.xlane.f32.xlu0 %v6893_v6  ;;  %v9680_v47 = vpop.f32.mrf.mxu1 }
0x1694   : > { %v13505_v32 = vadd.f32 %v6819_v20, %v12409_v0  ;;  %v6834_v24 = vadd.f32 %v9680_v47, %v8373_v53  ;;  %v6902_v27 = vsel %vm569_vm3, %v13508_v21, 0.0  ;;  %v14200_v0 = vld [vmem:[#allocation20_spill] sm:$0xff] }
0x1695   : > { %v6828_v9 = vpop.f32.mrf.mxu1 }
0x1696   : > { %v6829_v36 = vadd.f32 %v8373_v53, %v6828_v9  ;;  %v6899_v51 = vsel %vm569_vm3, %v13505_v32, 0.0  ;;  %v13518_v13 = vadd.f32 %v6834_v24, %v14200_v0 }
0x1697   : > { %6900 = vadd.xlane.f32.xlu0 %v6899_v51  ;;  %v9683_v38 = vpop.f32.mrf.mxu1 }
0x1698   : > { %v13513_v18 = vadd.f32 %v6829_v36, %v14199_v54  ;;  %v6844_v12 = vadd.f32 %v9683_v38, %v8373_v53  ;;  %v6908_v45 = vsel %vm569_vm3, %v13518_v13, 0.0 }
0x1699   : > { %v6838_v2 = vpop.f32.mrf.mxu1 }
0x169a   : > { %v6839_v16 = vadd.f32 %v8373_v53, %v6838_v2  ;;  %v6905_v8 = vsel %vm569_vm3, %v13513_v18, 0.0  ;;  %v13526_v49 = vadd.f32 %v6844_v12, %v14202_v58 }
0x169b   : > { %6903 = vadd.xlane.f32.xlu0 %v6902_v27  ;;  %6906 = vadd.xlane.f32.xlu1 %v6905_v8  ;;  %v9686_v15 = vpop.f32.mrf.mxu1 }
0x169c   : > { %v13523_v1 = vadd.f32 %v6839_v16, %v14201_v61  ;;  %v6854_v42 = vadd.f32 %v9686_v15, %v8373_v53  ;;  %v6914_v43 = vsel %vm569_vm3, %v13526_v49, 0.0 }
0x169d   : > { %v6848_v55 = vpop.f32.mrf.mxu1 }
0x169e   : > { %v6849_v29 = vadd.f32 %v8373_v53, %v6848_v55  ;;  %v6911_v62 = vsel %vm569_vm3, %v13523_v1, 0.0  ;;  %v13536_v48 = vadd.f32 %v6854_v42, %v14204_v52 }
0x169f   : > { %6909 = vadd.xlane.f32.xlu0 %v6908_v45  ;;  %6912 = vadd.xlane.f32.xlu1 %v6911_v62  ;;  %v9689_v59 = vpop.f32.mrf.mxu1 }
0x16a0   : > { %v13533_v3 = vadd.f32 %v6849_v29, %v14203_v35  ;;  %v6864_v19 = vadd.f32 %v9689_v59, %v8373_v53  ;;  %v6920_v5 = vsel %vm569_vm3, %v13536_v48, 0.0 }
0x16a1   : > { %v6858_v31 = vpop.f32.mrf.mxu1 }
0x16a2   : > { %v6859_v40 = vadd.f32 %v8373_v53, %v6858_v31  ;;  %v6917_v33 = vsel %vm569_vm3, %v13533_v3, 0.0  ;;  %v13548_v25 = vadd.f32 %v6864_v19, %v14206_v4 }
0x16a3   : > { %6915 = vadd.xlane.f32.xlu0 %v6914_v43  ;;  %6918 = vadd.xlane.f32.xlu1 %v6917_v33  ;;  %v9692_v39 = vpop.f32.mrf.mxu1 }
0x16a4   : > { %v13543_v41 = vadd.f32 %v6859_v40, %v14205_v23  ;;  %v6874_v28 = vadd.f32 %v9692_v39, %v8373_v53  ;;  %v6926_v37 = vsel %vm569_vm3, %v13548_v25, 0.0 }
0x16a5   : > { %v6868_v63 = vpop.f32.mrf.mxu1 }
0x16a6   : > { %v6869_v44 = vadd.f32 %v8373_v53, %v6868_v63  ;;  %v6923_v26 = vsel %vm569_vm3, %v13543_v41, 0.0  ;;  %v13556_v10 = vadd.f32 %v6874_v28, %v14208_v17 }
0x16a7   : > { %6921 = vadd.xlane.f32.xlu0 %v6920_v5  ;;  %6924 = vadd.xlane.f32.xlu1 %v6923_v26 }
0x16a8   : > { %v13553_v57 = vadd.f32 %v6869_v44, %v14207_v60  ;;  %v6932_v53 = vsel %vm569_vm3, %v13556_v10, 0.0 }
0x16aa   : > { %v6929_v50 = vsel %vm569_vm3, %v13553_v57, 0.0 }
0x16ab   : > { %6927 = vadd.xlane.f32.xlu0 %v6926_v37  ;;  %6930 = vadd.xlane.f32.xlu1 %v6929_v50 }
0x16af   : > { %6933 = vadd.xlane.f32.xlu0 %v6932_v53 }
0x171a   : > { %v6898_v14 = vpop.xlane.xlu1 %6897 }
0x171b   : > { %v6936_v11 = vmul.f32 0.03125, %v6898_v14 }
0x171c   : > { %v6895_v7 = vpop.xlane.xlu0 %6894 }
0x171d   : > { %v13565_v22 = vsub.f32 %v13495_v56, %v6936_v11  ;;  %v6935_v34 = vmul.f32 0.03125, %v6895_v7 }
0x171f   : > { %v13568_v30 = vsub.f32 %v13498_v46, %v6935_v34  ;;  %v6964_v20 = vmul.f32 %v13565_v22, %v13565_v22 }
0x1720   : > { %v6901_v6 = vpop.xlane.xlu0 %6900 }
0x1721   : > { %v6937_v47 = vmul.f32 0.03125, %v6901_v6  ;;  %v6980_v9 = vsel %vm569_vm3, %v6964_v20, 0.0  ;;  %v6963_v24 = vmul.f32 %v13568_v30, %v13568_v30 }
0x1722   : > { %6981 = vadd.xlane.f32.xlu0 %v6980_v9  ;;  %v7114_v9 = vld [vmem:[%s14089_s2 + $0x148] sm:$0xff] }
0x1723   : > { %v13576_v36 = vsub.f32 %v13505_v32, %v6937_v47  ;;  %v6977_v56 = vsel %vm569_vm3, %v6963_v24, 0.0  ;;  %9693 = vmatprep.subr.mxu0 %v7114_v9  ;;  %v7112_v24 = vld [vmem:[%s14089_s2 + $0x138] sm:$0xff] }
0x1724   : > { %v6904_v51 = vpop.xlane.xlu0 %6903  ;;  %6978 = vadd.xlane.f32.xlu1 %v6977_v56  ;;  %v6907_v46 = vpop.xlane.xlu1 %6906  ;;  %9694 = vmatpush3.msra.mxu0 %v7114_v9  ;;  %v7111_v56 = vld [vmem:[%s14089_s2 + $0x130] sm:$0xff] }
0x1725   : > { %v6938_v38 = vmul.f32 0.03125, %v6904_v51  ;;  %v6939_v54 = vmul.f32 0.03125, %v6907_v46  ;;  %v6965_v2 = vmul.f32 %v13576_v36, %v13576_v36  ;;  %v7318_v51 = vld [vmem:[%s14089_s2 + $0x188] sm:$0xff]  ;;  %v7317_v46 = vld [vmem:[%s14089_s2 + $0x180] sm:$0xff] }
0x1726   : > { %9722 = vmatprep.subr.mxu1 %v7318_v51 }
0x1727   : > { %v13582_v27 = vsub.f32 %v13508_v21, %v6938_v38  ;;  %v13585_v0 = vsub.f32 %v13513_v18, %v6939_v54  ;;  %v6983_v12 = vsel %vm569_vm3, %v6965_v2, 0.0  ;;  %9723 = vmatpush3.msra.mxu1 %v7318_v51  ;;  %v7316_v38 = vld [vmem:[%s14089_s2 + $0x178] sm:$0xff]  ;;  %v7315_v54 = vld [vmem:[%s14089_s2 + $0x170] sm:$0xff] }
0x1728   : > { %v6910_v32 = vpop.xlane.xlu0 %6909  ;;  %6984 = vadd.xlane.f32.xlu1 %v6983_v12  ;;  %v6913_v16 = vpop.xlane.xlu1 %6912  ;;  %9724 = vmatprep.subr.mxu1 %v7317_v46 }
0x1729   : > { %v6940_v8 = vmul.f32 0.03125, %v6910_v32  ;;  %v6941_v15 = vmul.f32 0.03125, %v6913_v16  ;;  %v6966_v61 = vmul.f32 %v13582_v27, %v13582_v27  ;;  %v6967_v42 = vmul.f32 %v13585_v0, %v13585_v0  ;;  %9725 = vmatpush3.msra.mxu1 %v7317_v46 }
0x172a   : > { %9726 = vmatprep.subr.mxu1 %v7316_v38 }
0x172b   : > { %v13593_v55 = vsub.f32 %v13518_v13, %v6940_v8  ;;  %v13596_v21 = vsub.f32 %v13523_v1, %v6941_v15  ;;  %v6986_v18 = vsel %vm569_vm3, %v6966_v61, 0.0  ;;  %v6989_v58 = vsel %vm569_vm3, %v6967_v42, 0.0  ;;  %9727 = vmatpush3.msra.mxu1 %v7316_v38 }
0x172c   : > { %v6916_v29 = vpop.xlane.xlu0 %6915  ;;  %6987 = vadd.xlane.f32.xlu0 %v6986_v18  ;;  %6990 = vadd.xlane.f32.xlu1 %v6989_v58  ;;  %v6919_v45 = vpop.xlane.xlu1 %6918 }
0x172d   : > { %v6942_v62 = vmul.f32 0.03125, %v6916_v29  ;;  %v6943_v59 = vmul.f32 0.03125, %v6919_v45  ;;  %v6968_v35 = vmul.f32 %v13593_v55, %v13593_v55  ;;  %v6969_v13 = vmul.f32 %v13596_v21, %v13596_v21  ;;  %9728 = vmatprep.subr.mxu1 %v7315_v54 }
0x172e   : > { %9729 = vmatpush3.msra.mxu1 %v7315_v54 }
0x172f   : > { %v13605_v52 = vsub.f32 %v13526_v49, %v6942_v62  ;;  %v13608_v1 = vsub.f32 %v13533_v3, %v6943_v59  ;;  %v6992_v31 = vsel %vm569_vm3, %v6968_v35, 0.0  ;;  %v6995_v19 = vsel %vm569_vm3, %v6969_v13, 0.0 }
0x1730   : > { %v6922_v40 = vpop.xlane.xlu0 %6921  ;;  %6993 = vadd.xlane.f32.xlu0 %v6992_v31  ;;  %6996 = vadd.xlane.f32.xlu1 %v6995_v19  ;;  %v6925_v43 = vpop.xlane.xlu1 %6924 }
0x1731   : > { %v6944_v33 = vmul.f32 0.03125, %v6922_v40  ;;  %v6945_v39 = vmul.f32 0.03125, %v6925_v43  ;;  %v6970_v23 = vmul.f32 %v13605_v52, %v13605_v52  ;;  %v6971_v49 = vmul.f32 %v13608_v1, %v13608_v1 }
0x1733   : > { %v13617_v63 = vsub.f32 %v13536_v48, %v6944_v33  ;;  %v13620_v3 = vsub.f32 %v13543_v41, %v6945_v39  ;;  %v6998_v5 = vsel %vm569_vm3, %v6970_v23, 0.0  ;;  %v7001_v4 = vsel %vm569_vm3, %v6971_v49, 0.0 }
0x1734   : > { %v6928_v28 = vpop.xlane.xlu0 %6927  ;;  %6999 = vadd.xlane.f32.xlu0 %v6998_v5  ;;  %7002 = vadd.xlane.f32.xlu1 %v7001_v4  ;;  %v6931_v44 = vpop.xlane.xlu1 %6930  ;;  %v13675_v5 = vld [vmem:[%s14089_s2 + $0x208] ss:$0 sm:$0xff] }
0x1735   : > { %v6946_v26 = vmul.f32 0.03125, %v6928_v28  ;;  %v6947_v60 = vmul.f32 0.03125, %v6931_v44  ;;  %v6972_v17 = vmul.f32 %v13617_v63, %v13617_v63  ;;  %v6973_v48 = vmul.f32 %v13620_v3, %v13620_v3 }
0x1737   : > { %v13629_v37 = vsub.f32 %v13548_v25, %v6946_v26  ;;  %v13632_v41 = vsub.f32 %v13553_v57, %v6947_v60  ;;  %v7004_v50 = vsel %vm569_vm3, %v6972_v17, 0.0  ;;  %v7007_v53 = vsel %vm569_vm3, %v6973_v48, 0.0 }
0x1738   : > { %v6934_v14 = vpop.xlane.xlu0 %6933  ;;  %7005 = vadd.xlane.f32.xlu0 %v7004_v50  ;;  %7008 = vadd.xlane.f32.xlu1 %v7007_v53 }
0x1739   : > { %v6948_v11 = vmul.f32 0.03125, %v6934_v14  ;;  %v6974_v7 = vmul.f32 %v13629_v37, %v13629_v37  ;;  %v6975_v34 = vmul.f32 %v13632_v41, %v13632_v41 }
0x173b   : > { %v13641_v25 = vsub.f32 %v13556_v10, %v6948_v11  ;;  %v7010_v57 = vsel %vm569_vm3, %v6974_v7, 0.0  ;;  %v7013_v20 = vsel %vm569_vm3, %v6975_v34, 0.0  ;;  %v7113_v10 = vld [vmem:[%s14089_s2 + $0x140] sm:$0xff]  ;;  %v13683_v11 = vld [vmem:[%s14089_s2 + $0x210] ss:$0 sm:$0xff] }
0x173c   : > { %7011 = vadd.xlane.f32.xlu0 %v7010_v57  ;;  %7014 = vadd.xlane.f32.xlu1 %v7013_v20 }
0x173d   : > { %v6976_v6 = vmul.f32 %v13641_v25, %v13641_v25  ;;  %9695 = vmatprep.subr.mxu0 %v7113_v10 }
0x173e   : > { %9696 = vmatpush3.msra.mxu0 %v7113_v10 }
0x173f   : > { %v7016_v47 = vsel %vm569_vm3, %v6976_v6, 0.0  ;;  %9697 = vmatprep.subr.mxu0 %v7112_v24 }
0x1740   : > { %7017 = vadd.xlane.f32.xlu0 %v7016_v47  ;;  %9698 = vmatpush3.msra.mxu0 %v7112_v24 }
0x1741   : > { %9699 = vmatprep.subr.mxu0 %v7111_v56 }
0x1742   : > { %9700 = vmatpush3.msra.mxu0 %v7111_v56 }
0x17ab   : > { %v6982_v2 = vpop.xlane.xlu0 %6981 }
0x17ac   : > { %v7020_v12 = vmul.f32 0.03125, %v6982_v2 }
0x17ad   : > { %v6979_v32 = vpop.xlane.xlu1 %6978 }
0x17ae   : > { %v7034_v16 = vadd.f32 1e-05, %v7020_v12  ;;  %v7019_v8 = vmul.f32 0.03125, %v6979_v32 }
0x17b0   : > { %10288 = vrsqrt.f32 %v7034_v16  ;;  %v7033_v15 = vadd.f32 1e-05, %v7019_v8 }
0x17b1   : > { %v6985_v61 = vpop.xlane.xlu1 %6984 }
0x17b2   : > { %10290 = vrsqrt.f32 %v7033_v15  ;;  %v7021_v42 = vmul.f32 0.03125, %v6985_v61 }
0x17b4   : > { %v7035_v18 = vadd.f32 1e-05, %v7021_v42 }
0x17b5   : > { %v6988_v58 = vpop.xlane.xlu0 %6987  ;;  %v6991_v29 = vpop.xlane.xlu1 %6990 }
0x17b6   : > { %10292 = vrsqrt.f32 %v7035_v18  ;;  %v7022_v45 = vmul.f32 0.03125, %v6988_v58  ;;  %v7023_v62 = vmul.f32 0.03125, %v6991_v29 }
0x17b8   : > { %v7036_v59 = vadd.f32 1e-05, %v7022_v45  ;;  %v7037_v35 = vadd.f32 1e-05, %v7023_v62 }
0x17b9   : > { %v6994_v13 = vpop.xlane.xlu0 %6993  ;;  %v6997_v31 = vpop.xlane.xlu1 %6996 }
0x17ba   : > { %10294 = vrsqrt.f32 %v7036_v59  ;;  %v7024_v19 = vmul.f32 0.03125, %v6994_v13  ;;  %v7025_v40 = vmul.f32 0.03125, %v6997_v31 }
0x17bb   : > { %10296 = vrsqrt.f32 %v7037_v35 }
0x17bc   : > { %v7038_v43 = vadd.f32 1e-05, %v7024_v19  ;;  %v7039_v33 = vadd.f32 1e-05, %v7025_v40 }
0x17bd   : > { %v10289_v39 = vpop.eup %10288  ;;  %v7000_v23 = vpop.xlane.xlu0 %6999 }
0x17be   : > { %v7003_v49 = vpop.xlane.xlu1 %7002  ;;  %v7062_v4 = vmul.f32 %v10289_v39, %v13565_v22  ;;  %10298 = vrsqrt.f32 %v7038_v43  ;;  %v7026_v28 = vmul.f32 0.03125, %v7000_v23 }
0x17bf   : > { %v7027_v44 = vmul.f32 0.03125, %v7003_v49  ;;  %v10291_v26 = vpop.eup %10290  ;;  %10300 = vrsqrt.f32 %v7039_v33 }
0x17c0   : > { %v7040_v60 = vadd.f32 1e-05, %v7026_v28  ;;  %v7061_v48 = vmul.f32 %v10291_v26, %v13568_v30  ;;  %v7080_v50 = vmul.f32 %v13675_v5, %v7062_v4 }
0x17c1   : > { %v7041_v17 = vadd.f32 1e-05, %v7027_v44  ;;  %v7006_v53 = vpop.xlane.xlu0 %7005 }
0x17c2   : > { %v7009_v14 = vpop.xlane.xlu1 %7008  ;;  %10302 = vrsqrt.f32 %v7040_v60  ;;  %v7028_v22 = vmul.f32 0.03125, %v7006_v53  ;;  %v7079_v57 = vmul.f32 %v13675_v5, %v7061_v48  ;;  %v13688_v47 = vadd.f32 %v13683_v11, %v7080_v50 }
0x17c3   : > { %v7029_v7 = vmul.f32 0.03125, %v7009_v14  ;;  %v10293_v34 = vpop.eup %10292  ;;  %10304 = vrsqrt.f32 %v7041_v17 }
0x17c4   : > { %v7042_v20 = vadd.f32 1e-05, %v7028_v22  ;;  %v7063_v30 = vmul.f32 %v10293_v34, %v13576_v36  ;;  %v13691_v24 = vadd.f32 %v13683_v11, %v7079_v57  ;;  %v7313_v57 = vld [vmem:[%s14089_s2 + $0x160] sm:$0xff] }
0x17c5   : > { %v7043_v6 = vadd.f32 1e-05, %v7029_v7  ;;  %v7012_v9 = vpop.xlane.xlu0 %7011 }
0x17c6   : > { %v7015_v10 = vpop.xlane.xlu1 %7014  ;;  %10306 = vrsqrt.f32 %v7042_v20  ;;  %v7030_v56 = vmul.f32 0.03125, %v7012_v9  ;;  %v7081_v46 = vmul.f32 %v13675_v5, %v7063_v30  ;;  %9701 = vmatprep.mubr.msk.f32.mxu0 %vm569_vm3, %v13691_v24  ;;  %v8390_v20 = vld [vmem:[%s14089_s2 + $0x1e8] ss:$0 sm:$0xff] }
0x17c7   : > { %v7031_v51 = vmul.f32 0.03125, %v7015_v10  ;;  %v10295_v38 = vpop.eup %10294  ;;  %10308 = vrsqrt.f32 %v7043_v6  ;;  %9702 = vmatmul.mubr.msk.f32.vlgmr.msra.gmra.mxu0 %vm569_vm3, %v13688_v47 }
0x17c8   : > { %v10297_v54 = vpop.eup %10296  ;;  %v7064_v36 = vmul.f32 %v10295_v38, %v13582_v27  ;;  %v7044_v2 = vadd.f32 1e-05, %v7030_v56  ;;  %v13700_v32 = vadd.f32 %v13683_v11, %v7081_v46 }
0x17c9   : > { %v7045_v12 = vadd.f32 1e-05, %v7031_v51  ;;  %v7018_v16 = vpop.xlane.xlu0 %7017  ;;  %v7065_v8 = vmul.f32 %v10297_v54, %v13585_v0 }
0x17ca   : > { %10310 = vrsqrt.f32 %v7044_v2  ;;  %v7032_v15 = vmul.f32 0.03125, %v7018_v16  ;;  %9704 = vmatprep.mubr.msk.f32.mxu0 %vm569_vm3, %v13700_v32  ;;  %v7082_v61 = vmul.f32 %v13675_v5, %v7064_v36 }
0x17cb   : > { %v10299_v42 = vpop.eup %10298  ;;  %10312 = vrsqrt.f32 %v7045_v12  ;;  %v7083_v27 = vmul.f32 %v13675_v5, %v7065_v8 }
0x17cc   : > { %v10301_v18 = vpop.eup %10300  ;;  %v7066_v58 = vmul.f32 %v10299_v42, %v13593_v55  ;;  %v7046_v29 = vadd.f32 1e-05, %v7032_v15  ;;  %v13709_v45 = vadd.f32 %v13683_v11, %v7082_v61 }
0x17cd   : > { %v13712_v0 = vadd.f32 %v13683_v11, %v7083_v27  ;;  %v7067_v62 = vmul.f32 %v10301_v18, %v13596_v21 }
0x17ce   : > { %10314 = vrsqrt.f32 %v7046_v29  ;;  %9705 = vmatmul.mubr.msk.f32.gmra.mxu0 %vm569_vm3, %v13709_v45  ;;  %v7084_v59 = vmul.f32 %v13675_v5, %v7066_v58 }
0x17cf   : > { %v10303_v35 = vpop.eup %10302  ;;  %9707 = vmatprep.mubr.msk.f32.mxu0 %vm569_vm3, %v13712_v0  ;;  %v7085_v55 = vmul.f32 %v13675_v5, %v7067_v62 }
0x17d0   : > { %v10305_v13 = vpop.eup %10304  ;;  %v7068_v31 = vmul.f32 %v10303_v35, %v13605_v52  ;;  %v13723_v19 = vadd.f32 %v13683_v11, %v7084_v59 }
0x17d1   : > { %v13726_v21 = vadd.f32 %v13683_v11, %v7085_v55  ;;  %v7069_v40 = vmul.f32 %v10305_v13, %v13608_v1 }
0x17d2   : > { %9708 = vmatmul.mubr.msk.f32.gmra.mxu0 %vm569_vm3, %v13723_v19  ;;  %v7086_v43 = vmul.f32 %v13675_v5, %v7068_v31 }
0x17d3   : > { %v10307_v33 = vpop.eup %10306  ;;  %9710 = vmatprep.mubr.msk.f32.mxu0 %vm569_vm3, %v13726_v21  ;;  %v7087_v39 = vmul.f32 %v13675_v5, %v7069_v40 }
0x17d4   : > { %v10309_v52 = vpop.eup %10308  ;;  %v7070_v23 = vmul.f32 %v10307_v33, %v13617_v63  ;;  %v13737_v49 = vadd.f32 %v13683_v11, %v7086_v43 }
0x17d5   : > { %v13740_v4 = vadd.f32 %v13683_v11, %v7087_v39  ;;  %v7071_v1 = vmul.f32 %v10309_v52, %v13620_v3 }
0x17d6   : > { %9711 = vmatmul.mubr.msk.f32.gmra.mxu0 %vm569_vm3, %v13737_v49  ;;  %v7088_v28 = vmul.f32 %v13675_v5, %v7070_v23 }
0x17d7   : > { %v10311_v44 = vpop.eup %10310  ;;  %9713 = vmatprep.mubr.msk.f32.mxu0 %vm569_vm3, %v13740_v4  ;;  %v7089_v26 = vmul.f32 %v13675_v5, %v7071_v1 }
0x17d8   : > { %v10313_v63 = vpop.eup %10312  ;;  %v7072_v60 = vmul.f32 %v10311_v44, %v13629_v37  ;;  %v13751_v17 = vadd.f32 %v13683_v11, %v7088_v28 }
0x17d9   : > { %v13754_v48 = vadd.f32 %v13683_v11, %v7089_v26  ;;  %v7073_v3 = vmul.f32 %v10313_v63, %v13632_v41 }
0x17da   : > { %9714 = vmatmul.mubr.msk.f32.gmra.mxu0 %vm569_vm3, %v13751_v17  ;;  %v7090_v50 = vmul.f32 %v13675_v5, %v7072_v60 }
0x17db   : > { %v10315_v53 = vpop.eup %10314  ;;  %9716 = vmatprep.mubr.msk.f32.mxu0 %vm569_vm3, %v13754_v48  ;;  %v7091_v14 = vmul.f32 %v13675_v5, %v7073_v3 }
0x17dc   : > { %v7074_v37 = vmul.f32 %v10315_v53, %v13641_v25  ;;  %v13765_v22 = vadd.f32 %v13683_v11, %v7090_v50  ;;  %v7314_v25 = vld [vmem:[%s14089_s2 + $0x168] sm:$0xff] }
0x17dd   : > { %v13768_v7 = vadd.f32 %v13683_v11, %v7091_v14  ;;  %9730 = vmatprep.subr.mxu1 %v7314_v25  ;;  %v13812_v14 = vld [vmem:[%s14089_s2 + $0x1f0] ss:$0 sm:$0xff] }
0x17de   : > { %9717 = vmatmul.mubr.msk.f32.gmra.mxu0 %vm569_vm3, %v13765_v22  ;;  %v7092_v41 = vmul.f32 %v13675_v5, %v7074_v37  ;;  %9731 = vmatpush3.msra.mxu1 %v7314_v25  ;;  %v7312_v5 = vld [vmem:[%s14089_s2 + $0x158] sm:$0xff] }
0x17df   : > { %9719 = vmatprep.mubr.msk.f32.mxu0 %vm569_vm3, %v13768_v7  ;;  %9732 = vmatprep.subr.mxu1 %v7313_v57 }
0x17e0   : > { %v13776_v34 = vadd.f32 %v13683_v11, %v7092_v41  ;;  %9733 = vmatpush3.msra.mxu1 %v7313_v57  ;;  %v7311_v11 = vld [vmem:[%s14089_s2 + $0x150] sm:$0xff] }
0x17e1   : > { %9734 = vmatprep.subr.mxu1 %v7312_v5 }
0x17e2   : > { %9720 = vmatmul.mubr.msk.f32.gmra.mxu0 %vm569_vm3, %v13776_v34  ;;  %9735 = vmatpush3.msra.mxu1 %v7312_v5 }
0x17e3   : > { %9736 = vmatprep.subr.mxu1 %v7311_v11 }
0x17e4   : > { %9737 = vmatpush3.msra.mxu1 %v7311_v11 }
0x1887   : > { %v9703_v6 = vpop.f32.mrf.mxu0 }
0x1888   : > { %v7234_v30 = vadd.f32 %v9703_v6, %v8390_v20 }
0x1889   : > { %v7228_v9 = vpop.f32.mrf.mxu0 }
0x188a   : > { %v7229_v10 = vadd.f32 %v8390_v20, %v7228_v9  ;;  %v7298_v51 = vmax.f32 %v7234_v30, 0.0 }
0x188c   : > { %v7297_v56 = vmax.f32 %v7229_v10, 0.0 }
0x188e   : > { %v9706_v46 = vpop.f32.mrf.mxu0  ;;  %9738 = vmatprep.mubr.msk.f32.mxu1 %vm7324_vm0, %v7297_v56 }
0x188f   : > { %v7244_v38 = vadd.f32 %v9706_v46, %v8390_v20  ;;  %9739 = vmatmul.mubr.msk.f32.vlgmr.msra.gmra.mxu1 %vm7324_vm0, %v7298_v51 }
0x1890   : > { %v7238_v54 = vpop.f32.mrf.mxu0 }
0x1891   : > { %v7239_v36 = vadd.f32 %v8390_v20, %v7238_v54  ;;  %v7300_v16 = vmax.f32 %v7244_v38, 0.0 }
0x1892   : > { %v9709_v2 = vpop.f32.mrf.mxu0 }
0x1893   : > { %v7299_v12 = vmax.f32 %v7239_v36, 0.0  ;;  %v7254_v8 = vadd.f32 %v9709_v2, %v8390_v20 }
0x1894   : > { %v7248_v15 = vpop.f32.mrf.mxu0 }
0x1895   : > { %v7249_v61 = vadd.f32 %v8390_v20, %v7248_v15  ;;  %9741 = vmatprep.mubr.msk.f32.mxu1 %vm7324_vm0, %v7299_v12  ;;  %v7302_v18 = vmax.f32 %v7254_v8, 0.0 }
0x1896   : > { %v9712_v42 = vpop.f32.mrf.mxu0  ;;  %9742 = vmatmul.mubr.msk.f32.gmra.mxu1 %vm7324_vm0, %v7300_v16 }
0x1897   : > { %v7301_v27 = vmax.f32 %v7249_v61, 0.0  ;;  %v7264_v58 = vadd.f32 %v9712_v42, %v8390_v20 }
0x1898   : > { %v7258_v29 = vpop.f32.mrf.mxu0 }
0x1899   : > { %v7259_v62 = vadd.f32 %v8390_v20, %v7258_v29  ;;  %9744 = vmatprep.mubr.msk.f32.mxu1 %vm7324_vm0, %v7301_v27  ;;  %v7304_v55 = vmax.f32 %v7264_v58, 0.0 }
0x189a   : > { %v9715_v59 = vpop.f32.mrf.mxu0  ;;  %9745 = vmatmul.mubr.msk.f32.gmra.mxu1 %vm7324_vm0, %v7302_v18 }
0x189b   : > { %v7303_v35 = vmax.f32 %v7259_v62, 0.0  ;;  %v7274_v13 = vadd.f32 %v9715_v59, %v8390_v20 }
0x189c   : > { %v7268_v31 = vpop.f32.mrf.mxu0 }
0x189d   : > { %v7269_v40 = vadd.f32 %v8390_v20, %v7268_v31  ;;  %9747 = vmatprep.mubr.msk.f32.mxu1 %vm7324_vm0, %v7303_v35  ;;  %v7306_v39 = vmax.f32 %v7274_v13, 0.0 }
0x189e   : > { %v9718_v43 = vpop.f32.mrf.mxu0  ;;  %9748 = vmatmul.mubr.msk.f32.gmra.mxu1 %vm7324_vm0, %v7304_v55 }
0x189f   : > { %v7305_v33 = vmax.f32 %v7269_v40, 0.0  ;;  %v7284_v52 = vadd.f32 %v9718_v43, %v8390_v20 }
0x18a0   : > { %v7278_v23 = vpop.f32.mrf.mxu0 }
0x18a1   : > { %v7279_v1 = vadd.f32 %v8390_v20, %v7278_v23  ;;  %9750 = vmatprep.mubr.msk.f32.mxu1 %vm7324_vm0, %v7305_v33  ;;  %v7308_v26 = vmax.f32 %v7284_v52, 0.0 }
0x18a2   : > { %v9721_v28 = vpop.f32.mrf.mxu0  ;;  %9751 = vmatmul.mubr.msk.f32.gmra.mxu1 %vm7324_vm0, %v7306_v39 }
0x18a3   : > { %v7307_v44 = vmax.f32 %v7279_v1, 0.0  ;;  %v7294_v63 = vadd.f32 %v9721_v28, %v8390_v20 }
0x18a4   : > { %v7288_v60 = vpop.f32.mrf.mxu0 }
0x18a5   : > { %v7289_v3 = vadd.f32 %v8390_v20, %v7288_v60  ;;  %9753 = vmatprep.mubr.msk.f32.mxu1 %vm7324_vm0, %v7307_v44  ;;  %v7310_v53 = vmax.f32 %v7294_v63, 0.0 }
0x18a6   : > { %9754 = vmatmul.mubr.msk.f32.gmra.mxu1 %vm7324_vm0, %v7308_v26 }
0x18a7   : > { %v7309_v50 = vmax.f32 %v7289_v3, 0.0 }
0x18a9   : > { %9756 = vmatprep.mubr.msk.f32.mxu1 %vm7324_vm0, %v7309_v50 }
0x18aa   : > { %9757 = vmatmul.mubr.msk.f32.gmra.mxu1 %vm7324_vm0, %v7310_v53 }
0x194f   : > { %v9740_v37 = vpop.f32.mrf.mxu1 }
0x1950   : > { %v7439_v41 = vadd.f32 %v9740_v37, %v13812_v14 }
0x1951   : > { %v7433_v25 = vpop.f32.mrf.mxu1 }
0x1952   : > { %v13816_v57 = vadd.f32 %v7439_v41, %v13688_v47  ;;  %v7434_v5 = vadd.f32 %v13812_v14, %v7433_v25 }
0x1954   : > { %v13820_v11 = vadd.f32 %v7434_v5, %v13691_v24  ;;  %v7521_v20 = vsel %vm569_vm3, %v13816_v57, 0.0 }
0x1955   : > { %7522 = vadd.xlane.f32.xlu0 %v7521_v20 }
0x1956   : > { %v9743_v6 = vpop.f32.mrf.mxu1  ;;  %v7518_v9 = vsel %vm569_vm3, %v13820_v11, 0.0 }
0x1957   : > { %v7449_v30 = vadd.f32 %v9743_v6, %v13812_v14  ;;  %7519 = vadd.xlane.f32.xlu1 %v7518_v9 }
0x1958   : > { %v7443_v10 = vpop.f32.mrf.mxu1 }
0x1959   : > { %v13828_v47 = vadd.f32 %v7449_v30, %v13709_v45  ;;  %v7444_v56 = vadd.f32 %v13812_v14, %v7443_v10 }
0x195a   : > { %v9746_v51 = vpop.f32.mrf.mxu1 }
0x195b   : > { %v13832_v24 = vadd.f32 %v7444_v56, %v13700_v32  ;;  %v7459_v46 = vadd.f32 %v9746_v51, %v13812_v14  ;;  %v7527_v38 = vsel %vm569_vm3, %v13828_v47, 0.0 }
0x195c   : > { %7528 = vadd.xlane.f32.xlu0 %v7527_v38  ;;  %v7453_v54 = vpop.f32.mrf.mxu1 }
0x195d   : > { %v13838_v36 = vadd.f32 %v7459_v46, %v13723_v19  ;;  %v7454_v2 = vadd.f32 %v13812_v14, %v7453_v54  ;;  %v7524_v45 = vsel %vm569_vm3, %v13832_v24, 0.0 }
0x195e   : > { %7525 = vadd.xlane.f32.xlu1 %v7524_v45  ;;  %v9749_v12 = vpop.f32.mrf.mxu1 }
0x195f   : > { %v13844_v32 = vadd.f32 %v7454_v2, %v13712_v0  ;;  %v7469_v16 = vadd.f32 %v9749_v12, %v13812_v14  ;;  %v7533_v8 = vsel %vm569_vm3, %v13838_v36, 0.0 }
0x1960   : > { %7534 = vadd.xlane.f32.xlu0 %v7533_v8  ;;  %v7463_v15 = vpop.f32.mrf.mxu1 }
0x1961   : > { %v13850_v19 = vadd.f32 %v7469_v16, %v13737_v49  ;;  %v7464_v61 = vadd.f32 %v13812_v14, %v7463_v15  ;;  %v7530_v42 = vsel %vm569_vm3, %v13844_v32, 0.0 }
0x1962   : > { %7531 = vadd.xlane.f32.xlu1 %v7530_v42  ;;  %v9752_v27 = vpop.f32.mrf.mxu1 }
0x1963   : > { %v13856_v0 = vadd.f32 %v7464_v61, %v13726_v21  ;;  %v7479_v18 = vadd.f32 %v9752_v27, %v13812_v14  ;;  %v7539_v58 = vsel %vm569_vm3, %v13850_v19, 0.0 }
0x1964   : > { %7540 = vadd.xlane.f32.xlu0 %v7539_v58  ;;  %v7473_v29 = vpop.f32.mrf.mxu1 }
0x1965   : > { %v13862_v49 = vadd.f32 %v7479_v18, %v13751_v17  ;;  %v7474_v62 = vadd.f32 %v13812_v14, %v7473_v29  ;;  %v7536_v59 = vsel %vm569_vm3, %v13856_v0, 0.0 }
0x1966   : > { %7537 = vadd.xlane.f32.xlu1 %v7536_v59  ;;  %v9755_v35 = vpop.f32.mrf.mxu1 }
0x1967   : > { %v13868_v21 = vadd.f32 %v7474_v62, %v13740_v4  ;;  %v7489_v55 = vadd.f32 %v9755_v35, %v13812_v14  ;;  %v7545_v13 = vsel %vm569_vm3, %v13862_v49, 0.0 }
0x1968   : > { %7546 = vadd.xlane.f32.xlu0 %v7545_v13  ;;  %v7483_v31 = vpop.f32.mrf.mxu1 }
0x1969   : > { %v13874_v17 = vadd.f32 %v7489_v55, %v13765_v22  ;;  %v7484_v40 = vadd.f32 %v13812_v14, %v7483_v31  ;;  %v7542_v43 = vsel %vm569_vm3, %v13868_v21, 0.0 }
0x196a   : > { %7543 = vadd.xlane.f32.xlu1 %v7542_v43  ;;  %v9758_v33 = vpop.f32.mrf.mxu1 }
0x196b   : > { %v13880_v4 = vadd.f32 %v7484_v40, %v13754_v48  ;;  %v7499_v39 = vadd.f32 %v9758_v33, %v13812_v14  ;;  %v7551_v52 = vsel %vm569_vm3, %v13874_v17, 0.0 }
0x196c   : > { %7552 = vadd.xlane.f32.xlu0 %v7551_v52  ;;  %v7493_v23 = vpop.f32.mrf.mxu1 }
0x196d   : > { %v13886_v22 = vadd.f32 %v7499_v39, %v13776_v34  ;;  %v7494_v1 = vadd.f32 %v13812_v14, %v7493_v23  ;;  %v7548_v28 = vsel %vm569_vm3, %v13880_v4, 0.0 }
0x196e   : > { %7549 = vadd.xlane.f32.xlu1 %v7548_v28 }
0x196f   : > { %v13892_v44 = vadd.f32 %v7494_v1, %v13768_v7  ;;  %v7557_v48 = vsel %vm569_vm3, %v13886_v22, 0.0 }
0x1970   : > { %7558 = vadd.xlane.f32.xlu0 %v7557_v48 }
0x1971   : > { %v7554_v26 = vsel %vm569_vm3, %v13892_v44, 0.0 }
0x1972   : > { %7555 = vadd.xlane.f32.xlu1 %v7554_v26 }
0x19de   : > { %v7523_v63 = vpop.xlane.xlu0 %7522 }
0x19df   : > { %v7561_v34 = vmul.f32 0.03125, %v7523_v63 }
0x19e0   : > { %v7520_v60 = vpop.xlane.xlu1 %7519 }
0x19e1   : > { %v13899_v3 = vsub.f32 %v13816_v57, %v7561_v34  ;;  %v7560_v50 = vmul.f32 0.03125, %v7520_v60 }
0x19e3   : > { %v13902_v53 = vsub.f32 %v13820_v11, %v7560_v50  ;;  %v7589_v7 = vmul.f32 %v13899_v3, %v13899_v3 }
0x19e5   : > { %v7529_v14 = vpop.xlane.xlu0 %7528  ;;  %v7605_v41 = vsel %vm569_vm3, %v7589_v7, 0.0  ;;  %v7588_v25 = vmul.f32 %v13902_v53, %v13902_v53 }
0x19e6   : > { %v7563_v37 = vmul.f32 0.03125, %v7529_v14  ;;  %7606 = vadd.xlane.f32.xlu0 %v7605_v41  ;;  %v7738_v41 = vld [vmem:[%s14089_s2 + $0x1a0] sm:$0xff] }
0x19e7   : > { %v7526_v5 = vpop.xlane.xlu1 %7525  ;;  %v7602_v6 = vsel %vm569_vm3, %v7588_v25, 0.0  ;;  %v7737_v25 = vld [vmem:[%s14089_s2 + $0x198] sm:$0xff] }
0x19e8   : > { %v13910_v20 = vsub.f32 %v13828_v47, %v7563_v37  ;;  %v7562_v57 = vmul.f32 0.03125, %v7526_v5  ;;  %7603 = vadd.xlane.f32.xlu1 %v7602_v6  ;;  %v7736_v5 = vld [vmem:[%s14089_s2 + $0x190] sm:$0xff] }
0x19e9   : > { %v7535_v11 = vpop.xlane.xlu0 %7534 }
0x19ea   : > { %v13914_v30 = vsub.f32 %v13832_v24, %v7562_v57  ;;  %v7565_v9 = vmul.f32 0.03125, %v7535_v11  ;;  %v7591_v10 = vmul.f32 %v13910_v20, %v13910_v20 }
0x19eb   : > { %v7532_v56 = vpop.xlane.xlu1 %7531 }
0x19ec   : > { %v13919_v51 = vsub.f32 %v13838_v36, %v7565_v9  ;;  %v7564_v46 = vmul.f32 0.03125, %v7532_v56  ;;  %v7611_v47 = vsel %vm569_vm3, %v7591_v10, 0.0  ;;  %v7590_v38 = vmul.f32 %v13914_v30, %v13914_v30 }
0x19ed   : > { %v7541_v54 = vpop.xlane.xlu0 %7540  ;;  %7612 = vadd.xlane.f32.xlu0 %v7611_v47 }
0x19ee   : > { %v13925_v2 = vsub.f32 %v13844_v32, %v7564_v46  ;;  %v7567_v24 = vmul.f32 0.03125, %v7541_v54  ;;  %v7608_v45 = vsel %vm569_vm3, %v7590_v38, 0.0  ;;  %v7593_v12 = vmul.f32 %v13919_v51, %v13919_v51 }
0x19ef   : > { %7609 = vadd.xlane.f32.xlu1 %v7608_v45  ;;  %v7538_v36 = vpop.xlane.xlu1 %7537 }
0x19f0   : > { %v13931_v16 = vsub.f32 %v13850_v19, %v7567_v24  ;;  %v7566_v8 = vmul.f32 0.03125, %v7538_v36  ;;  %v7617_v15 = vsel %vm569_vm3, %v7593_v12, 0.0  ;;  %v7592_v61 = vmul.f32 %v13925_v2, %v13925_v2 }
0x19f1   : > { %v7547_v42 = vpop.xlane.xlu0 %7546  ;;  %7618 = vadd.xlane.f32.xlu0 %v7617_v15 }
0x19f2   : > { %v13937_v32 = vsub.f32 %v13856_v0, %v7566_v8  ;;  %v7569_v27 = vmul.f32 0.03125, %v7547_v42  ;;  %v7614_v18 = vsel %vm569_vm3, %v7592_v61, 0.0  ;;  %v7595_v58 = vmul.f32 %v13931_v16, %v13931_v16 }
0x19f3   : > { %7615 = vadd.xlane.f32.xlu1 %v7614_v18  ;;  %v7544_v19 = vpop.xlane.xlu1 %7543 }
0x19f4   : > { %v13943_v29 = vsub.f32 %v13862_v49, %v7569_v27  ;;  %v7568_v62 = vmul.f32 0.03125, %v7544_v19  ;;  %v7623_v59 = vsel %vm569_vm3, %v7595_v58, 0.0  ;;  %v7594_v35 = vmul.f32 %v13937_v32, %v13937_v32 }
0x19f5   : > { %v7553_v55 = vpop.xlane.xlu0 %7552  ;;  %7624 = vadd.xlane.f32.xlu0 %v7623_v59 }
0x19f6   : > { %v13949_v0 = vsub.f32 %v13868_v21, %v7568_v62  ;;  %v7571_v13 = vmul.f32 0.03125, %v7553_v55  ;;  %v7620_v31 = vsel %vm569_vm3, %v7594_v35, 0.0  ;;  %v7597_v40 = vmul.f32 %v13943_v29, %v13943_v29  ;;  %v13997_v55 = vld [vmem:[%s14089_s2 + $0x218] ss:$0 sm:$0xff] }
0x19f7   : > { %7621 = vadd.xlane.f32.xlu1 %v7620_v31  ;;  %v7550_v49 = vpop.xlane.xlu1 %7549 }
0x19f8   : > { %v13955_v43 = vsub.f32 %v13874_v17, %v7571_v13  ;;  %v7570_v33 = vmul.f32 0.03125, %v7550_v49  ;;  %v7629_v39 = vsel %vm569_vm3, %v7597_v40, 0.0  ;;  %v7596_v52 = vmul.f32 %v13949_v0, %v13949_v0 }
0x19f9   : > { %7630 = vadd.xlane.f32.xlu0 %v7629_v39  ;;  %v7559_v21 = vpop.xlane.xlu0 %7558 }
0x19fa   : > { %v13961_v23 = vsub.f32 %v13880_v4, %v7570_v33  ;;  %v7573_v1 = vmul.f32 0.03125, %v7559_v21  ;;  %v7626_v28 = vsel %vm569_vm3, %v7596_v52, 0.0  ;;  %v7599_v48 = vmul.f32 %v13955_v43, %v13955_v43 }
0x19fb   : > { %7627 = vadd.xlane.f32.xlu1 %v7626_v28  ;;  %v7556_v17 = vpop.xlane.xlu1 %7555 }
0x19fc   : > { %v13967_v26 = vsub.f32 %v13886_v22, %v7573_v1  ;;  %v7572_v63 = vmul.f32 0.03125, %v7556_v17  ;;  %v7635_v34 = vsel %vm569_vm3, %v7599_v48, 0.0  ;;  %v7598_v60 = vmul.f32 %v13961_v23, %v13961_v23  ;;  %v14005_v48 = vld [vmem:[%s14089_s2 + $0x220] ss:$0 sm:$0xff] }
0x19fd   : > { %7636 = vadd.xlane.f32.xlu0 %v7635_v34 }
0x19fe   : > { %v13973_v4 = vsub.f32 %v13892_v44, %v7572_v63  ;;  %v7632_v50 = vsel %vm569_vm3, %v7598_v60, 0.0  ;;  %v7601_v7 = vmul.f32 %v13967_v26, %v13967_v26  ;;  %v7739_v44 = vld [vmem:[%s14089_s2 + $0x1a8] sm:$0xff] }
0x19ff   : > { %7633 = vadd.xlane.f32.xlu1 %v7632_v50  ;;  %9759 = vmatprep.subr.mxu0 %v7739_v44 }
0x1a00   : > { %v7641_v14 = vsel %vm569_vm3, %v7601_v7, 0.0  ;;  %v7600_v22 = vmul.f32 %v13973_v4, %v13973_v4  ;;  %9760 = vmatpush3.msra.mxu0 %v7739_v44 }
0x1a01   : > { %7642 = vadd.xlane.f32.xlu0 %v7641_v14  ;;  %9761 = vmatprep.subr.mxu0 %v7738_v41 }
0x1a02   : > { %v7638_v37 = vsel %vm569_vm3, %v7600_v22, 0.0  ;;  %9762 = vmatpush3.msra.mxu0 %v7738_v41 }
0x1a03   : > { %7639 = vadd.xlane.f32.xlu1 %v7638_v37  ;;  %9763 = vmatprep.subr.mxu0 %v7737_v25 }
0x1a04   : > { %9764 = vmatpush3.msra.mxu0 %v7737_v25 }
0x1a05   : > { %9765 = vmatprep.subr.mxu0 %v7736_v5 }
0x1a06   : > { %9766 = vmatpush3.msra.mxu0 %v7736_v5 }
0x1a6f   : > { %v7607_v57 = vpop.xlane.xlu0 %7606 }
0x1a70   : > { %v7645_v6 = vmul.f32 0.03125, %v7607_v57 }
0x1a71   : > { %v7604_v11 = vpop.xlane.xlu1 %7603 }
0x1a72   : > { %v7659_v9 = vadd.f32 1e-05, %v7645_v6  ;;  %v7644_v10 = vmul.f32 0.03125, %v7604_v11 }
0x1a74   : > { %10316 = vrsqrt.f32 %v7659_v9  ;;  %v7658_v56 = vadd.f32 1e-05, %v7644_v10 }
0x1a76   : > { %v7613_v46 = vpop.xlane.xlu0 %7612  ;;  %10318 = vrsqrt.f32 %v7658_v56 }
0x1a77   : > { %v7647_v47 = vmul.f32 0.03125, %v7613_v46 }
0x1a78   : > { %v7610_v38 = vpop.xlane.xlu1 %7609 }
0x1a79   : > { %v7661_v54 = vadd.f32 1e-05, %v7647_v47  ;;  %v7646_v24 = vmul.f32 0.03125, %v7610_v38 }
0x1a7a   : > { %v7619_v45 = vpop.xlane.xlu0 %7618 }
0x1a7b   : > { %10320 = vrsqrt.f32 %v7661_v54  ;;  %v7660_v12 = vadd.f32 1e-05, %v7646_v24  ;;  %v7649_v36 = vmul.f32 0.03125, %v7619_v45 }
0x1a7c   : > { %v7616_v8 = vpop.xlane.xlu1 %7615 }
0x1a7d   : > { %10322 = vrsqrt.f32 %v7660_v12  ;;  %v7663_v15 = vadd.f32 1e-05, %v7649_v36  ;;  %v7648_v61 = vmul.f32 0.03125, %v7616_v8 }
0x1a7e   : > { %v7625_v42 = vpop.xlane.xlu0 %7624 }
0x1a7f   : > { %10324 = vrsqrt.f32 %v7663_v15  ;;  %v7662_v27 = vadd.f32 1e-05, %v7648_v61  ;;  %v7651_v18 = vmul.f32 0.03125, %v7625_v42 }
0x1a80   : > { %v7622_v58 = vpop.xlane.xlu1 %7621 }
0x1a81   : > { %10326 = vrsqrt.f32 %v7662_v27  ;;  %v7665_v19 = vadd.f32 1e-05, %v7651_v18  ;;  %v7650_v62 = vmul.f32 0.03125, %v7622_v58  ;;  %v10317_v59 = vpop.eup %10316 }
0x1a82   : > { %v7631_v35 = vpop.xlane.xlu0 %7630  ;;  %v7687_v13 = vmul.f32 %v10317_v59, %v13899_v3 }
0x1a83   : > { %10328 = vrsqrt.f32 %v7665_v19  ;;  %v7664_v31 = vadd.f32 1e-05, %v7650_v62  ;;  %v7653_v40 = vmul.f32 0.03125, %v7631_v35  ;;  %v10319_v49 = vpop.eup %10318 }
0x1a84   : > { %v7628_v33 = vpop.xlane.xlu1 %7627  ;;  %v7705_v21 = vmul.f32 %v13997_v55, %v7687_v13  ;;  %v7686_v28 = vmul.f32 %v10319_v49, %v13902_v53 }
0x1a85   : > { %10330 = vrsqrt.f32 %v7664_v31  ;;  %v7667_v39 = vadd.f32 1e-05, %v7653_v40  ;;  %v7652_v52 = vmul.f32 0.03125, %v7628_v33 }
0x1a86   : > { %v7637_v1 = vpop.xlane.xlu0 %7636  ;;  %v7704_v60 = vmul.f32 %v13997_v55, %v7686_v28  ;;  %v7723_v53 = vadd.f32 %v14005_v48, %v7705_v21 }
0x1a87   : > { %10332 = vrsqrt.f32 %v7667_v39  ;;  %v7666_v3 = vadd.f32 1e-05, %v7652_v52  ;;  %v7655_v17 = vmul.f32 0.03125, %v7637_v1 }
0x1a88   : > { %v10321_v63 = vpop.eup %10320  ;;  %v7634_v34 = vpop.xlane.xlu1 %7633  ;;  %v7722_v44 = vadd.f32 %v14005_v48, %v7704_v60 }
0x1a89   : > { %v7689_v50 = vmul.f32 %v10321_v63, %v13910_v20  ;;  %10334 = vrsqrt.f32 %v7666_v3  ;;  %v7669_v7 = vadd.f32 1e-05, %v7655_v17  ;;  %v7654_v14 = vmul.f32 0.03125, %v7634_v34 }
0x1a8a   : > { %v10323_v22 = vpop.eup %10322  ;;  %v7643_v37 = vpop.xlane.xlu0 %7642  ;;  %9767 = vmatprep.mubr.msk.f32.mxu0 %vm569_vm3, %v7722_v44 }
0x1a8b   : > { %10336 = vrsqrt.f32 %v7669_v7  ;;  %v7668_v41 = vadd.f32 1e-05, %v7654_v14  ;;  %v7657_v25 = vmul.f32 0.03125, %v7643_v37  ;;  %v7688_v5 = vmul.f32 %v10323_v22, %v13914_v30  ;;  %9768 = vmatmul.mubr.msk.f32.vlgmr.msra.gmra.mxu0 %vm569_vm3, %v7723_v53 }
0x1a8c   : > { %v10325_v57 = vpop.eup %10324  ;;  %v7640_v6 = vpop.xlane.xlu1 %7639  ;;  %v7707_v20 = vmul.f32 %v13997_v55, %v7689_v50 }
0x1a8d   : > { %v7691_v11 = vmul.f32 %v10325_v57, %v13919_v51  ;;  %10338 = vrsqrt.f32 %v7668_v41  ;;  %v7671_v9 = vadd.f32 1e-05, %v7657_v25  ;;  %v7656_v10 = vmul.f32 0.03125, %v7640_v6 }
0x1a8e   : > { %v10327_v56 = vpop.eup %10326  ;;  %v7706_v46 = vmul.f32 %v13997_v55, %v7688_v5  ;;  %v7725_v24 = vadd.f32 %v14005_v48, %v7707_v20 }
0x1a8f   : > { %10340 = vrsqrt.f32 %v7671_v9  ;;  %v7670_v47 = vadd.f32 1e-05, %v7656_v10  ;;  %v7690_v30 = vmul.f32 %v10327_v56, %v13925_v2  ;;  %v7709_v12 = vmul.f32 %v13997_v55, %v7691_v11 }
0x1a90   : > { %v10329_v38 = vpop.eup %10328  ;;  %v7724_v54 = vadd.f32 %v14005_v48, %v7706_v46 }
0x1a91   : > { %v7693_v45 = vmul.f32 %v10329_v38, %v13931_v16  ;;  %10342 = vrsqrt.f32 %v7670_v47  ;;  %v7708_v51 = vmul.f32 %v13997_v55, %v7690_v30  ;;  %v7727_v16 = vadd.f32 %v14005_v48, %v7709_v12 }
0x1a92   : > { %v10331_v36 = vpop.eup %10330  ;;  %9770 = vmatprep.mubr.msk.f32.mxu0 %vm569_vm3, %v7724_v54 }
0x1a93   : > { %9771 = vmatmul.mubr.msk.f32.gmra.mxu0 %vm569_vm3, %v7725_v24  ;;  %v7726_v8 = vadd.f32 %v14005_v48, %v7708_v51  ;;  %v7692_v2 = vmul.f32 %v10331_v36, %v13937_v32  ;;  %v7711_v27 = vmul.f32 %v13997_v55, %v7693_v45 }
0x1a94   : > { %v10333_v15 = vpop.eup %10332 }
0x1a95   : > { %v7695_v61 = vmul.f32 %v10333_v15, %v13943_v29  ;;  %9773 = vmatprep.mubr.msk.f32.mxu0 %vm569_vm3, %v7726_v8  ;;  %v7710_v42 = vmul.f32 %v13997_v55, %v7692_v2  ;;  %v7729_v29 = vadd.f32 %v14005_v48, %v7711_v27 }
0x1a96   : > { %v10335_v18 = vpop.eup %10334 }
0x1a97   : > { %9774 = vmatmul.mubr.msk.f32.gmra.mxu0 %vm569_vm3, %v7727_v16  ;;  %v7728_v58 = vadd.f32 %v14005_v48, %v7710_v42  ;;  %v7694_v19 = vmul.f32 %v10335_v18, %v13949_v0  ;;  %v7713_v35 = vmul.f32 %v13997_v55, %v7695_v61 }
0x1a98   : > { %v10337_v62 = vpop.eup %10336 }
0x1a99   : > { %v7697_v32 = vmul.f32 %v10337_v62, %v13955_v43  ;;  %9776 = vmatprep.mubr.msk.f32.mxu0 %vm569_vm3, %v7728_v58  ;;  %v7712_v59 = vmul.f32 %v13997_v55, %v7694_v19  ;;  %v7731_v43 = vadd.f32 %v14005_v48, %v7713_v35 }
0x1a9a   : > { %v10339_v13 = vpop.eup %10338 }
0x1a9b   : > { %9777 = vmatmul.mubr.msk.f32.gmra.mxu0 %vm569_vm3, %v7729_v29  ;;  %v7730_v31 = vadd.f32 %v14005_v48, %v7712_v59  ;;  %v7696_v40 = vmul.f32 %v10339_v13, %v13961_v23  ;;  %v7715_v39 = vmul.f32 %v13997_v55, %v7697_v32 }
0x1a9c   : > { %v10341_v49 = vpop.eup %10340 }
0x1a9d   : > { %v7699_v0 = vmul.f32 %v10341_v49, %v13967_v26  ;;  %9779 = vmatprep.mubr.msk.f32.mxu0 %vm569_vm3, %v7730_v31  ;;  %v7714_v33 = vmul.f32 %v13997_v55, %v7696_v40  ;;  %v7733_v23 = vadd.f32 %v14005_v48, %v7715_v39 }
0x1a9e   : > { %v10343_v52 = vpop.eup %10342 }
0x1a9f   : > { %9780 = vmatmul.mubr.msk.f32.gmra.mxu0 %vm569_vm3, %v7731_v43  ;;  %v7732_v21 = vadd.f32 %v14005_v48, %v7714_v33  ;;  %v7698_v1 = vmul.f32 %v10343_v52, %v13973_v4  ;;  %v7717_v28 = vmul.f32 %v13997_v55, %v7699_v0  ;;  %v8422_v4 = vld [vmem:[%s14089_s2 + $0x228] ss:$0 sm:$0xff] }
0x1aa1   : > { %9782 = vmatprep.mubr.msk.f32.mxu0 %vm569_vm3, %v7732_v21  ;;  %v7716_v26 = vmul.f32 %v13997_v55, %v7698_v1  ;;  %v7735_v17 = vadd.f32 %v14005_v48, %v7717_v28 }
0x1aa3   : > { %9783 = vmatmul.mubr.msk.f32.gmra.mxu0 %vm569_vm3, %v7733_v23  ;;  %v7734_v3 = vadd.f32 %v14005_v48, %v7716_v26 }
0x1aa5   : > { %9785 = vmatprep.mubr.msk.f32.mxu0 %vm569_vm3, %v7734_v3 }
0x1aa7   : > { %9786 = vmatmul.mubr.msk.f32.gmra.mxu0 %vm569_vm3, %v7735_v17 }
0x1b4b   : > { %v9769_v55 = vpop.f32.mrf.mxu0 }
0x1b4c   : > { %v7859_v63 = vadd.f32 %v9769_v55, %v8422_v4 }
0x1b4d   : > { %v7853_v48 = vpop.f32.mrf.mxu0 }
0x1b4e   : > { %7923 = vst [vmem:[%s14068_s25 + $0x8] sm:$0xff] %v7859_v63  ;;  %v7854_v34 = vadd.f32 %v8422_v4, %v7853_v48 }
0x1b50   : > { %7922 = vst [vmem:[%s14068_s25] sm:$0xff] %v7854_v34 }
0x1b53   : > { %v9772_v60 = vpop.f32.mrf.mxu0 }
0x1b54   : > { %v7869_v50 = vadd.f32 %v9772_v60, %v8422_v4 }
0x1b55   : > { %v7863_v7 = vpop.f32.mrf.mxu0 }
0x1b56   : > { %7925 = vst [vmem:[%s14068_s25 + $0x18] sm:$0xff] %v7869_v50  ;;  %v7864_v14 = vadd.f32 %v8422_v4, %v7863_v7 }
0x1b57   : > { %v9775_v22 = vpop.f32.mrf.mxu0 }
0x1b58   : > { %7924 = vst [vmem:[%s14068_s25 + $0x10] sm:$0xff] %v7864_v14  ;;  %v7879_v53 = vadd.f32 %v9775_v22, %v8422_v4 }
0x1b59   : > { %v7873_v37 = vpop.f32.mrf.mxu0 }
0x1b5a   : > { %7927 = vst [vmem:[%s14068_s25 + $0x28] sm:$0xff] %v7879_v53  ;;  %v7874_v44 = vadd.f32 %v8422_v4, %v7873_v37 }
0x1b5b   : > { %v9778_v41 = vpop.f32.mrf.mxu0 }
0x1b5c   : > { %7926 = vst [vmem:[%s14068_s25 + $0x20] sm:$0xff] %v7874_v44  ;;  %v7889_v25 = vadd.f32 %v9778_v41, %v8422_v4 }
0x1b5d   : > { %v7883_v5 = vpop.f32.mrf.mxu0 }
0x1b5e   : > { %7929 = vst [vmem:[%s14068_s25 + $0x38] sm:$0xff] %v7889_v25  ;;  %v7884_v57 = vadd.f32 %v8422_v4, %v7883_v5 }
0x1b5f   : > { %v9781_v6 = vpop.f32.mrf.mxu0 }
0x1b60   : > { %7928 = vst [vmem:[%s14068_s25 + $0x30] sm:$0xff] %v7884_v57  ;;  %v7899_v20 = vadd.f32 %v9781_v6, %v8422_v4 }
0x1b61   : > { %v7893_v11 = vpop.f32.mrf.mxu0 }
0x1b62   : > { %7931 = vst [vmem:[%s14068_s25 + $0x48] sm:$0xff] %v7899_v20  ;;  %v7894_v9 = vadd.f32 %v8422_v4, %v7893_v11 }
0x1b63   : > { %v9784_v10 = vpop.f32.mrf.mxu0 }
0x1b64   : > { %7930 = vst [vmem:[%s14068_s25 + $0x40] sm:$0xff] %v7894_v9  ;;  %v7909_v56 = vadd.f32 %v9784_v10, %v8422_v4 }
0x1b65   : > { %v7903_v46 = vpop.f32.mrf.mxu0 }
0x1b66   : > { %7933 = vst [vmem:[%s14068_s25 + $0x58] sm:$0xff] %v7909_v56  ;;  %v7904_v47 = vadd.f32 %v8422_v4, %v7903_v46 }
0x1b67   : > { %v9787_v30 = vpop.f32.mrf.mxu0 }
0x1b68   : > { %7932 = vst [vmem:[%s14068_s25 + $0x50] sm:$0xff] %v7904_v47  ;;  %v7919_v38 = vadd.f32 %v9787_v30, %v8422_v4 }
0x1b69   : > { %v7913_v54 = vpop.f32.mrf.mxu0 }
0x1b6a   : > { %7935 = vst [vmem:[%s14068_s25 + $0x68] sm:$0xff] %v7919_v38  ;;  %v7914_v24 = vadd.f32 %v8422_v4, %v7913_v54 }
0x1b6c   : > { %7934 = vst [vmem:[%s14068_s25 + $0x60] sm:$0xff] %v7914_v24 }
0x1b6d PF: > { %s13_s12 = sadd.s32 1, %s10350_s12  }
0x1b6e   : > { %p10_p4 = scmp.ge.s32.totalorder %s13_s12, 4  }
0x1b70   :  { %12 = sbr.rel (!%p10_p4) target bundleno = 1 (0x1), region = 65 }

</bundles_post_ra>
